<compile_context>
chip_gen: v7x
topology: tpu7x:2x2x1
jax: 0.10.0
libtpu: 0.0.40
codegen_flags: <defaults>
</compile_context>

<pallas_src>
import functools

import jax
import jax.numpy as jnp
from jax import lax
from jax.experimental import pallas as pl
from jax.experimental.pallas import tpu as pltpu

LANES = 128                   # lane-padded channel width for conv outputs / FC
CIN1 = 8                      # conv1 input channels padded 1 -> 8 (not 128!)
IH, IW = 32, 32               # input spatial zero-padded 28x28 -> 32x32
C1_ROWS = 26                  # conv1 valid output rows
M1 = C1_ROWS * IW             # 832: M of each conv1 per-tap matmul
P1_H, P1_W = 13, 16           # pooled-1 buffer: 13 valid rows x 16 cols (13 valid)
C2_ROWS = 10                  # conv2 rows needed by the 2x2/2 pool (rows 0..9)
M2 = C2_ROWS * P1_W           # 160: M of each conv2 per-tap matmul
P2_H, P2_W = 5, 8             # pooled-2 buffer: 5 rows x 8 cols (5 valid)
FLAT_K = P2_H * P2_W * LANES  # 5120 flattened features fed to fc1


def _round_up(x, m):
    return ((x + m - 1) // m) * m


# ----------------------------------------------------------------------------
# Fused conv1 + pool1 + conv2 + pool2 kernel (one grid step = `bb` images)
# ----------------------------------------------------------------------------
def _fused_conv_kernel(x_ref, w1_ref, b1_ref, w2_ref, b2_ref, o_ref,
                       acc1_ref, acc2_ref, a1_ref, *, bb):
    """x_ref:  (bb, IH*IW, CIN1)  bf16   row-flattened, zero-padded input
       w1_ref: (9, CIN1, 128)     bf16   conv1 taps (Cout 32 -> 128)
       b1_ref: (1, 128)           f32
       w2_ref: (9, 128, 128)      bf16   conv2 taps (Cin 32 -> 128, Cout 64 -> 128)
       b2_ref: (1, 128)           f32
       o_ref:  (bb, 5, 8, 128)    bf16   pooled conv2 output (valid [:, :5, :5, :64])
       acc1_ref: (M1, 128) f32  acc2_ref: (M2, 128) f32  a1_ref: (208, 128) bf16
    """
    b1 = b1_ref[...]                                  # hoisted, broadcast once
    b2 = b2_ref[...]

    @pl.loop(0, bb)
    def _per_image(b):
        # ---- conv1: ONE large-M matmul per tap, f32 VMEM accumulator -------
        for t in range(9):                            # static unroll over taps
            di, dj = divmod(t, 3)
            lhs = x_ref[b, pl.ds(di * IW + dj, M1), :]        # (832, 8) bf16
            part = jnp.dot(lhs, w1_ref[t], preferred_element_type=jnp.float32)
            if t == 0:
                acc1_ref[...] = part
            else:
                acc1_ref[...] += part

        # ---- 2x2/2 max-pool + bias + ReLU (exact: both commute with max) ---
        # Even/odd strided reads straight from the accumulator -- no extra
        # store/reload round trip.
        for p in range(P1_H):                         # static unroll (13)
            base = 2 * p * IW
            m00 = acc1_ref[pl.ds(base, P1_W, stride=2), :]
            m01 = acc1_ref[pl.ds(base + 1, P1_W, stride=2), :]
            m10 = acc1_ref[pl.ds(base + IW, P1_W, stride=2), :]
            m11 = acc1_ref[pl.ds(base + IW + 1, P1_W, stride=2), :]
            v = jnp.maximum(jnp.maximum(m00, m01), jnp.maximum(m10, m11))
            a1_ref[pl.ds(p * P1_W, P1_W), :] = (
                jnp.maximum(v + b1, 0.0).astype(a1_ref.dtype))

        # ---- conv2: ONE large-M matmul per tap over the pooled-1 buffer ----
        for t in range(9):
            di, dj = divmod(t, 3)
            lhs = a1_ref[pl.ds(di * P1_W + dj, M2), :]        # (160, 128) bf16
            part = jnp.dot(lhs, w2_ref[t], preferred_element_type=jnp.float32)
            if t == 0:
                acc2_ref[...] = part
            else:
                acc2_ref[...] += part

        # ---- pool2 + bias + ReLU, single dense (5, 8, 128) store per image -
        rows = []
        for p in range(P2_H):                         # static unroll (5)
            base = 2 * p * P1_W
            m00 = acc2_ref[pl.ds(base, P2_W, stride=2), :]
            m01 = acc2_ref[pl.ds(base + 1, P2_W, stride=2), :]
            m10 = acc2_ref[pl.ds(base + P1_W, P2_W, stride=2), :]
            m11 = acc2_ref[pl.ds(base + P1_W + 1, P2_W, stride=2), :]
            rows.append(jnp.maximum(jnp.maximum(m00, m01), jnp.maximum(m10, m11)))
        pooled = jnp.stack(rows, axis=0)              # (5, 8, 128) f32
        o_ref[b] = jnp.maximum(pooled + b2, 0.0).astype(o_ref.dtype)


def _pick_block_batch(n):
    # Keep >= 2 grid steps whenever possible (feeds both v7x TensorCores under
    # dimension_semantics=("parallel",)); cap at 8 images/block so the tile
    # stays far under v5e's 16 MiB / v6e-v7x's 32 MiB scoped-VMEM defaults.
    if n >= 16:
        return 8
    return max(1, n // 2)


def fused_convs(xflat, w1p, b1p, w2p, b2p, *, bb):
    n = xflat.shape[0]
    assert n % bb == 0
    kernel = functools.partial(_fused_conv_kernel, bb=bb)
    return pl.pallas_call(
        kernel,
        out_shape=jax.ShapeDtypeStruct((n, P2_H, P2_W, LANES), jnp.bfloat16),
        grid=(n // bb,),
        in_specs=[
            pl.BlockSpec((bb, IH * IW, CIN1), lambda i: (i, 0, 0)),
            pl.BlockSpec((9, CIN1, LANES), lambda i: (0, 0, 0)),
            pl.BlockSpec((1, LANES), lambda i: (0, 0)),
            pl.BlockSpec((9, LANES, LANES), lambda i: (0, 0, 0)),
            pl.BlockSpec((1, LANES), lambda i: (0, 0)),
        ],
        out_specs=pl.BlockSpec((bb, P2_H, P2_W, LANES), lambda i: (i, 0, 0, 0)),
        scratch_shapes=[
            pltpu.VMEM((M1, LANES), jnp.float32),     # conv1 f32 accumulator
            pltpu.VMEM((M2, LANES), jnp.float32),     # conv2 f32 accumulator
            pltpu.VMEM((P1_H * P1_W, LANES), jnp.bfloat16),  # pooled-1 activation
        ],
        compiler_params=pltpu.CompilerParams(
            dimension_semantics=("parallel",)),
    )(xflat, w1p, b1p, w2p, b2p)


# ----------------------------------------------------------------------------
# Fused fc1 + ReLU + fc2 kernel (lane-dense, fixed row tiling)
# ----------------------------------------------------------------------------
def _mlp_head_kernel(x_ref, w3_ref, b3_ref, w4_ref, b4_ref, o_ref):
    h = jnp.dot(x_ref[...], w3_ref[...], preferred_element_type=jnp.float32)
    h = jnp.maximum(h + b3_ref[...], 0.0)
    y = jnp.dot(h.astype(w4_ref.dtype), w4_ref[...],
                preferred_element_type=jnp.float32)
    o_ref[...] = y + b4_ref[...]


def mlp_head(x, w3p, b3p, w4p, b4p):
    """x: (M, 5120) bf16 -> (M, 128) f32 logits (first 10 lanes valid)."""
    m, k = x.shape
    # Fixed, MXU-friendly row tile; tail padded (never one huge (m, K) block).
    tm = 256 if m >= 256 else _round_up(m, 8)
    mpad = _round_up(m, tm)
    if mpad != m:
        x = jnp.pad(x, ((0, mpad - m), (0, 0)))
    n_hidden, n_out = w3p.shape[1], w4p.shape[1]
    out = pl.pallas_call(
        _mlp_head_kernel,
        out_shape=jax.ShapeDtypeStruct((mpad, n_out), jnp.float32),
        grid=(mpad // tm,),
        in_specs=[
            pl.BlockSpec((tm, k), lambda i: (i, 0)),
            pl.BlockSpec((k, n_hidden), lambda i: (0, 0)),
            pl.BlockSpec((1, n_hidden), lambda i: (0, 0)),
            pl.BlockSpec((n_hidden, n_out), lambda i: (0, 0)),
            pl.BlockSpec((1, n_out), lambda i: (0, 0)),
        ],
        out_specs=pl.BlockSpec((tm, n_out), lambda i: (i, 0)),
        compiler_params=pltpu.CompilerParams(
            dimension_semantics=("parallel",)),
    )(x, w3p, b3p, w4p, b4p)
    return out[:m]


# ----------------------------------------------------------------------------
# One-time parameter repack (PyTorch layout -> kernel layout) -- OUTSIDE jit
# ----------------------------------------------------------------------------
def pack_params(params):
    w1, b1, w2, b2, w3, b3, w4, b4 = params

    # conv1: (32, 1, 3, 3) -> (9, 8, 128): tap-major, Cin 1 -> 8, Cout 32 -> 128.
    w1t = jnp.transpose(w1, (2, 3, 1, 0)).reshape(9, 1, 32)
    w1p = (jnp.zeros((9, CIN1, LANES), jnp.float32)
           .at[:, :1, :32].set(w1t).astype(jnp.bfloat16))
    b1p = jnp.zeros((1, LANES), jnp.float32).at[0, :32].set(b1)

    # conv2: (64, 32, 3, 3) -> (9, 128, 128): Cin 32 -> 128, Cout 64 -> 128.
    w2t = jnp.transpose(w2, (2, 3, 1, 0)).reshape(9, 32, 64)
    w2p = (jnp.zeros((9, LANES, LANES), jnp.float32)
           .at[:, :32, :64].set(w2t).astype(jnp.bfloat16))
    b2p = jnp.zeros((1, LANES), jnp.float32).at[0, :64].set(b2)

    # fc1: fold PyTorch's (c, h, w) flatten order + the (h, w_pad=8, c_pad=128)
    # kernel layout into a one-time weight column reorder / zero fill.
    w3r = w3.reshape(128, 64, 5, 5).transpose(0, 2, 3, 1)         # (out, h, w, c)
    w3p = jnp.zeros((128, P2_H, P2_W, LANES), jnp.float32).at[:, :, :5, :64].set(w3r)
    w3p = w3p.reshape(128, FLAT_K).T.astype(jnp.bfloat16)         # (5120, 128)
    b3p = b3.reshape(1, 128).astype(jnp.float32)

    # fc2: pad N = 10 -> 128 so the output block is lane-dense; slice afterwards.
    w4p = (jnp.zeros((128, LANES), jnp.float32)
           .at[:, :10].set(w4.T).astype(jnp.bfloat16))
    b4p = jnp.zeros((1, LANES), jnp.float32).at[0, :10].set(b4)
    return (w1p, b1p, w2p, b2p, w3p, b3p, w4p, b4p)


# ----------------------------------------------------------------------------
# SimpleCNN forward (params already packed outside jit)
# ----------------------------------------------------------------------------
def simple_cnn_forward(x, packed):
    w1p, b1p, w2p, b2p, w3p, b3p, w4p, b4p = packed
    n = x.shape[0]

    # NCHW f32 -> row-flattened NHWC bf16: H, W zero-padded 28 -> 32, Cin 1 -> 8
    # (~16 KB/image instead of the old 128-lane-padded ~200 KB/image).
    xh = jnp.transpose(x, (0, 2, 3, 1))                           # (N, 28, 28, 1)
    xh = jnp.pad(xh, ((0, 0), (0, IH - 28), (0, IW - 28), (0, CIN1 - 1)))
    xflat = xh.astype(jnp.bfloat16).reshape(n, IH * IW, CIN1)

    bb = _pick_block_batch(n)
    npad = _round_up(n, bb)
    if npad != n:
        xflat = jnp.pad(xflat, ((0, npad - n), (0, 0), (0, 0)))

    a2 = fused_convs(xflat, w1p, b1p, w2p, b2p, bb=bb)            # (npad, 5, 8, 128)
    flat = a2.reshape(npad, FLAT_K)                               # contiguous reshape
    logits = mlp_head(flat, w3p, b3p, w4p, b4p)                   # (npad, 128) f32
    return logits[:n, :10]


# ----------------------------------------------------------------------------
# Pure-JAX reference (same bf16-operand / f32-accumulate convention)
# ----------------------------------------------------------------------------
def reference_forward(x, params):
    w1, b1, w2, b2, w3, b3, w4, b4 = params

    def conv_relu(x, w, b):
        dn = lax.conv_dimension_numbers(x.shape, w.shape, ("NCHW", "OIHW", "NCHW"))
        y = lax.conv_general_dilated(
            x.astype(jnp.bfloat16), w.astype(jnp.bfloat16), (1, 1), "VALID",
            dimension_numbers=dn, preferred_element_type=jnp.float32)
        return jnp.maximum(y + b[None, :, None, None], 0.0)

    def pool(x):
        n, c, h, w = x.shape
        x = x[:, :, : (h // 2) * 2, : (w // 2) * 2]
        x = x.reshape(n, c, h // 2, 2, w // 2, 2)
        return x.max(axis=(3, 5))

    x = pool(conv_relu(x, w1, b1))
    x = pool(conv_relu(x, w2, b2))
    x = x.reshape(x.shape[0], -1)
    h = jnp.dot(x.astype(jnp.bfloat16), w3.T.astype(jnp.bfloat16),
                preferred_element_type=jnp.float32) + b3
    h = jnp.maximum(h, 0.0)
    return jnp.dot(h.astype(jnp.bfloat16), w4.T.astype(jnp.bfloat16),
                   preferred_element_type=jnp.float32) + b4


# ----------------------------------------------------------------------------
# Main
# ----------------------------------------------------------------------------
if __name__ == "__main__":
    key = jax.random.PRNGKey(0)
    ks = jax.random.split(key, 9)

    # Deterministic parameter init (shapes from SimpleCNN.__init__).
    w1 = jax.random.normal(ks[0], (32, 1, 3, 3), jnp.float32) * 0.1
    b1 = jax.random.normal(ks[1], (32,), jnp.float32) * 0.1
    w2 = jax.random.normal(ks[2], (64, 32, 3, 3), jnp.float32) * 0.05
    b2 = jax.random.normal(ks[3], (64,), jnp.float32) * 0.05
    w3 = jax.random.normal(ks[4], (128, 64 * 5 * 5), jnp.float32) * 0.02
    b3 = jax.random.normal(ks[5], (128,), jnp.float32) * 0.02
    w4 = jax.random.normal(ks[6], (10, 128), jnp.float32) * 0.05
    b4 = jax.random.normal(ks[7], (10,), jnp.float32) * 0.05
    params = (w1, b1, w2, b2, w3, b3, w4, b4)

    # Repack once, OUTSIDE the jitted forward (feedback: hoist pack_params).
    packed = pack_params(params)

    # Input: the Linear(64*5*5, 128) layer pins the input to (N, 1, 28, 28).
    x = jax.random.normal(ks[8], (2, 1, 28, 28), jnp.float32)

    fwd = jax.jit(simple_cnn_forward)
    out = jax.block_until_ready(fwd(x, packed))
    assert out.shape == (2, 10) and out.dtype == jnp.float32

    ref = jax.block_until_ready(reference_forward(x, params))
    max_err = float(jnp.max(jnp.abs(out - ref)))
    assert jnp.allclose(out, ref, rtol=2e-2, atol=2e-2), (
        f"mismatch: max abs err {max_err}")

    print("KERNEL_OK")
</pallas_src>

<mosaic_0001>
module attributes {stable_mosaic.version = 11 : i64} {
  func.func @_fused_conv_kernel(%arg0: i32, %arg1: memref<1x1024x8xbf16, #tpu.memory_space<vmem>>, %arg2: memref<9x8x128xbf16, #tpu.memory_space<vmem>>, %arg3: memref<1x128xf32, #tpu.memory_space<vmem>>, %arg4: memref<9x128x128xbf16, #tpu.memory_space<vmem>>, %arg5: memref<1x128xf32, #tpu.memory_space<vmem>>, %arg6: memref<1x5x8x128xbf16, #tpu.memory_space<vmem>>, %arg7: memref<832x128xf32, #tpu.memory_space<vmem>>, %arg8: memref<160x128xf32, #tpu.memory_space<vmem>>, %arg9: memref<208x128xbf16, #tpu.memory_space<vmem>>) attributes {dimension_semantics = [#tpu.dimension_semantics<parallel>], iteration_bounds = array<i64: 2>, scalar_prefetch = 0 : i64, scratch_operands = 3 : i64, tpu.core_type = #tpu.core_type<tc>, window_params = [{transform_indices = @transform_0, window_bounds = array<i64: 1, 1024, 8>}, {pipeline_mode = #tpu.pipeline_mode<synchronous>, transform_indices = @transform_1, window_bounds = array<i64: 9, 8, 128>}, {pipeline_mode = #tpu.pipeline_mode<synchronous>, transform_indices = @transform_2, window_bounds = array<i64: 1, 128>}, {pipeline_mode = #tpu.pipeline_mode<synchronous>, transform_indices = @transform_3, window_bounds = array<i64: 9, 128, 128>}, {pipeline_mode = #tpu.pipeline_mode<synchronous>, transform_indices = @transform_4, window_bounds = array<i64: 1, 128>}, {transform_indices = @transform_5, window_bounds = array<i64: 1, 5, 8, 128>}]} {
    %c0 = arith.constant 0 : index
    %c0_0 = arith.constant 0 : index
    %0 = vector.load %arg3[%c0, %c0_0] : memref<1x128xf32, #tpu.memory_space<vmem>>, vector<1x128xf32>
    %c0_1 = arith.constant 0 : index
    %c0_2 = arith.constant 0 : index
    %1 = vector.load %arg5[%c0_1, %c0_2] : memref<1x128xf32, #tpu.memory_space<vmem>>, vector<1x128xf32>
    %c0_i32 = arith.constant 0 : i32
    %c1_i32 = arith.constant 1 : i32
    %2 = arith.muli %c0_i32, %c1_i32 : i32
    %c0_i32_3 = arith.constant 0 : i32
    %3 = arith.addi %c0_i32_3, %2 : i32
    %4 = arith.index_cast %3 : i32 to index
    %c0_4 = arith.constant 0 : index
    %c0_5 = arith.constant 0 : index
    %5 = vector.load %arg1[%4, %c0_4, %c0_5] : memref<1x1024x8xbf16, #tpu.memory_space<vmem>>, vector<1x832x8xbf16>
    %6 = vector.shape_cast %5 : vector<1x832x8xbf16> to vector<832x8xbf16>
    %c0_6 = arith.constant 0 : index
    %c0_7 = arith.constant 0 : index
    %c0_8 = arith.constant 0 : index
    %7 = vector.load %arg2[%c0_6, %c0_7, %c0_8] : memref<9x8x128xbf16, #tpu.memory_space<vmem>>, vector<1x8x128xbf16>
    %8 = vector.shape_cast %7 : vector<1x8x128xbf16> to vector<8x128xbf16>
    %cst = arith.constant dense<0.000000e+00> : vector<832x128xf32>
    %9 = tpu.matmul %6, %8, %cst {dimension_numbers = #tpu.dot_dimension_numbers<[1], [0], [0], [1], [0, 0, 1, 1], [], []>} : vector<832x8xbf16>, vector<8x128xbf16>, vector<832x128xf32> -> vector<832x128xf32>
    %c0_9 = arith.constant 0 : index
    %c0_10 = arith.constant 0 : index
    %10 = vector.load %arg7[%c0_9, %c0_10] : memref<832x128xf32, #tpu.memory_space<vmem>>, vector<832x128xf32>
    tpu.vector_store %arg7[%c0_9, %c0_10], %9 {strides = array<i32>} : memref<832x128xf32, #tpu.memory_space<vmem>>, vector<832x128xf32>,
    %11 = arith.index_cast %3 : i32 to index
    %c1 = arith.constant 1 : index
    %c0_11 = arith.constant 0 : index
    %12 = vector.load %arg1[%11, %c1, %c0_11] : memref<1x1024x8xbf16, #tpu.memory_space<vmem>>, vector<1x832x8xbf16>
    %13 = vector.shape_cast %12 : vector<1x832x8xbf16> to vector<832x8xbf16>
    %c1_12 = arith.constant 1 : index
    %c0_13 = arith.constant 0 : index
    %c0_14 = arith.constant 0 : index
    %14 = vector.load %arg2[%c1_12, %c0_13, %c0_14] : memref<9x8x128xbf16, #tpu.memory_space<vmem>>, vector<1x8x128xbf16>
    %15 = vector.shape_cast %14 : vector<1x8x128xbf16> to vector<8x128xbf16>
    %cst_15 = arith.constant dense<0.000000e+00> : vector<832x128xf32>
    %16 = tpu.matmul %13, %15, %cst_15 {dimension_numbers = #tpu.dot_dimension_numbers<[1], [0], [0], [1], [0, 0, 1, 1], [], []>} : vector<832x8xbf16>, vector<8x128xbf16>, vector<832x128xf32> -> vector<832x128xf32>
    %c0_16 = arith.constant 0 : index
    %c0_17 = arith.constant 0 : index
    %17 = vector.load %arg7[%c0_16, %c0_17] : memref<832x128xf32, #tpu.memory_space<vmem>>, vector<832x128xf32>
    %18 = arith.addf %17, %16 : vector<832x128xf32>
    %c0_18 = arith.constant 0 : index
    %c0_19 = arith.constant 0 : index
    %19 = vector.load %arg7[%c0_18, %c0_19] : memref<832x128xf32, #tpu.memory_space<vmem>>, vector<832x128xf32>
    tpu.vector_store %arg7[%c0_18, %c0_19], %18 {strides = array<i32>} : memref<832x128xf32, #tpu.memory_space<vmem>>, vector<832x128xf32>,
    %20 = arith.index_cast %3 : i32 to index
    %c2 = arith.constant 2 : index
    %c0_20 = arith.constant 0 : index
    %21 = vector.load %arg1[%20, %c2, %c0_20] : memref<1x1024x8xbf16, #tpu.memory_space<vmem>>, vector<1x832x8xbf16>
    %22 = vector.shape_cast %21 : vector<1x832x8xbf16> to vector<832x8xbf16>
    %c2_21 = arith.constant 2 : index
    %c0_22 = arith.constant 0 : index
    %c0_23 = arith.constant 0 : index
    %23 = vector.load %arg2[%c2_21, %c0_22, %c0_23] : memref<9x8x128xbf16, #tpu.memory_space<vmem>>, vector<1x8x128xbf16>
    %24 = vector.shape_cast %23 : vector<1x8x128xbf16> to vector<8x128xbf16>
    %cst_24 = arith.constant dense<0.000000e+00> : vector<832x128xf32>
    %25 = tpu.matmul %22, %24, %cst_24 {dimension_numbers = #tpu.dot_dimension_numbers<[1], [0], [0], [1], [0, 0, 1, 1], [], []>} : vector<832x8xbf16>, vector<8x128xbf16>, vector<832x128xf32> -> vector<832x128xf32>
    %c0_25 = arith.constant 0 : index
    %c0_26 = arith.constant 0 : index
    %26 = vector.load %arg7[%c0_25, %c0_26] : memref<832x128xf32, #tpu.memory_space<vmem>>, vector<832x128xf32>
    %27 = arith.addf %26, %25 : vector<832x128xf32>
    %c0_27 = arith.constant 0 : index
    %c0_28 = arith.constant 0 : index
    %28 = vector.load %arg7[%c0_27, %c0_28] : memref<832x128xf32, #tpu.memory_space<vmem>>, vector<832x128xf32>
    tpu.vector_store %arg7[%c0_27, %c0_28], %27 {strides = array<i32>} : memref<832x128xf32, #tpu.memory_space<vmem>>, vector<832x128xf32>,
    %29 = arith.index_cast %3 : i32 to index
    %c32 = arith.constant 32 : index
    %c0_29 = arith.constant 0 : index
    %30 = vector.load %arg1[%29, %c32, %c0_29] : memref<1x1024x8xbf16, #tpu.memory_space<vmem>>, vector<1x832x8xbf16>
    %31 = vector.shape_cast %30 : vector<1x832x8xbf16> to vector<832x8xbf16>
    %c3 = arith.constant 3 : index
    %c0_30 = arith.constant 0 : index
    %c0_31 = arith.constant 0 : index
    %32 = vector.load %arg2[%c3, %c0_30, %c0_31] : memref<9x8x128xbf16, #tpu.memory_space<vmem>>, vector<1x8x128xbf16>
    %33 = vector.shape_cast %32 : vector<1x8x128xbf16> to vector<8x128xbf16>
    %cst_32 = arith.constant dense<0.000000e+00> : vector<832x128xf32>
    %34 = tpu.matmul %31, %33, %cst_32 {dimension_numbers = #tpu.dot_dimension_numbers<[1], [0], [0], [1], [0, 0, 1, 1], [], []>} : vector<832x8xbf16>, vector<8x128xbf16>, vector<832x128xf32> -> vector<832x128xf32>
    %c0_33 = arith.constant 0 : index
    %c0_34 = arith.constant 0 : index
    %35 = vector.load %arg7[%c0_33, %c0_34] : memref<832x128xf32, #tpu.memory_space<vmem>>, vector<832x128xf32>
    %36 = arith.addf %35, %34 : vector<832x128xf32>
    %c0_35 = arith.constant 0 : index
    %c0_36 = arith.constant 0 : index
    %37 = vector.load %arg7[%c0_35, %c0_36] : memref<832x128xf32, #tpu.memory_space<vmem>>, vector<832x128xf32>
    tpu.vector_store %arg7[%c0_35, %c0_36], %36 {strides = array<i32>} : memref<832x128xf32, #tpu.memory_space<vmem>>, vector<832x128xf32>,
    %38 = arith.index_cast %3 : i32 to index
    %c33 = arith.constant 33 : index
    %c0_37 = arith.constant 0 : index
    %39 = vector.load %arg1[%38, %c33, %c0_37] : memref<1x1024x8xbf16, #tpu.memory_space<vmem>>, vector<1x832x8xbf16>
    %40 = vector.shape_cast %39 : vector<1x832x8xbf16> to vector<832x8xbf16>
    %c4 = arith.constant 4 : index
    %c0_38 = arith.constant 0 : index
    %c0_39 = arith.constant 0 : index
    %41 = vector.load %arg2[%c4, %c0_38, %c0_39] : memref<9x8x128xbf16, #tpu.memory_space<vmem>>, vector<1x8x128xbf16>
    %42 = vector.shape_cast %41 : vector<1x8x128xbf16> to vector<8x128xbf16>
    %cst_40 = arith.constant dense<0.000000e+00> : vector<832x128xf32>
    %43 = tpu.matmul %40, %42, %cst_40 {dimension_numbers = #tpu.dot_dimension_numbers<[1], [0], [0], [1], [0, 0, 1, 1], [], []>} : vector<832x8xbf16>, vector<8x128xbf16>, vector<832x128xf32> -> vector<832x128xf32>
    %c0_41 = arith.constant 0 : index
    %c0_42 = arith.constant 0 : index
    %44 = vector.load %arg7[%c0_41, %c0_42] : memref<832x128xf32, #tpu.memory_space<vmem>>, vector<832x128xf32>
    %45 = arith.addf %44, %43 : vector<832x128xf32>
    %c0_43 = arith.constant 0 : index
    %c0_44 = arith.constant 0 : index
    %46 = vector.load %arg7[%c0_43, %c0_44] : memref<832x128xf32, #tpu.memory_space<vmem>>, vector<832x128xf32>
    tpu.vector_store %arg7[%c0_43, %c0_44], %45 {strides = array<i32>} : memref<832x128xf32, #tpu.memory_space<vmem>>, vector<832x128xf32>,
    %47 = arith.index_cast %3 : i32 to index
    %c34 = arith.constant 34 : index
    %c0_45 = arith.constant 0 : index
    %48 = vector.load %arg1[%47, %c34, %c0_45] : memref<1x1024x8xbf16, #tpu.memory_space<vmem>>, vector<1x832x8xbf16>
    %49 = vector.shape_cast %48 : vector<1x832x8xbf16> to vector<832x8xbf16>
    %c5 = arith.constant 5 : index
    %c0_46 = arith.constant 0 : index
    %c0_47 = arith.constant 0 : index
    %50 = vector.load %arg2[%c5, %c0_46, %c0_47] : memref<9x8x128xbf16, #tpu.memory_space<vmem>>, vector<1x8x128xbf16>
    %51 = vector.shape_cast %50 : vector<1x8x128xbf16> to vector<8x128xbf16>
    %cst_48 = arith.constant dense<0.000000e+00> : vector<832x128xf32>
    %52 = tpu.matmul %49, %51, %cst_48 {dimension_numbers = #tpu.dot_dimension_numbers<[1], [0], [0], [1], [0, 0, 1, 1], [], []>} : vector<832x8xbf16>, vector<8x128xbf16>, vector<832x128xf32> -> vector<832x128xf32>
    %c0_49 = arith.constant 0 : index
    %c0_50 = arith.constant 0 : index
    %53 = vector.load %arg7[%c0_49, %c0_50] : memref<832x128xf32, #tpu.memory_space<vmem>>, vector<832x128xf32>
    %54 = arith.addf %53, %52 : vector<832x128xf32>
    %c0_51 = arith.constant 0 : index
    %c0_52 = arith.constant 0 : index
    %55 = vector.load %arg7[%c0_51, %c0_52] : memref<832x128xf32, #tpu.memory_space<vmem>>, vector<832x128xf32>
    tpu.vector_store %arg7[%c0_51, %c0_52], %54 {strides = array<i32>} : memref<832x128xf32, #tpu.memory_space<vmem>>, vector<832x128xf32>,
    %56 = arith.index_cast %3 : i32 to index
    %c64 = arith.constant 64 : index
    %c0_53 = arith.constant 0 : index
    %57 = vector.load %arg1[%56, %c64, %c0_53] : memref<1x1024x8xbf16, #tpu.memory_space<vmem>>, vector<1x832x8xbf16>
    %58 = vector.shape_cast %57 : vector<1x832x8xbf16> to vector<832x8xbf16>
    %c6 = arith.constant 6 : index
    %c0_54 = arith.constant 0 : index
    %c0_55 = arith.constant 0 : index
    %59 = vector.load %arg2[%c6, %c0_54, %c0_55] : memref<9x8x128xbf16, #tpu.memory_space<vmem>>, vector<1x8x128xbf16>
    %60 = vector.shape_cast %59 : vector<1x8x128xbf16> to vector<8x128xbf16>
    %cst_56 = arith.constant dense<0.000000e+00> : vector<832x128xf32>
    %61 = tpu.matmul %58, %60, %cst_56 {dimension_numbers = #tpu.dot_dimension_numbers<[1], [0], [0], [1], [0, 0, 1, 1], [], []>} : vector<832x8xbf16>, vector<8x128xbf16>, vector<832x128xf32> -> vector<832x128xf32>
    %c0_57 = arith.constant 0 : index
    %c0_58 = arith.constant 0 : index
    %62 = vector.load %arg7[%c0_57, %c0_58] : memref<832x128xf32, #tpu.memory_space<vmem>>, vector<832x128xf32>
    %63 = arith.addf %62, %61 : vector<832x128xf32>
    %c0_59 = arith.constant 0 : index
    %c0_60 = arith.constant 0 : index
    %64 = vector.load %arg7[%c0_59, %c0_60] : memref<832x128xf32, #tpu.memory_space<vmem>>, vector<832x128xf32>
    tpu.vector_store %arg7[%c0_59, %c0_60], %63 {strides = array<i32>} : memref<832x128xf32, #tpu.memory_space<vmem>>, vector<832x128xf32>,
    %65 = arith.index_cast %3 : i32 to index
    %c65 = arith.constant 65 : index
    %c0_61 = arith.constant 0 : index
    %66 = vector.load %arg1[%65, %c65, %c0_61] : memref<1x1024x8xbf16, #tpu.memory_space<vmem>>, vector<1x832x8xbf16>
    %67 = vector.shape_cast %66 : vector<1x832x8xbf16> to vector<832x8xbf16>
    %c7 = arith.constant 7 : index
    %c0_62 = arith.constant 0 : index
    %c0_63 = arith.constant 0 : index
    %68 = vector.load %arg2[%c7, %c0_62, %c0_63] : memref<9x8x128xbf16, #tpu.memory_space<vmem>>, vector<1x8x128xbf16>
    %69 = vector.shape_cast %68 : vector<1x8x128xbf16> to vector<8x128xbf16>
    %cst_64 = arith.constant dense<0.000000e+00> : vector<832x128xf32>
    %70 = tpu.matmul %67, %69, %cst_64 {dimension_numbers = #tpu.dot_dimension_numbers<[1], [0], [0], [1], [0, 0, 1, 1], [], []>} : vector<832x8xbf16>, vector<8x128xbf16>, vector<832x128xf32> -> vector<832x128xf32>
    %c0_65 = arith.constant 0 : index
    %c0_66 = arith.constant 0 : index
    %71 = vector.load %arg7[%c0_65, %c0_66] : memref<832x128xf32, #tpu.memory_space<vmem>>, vector<832x128xf32>
    %72 = arith.addf %71, %70 : vector<832x128xf32>
    %c0_67 = arith.constant 0 : index
    %c0_68 = arith.constant 0 : index
    %73 = vector.load %arg7[%c0_67, %c0_68] : memref<832x128xf32, #tpu.memory_space<vmem>>, vector<832x128xf32>
    tpu.vector_store %arg7[%c0_67, %c0_68], %72 {strides = array<i32>} : memref<832x128xf32, #tpu.memory_space<vmem>>, vector<832x128xf32>,
    %74 = arith.index_cast %3 : i32 to index
    %c66 = arith.constant 66 : index
    %c0_69 = arith.constant 0 : index
    %75 = vector.load %arg1[%74, %c66, %c0_69] : memref<1x1024x8xbf16, #tpu.memory_space<vmem>>, vector<1x832x8xbf16>
    %76 = vector.shape_cast %75 : vector<1x832x8xbf16> to vector<832x8xbf16>
    %c8 = arith.constant 8 : index
    %c0_70 = arith.constant 0 : index
    %c0_71 = arith.constant 0 : index
    %77 = vector.load %arg2[%c8, %c0_70, %c0_71] : memref<9x8x128xbf16, #tpu.memory_space<vmem>>, vector<1x8x128xbf16>
    %78 = vector.shape_cast %77 : vector<1x8x128xbf16> to vector<8x128xbf16>
    %cst_72 = arith.constant dense<0.000000e+00> : vector<832x128xf32>
    %79 = tpu.matmul %76, %78, %cst_72 {dimension_numbers = #tpu.dot_dimension_numbers<[1], [0], [0], [1], [0, 0, 1, 1], [], []>} : vector<832x8xbf16>, vector<8x128xbf16>, vector<832x128xf32> -> vector<832x128xf32>
    %c0_73 = arith.constant 0 : index
    %c0_74 = arith.constant 0 : index
    %80 = vector.load %arg7[%c0_73, %c0_74] : memref<832x128xf32, #tpu.memory_space<vmem>>, vector<832x128xf32>
    %81 = arith.addf %80, %79 : vector<832x128xf32>
    %c0_75 = arith.constant 0 : index
    %c0_76 = arith.constant 0 : index
    %82 = vector.load %arg7[%c0_75, %c0_76] : memref<832x128xf32, #tpu.memory_space<vmem>>, vector<832x128xf32>
    tpu.vector_store %arg7[%c0_75, %c0_76], %81 {strides = array<i32>} : memref<832x128xf32, #tpu.memory_space<vmem>>, vector<832x128xf32>,
    %c0_77 = arith.constant 0 : index
    %c0_78 = arith.constant 0 : index
    %83 = tpu.strided_load %arg7[%c0_77, %c0_78] {strides = array<i32: 2, 1>} : memref<832x128xf32, #tpu.memory_space<vmem>>, vector<16x128xf32>
    %c1_79 = arith.constant 1 : index
    %c0_80 = arith.constant 0 : index
    %84 = tpu.strided_load %arg7[%c1_79, %c0_80] {strides = array<i32: 2, 1>} : memref<832x128xf32, #tpu.memory_space<vmem>>, vector<16x128xf32>
    %c32_81 = arith.constant 32 : index
    %c0_82 = arith.constant 0 : index
    %85 = tpu.strided_load %arg7[%c32_81, %c0_82] {strides = array<i32: 2, 1>} : memref<832x128xf32, #tpu.memory_space<vmem>>, vector<16x128xf32>
    %c33_83 = arith.constant 33 : index
    %c0_84 = arith.constant 0 : index
    %86 = tpu.strided_load %arg7[%c33_83, %c0_84] {strides = array<i32: 2, 1>} : memref<832x128xf32, #tpu.memory_space<vmem>>, vector<16x128xf32>
    %87 = arith.maximumf %83, %84 : vector<16x128xf32>
    %88 = arith.maximumf %85, %86 : vector<16x128xf32>
    %89 = arith.maximumf %87, %88 : vector<16x128xf32>
    %90 = vector.broadcast %0 : vector<1x128xf32> to vector<16x128xf32>
    %91 = arith.addf %89, %90 : vector<16x128xf32>
    %cst_85 = arith.constant 0.000000e+00 : f32
    %92 = vector.broadcast %cst_85 : f32 to vector<16x128xf32>
    %93 = arith.maximumf %91, %92 : vector<16x128xf32>
    %94 = arith.truncf %93 : vector<16x128xf32> to vector<16x128xbf16>
    %c0_86 = arith.constant 0 : index
    %c0_87 = arith.constant 0 : index
    %95 = vector.load %arg9[%c0_86, %c0_87] : memref<208x128xbf16, #tpu.memory_space<vmem>>, vector<16x128xbf16>
    tpu.vector_store %arg9[%c0_86, %c0_87], %94 {strides = array<i32>} : memref<208x128xbf16, #tpu.memory_space<vmem>>, vector<16x128xbf16>,
    %c64_88 = arith.constant 64 : index
    %c0_89 = arith.constant 0 : index
    %96 = tpu.strided_load %arg7[%c64_88, %c0_89] {strides = array<i32: 2, 1>} : memref<832x128xf32, #tpu.memory_space<vmem>>, vector<16x128xf32>
    %c65_90 = arith.constant 65 : index
    %c0_91 = arith.constant 0 : index
    %97 = tpu.strided_load %arg7[%c65_90, %c0_91] {strides = array<i32: 2, 1>} : memref<832x128xf32, #tpu.memory_space<vmem>>, vector<16x128xf32>
    %c96 = arith.constant 96 : index
    %c0_92 = arith.constant 0 : index
    %98 = tpu.strided_load %arg7[%c96, %c0_92] {strides = array<i32: 2, 1>} : memref<832x128xf32, #tpu.memory_space<vmem>>, vector<16x128xf32>
    %c97 = arith.constant 97 : index
    %c0_93 = arith.constant 0 : index
    %99 = tpu.strided_load %arg7[%c97, %c0_93] {strides = array<i32: 2, 1>} : memref<832x128xf32, #tpu.memory_space<vmem>>, vector<16x128xf32>
    %100 = arith.maximumf %96, %97 : vector<16x128xf32>
    %101 = arith.maximumf %98, %99 : vector<16x128xf32>
    %102 = arith.maximumf %100, %101 : vector<16x128xf32>
    %103 = vector.broadcast %0 : vector<1x128xf32> to vector<16x128xf32>
    %104 = arith.addf %102, %103 : vector<16x128xf32>
    %cst_94 = arith.constant 0.000000e+00 : f32
    %105 = vector.broadcast %cst_94 : f32 to vector<16x128xf32>
    %106 = arith.maximumf %104, %105 : vector<16x128xf32>
    %107 = arith.truncf %106 : vector<16x128xf32> to vector<16x128xbf16>
    %c16 = arith.constant 16 : index
    %c0_95 = arith.constant 0 : index
    %108 = vector.load %arg9[%c16, %c0_95] : memref<208x128xbf16, #tpu.memory_space<vmem>>, vector<16x128xbf16>
    tpu.vector_store %arg9[%c16, %c0_95], %107 {strides = array<i32>} : memref<208x128xbf16, #tpu.memory_space<vmem>>, vector<16x128xbf16>,
    %c128 = arith.constant 128 : index
    %c0_96 = arith.constant 0 : index
    %109 = tpu.strided_load %arg7[%c128, %c0_96] {strides = array<i32: 2, 1>} : memref<832x128xf32, #tpu.memory_space<vmem>>, vector<16x128xf32>
    %c129 = arith.constant 129 : index
    %c0_97 = arith.constant 0 : index
    %110 = tpu.strided_load %arg7[%c129, %c0_97] {strides = array<i32: 2, 1>} : memref<832x128xf32, #tpu.memory_space<vmem>>, vector<16x128xf32>
    %c160 = arith.constant 160 : index
    %c0_98 = arith.constant 0 : index
    %111 = tpu.strided_load %arg7[%c160, %c0_98] {strides = array<i32: 2, 1>} : memref<832x128xf32, #tpu.memory_space<vmem>>, vector<16x128xf32>
    %c161 = arith.constant 161 : index
    %c0_99 = arith.constant 0 : index
    %112 = tpu.strided_load %arg7[%c161, %c0_99] {strides = array<i32: 2, 1>} : memref<832x128xf32, #tpu.memory_space<vmem>>, vector<16x128xf32>
    %113 = arith.maximumf %109, %110 : vector<16x128xf32>
    %114 = arith.maximumf %111, %112 : vector<16x128xf32>
    %115 = arith.maximumf %113, %114 : vector<16x128xf32>
    %116 = vector.broadcast %0 : vector<1x128xf32> to vector<16x128xf32>
    %117 = arith.addf %115, %116 : vector<16x128xf32>
    %cst_100 = arith.constant 0.000000e+00 : f32
    %118 = vector.broadcast %cst_100 : f32 to vector<16x128xf32>
    %119 = arith.maximumf %117, %118 : vector<16x128xf32>
    %120 = arith.truncf %119 : vector<16x128xf32> to vector<16x128xbf16>
    %c32_101 = arith.constant 32 : index
    %c0_102 = arith.constant 0 : index
    %121 = vector.load %arg9[%c32_101, %c0_102] : memref<208x128xbf16, #tpu.memory_space<vmem>>, vector<16x128xbf16>
    tpu.vector_store %arg9[%c32_101, %c0_102], %120 {strides = array<i32>} : memref<208x128xbf16, #tpu.memory_space<vmem>>, vector<16x128xbf16>,
    %c192 = arith.constant 192 : index
    %c0_103 = arith.constant 0 : index
    %122 = tpu.strided_load %arg7[%c192, %c0_103] {strides = array<i32: 2, 1>} : memref<832x128xf32, #tpu.memory_space<vmem>>, vector<16x128xf32>
    %c193 = arith.constant 193 : index
    %c0_104 = arith.constant 0 : index
    %123 = tpu.strided_load %arg7[%c193, %c0_104] {strides = array<i32: 2, 1>} : memref<832x128xf32, #tpu.memory_space<vmem>>, vector<16x128xf32>
    %c224 = arith.constant 224 : index
    %c0_105 = arith.constant 0 : index
    %124 = tpu.strided_load %arg7[%c224, %c0_105] {strides = array<i32: 2, 1>} : memref<832x128xf32, #tpu.memory_space<vmem>>, vector<16x128xf32>
    %c225 = arith.constant 225 : index
    %c0_106 = arith.constant 0 : index
    %125 = tpu.strided_load %arg7[%c225, %c0_106] {strides = array<i32: 2, 1>} : memref<832x128xf32, #tpu.memory_space<vmem>>, vector<16x128xf32>
    %126 = arith.maximumf %122, %123 : vector<16x128xf32>
    %127 = arith.maximumf %124, %125 : vector<16x128xf32>
    %128 = arith.maximumf %126, %127 : vector<16x128xf32>
    %129 = vector.broadcast %0 : vector<1x128xf32> to vector<16x128xf32>
    %130 = arith.addf %128, %129 : vector<16x128xf32>
    %cst_107 = arith.constant 0.000000e+00 : f32
    %131 = vector.broadcast %cst_107 : f32 to vector<16x128xf32>
    %132 = arith.maximumf %130, %131 : vector<16x128xf32>
    %133 = arith.truncf %132 : vector<16x128xf32> to vector<16x128xbf16>
    %c48 = arith.constant 48 : index
    %c0_108 = arith.constant 0 : index
    %134 = vector.load %arg9[%c48, %c0_108] : memref<208x128xbf16, #tpu.memory_space<vmem>>, vector<16x128xbf16>
    tpu.vector_store %arg9[%c48, %c0_108], %133 {strides = array<i32>} : memref<208x128xbf16, #tpu.memory_space<vmem>>, vector<16x128xbf16>,
    %c256 = arith.constant 256 : index
    %c0_109 = arith.constant 0 : index
    %135 = tpu.strided_load %arg7[%c256, %c0_109] {strides = array<i32: 2, 1>} : memref<832x128xf32, #tpu.memory_space<vmem>>, vector<16x128xf32>
    %c257 = arith.constant 257 : index
    %c0_110 = arith.constant 0 : index
    %136 = tpu.strided_load %arg7[%c257, %c0_110] {strides = array<i32: 2, 1>} : memref<832x128xf32, #tpu.memory_space<vmem>>, vector<16x128xf32>
    %c288 = arith.constant 288 : index
    %c0_111 = arith.constant 0 : index
    %137 = tpu.strided_load %arg7[%c288, %c0_111] {strides = array<i32: 2, 1>} : memref<832x128xf32, #tpu.memory_space<vmem>>, vector<16x128xf32>
    %c289 = arith.constant 289 : index
    %c0_112 = arith.constant 0 : index
    %138 = tpu.strided_load %arg7[%c289, %c0_112] {strides = array<i32: 2, 1>} : memref<832x128xf32, #tpu.memory_space<vmem>>, vector<16x128xf32>
    %139 = arith.maximumf %135, %136 : vector<16x128xf32>
    %140 = arith.maximumf %137, %138 : vector<16x128xf32>
    %141 = arith.maximumf %139, %140 : vector<16x128xf32>
    %142 = vector.broadcast %0 : vector<1x128xf32> to vector<16x128xf32>
    %143 = arith.addf %141, %142 : vector<16x128xf32>
    %cst_113 = arith.constant 0.000000e+00 : f32
    %144 = vector.broadcast %cst_113 : f32 to vector<16x128xf32>
    %145 = arith.maximumf %143, %144 : vector<16x128xf32>
    %146 = arith.truncf %145 : vector<16x128xf32> to vector<16x128xbf16>
    %c64_114 = arith.constant 64 : index
    %c0_115 = arith.constant 0 : index
    %147 = vector.load %arg9[%c64_114, %c0_115] : memref<208x128xbf16, #tpu.memory_space<vmem>>, vector<16x128xbf16>
    tpu.vector_store %arg9[%c64_114, %c0_115], %146 {strides = array<i32>} : memref<208x128xbf16, #tpu.memory_space<vmem>>, vector<16x128xbf16>,
    %c320 = arith.constant 320 : index
    %c0_116 = arith.constant 0 : index
    %148 = tpu.strided_load %arg7[%c320, %c0_116] {strides = array<i32: 2, 1>} : memref<832x128xf32, #tpu.memory_space<vmem>>, vector<16x128xf32>
    %c321 = arith.constant 321 : index
    %c0_117 = arith.constant 0 : index
    %149 = tpu.strided_load %arg7[%c321, %c0_117] {strides = array<i32: 2, 1>} : memref<832x128xf32, #tpu.memory_space<vmem>>, vector<16x128xf32>
    %c352 = arith.constant 352 : index
    %c0_118 = arith.constant 0 : index
    %150 = tpu.strided_load %arg7[%c352, %c0_118] {strides = array<i32: 2, 1>} : memref<832x128xf32, #tpu.memory_space<vmem>>, vector<16x128xf32>
    %c353 = arith.constant 353 : index
    %c0_119 = arith.constant 0 : index
    %151 = tpu.strided_load %arg7[%c353, %c0_119] {strides = array<i32: 2, 1>} : memref<832x128xf32, #tpu.memory_space<vmem>>, vector<16x128xf32>
    %152 = arith.maximumf %148, %149 : vector<16x128xf32>
    %153 = arith.maximumf %150, %151 : vector<16x128xf32>
    %154 = arith.maximumf %152, %153 : vector<16x128xf32>
    %155 = vector.broadcast %0 : vector<1x128xf32> to vector<16x128xf32>
    %156 = arith.addf %154, %155 : vector<16x128xf32>
    %cst_120 = arith.constant 0.000000e+00 : f32
    %157 = vector.broadcast %cst_120 : f32 to vector<16x128xf32>
    %158 = arith.maximumf %156, %157 : vector<16x128xf32>
    %159 = arith.truncf %158 : vector<16x128xf32> to vector<16x128xbf16>
    %c80 = arith.constant 80 : index
    %c0_121 = arith.constant 0 : index
    %160 = vector.load %arg9[%c80, %c0_121] : memref<208x128xbf16, #tpu.memory_space<vmem>>, vector<16x128xbf16>
    tpu.vector_store %arg9[%c80, %c0_121], %159 {strides = array<i32>} : memref<208x128xbf16, #tpu.memory_space<vmem>>, vector<16x128xbf16>,
    %c384 = arith.constant 384 : index
    %c0_122 = arith.constant 0 : index
    %161 = tpu.strided_load %arg7[%c384, %c0_122] {strides = array<i32: 2, 1>} : memref<832x128xf32, #tpu.memory_space<vmem>>, vector<16x128xf32>
    %c385 = arith.constant 385 : index
    %c0_123 = arith.constant 0 : index
    %162 = tpu.strided_load %arg7[%c385, %c0_123] {strides = array<i32: 2, 1>} : memref<832x128xf32, #tpu.memory_space<vmem>>, vector<16x128xf32>
    %c416 = arith.constant 416 : index
    %c0_124 = arith.constant 0 : index
    %163 = tpu.strided_load %arg7[%c416, %c0_124] {strides = array<i32: 2, 1>} : memref<832x128xf32, #tpu.memory_space<vmem>>, vector<16x128xf32>
    %c417 = arith.constant 417 : index
    %c0_125 = arith.constant 0 : index
    %164 = tpu.strided_load %arg7[%c417, %c0_125] {strides = array<i32: 2, 1>} : memref<832x128xf32, #tpu.memory_space<vmem>>, vector<16x128xf32>
    %165 = arith.maximumf %161, %162 : vector<16x128xf32>
    %166 = arith.maximumf %163, %164 : vector<16x128xf32>
    %167 = arith.maximumf %165, %166 : vector<16x128xf32>
    %168 = vector.broadcast %0 : vector<1x128xf32> to vector<16x128xf32>
    %169 = arith.addf %167, %168 : vector<16x128xf32>
    %cst_126 = arith.constant 0.000000e+00 : f32
    %170 = vector.broadcast %cst_126 : f32 to vector<16x128xf32>
    %171 = arith.maximumf %169, %170 : vector<16x128xf32>
    %172 = arith.truncf %171 : vector<16x128xf32> to vector<16x128xbf16>
    %c96_127 = arith.constant 96 : index
    %c0_128 = arith.constant 0 : index
    %173 = vector.load %arg9[%c96_127, %c0_128] : memref<208x128xbf16, #tpu.memory_space<vmem>>, vector<16x128xbf16>
    tpu.vector_store %arg9[%c96_127, %c0_128], %172 {strides = array<i32>} : memref<208x128xbf16, #tpu.memory_space<vmem>>, vector<16x128xbf16>,
    %c448 = arith.constant 448 : index
    %c0_129 = arith.constant 0 : index
    %174 = tpu.strided_load %arg7[%c448, %c0_129] {strides = array<i32: 2, 1>} : memref<832x128xf32, #tpu.memory_space<vmem>>, vector<16x128xf32>
    %c449 = arith.constant 449 : index
    %c0_130 = arith.constant 0 : index
    %175 = tpu.strided_load %arg7[%c449, %c0_130] {strides = array<i32: 2, 1>} : memref<832x128xf32, #tpu.memory_space<vmem>>, vector<16x128xf32>
    %c480 = arith.constant 480 : index
    %c0_131 = arith.constant 0 : index
    %176 = tpu.strided_load %arg7[%c480, %c0_131] {strides = array<i32: 2, 1>} : memref<832x128xf32, #tpu.memory_space<vmem>>, vector<16x128xf32>
    %c481 = arith.constant 481 : index
    %c0_132 = arith.constant 0 : index
    %177 = tpu.strided_load %arg7[%c481, %c0_132] {strides = array<i32: 2, 1>} : memref<832x128xf32, #tpu.memory_space<vmem>>, vector<16x128xf32>
    %178 = arith.maximumf %174, %175 : vector<16x128xf32>
    %179 = arith.maximumf %176, %177 : vector<16x128xf32>
    %180 = arith.maximumf %178, %179 : vector<16x128xf32>
    %181 = vector.broadcast %0 : vector<1x128xf32> to vector<16x128xf32>
    %182 = arith.addf %180, %181 : vector<16x128xf32>
    %cst_133 = arith.constant 0.000000e+00 : f32
    %183 = vector.broadcast %cst_133 : f32 to vector<16x128xf32>
    %184 = arith.maximumf %182, %183 : vector<16x128xf32>
    %185 = arith.truncf %184 : vector<16x128xf32> to vector<16x128xbf16>
    %c112 = arith.constant 112 : index
    %c0_134 = arith.constant 0 : index
    %186 = vector.load %arg9[%c112, %c0_134] : memref<208x128xbf16, #tpu.memory_space<vmem>>, vector<16x128xbf16>
    tpu.vector_store %arg9[%c112, %c0_134], %185 {strides = array<i32>} : memref<208x128xbf16, #tpu.memory_space<vmem>>, vector<16x128xbf16>,
    %c512 = arith.constant 512 : index
    %c0_135 = arith.constant 0 : index
    %187 = tpu.strided_load %arg7[%c512, %c0_135] {strides = array<i32: 2, 1>} : memref<832x128xf32, #tpu.memory_space<vmem>>, vector<16x128xf32>
    %c513 = arith.constant 513 : index
    %c0_136 = arith.constant 0 : index
    %188 = tpu.strided_load %arg7[%c513, %c0_136] {strides = array<i32: 2, 1>} : memref<832x128xf32, #tpu.memory_space<vmem>>, vector<16x128xf32>
    %c544 = arith.constant 544 : index
    %c0_137 = arith.constant 0 : index
    %189 = tpu.strided_load %arg7[%c544, %c0_137] {strides = array<i32: 2, 1>} : memref<832x128xf32, #tpu.memory_space<vmem>>, vector<16x128xf32>
    %c545 = arith.constant 545 : index
    %c0_138 = arith.constant 0 : index
    %190 = tpu.strided_load %arg7[%c545, %c0_138] {strides = array<i32: 2, 1>} : memref<832x128xf32, #tpu.memory_space<vmem>>, vector<16x128xf32>
    %191 = arith.maximumf %187, %188 : vector<16x128xf32>
    %192 = arith.maximumf %189, %190 : vector<16x128xf32>
    %193 = arith.maximumf %191, %192 : vector<16x128xf32>
    %194 = vector.broadcast %0 : vector<1x128xf32> to vector<16x128xf32>
    %195 = arith.addf %193, %194 : vector<16x128xf32>
    %cst_139 = arith.constant 0.000000e+00 : f32
    %196 = vector.broadcast %cst_139 : f32 to vector<16x128xf32>
    %197 = arith.maximumf %195, %196 : vector<16x128xf32>
    %198 = arith.truncf %197 : vector<16x128xf32> to vector<16x128xbf16>
    %c128_140 = arith.constant 128 : index
    %c0_141 = arith.constant 0 : index
    %199 = vector.load %arg9[%c128_140, %c0_141] : memref<208x128xbf16, #tpu.memory_space<vmem>>, vector<16x128xbf16>
    tpu.vector_store %arg9[%c128_140, %c0_141], %198 {strides = array<i32>} : memref<208x128xbf16, #tpu.memory_space<vmem>>, vector<16x128xbf16>,
    %c576 = arith.constant 576 : index
    %c0_142 = arith.constant 0 : index
    %200 = tpu.strided_load %arg7[%c576, %c0_142] {strides = array<i32: 2, 1>} : memref<832x128xf32, #tpu.memory_space<vmem>>, vector<16x128xf32>
    %c577 = arith.constant 577 : index
    %c0_143 = arith.constant 0 : index
    %201 = tpu.strided_load %arg7[%c577, %c0_143] {strides = array<i32: 2, 1>} : memref<832x128xf32, #tpu.memory_space<vmem>>, vector<16x128xf32>
    %c608 = arith.constant 608 : index
    %c0_144 = arith.constant 0 : index
    %202 = tpu.strided_load %arg7[%c608, %c0_144] {strides = array<i32: 2, 1>} : memref<832x128xf32, #tpu.memory_space<vmem>>, vector<16x128xf32>
    %c609 = arith.constant 609 : index
    %c0_145 = arith.constant 0 : index
    %203 = tpu.strided_load %arg7[%c609, %c0_145] {strides = array<i32: 2, 1>} : memref<832x128xf32, #tpu.memory_space<vmem>>, vector<16x128xf32>
    %204 = arith.maximumf %200, %201 : vector<16x128xf32>
    %205 = arith.maximumf %202, %203 : vector<16x128xf32>
    %206 = arith.maximumf %204, %205 : vector<16x128xf32>
    %207 = vector.broadcast %0 : vector<1x128xf32> to vector<16x128xf32>
    %208 = arith.addf %206, %207 : vector<16x128xf32>
    %cst_146 = arith.constant 0.000000e+00 : f32
    %209 = vector.broadcast %cst_146 : f32 to vector<16x128xf32>
    %210 = arith.maximumf %208, %209 : vector<16x128xf32>
    %211 = arith.truncf %210 : vector<16x128xf32> to vector<16x128xbf16>
    %c144 = arith.constant 144 : index
    %c0_147 = arith.constant 0 : index
    %212 = vector.load %arg9[%c144, %c0_147] : memref<208x128xbf16, #tpu.memory_space<vmem>>, vector<16x128xbf16>
    tpu.vector_store %arg9[%c144, %c0_147], %211 {strides = array<i32>} : memref<208x128xbf16, #tpu.memory_space<vmem>>, vector<16x128xbf16>,
    %c640 = arith.constant 640 : index
    %c0_148 = arith.constant 0 : index
    %213 = tpu.strided_load %arg7[%c640, %c0_148] {strides = array<i32: 2, 1>} : memref<832x128xf32, #tpu.memory_space<vmem>>, vector<16x128xf32>
    %c641 = arith.constant 641 : index
    %c0_149 = arith.constant 0 : index
    %214 = tpu.strided_load %arg7[%c641, %c0_149] {strides = array<i32: 2, 1>} : memref<832x128xf32, #tpu.memory_space<vmem>>, vector<16x128xf32>
    %c672 = arith.constant 672 : index
    %c0_150 = arith.constant 0 : index
    %215 = tpu.strided_load %arg7[%c672, %c0_150] {strides = array<i32: 2, 1>} : memref<832x128xf32, #tpu.memory_space<vmem>>, vector<16x128xf32>
    %c673 = arith.constant 673 : index
    %c0_151 = arith.constant 0 : index
    %216 = tpu.strided_load %arg7[%c673, %c0_151] {strides = array<i32: 2, 1>} : memref<832x128xf32, #tpu.memory_space<vmem>>, vector<16x128xf32>
    %217 = arith.maximumf %213, %214 : vector<16x128xf32>
    %218 = arith.maximumf %215, %216 : vector<16x128xf32>
    %219 = arith.maximumf %217, %218 : vector<16x128xf32>
    %220 = vector.broadcast %0 : vector<1x128xf32> to vector<16x128xf32>
    %221 = arith.addf %219, %220 : vector<16x128xf32>
    %cst_152 = arith.constant 0.000000e+00 : f32
    %222 = vector.broadcast %cst_152 : f32 to vector<16x128xf32>
    %223 = arith.maximumf %221, %222 : vector<16x128xf32>
    %224 = arith.truncf %223 : vector<16x128xf32> to vector<16x128xbf16>
    %c160_153 = arith.constant 160 : index
    %c0_154 = arith.constant 0 : index
    %225 = vector.load %arg9[%c160_153, %c0_154] : memref<208x128xbf16, #tpu.memory_space<vmem>>, vector<16x128xbf16>
    tpu.vector_store %arg9[%c160_153, %c0_154], %224 {strides = array<i32>} : memref<208x128xbf16, #tpu.memory_space<vmem>>, vector<16x128xbf16>,
    %c704 = arith.constant 704 : index
    %c0_155 = arith.constant 0 : index
    %226 = tpu.strided_load %arg7[%c704, %c0_155] {strides = array<i32: 2, 1>} : memref<832x128xf32, #tpu.memory_space<vmem>>, vector<16x128xf32>
    %c705 = arith.constant 705 : index
    %c0_156 = arith.constant 0 : index
    %227 = tpu.strided_load %arg7[%c705, %c0_156] {strides = array<i32: 2, 1>} : memref<832x128xf32, #tpu.memory_space<vmem>>, vector<16x128xf32>
    %c736 = arith.constant 736 : index
    %c0_157 = arith.constant 0 : index
    %228 = tpu.strided_load %arg7[%c736, %c0_157] {strides = array<i32: 2, 1>} : memref<832x128xf32, #tpu.memory_space<vmem>>, vector<16x128xf32>
    %c737 = arith.constant 737 : index
    %c0_158 = arith.constant 0 : index
    %229 = tpu.strided_load %arg7[%c737, %c0_158] {strides = array<i32: 2, 1>} : memref<832x128xf32, #tpu.memory_space<vmem>>, vector<16x128xf32>
    %230 = arith.maximumf %226, %227 : vector<16x128xf32>
    %231 = arith.maximumf %228, %229 : vector<16x128xf32>
    %232 = arith.maximumf %230, %231 : vector<16x128xf32>
    %233 = vector.broadcast %0 : vector<1x128xf32> to vector<16x128xf32>
    %234 = arith.addf %232, %233 : vector<16x128xf32>
    %cst_159 = arith.constant 0.000000e+00 : f32
    %235 = vector.broadcast %cst_159 : f32 to vector<16x128xf32>
    %236 = arith.maximumf %234, %235 : vector<16x128xf32>
    %237 = arith.truncf %236 : vector<16x128xf32> to vector<16x128xbf16>
    %c176 = arith.constant 176 : index
    %c0_160 = arith.constant 0 : index
    %238 = vector.load %arg9[%c176, %c0_160] : memref<208x128xbf16, #tpu.memory_space<vmem>>, vector<16x128xbf16>
    tpu.vector_store %arg9[%c176, %c0_160], %237 {strides = array<i32>} : memref<208x128xbf16, #tpu.memory_space<vmem>>, vector<16x128xbf16>,
    %c768 = arith.constant 768 : index
    %c0_161 = arith.constant 0 : index
    %239 = tpu.strided_load %arg7[%c768, %c0_161] {strides = array<i32: 2, 1>} : memref<832x128xf32, #tpu.memory_space<vmem>>, vector<16x128xf32>
    %c769 = arith.constant 769 : index
    %c0_162 = arith.constant 0 : index
    %240 = tpu.strided_load %arg7[%c769, %c0_162] {strides = array<i32: 2, 1>} : memref<832x128xf32, #tpu.memory_space<vmem>>, vector<16x128xf32>
    %c800 = arith.constant 800 : index
    %c0_163 = arith.constant 0 : index
    %241 = tpu.strided_load %arg7[%c800, %c0_163] {strides = array<i32: 2, 1>} : memref<832x128xf32, #tpu.memory_space<vmem>>, vector<16x128xf32>
    %c801 = arith.constant 801 : index
    %c0_164 = arith.constant 0 : index
    %242 = tpu.strided_load %arg7[%c801, %c0_164] {strides = array<i32: 2, 1>} : memref<832x128xf32, #tpu.memory_space<vmem>>, vector<16x128xf32>
    %243 = arith.maximumf %239, %240 : vector<16x128xf32>
    %244 = arith.maximumf %241, %242 : vector<16x128xf32>
    %245 = arith.maximumf %243, %244 : vector<16x128xf32>
    %246 = vector.broadcast %0 : vector<1x128xf32> to vector<16x128xf32>
    %247 = arith.addf %245, %246 : vector<16x128xf32>
    %cst_165 = arith.constant 0.000000e+00 : f32
    %248 = vector.broadcast %cst_165 : f32 to vector<16x128xf32>
    %249 = arith.maximumf %247, %248 : vector<16x128xf32>
    %250 = arith.truncf %249 : vector<16x128xf32> to vector<16x128xbf16>
    %c192_166 = arith.constant 192 : index
    %c0_167 = arith.constant 0 : index
    %251 = vector.load %arg9[%c192_166, %c0_167] : memref<208x128xbf16, #tpu.memory_space<vmem>>, vector<16x128xbf16>
    tpu.vector_store %arg9[%c192_166, %c0_167], %250 {strides = array<i32>} : memref<208x128xbf16, #tpu.memory_space<vmem>>, vector<16x128xbf16>,
    %c0_168 = arith.constant 0 : index
    %c0_169 = arith.constant 0 : index
    %252 = vector.load %arg9[%c0_168, %c0_169] : memref<208x128xbf16, #tpu.memory_space<vmem>>, vector<160x128xbf16>
    %c0_170 = arith.constant 0 : index
    %c0_171 = arith.constant 0 : index
    %c0_172 = arith.constant 0 : index
    %253 = vector.load %arg4[%c0_170, %c0_171, %c0_172] : memref<9x128x128xbf16, #tpu.memory_space<vmem>>, vector<1x128x128xbf16>
    %254 = vector.shape_cast %253 : vector<1x128x128xbf16> to vector<128x128xbf16>
    %cst_173 = arith.constant dense<0.000000e+00> : vector<160x128xf32>
    %255 = tpu.matmul %252, %254, %cst_173 {dimension_numbers = #tpu.dot_dimension_numbers<[1], [0], [0], [1], [0, 0, 1, 1], [], []>} : vector<160x128xbf16>, vector<128x128xbf16>, vector<160x128xf32> -> vector<160x128xf32>
    %c0_174 = arith.constant 0 : index
    %c0_175 = arith.constant 0 : index
    %256 = vector.load %arg8[%c0_174, %c0_175] : memref<160x128xf32, #tpu.memory_space<vmem>>, vector<160x128xf32>
    tpu.vector_store %arg8[%c0_174, %c0_175], %255 {strides = array<i32>} : memref<160x128xf32, #tpu.memory_space<vmem>>, vector<160x128xf32>,
    %c1_176 = arith.constant 1 : index
    %c0_177 = arith.constant 0 : index
    %257 = vector.load %arg9[%c1_176, %c0_177] : memref<208x128xbf16, #tpu.memory_space<vmem>>, vector<160x128xbf16>
    %c1_178 = arith.constant 1 : index
    %c0_179 = arith.constant 0 : index
    %c0_180 = arith.constant 0 : index
    %258 = vector.load %arg4[%c1_178, %c0_179, %c0_180] : memref<9x128x128xbf16, #tpu.memory_space<vmem>>, vector<1x128x128xbf16>
    %259 = vector.shape_cast %258 : vector<1x128x128xbf16> to vector<128x128xbf16>
    %cst_181 = arith.constant dense<0.000000e+00> : vector<160x128xf32>
    %260 = tpu.matmul %257, %259, %cst_181 {dimension_numbers = #tpu.dot_dimension_numbers<[1], [0], [0], [1], [0, 0, 1, 1], [], []>} : vector<160x128xbf16>, vector<128x128xbf16>, vector<160x128xf32> -> vector<160x128xf32>
    %c0_182 = arith.constant 0 : index
    %c0_183 = arith.constant 0 : index
    %261 = vector.load %arg8[%c0_182, %c0_183] : memref<160x128xf32, #tpu.memory_space<vmem>>, vector<160x128xf32>
    %262 = arith.addf %261, %260 : vector<160x128xf32>
    %c0_184 = arith.constant 0 : index
    %c0_185 = arith.constant 0 : index
    %263 = vector.load %arg8[%c0_184, %c0_185] : memref<160x128xf32, #tpu.memory_space<vmem>>, vector<160x128xf32>
    tpu.vector_store %arg8[%c0_184, %c0_185], %262 {strides = array<i32>} : memref<160x128xf32, #tpu.memory_space<vmem>>, vector<160x128xf32>,
    %c2_186 = arith.constant 2 : index
    %c0_187 = arith.constant 0 : index
    %264 = vector.load %arg9[%c2_186, %c0_187] : memref<208x128xbf16, #tpu.memory_space<vmem>>, vector<160x128xbf16>
    %c2_188 = arith.constant 2 : index
    %c0_189 = arith.constant 0 : index
    %c0_190 = arith.constant 0 : index
    %265 = vector.load %arg4[%c2_188, %c0_189, %c0_190] : memref<9x128x128xbf16, #tpu.memory_space<vmem>>, vector<1x128x128xbf16>
    %266 = vector.shape_cast %265 : vector<1x128x128xbf16> to vector<128x128xbf16>
    %cst_191 = arith.constant dense<0.000000e+00> : vector<160x128xf32>
    %267 = tpu.matmul %264, %266, %cst_191 {dimension_numbers = #tpu.dot_dimension_numbers<[1], [0], [0], [1], [0, 0, 1, 1], [], []>} : vector<160x128xbf16>, vector<128x128xbf16>, vector<160x128xf32> -> vector<160x128xf32>
    %c0_192 = arith.constant 0 : index
    %c0_193 = arith.constant 0 : index
    %268 = vector.load %arg8[%c0_192, %c0_193] : memref<160x128xf32, #tpu.memory_space<vmem>>, vector<160x128xf32>
    %269 = arith.addf %268, %267 : vector<160x128xf32>
    %c0_194 = arith.constant 0 : index
    %c0_195 = arith.constant 0 : index
    %270 = vector.load %arg8[%c0_194, %c0_195] : memref<160x128xf32, #tpu.memory_space<vmem>>, vector<160x128xf32>
    tpu.vector_store %arg8[%c0_194, %c0_195], %269 {strides = array<i32>} : memref<160x128xf32, #tpu.memory_space<vmem>>, vector<160x128xf32>,
    %c16_196 = arith.constant 16 : index
    %c0_197 = arith.constant 0 : index
    %271 = vector.load %arg9[%c16_196, %c0_197] : memref<208x128xbf16, #tpu.memory_space<vmem>>, vector<160x128xbf16>
    %c3_198 = arith.constant 3 : index
    %c0_199 = arith.constant 0 : index
    %c0_200 = arith.constant 0 : index
    %272 = vector.load %arg4[%c3_198, %c0_199, %c0_200] : memref<9x128x128xbf16, #tpu.memory_space<vmem>>, vector<1x128x128xbf16>
    %273 = vector.shape_cast %272 : vector<1x128x128xbf16> to vector<128x128xbf16>
    %cst_201 = arith.constant dense<0.000000e+00> : vector<160x128xf32>
    %274 = tpu.matmul %271, %273, %cst_201 {dimension_numbers = #tpu.dot_dimension_numbers<[1], [0], [0], [1], [0, 0, 1, 1], [], []>} : vector<160x128xbf16>, vector<128x128xbf16>, vector<160x128xf32> -> vector<160x128xf32>
    %c0_202 = arith.constant 0 : index
    %c0_203 = arith.constant 0 : index
    %275 = vector.load %arg8[%c0_202, %c0_203] : memref<160x128xf32, #tpu.memory_space<vmem>>, vector<160x128xf32>
    %276 = arith.addf %275, %274 : vector<160x128xf32>
    %c0_204 = arith.constant 0 : index
    %c0_205 = arith.constant 0 : index
    %277 = vector.load %arg8[%c0_204, %c0_205] : memref<160x128xf32, #tpu.memory_space<vmem>>, vector<160x128xf32>
    tpu.vector_store %arg8[%c0_204, %c0_205], %276 {strides = array<i32>} : memref<160x128xf32, #tpu.memory_space<vmem>>, vector<160x128xf32>,
    %c17 = arith.constant 17 : index
    %c0_206 = arith.constant 0 : index
    %278 = vector.load %arg9[%c17, %c0_206] : memref<208x128xbf16, #tpu.memory_space<vmem>>, vector<160x128xbf16>
    %c4_207 = arith.constant 4 : index
    %c0_208 = arith.constant 0 : index
    %c0_209 = arith.constant 0 : index
    %279 = vector.load %arg4[%c4_207, %c0_208, %c0_209] : memref<9x128x128xbf16, #tpu.memory_space<vmem>>, vector<1x128x128xbf16>
    %280 = vector.shape_cast %279 : vector<1x128x128xbf16> to vector<128x128xbf16>
    %cst_210 = arith.constant dense<0.000000e+00> : vector<160x128xf32>
    %281 = tpu.matmul %278, %280, %cst_210 {dimension_numbers = #tpu.dot_dimension_numbers<[1], [0], [0], [1], [0, 0, 1, 1], [], []>} : vector<160x128xbf16>, vector<128x128xbf16>, vector<160x128xf32> -> vector<160x128xf32>
    %c0_211 = arith.constant 0 : index
    %c0_212 = arith.constant 0 : index
    %282 = vector.load %arg8[%c0_211, %c0_212] : memref<160x128xf32, #tpu.memory_space<vmem>>, vector<160x128xf32>
    %283 = arith.addf %282, %281 : vector<160x128xf32>
    %c0_213 = arith.constant 0 : index
    %c0_214 = arith.constant 0 : index
    %284 = vector.load %arg8[%c0_213, %c0_214] : memref<160x128xf32, #tpu.memory_space<vmem>>, vector<160x128xf32>
    tpu.vector_store %arg8[%c0_213, %c0_214], %283 {strides = array<i32>} : memref<160x128xf32, #tpu.memory_space<vmem>>, vector<160x128xf32>,
    %c18 = arith.constant 18 : index
    %c0_215 = arith.constant 0 : index
    %285 = vector.load %arg9[%c18, %c0_215] : memref<208x128xbf16, #tpu.memory_space<vmem>>, vector<160x128xbf16>
    %c5_216 = arith.constant 5 : index
    %c0_217 = arith.constant 0 : index
    %c0_218 = arith.constant 0 : index
    %286 = vector.load %arg4[%c5_216, %c0_217, %c0_218] : memref<9x128x128xbf16, #tpu.memory_space<vmem>>, vector<1x128x128xbf16>
    %287 = vector.shape_cast %286 : vector<1x128x128xbf16> to vector<128x128xbf16>
    %cst_219 = arith.constant dense<0.000000e+00> : vector<160x128xf32>
    %288 = tpu.matmul %285, %287, %cst_219 {dimension_numbers = #tpu.dot_dimension_numbers<[1], [0], [0], [1], [0, 0, 1, 1], [], []>} : vector<160x128xbf16>, vector<128x128xbf16>, vector<160x128xf32> -> vector<160x128xf32>
    %c0_220 = arith.constant 0 : index
    %c0_221 = arith.constant 0 : index
    %289 = vector.load %arg8[%c0_220, %c0_221] : memref<160x128xf32, #tpu.memory_space<vmem>>, vector<160x128xf32>
    %290 = arith.addf %289, %288 : vector<160x128xf32>
    %c0_222 = arith.constant 0 : index
    %c0_223 = arith.constant 0 : index
    %291 = vector.load %arg8[%c0_222, %c0_223] : memref<160x128xf32, #tpu.memory_space<vmem>>, vector<160x128xf32>
    tpu.vector_store %arg8[%c0_222, %c0_223], %290 {strides = array<i32>} : memref<160x128xf32, #tpu.memory_space<vmem>>, vector<160x128xf32>,
    %c32_224 = arith.constant 32 : index
    %c0_225 = arith.constant 0 : index
    %292 = vector.load %arg9[%c32_224, %c0_225] : memref<208x128xbf16, #tpu.memory_space<vmem>>, vector<160x128xbf16>
    %c6_226 = arith.constant 6 : index
    %c0_227 = arith.constant 0 : index
    %c0_228 = arith.constant 0 : index
    %293 = vector.load %arg4[%c6_226, %c0_227, %c0_228] : memref<9x128x128xbf16, #tpu.memory_space<vmem>>, vector<1x128x128xbf16>
    %294 = vector.shape_cast %293 : vector<1x128x128xbf16> to vector<128x128xbf16>
    %cst_229 = arith.constant dense<0.000000e+00> : vector<160x128xf32>
    %295 = tpu.matmul %292, %294, %cst_229 {dimension_numbers = #tpu.dot_dimension_numbers<[1], [0], [0], [1], [0, 0, 1, 1], [], []>} : vector<160x128xbf16>, vector<128x128xbf16>, vector<160x128xf32> -> vector<160x128xf32>
    %c0_230 = arith.constant 0 : index
    %c0_231 = arith.constant 0 : index
    %296 = vector.load %arg8[%c0_230, %c0_231] : memref<160x128xf32, #tpu.memory_space<vmem>>, vector<160x128xf32>
    %297 = arith.addf %296, %295 : vector<160x128xf32>
    %c0_232 = arith.constant 0 : index
    %c0_233 = arith.constant 0 : index
    %298 = vector.load %arg8[%c0_232, %c0_233] : memref<160x128xf32, #tpu.memory_space<vmem>>, vector<160x128xf32>
    tpu.vector_store %arg8[%c0_232, %c0_233], %297 {strides = array<i32>} : memref<160x128xf32, #tpu.memory_space<vmem>>, vector<160x128xf32>,
    %c33_234 = arith.constant 33 : index
    %c0_235 = arith.constant 0 : index
    %299 = vector.load %arg9[%c33_234, %c0_235] : memref<208x128xbf16, #tpu.memory_space<vmem>>, vector<160x128xbf16>
    %c7_236 = arith.constant 7 : index
    %c0_237 = arith.constant 0 : index
    %c0_238 = arith.constant 0 : index
    %300 = vector.load %arg4[%c7_236, %c0_237, %c0_238] : memref<9x128x128xbf16, #tpu.memory_space<vmem>>, vector<1x128x128xbf16>
    %301 = vector.shape_cast %300 : vector<1x128x128xbf16> to vector<128x128xbf16>
    %cst_239 = arith.constant dense<0.000000e+00> : vector<160x128xf32>
    %302 = tpu.matmul %299, %301, %cst_239 {dimension_numbers = #tpu.dot_dimension_numbers<[1], [0], [0], [1], [0, 0, 1, 1], [], []>} : vector<160x128xbf16>, vector<128x128xbf16>, vector<160x128xf32> -> vector<160x128xf32>
    %c0_240 = arith.constant 0 : index
    %c0_241 = arith.constant 0 : index
    %303 = vector.load %arg8[%c0_240, %c0_241] : memref<160x128xf32, #tpu.memory_space<vmem>>, vector<160x128xf32>
    %304 = arith.addf %303, %302 : vector<160x128xf32>
    %c0_242 = arith.constant 0 : index
    %c0_243 = arith.constant 0 : index
    %305 = vector.load %arg8[%c0_242, %c0_243] : memref<160x128xf32, #tpu.memory_space<vmem>>, vector<160x128xf32>
    tpu.vector_store %arg8[%c0_242, %c0_243], %304 {strides = array<i32>} : memref<160x128xf32, #tpu.memory_space<vmem>>, vector<160x128xf32>,
    %c34_244 = arith.constant 34 : index
    %c0_245 = arith.constant 0 : index
    %306 = vector.load %arg9[%c34_244, %c0_245] : memref<208x128xbf16, #tpu.memory_space<vmem>>, vector<160x128xbf16>
    %c8_246 = arith.constant 8 : index
    %c0_247 = arith.constant 0 : index
    %c0_248 = arith.constant 0 : index
    %307 = vector.load %arg4[%c8_246, %c0_247, %c0_248] : memref<9x128x128xbf16, #tpu.memory_space<vmem>>, vector<1x128x128xbf16>
    %308 = vector.shape_cast %307 : vector<1x128x128xbf16> to vector<128x128xbf16>
    %cst_249 = arith.constant dense<0.000000e+00> : vector<160x128xf32>
    %309 = tpu.matmul %306, %308, %cst_249 {dimension_numbers = #tpu.dot_dimension_numbers<[1], [0], [0], [1], [0, 0, 1, 1], [], []>} : vector<160x128xbf16>, vector<128x128xbf16>, vector<160x128xf32> -> vector<160x128xf32>
    %c0_250 = arith.constant 0 : index
    %c0_251 = arith.constant 0 : index
    %310 = vector.load %arg8[%c0_250, %c0_251] : memref<160x128xf32, #tpu.memory_space<vmem>>, vector<160x128xf32>
    %311 = arith.addf %310, %309 : vector<160x128xf32>
    %c0_252 = arith.constant 0 : index
    %c0_253 = arith.constant 0 : index
    %312 = vector.load %arg8[%c0_252, %c0_253] : memref<160x128xf32, #tpu.memory_space<vmem>>, vector<160x128xf32>
    tpu.vector_store %arg8[%c0_252, %c0_253], %311 {strides = array<i32>} : memref<160x128xf32, #tpu.memory_space<vmem>>, vector<160x128xf32>,
    %c0_254 = arith.constant 0 : index
    %c0_255 = arith.constant 0 : index
    %313 = tpu.strided_load %arg8[%c0_254, %c0_255] {strides = array<i32: 2, 1>} : memref<160x128xf32, #tpu.memory_space<vmem>>, vector<8x128xf32>
    %c1_256 = arith.constant 1 : index
    %c0_257 = arith.constant 0 : index
    %314 = tpu.strided_load %arg8[%c1_256, %c0_257] {strides = array<i32: 2, 1>} : memref<160x128xf32, #tpu.memory_space<vmem>>, vector<8x128xf32>
    %c16_258 = arith.constant 16 : index
    %c0_259 = arith.constant 0 : index
    %315 = tpu.strided_load %arg8[%c16_258, %c0_259] {strides = array<i32: 2, 1>} : memref<160x128xf32, #tpu.memory_space<vmem>>, vector<8x128xf32>
    %c17_260 = arith.constant 17 : index
    %c0_261 = arith.constant 0 : index
    %316 = tpu.strided_load %arg8[%c17_260, %c0_261] {strides = array<i32: 2, 1>} : memref<160x128xf32, #tpu.memory_space<vmem>>, vector<8x128xf32>
    %317 = arith.maximumf %313, %314 : vector<8x128xf32>
    %318 = arith.maximumf %315, %316 : vector<8x128xf32>
    %319 = arith.maximumf %317, %318 : vector<8x128xf32>
    %c32_262 = arith.constant 32 : index
    %c0_263 = arith.constant 0 : index
    %320 = tpu.strided_load %arg8[%c32_262, %c0_263] {strides = array<i32: 2, 1>} : memref<160x128xf32, #tpu.memory_space<vmem>>, vector<8x128xf32>
    %c33_264 = arith.constant 33 : index
    %c0_265 = arith.constant 0 : index
    %321 = tpu.strided_load %arg8[%c33_264, %c0_265] {strides = array<i32: 2, 1>} : memref<160x128xf32, #tpu.memory_space<vmem>>, vector<8x128xf32>
    %c48_266 = arith.constant 48 : index
    %c0_267 = arith.constant 0 : index
    %322 = tpu.strided_load %arg8[%c48_266, %c0_267] {strides = array<i32: 2, 1>} : memref<160x128xf32, #tpu.memory_space<vmem>>, vector<8x128xf32>
    %c49 = arith.constant 49 : index
    %c0_268 = arith.constant 0 : index
    %323 = tpu.strided_load %arg8[%c49, %c0_268] {strides = array<i32: 2, 1>} : memref<160x128xf32, #tpu.memory_space<vmem>>, vector<8x128xf32>
    %324 = arith.maximumf %320, %321 : vector<8x128xf32>
    %325 = arith.maximumf %322, %323 : vector<8x128xf32>
    %326 = arith.maximumf %324, %325 : vector<8x128xf32>
    %c64_269 = arith.constant 64 : index
    %c0_270 = arith.constant 0 : index
    %327 = tpu.strided_load %arg8[%c64_269, %c0_270] {strides = array<i32: 2, 1>} : memref<160x128xf32, #tpu.memory_space<vmem>>, vector<8x128xf32>
    %c65_271 = arith.constant 65 : index
    %c0_272 = arith.constant 0 : index
    %328 = tpu.strided_load %arg8[%c65_271, %c0_272] {strides = array<i32: 2, 1>} : memref<160x128xf32, #tpu.memory_space<vmem>>, vector<8x128xf32>
    %c80_273 = arith.constant 80 : index
    %c0_274 = arith.constant 0 : index
    %329 = tpu.strided_load %arg8[%c80_273, %c0_274] {strides = array<i32: 2, 1>} : memref<160x128xf32, #tpu.memory_space<vmem>>, vector<8x128xf32>
    %c81 = arith.constant 81 : index
    %c0_275 = arith.constant 0 : index
    %330 = tpu.strided_load %arg8[%c81, %c0_275] {strides = array<i32: 2, 1>} : memref<160x128xf32, #tpu.memory_space<vmem>>, vector<8x128xf32>
    %331 = arith.maximumf %327, %328 : vector<8x128xf32>
    %332 = arith.maximumf %329, %330 : vector<8x128xf32>
    %333 = arith.maximumf %331, %332 : vector<8x128xf32>
    %c96_276 = arith.constant 96 : index
    %c0_277 = arith.constant 0 : index
    %334 = tpu.strided_load %arg8[%c96_276, %c0_277] {strides = array<i32: 2, 1>} : memref<160x128xf32, #tpu.memory_space<vmem>>, vector<8x128xf32>
    %c97_278 = arith.constant 97 : index
    %c0_279 = arith.constant 0 : index
    %335 = tpu.strided_load %arg8[%c97_278, %c0_279] {strides = array<i32: 2, 1>} : memref<160x128xf32, #tpu.memory_space<vmem>>, vector<8x128xf32>
    %c112_280 = arith.constant 112 : index
    %c0_281 = arith.constant 0 : index
    %336 = tpu.strided_load %arg8[%c112_280, %c0_281] {strides = array<i32: 2, 1>} : memref<160x128xf32, #tpu.memory_space<vmem>>, vector<8x128xf32>
    %c113 = arith.constant 113 : index
    %c0_282 = arith.constant 0 : index
    %337 = tpu.strided_load %arg8[%c113, %c0_282] {strides = array<i32: 2, 1>} : memref<160x128xf32, #tpu.memory_space<vmem>>, vector<8x128xf32>
    %338 = arith.maximumf %334, %335 : vector<8x128xf32>
    %339 = arith.maximumf %336, %337 : vector<8x128xf32>
    %340 = arith.maximumf %338, %339 : vector<8x128xf32>
    %c128_283 = arith.constant 128 : index
    %c0_284 = arith.constant 0 : index
    %341 = tpu.strided_load %arg8[%c128_283, %c0_284] {strides = array<i32: 2, 1>} : memref<160x128xf32, #tpu.memory_space<vmem>>, vector<8x128xf32>
    %c129_285 = arith.constant 129 : index
    %c0_286 = arith.constant 0 : index
    %342 = tpu.strided_load %arg8[%c129_285, %c0_286] {strides = array<i32: 2, 1>} : memref<160x128xf32, #tpu.memory_space<vmem>>, vector<8x128xf32>
    %c144_287 = arith.constant 144 : index
    %c0_288 = arith.constant 0 : index
    %343 = tpu.strided_load %arg8[%c144_287, %c0_288] {strides = array<i32: 2, 1>} : memref<160x128xf32, #tpu.memory_space<vmem>>, vector<8x128xf32>
    %c145 = arith.constant 145 : index
    %c0_289 = arith.constant 0 : index
    %344 = tpu.strided_load %arg8[%c145, %c0_289] {strides = array<i32: 2, 1>} : memref<160x128xf32, #tpu.memory_space<vmem>>, vector<8x128xf32>
    %345 = arith.maximumf %341, %342 : vector<8x128xf32>
    %346 = arith.maximumf %343, %344 : vector<8x128xf32>
    %347 = arith.maximumf %345, %346 : vector<8x128xf32>
    %348 = vector.shape_cast %319 : vector<8x128xf32> to vector<1x8x128xf32>
    %349 = vector.shape_cast %326 : vector<8x128xf32> to vector<1x8x128xf32>
    %350 = vector.shape_cast %333 : vector<8x128xf32> to vector<1x8x128xf32>
    %351 = vector.shape_cast %340 : vector<8x128xf32> to vector<1x8x128xf32>
    %352 = vector.shape_cast %347 : vector<8x128xf32> to vector<1x8x128xf32>
    %353 = tpu.concatenate %348, %349, %350, %351, %352 in 0 : vector<1x8x128xf32>, vector<1x8x128xf32>, vector<1x8x128xf32>, vector<1x8x128xf32>, vector<1x8x128xf32> -> vector<5x8x128xf32>
    %354 = vector.shape_cast %1 : vector<1x128xf32> to vector<1x1x128xf32>
    %355 = vector.broadcast %354 : vector<1x1x128xf32> to vector<5x8x128xf32>
    %356 = arith.addf %353, %355 : vector<5x8x128xf32>
    %cst_290 = arith.constant 0.000000e+00 : f32
    %357 = vector.broadcast %cst_290 : f32 to vector<5x8x128xf32>
    %358 = arith.maximumf %356, %357 : vector<5x8x128xf32>
    %359 = arith.truncf %358 : vector<5x8x128xf32> to vector<5x8x128xbf16>
    %360 = arith.index_cast %3 : i32 to index
    %c0_291 = arith.constant 0 : index
    %c0_292 = arith.constant 0 : index
    %c0_293 = arith.constant 0 : index
    %361 = vector.load %arg6[%360, %c0_291, %c0_292, %c0_293] : memref<1x5x8x128xbf16, #tpu.memory_space<vmem>>, vector<1x5x8x128xbf16>
    %362 = vector.shape_cast %361 : vector<1x5x8x128xbf16> to vector<5x8x128xbf16>
    %363 = vector.shape_cast %359 : vector<5x8x128xbf16> to vector<1x5x8x128xbf16>
    tpu.vector_store %arg6[%360, %c0_291, %c0_292, %c0_293], %363 {strides = array<i32>} : memref<1x5x8x128xbf16, #tpu.memory_space<vmem>>, vector<1x5x8x128xbf16>,
    %c1_i32_294 = arith.constant 1 : i32
    return
  }
  func.func @transform_0(%arg0: i32) -> (i32, i32, i32) {
    %c0_i32 = arith.constant 0 : i32
    %c0_i32_0 = arith.constant 0 : i32
    %c0_i32_1 = arith.constant 0 : i32
    return %arg0, %c0_i32, %c0_i32_0 : i32, i32, i32
  }
  func.func @transform_1(%arg0: i32) -> (i32, i32, i32) {
    %c0_i32 = arith.constant 0 : i32
    %c0_i32_0 = arith.constant 0 : i32
    %c0_i32_1 = arith.constant 0 : i32
    %c0_i32_2 = arith.constant 0 : i32
    return %c0_i32, %c0_i32_0, %c0_i32_1 : i32, i32, i32
  }
  func.func @transform_2(%arg0: i32) -> (i32, i32) {
    %c0_i32 = arith.constant 0 : i32
    %c0_i32_0 = arith.constant 0 : i32
    %c0_i32_1 = arith.constant 0 : i32
    return %c0_i32, %c0_i32_0 : i32, i32
  }
  func.func @transform_3(%arg0: i32) -> (i32, i32, i32) {
    %c0_i32 = arith.constant 0 : i32
    %c0_i32_0 = arith.constant 0 : i32
    %c0_i32_1 = arith.constant 0 : i32
    %c0_i32_2 = arith.constant 0 : i32
    return %c0_i32, %c0_i32_0, %c0_i32_1 : i32, i32, i32
  }
  func.func @transform_4(%arg0: i32) -> (i32, i32) {
    %c0_i32 = arith.constant 0 : i32
    %c0_i32_0 = arith.constant 0 : i32
    %c0_i32_1 = arith.constant 0 : i32
    return %c0_i32, %c0_i32_0 : i32, i32
  }
  func.func @transform_5(%arg0: i32) -> (i32, i32, i32, i32) {
    %c0_i32 = arith.constant 0 : i32
    %c0_i32_0 = arith.constant 0 : i32
    %c0_i32_1 = arith.constant 0 : i32
    %c0_i32_2 = arith.constant 0 : i32
    return %arg0, %c0_i32, %c0_i32_0, %c0_i32_1 : i32, i32, i32, i32
  }
}

module attributes {stable_mosaic.version = 11 : i64} {
  func.func @_mlp_head_kernel(%arg0: i32, %arg1: memref<8x5120xbf16, #tpu.memory_space<vmem>>, %arg2: memref<5120x128xbf16, #tpu.memory_space<vmem>>, %arg3: memref<1x128xf32, #tpu.memory_space<vmem>>, %arg4: memref<128x128xbf16, #tpu.memory_space<vmem>>, %arg5: memref<1x128xf32, #tpu.memory_space<vmem>>, %arg6: memref<8x128xf32, #tpu.memory_space<vmem>>) attributes {dimension_semantics = [#tpu.dimension_semantics<parallel>], iteration_bounds = array<i64: 1>, scalar_prefetch = 0 : i64, scratch_operands = 0 : i64, tpu.core_type = #tpu.core_type<tc>, window_params = [{transform_indices = @transform_0, window_bounds = array<i64: 8, 5120>}, {pipeline_mode = #tpu.pipeline_mode<synchronous>, transform_indices = @transform_1, window_bounds = array<i64: 5120, 128>}, {pipeline_mode = #tpu.pipeline_mode<synchronous>, transform_indices = @transform_2, window_bounds = array<i64: 1, 128>}, {pipeline_mode = #tpu.pipeline_mode<synchronous>, transform_indices = @transform_3, window_bounds = array<i64: 128, 128>}, {pipeline_mode = #tpu.pipeline_mode<synchronous>, transform_indices = @transform_4, window_bounds = array<i64: 1, 128>}, {transform_indices = @transform_5, window_bounds = array<i64: 8, 128>}]} {
    %c0 = arith.constant 0 : index
    %c0_0 = arith.constant 0 : index
    %0 = vector.load %arg1[%c0, %c0_0] : memref<8x5120xbf16, #tpu.memory_space<vmem>>, vector<8x5120xbf16>
    %c0_1 = arith.constant 0 : index
    %c0_2 = arith.constant 0 : index
    %1 = vector.load %arg2[%c0_1, %c0_2] : memref<5120x128xbf16, #tpu.memory_space<vmem>>, vector<5120x128xbf16>
    %cst = arith.constant dense<0.000000e+00> : vector<8x128xf32>
    %2 = tpu.matmul %0, %1, %cst {dimension_numbers = #tpu.dot_dimension_numbers<[1], [0], [0], [1], [0, 0, 1, 1], [], []>} : vector<8x5120xbf16>, vector<5120x128xbf16>, vector<8x128xf32> -> vector<8x128xf32>
    %c0_3 = arith.constant 0 : index
    %c0_4 = arith.constant 0 : index
    %3 = vector.load %arg3[%c0_3, %c0_4] : memref<1x128xf32, #tpu.memory_space<vmem>>, vector<1x128xf32>
    %4 = vector.broadcast %3 : vector<1x128xf32> to vector<8x128xf32>
    %5 = arith.addf %2, %4 : vector<8x128xf32>
    %cst_5 = arith.constant 0.000000e+00 : f32
    %6 = vector.broadcast %cst_5 : f32 to vector<8x128xf32>
    %7 = arith.maximumf %5, %6 : vector<8x128xf32>
    %8 = arith.truncf %7 : vector<8x128xf32> to vector<8x128xbf16>
    %c0_6 = arith.constant 0 : index
    %c0_7 = arith.constant 0 : index
    %9 = vector.load %arg4[%c0_6, %c0_7] : memref<128x128xbf16, #tpu.memory_space<vmem>>, vector<128x128xbf16>
    %cst_8 = arith.constant dense<0.000000e+00> : vector<8x128xf32>
    %10 = tpu.matmul %8, %9, %cst_8 {dimension_numbers = #tpu.dot_dimension_numbers<[1], [0], [0], [1], [0, 0, 1, 1], [], []>} : vector<8x128xbf16>, vector<128x128xbf16>, vector<8x128xf32> -> vector<8x128xf32>
    %c0_9 = arith.constant 0 : index
    %c0_10 = arith.constant 0 : index
    %11 = vector.load %arg5[%c0_9, %c0_10] : memref<1x128xf32, #tpu.memory_space<vmem>>, vector<1x128xf32>
    %12 = vector.broadcast %11 : vector<1x128xf32> to vector<8x128xf32>
    %13 = arith.addf %10, %12 : vector<8x128xf32>
    %c0_11 = arith.constant 0 : index
    %c0_12 = arith.constant 0 : index
    %14 = vector.load %arg6[%c0_11, %c0_12] : memref<8x128xf32, #tpu.memory_space<vmem>>, vector<8x128xf32>
    tpu.vector_store %arg6[%c0_11, %c0_12], %13 {strides = array<i32>} : memref<8x128xf32, #tpu.memory_space<vmem>>, vector<8x128xf32>,
    return
  }
  func.func @transform_0(%arg0: i32) -> (i32, i32) {
    %c0_i32 = arith.constant 0 : i32
    %c0_i32_0 = arith.constant 0 : i32
    return %arg0, %c0_i32 : i32, i32
  }
  func.func @transform_1(%arg0: i32) -> (i32, i32) {
    %c0_i32 = arith.constant 0 : i32
    %c0_i32_0 = arith.constant 0 : i32
    %c0_i32_1 = arith.constant 0 : i32
    return %c0_i32, %c0_i32_0 : i32, i32
  }
  func.func @transform_2(%arg0: i32) -> (i32, i32) {
    %c0_i32 = arith.constant 0 : i32
    %c0_i32_0 = arith.constant 0 : i32
    %c0_i32_1 = arith.constant 0 : i32
    return %c0_i32, %c0_i32_0 : i32, i32
  }
  func.func @transform_3(%arg0: i32) -> (i32, i32) {
    %c0_i32 = arith.constant 0 : i32
    %c0_i32_0 = arith.constant 0 : i32
    %c0_i32_1 = arith.constant 0 : i32
    return %c0_i32, %c0_i32_0 : i32, i32
  }
  func.func @transform_4(%arg0: i32) -> (i32, i32) {
    %c0_i32 = arith.constant 0 : i32
    %c0_i32_0 = arith.constant 0 : i32
    %c0_i32_1 = arith.constant 0 : i32
    return %c0_i32, %c0_i32_0 : i32, i32
  }
  func.func @transform_5(%arg0: i32) -> (i32, i32) {
    %c0_i32 = arith.constant 0 : i32
    %c0_i32_0 = arith.constant 0 : i32
    return %arg0, %c0_i32 : i32, i32
  }
}

</mosaic_0001>

<bundles_post_ra>
// kernel: simple_cnn_forward.3
= control target key start
LH: loop header
LB: loop body
LE: loop exit
PB: predicated region body
PF: predicated region fallthrough
CT: control target
= control target key end

     0   :  { %vm4876_vm0 = vmmov 0   ;;  %s5966_s1 = inlined_call_operand.vmem [shape: bf16[5120,128], index: 1, kind: input, shape index: {}]   ;;  %s5967_s0 = inlined_call_operand.vmem [shape: bf16[8,5120], index: 0, kind: input, shape index: {}]   ;;  %s5968_s2 = inlined_call_operand.vmem [shape: f32[1,128], index: 2, kind: input, shape index: {}]   ;;  %s5969_s3 = inlined_call_operand.vmem [shape: bf16[128,128], index: 3, kind: input, shape index: {}]   ;;  %s5970_s4 = inlined_call_operand.vmem [shape: f32[1,128], index: 4, kind: input, shape index: {}]   ;;  %s5971_s5 = inlined_call_operand.vmem [shape: f32[8,128], index: 5, kind: output, shape index: {}]  }
   0x1   :  { %v4507_v0 = vld [vmem:[%s5966_s1 + $0x40] sm:$0xff]   ;;  %v4511_v4 = vld [vmem:[%s5966_s1 + $0x48] sm:$0xff]   ;;  %v4515_v8 = vld [vmem:[%s5966_s1 + $0x50] sm:$0xff]  }
   0x2   :  { %v4508_v1 = vld [vmem:[%s5966_s1 + $0xc0] sm:$0xff]   ;;  %4036 = vmatprep.subr.bf16.mxu0 %v4507_v0  ;;  %v4512_v5 = vld [vmem:[%s5966_s1 + $0xc8] sm:$0xff]   ;;  %v4516_v9 = vld [vmem:[%s5966_s1 + $0xd0] sm:$0xff]  }
   0x3   :  { %v4509_v2 = vld [vmem:[%s5966_s1] sm:$0xff]   ;;  %4058 = vmatprep.subr.bf16.mxu1 %v4508_v1  ;;  %v4513_v6 = vld [vmem:[%s5966_s1 + $0x8] sm:$0xff]   ;;  %v4517_v10 = vld [vmem:[%s5966_s1 + $0x10] sm:$0xff]  }
   0x4   :  { %v4510_v3 = vld [vmem:[%s5966_s1 + $0x80] sm:$0xff]   ;;  %4037 = vmatpush3.bf16.msra.mxu0 %v4509_v2  ;;  %v4514_v7 = vld [vmem:[%s5966_s1 + $0x88] sm:$0xff]   ;;  %v4518_v11 = vld [vmem:[%s5966_s1 + $0x90] sm:$0xff]  }
   0x5   :  { %4059 = vmatpush3.bf16.msra.mxu1 %v4510_v3  ;;  %4038 = vmatprep.subr.bf16.mxu0 %v4511_v4  ;;  %v4519_v12 = vld [vmem:[%s5966_s1 + $0x58] sm:$0xff]   ;;  %v4523_v16 = vld [vmem:[%s5966_s1 + $0x60] sm:$0xff]   ;;  %v4527_v20 = vld [vmem:[%s5966_s1 + $0x68] sm:$0xff]  }
   0x6   :  { %4060 = vmatprep.subr.bf16.mxu1 %v4512_v5  ;;  %v4520_v13 = vld [vmem:[%s5966_s1 + $0xd8] sm:$0xff]   ;;  %v4524_v17 = vld [vmem:[%s5966_s1 + $0xe0] sm:$0xff]   ;;  %v4528_v21 = vld [vmem:[%s5966_s1 + $0xe8] sm:$0xff]  }
   0x7   :  { %v4521_v14 = vld [vmem:[%s5966_s1 + $0x18] sm:$0xff]   ;;  %v4525_v18 = vld [vmem:[%s5966_s1 + $0x20] sm:$0xff]   ;;  %v4529_v22 = vld [vmem:[%s5966_s1 + $0x28] sm:$0xff]  }
   0x8   :  { %4039 = vmatpush3.bf16.msra.mxu0 %v4513_v6  ;;  %v4522_v15 = vld [vmem:[%s5966_s1 + $0x98] sm:$0xff]   ;;  %v4526_v19 = vld [vmem:[%s5966_s1 + $0xa0] sm:$0xff]   ;;  %v4530_v23 = vld [vmem:[%s5966_s1 + $0xa8] sm:$0xff]  }
   0x9   :  { %4061 = vmatpush3.bf16.msra.mxu1 %v4514_v7  ;;  %4040 = vmatprep.subr.bf16.mxu0 %v4515_v8  ;;  %v4531_v24 = vld [vmem:[%s5966_s1 + $0x70] sm:$0xff]   ;;  %v4535_v28 = vld [vmem:[%s5966_s1 + $0x78] sm:$0xff]   ;;  %v21_v32 = vld [vmem:[%s5967_s0] sm:$0xff] }
   0xa   :  { %4062 = vmatprep.subr.bf16.mxu1 %v4516_v9  ;;  %v4532_v25 = vld [vmem:[%s5966_s1 + $0xf0] sm:$0xff]   ;;  %v4536_v29 = vld [vmem:[%s5966_s1 + $0xf8] sm:$0xff]   ;;  %v22_v33 = vld [vmem:[%s5967_s0 + $0x8] sm:$0xff]  ;;  %v3667_v34 = vcombine.low %v21_v32, %v21_v32  ;;  %v3668_v35 = vcombine.high %v21_v32, %v21_v32 }
   0xb   :  { %v4533_v26 = vld [vmem:[%s5966_s1 + $0x30] sm:$0xff]   ;;  %v4537_v30 = vld [vmem:[%s5966_s1 + $0x38] sm:$0xff]   ;;  %v3669_v36 = vcombine.low %v22_v33, %v22_v33  ;;  %v3670_v37 = vcombine.high %v22_v33, %v22_v33  ;;  %v4543_v38 = vld [vmem:[%s5966_s1 + $0x140] sm:$0xff]  }
   0xc   :  { %4041 = vmatpush3.bf16.msra.mxu0 %v4517_v10  ;;  %v4534_v27 = vld [vmem:[%s5966_s1 + $0xb0] sm:$0xff]   ;;  %v4538_v31 = vld [vmem:[%s5966_s1 + $0xb8] sm:$0xff]   ;;  %v4544_v39 = vld [vmem:[%s5966_s1 + $0x1c0] sm:$0xff]   ;;  %2780 = vmatprep.mubr.bf16.mxu0 %v3668_v35 }
   0xd   :  { %4063 = vmatpush3.bf16.msra.mxu1 %v4518_v11  ;;  %4042 = vmatprep.subr.bf16.mxu0 %v4519_v12  ;;  %v4545_v40 = vld [vmem:[%s5966_s1 + $0x100] sm:$0xff]   ;;  %v4547_v42 = vld [vmem:[%s5966_s1 + $0x148] sm:$0xff]   ;;  %v4551_v46 = vld [vmem:[%s5966_s1 + $0x150] sm:$0xff]  }
   0xe   :  { %4064 = vmatprep.subr.bf16.mxu1 %v4520_v13  ;;  %2820 = vmatprep.mubr.bf16.mxu1 %v3670_v37  ;;  %v4546_v41 = vld [vmem:[%s5966_s1 + $0x180] sm:$0xff]   ;;  %v4548_v43 = vld [vmem:[%s5966_s1 + $0x1c8] sm:$0xff]   ;;  %v4552_v47 = vld [vmem:[%s5966_s1 + $0x1d0] sm:$0xff]  }
   0xf   :  { %v4549_v44 = vld [vmem:[%s5966_s1 + $0x108] sm:$0xff]   ;;  %v4553_v48 = vld [vmem:[%s5966_s1 + $0x110] sm:$0xff]   ;;  %v4555_v50 = vld [vmem:[%s5966_s1 + $0x158] sm:$0xff]  }
  0x10   :  { %4043 = vmatpush3.bf16.msra.mxu0 %v4521_v14  ;;  %v4550_v45 = vld [vmem:[%s5966_s1 + $0x188] sm:$0xff]   ;;  %v4554_v49 = vld [vmem:[%s5966_s1 + $0x190] sm:$0xff]   ;;  %v4556_v51 = vld [vmem:[%s5966_s1 + $0x1d8] sm:$0xff]  }
  0x11   :  { %4065 = vmatpush3.bf16.msra.mxu1 %v4522_v15  ;;  %4044 = vmatprep.subr.bf16.mxu0 %v4523_v16  ;;  %v4557_v52 = vld [vmem:[%s5966_s1 + $0x118] sm:$0xff]   ;;  %v4559_v54 = vld [vmem:[%s5966_s1 + $0x160] sm:$0xff]   ;;  %v4563_v58 = vld [vmem:[%s5966_s1 + $0x168] sm:$0xff]  }
  0x12   :  { %4066 = vmatprep.subr.bf16.mxu1 %v4524_v17  ;;  %v4558_v53 = vld [vmem:[%s5966_s1 + $0x198] sm:$0xff]   ;;  %v4560_v55 = vld [vmem:[%s5966_s1 + $0x1e0] sm:$0xff]   ;;  %v4564_v59 = vld [vmem:[%s5966_s1 + $0x1e8] sm:$0xff]  }
  0x13   :  { %v4561_v56 = vld [vmem:[%s5966_s1 + $0x120] sm:$0xff]   ;;  %v4565_v60 = vld [vmem:[%s5966_s1 + $0x128] sm:$0xff]   ;;  %v4567_v62 = vld [vmem:[%s5966_s1 + $0x170] sm:$0xff]  }
  0x14   :  { %4045 = vmatpush3.bf16.msra.mxu0 %v4525_v18  ;;  %v4562_v57 = vld [vmem:[%s5966_s1 + $0x1a0] sm:$0xff]   ;;  %v4566_v61 = vld [vmem:[%s5966_s1 + $0x1a8] sm:$0xff]   ;;  %v4568_v63 = vld [vmem:[%s5966_s1 + $0x1f0] sm:$0xff]  }
  0x15   :  { %4067 = vmatpush3.bf16.msra.mxu1 %v4526_v19  ;;  %4046 = vmatprep.subr.bf16.mxu0 %v4527_v20  ;;  %v4569_v0 = vld [vmem:[%s5966_s1 + $0x130] sm:$0xff]   ;;  %v4571_v2 = vld [vmem:[%s5966_s1 + $0x178] sm:$0xff]   ;;  %v4579_v12 = vld [vmem:[%s5966_s1 + $0x240] sm:$0xff]  }
  0x16   :  { %4068 = vmatprep.subr.bf16.mxu1 %v4528_v21  ;;  %v4570_v1 = vld [vmem:[%s5966_s1 + $0x1b0] sm:$0xff]   ;;  %v4572_v3 = vld [vmem:[%s5966_s1 + $0x1f8] sm:$0xff]   ;;  %v4580_v13 = vld [vmem:[%s5966_s1 + $0x2c0] sm:$0xff]  }
  0x17   :  { %v4573_v4 = vld [vmem:[%s5966_s1 + $0x138] sm:$0xff]   ;;  %v23_v6 = vld [vmem:[%s5967_s0 + $0x10] sm:$0xff]  ;;  %v4581_v14 = vld [vmem:[%s5966_s1 + $0x200] sm:$0xff]  }
  0x18   :  { %4047 = vmatpush3.bf16.msra.mxu0 %v4529_v22  ;;  %v4574_v5 = vld [vmem:[%s5966_s1 + $0x1b8] sm:$0xff]   ;;  %v3671_v7 = vcombine.low %v23_v6, %v23_v6  ;;  %v3672_v8 = vcombine.high %v23_v6, %v23_v6  ;;  %v4582_v15 = vld [vmem:[%s5966_s1 + $0x280] sm:$0xff]   ;;  %v4583_v16 = vld [vmem:[%s5966_s1 + $0x248] sm:$0xff]  }
  0x19   :  { %4069 = vmatpush3.bf16.msra.mxu1 %v4530_v23  ;;  %4048 = vmatprep.subr.bf16.mxu0 %v4531_v24  ;;  %v24_v9 = vld [vmem:[%s5967_s0 + $0x18] sm:$0xff]  ;;  %v4584_v17 = vld [vmem:[%s5966_s1 + $0x2c8] sm:$0xff]   ;;  %v4587_v20 = vld [vmem:[%s5966_s1 + $0x250] sm:$0xff]  }
  0x1a   :  { %4070 = vmatprep.subr.bf16.mxu1 %v4532_v25  ;;  %v3673_v10 = vcombine.low %v24_v9, %v24_v9  ;;  %v3674_v11 = vcombine.high %v24_v9, %v24_v9  ;;  %v4585_v18 = vld [vmem:[%s5966_s1 + $0x208] sm:$0xff]   ;;  %v4588_v21 = vld [vmem:[%s5966_s1 + $0x2d0] sm:$0xff]   ;;  %v4591_v24 = vld [vmem:[%s5966_s1 + $0x258] sm:$0xff]  }
  0x1b   :  { %v4586_v19 = vld [vmem:[%s5966_s1 + $0x288] sm:$0xff]   ;;  %v4589_v22 = vld [vmem:[%s5966_s1 + $0x210] sm:$0xff]   ;;  %v4592_v25 = vld [vmem:[%s5966_s1 + $0x2d8] sm:$0xff]  }
  0x1c   :  { %4049 = vmatpush3.bf16.msra.mxu0 %v4533_v26  ;;  %v4590_v23 = vld [vmem:[%s5966_s1 + $0x290] sm:$0xff]   ;;  %v4593_v26 = vld [vmem:[%s5966_s1 + $0x218] sm:$0xff]   ;;  %v4599_v32 = vld [vmem:[%s5966_s1 + $0x268] sm:$0xff]  }
  0x1d   :  { %4071 = vmatpush3.bf16.msra.mxu1 %v4534_v27  ;;  %4050 = vmatprep.subr.bf16.mxu0 %v4535_v28  ;;  %v4594_v27 = vld [vmem:[%s5966_s1 + $0x298] sm:$0xff]   ;;  %v4595_v28 = vld [vmem:[%s5966_s1 + $0x260] sm:$0xff]   ;;  %v4600_v33 = vld [vmem:[%s5966_s1 + $0x2e8] sm:$0xff]  }
  0x1e   :  { %4072 = vmatprep.subr.bf16.mxu1 %v4536_v29  ;;  %v4596_v29 = vld [vmem:[%s5966_s1 + $0x2e0] sm:$0xff]   ;;  %v4602_v35 = vld [vmem:[%s5966_s1 + $0x2a8] sm:$0xff]   ;;  %v4604_v37 = vld [vmem:[%s5966_s1 + $0x2f0] sm:$0xff]  }
  0x1f   :  { %v4635_v6 = vld [vmem:[%s5966_s1 + $0x368] sm:$0xff]  }
  0x20   :  { %4051 = vmatpush3.bf16.msra.mxu0 %v4537_v30  ;;  %v4597_v30 = vld [vmem:[%s5966_s1 + $0x220] sm:$0xff]   ;;  %v4638_v9 = vld [vmem:[%s5966_s1 + $0x3a8] sm:$0xff]  }
  0x21   :  { %4073 = vmatpush3.bf16.msra.mxu1 %v4538_v31  ;;  %4080 = vmatprep.subr.bf16.mxu0 %v4543_v38  ;;  %v4598_v31 = vld [vmem:[%s5966_s1 + $0x2a0] sm:$0xff]   ;;  %v4605_v38 = vld [vmem:[%s5966_s1 + $0x230] sm:$0xff]  }
  0x22   :  { %4102 = vmatprep.subr.bf16.mxu1 %v4544_v39  ;;  %v4606_v39 = vld [vmem:[%s5966_s1 + $0x2b0] sm:$0xff]  }
  0x23   :  { %2781 = vmatmul.mubr.bf16.vlgmr.msra.gmra.mrb[0].mxu0 %v3667_v34  ;;  %v4601_v34 = vld [vmem:[%s5966_s1 + $0x228] sm:$0xff]  }
  0x24   :  { %2821 = vmatmul.mubr.bf16.vlgmr.msra.gmra.mrb[0].mxu1 %v3669_v36  ;;  %4081 = vmatpush3.bf16.msra.mxu0 %v4545_v40  ;;  %v4603_v36 = vld [vmem:[%s5966_s1 + $0x270] sm:$0xff]   ;;  %v4607_v40 = vld [vmem:[%s5966_s1 + $0x278] sm:$0xff]  }
  0x25   :  { %4103 = vmatpush3.bf16.msra.mxu1 %v4546_v41  ;;  %4082 = vmatprep.subr.bf16.mxu0 %v4547_v42  ;;  %v4608_v41 = vld [vmem:[%s5966_s1 + $0x2f8] sm:$0xff]  }
  0x26   :  { %4104 = vmatprep.subr.bf16.mxu1 %v4548_v43  ;;  %2860 = vmatprep.mubr.bf16.mxu0 %v3672_v8  ;;  %v4609_v42 = vld [vmem:[%s5966_s1 + $0x238] sm:$0xff]   ;;  %v4637_v8 = vld [vmem:[%s5966_s1 + $0x328] sm:$0xff]  }
  0x27   :  { %2900 = vmatprep.mubr.bf16.mxu1 %v3674_v11  ;;  %v4610_v43 = vld [vmem:[%s5966_s1 + $0x2b8] sm:$0xff]   ;;  %v4640_v11 = vld [vmem:[%s5966_s1 + $0x3f0] sm:$0xff]  }
  0x28   :  { %4083 = vmatpush3.bf16.msra.mxu0 %v4549_v44  ;;  %v25_v44 = vld [vmem:[%s5967_s0 + $0x20] sm:$0xff] }
  0x29   :  { %4105 = vmatpush3.bf16.msra.mxu1 %v4550_v45  ;;  %4084 = vmatprep.subr.bf16.mxu0 %v4551_v46  ;;  %v26_v45 = vld [vmem:[%s5967_s0 + $0x28] sm:$0xff]  ;;  %v3675_v46 = vcombine.low %v25_v44, %v25_v44 }
  0x2a   :  { %4106 = vmatprep.subr.bf16.mxu1 %v4552_v47  ;;  %v3676_v47 = vcombine.high %v25_v44, %v25_v44  ;;  %v4671_v44 = vld [vmem:[%s5966_s1 + $0x468] sm:$0xff]  }
  0x2c   :  { %4085 = vmatpush3.bf16.msra.mxu0 %v4553_v48  ;;  %v3677_v48 = vcombine.low %v26_v45, %v26_v45 }
  0x2d   :  { %4107 = vmatpush3.bf16.msra.mxu1 %v4554_v49  ;;  %4086 = vmatprep.subr.bf16.mxu0 %v4555_v50  ;;  %v3678_v49 = vcombine.high %v26_v45, %v26_v45  ;;  %v4615_v50 = vld [vmem:[%s5966_s1 + $0x340] sm:$0xff]   ;;  %v4672_v45 = vld [vmem:[%s5966_s1 + $0x4e8] sm:$0xff]  }
  0x2e   :  { %4108 = vmatprep.subr.bf16.mxu1 %v4556_v51  ;;  %v4616_v51 = vld [vmem:[%s5966_s1 + $0x3c0] sm:$0xff]  }
  0x30   :  { %4087 = vmatpush3.bf16.msra.mxu0 %v4557_v52  ;;  %v4617_v52 = vld [vmem:[%s5966_s1 + $0x300] sm:$0xff]  }
  0x31   :  { %4109 = vmatpush3.bf16.msra.mxu1 %v4558_v53  ;;  %4088 = vmatprep.subr.bf16.mxu0 %v4559_v54  ;;  %v4618_v53 = vld [vmem:[%s5966_s1 + $0x380] sm:$0xff]   ;;  %v4619_v54 = vld [vmem:[%s5966_s1 + $0x348] sm:$0xff]  }
  0x32   :  { %4110 = vmatprep.subr.bf16.mxu1 %v4560_v55  ;;  %v4620_v55 = vld [vmem:[%s5966_s1 + $0x3c8] sm:$0xff]  }
  0x34   :  { %4089 = vmatpush3.bf16.msra.mxu0 %v4561_v56  ;;  %v4621_v56 = vld [vmem:[%s5966_s1 + $0x308] sm:$0xff]  }
  0x35   :  { %4111 = vmatpush3.bf16.msra.mxu1 %v4562_v57  ;;  %4090 = vmatprep.subr.bf16.mxu0 %v4563_v58  ;;  %v4622_v57 = vld [vmem:[%s5966_s1 + $0x388] sm:$0xff]   ;;  %v4623_v58 = vld [vmem:[%s5966_s1 + $0x350] sm:$0xff]  }
  0x36   :  { %4112 = vmatprep.subr.bf16.mxu1 %v4564_v59  ;;  %v4624_v59 = vld [vmem:[%s5966_s1 + $0x3d0] sm:$0xff]  }
  0x38   :  { %4091 = vmatpush3.bf16.msra.mxu0 %v4565_v60  ;;  %v4625_v60 = vld [vmem:[%s5966_s1 + $0x310] sm:$0xff]  }
  0x39   :  { %4113 = vmatpush3.bf16.msra.mxu1 %v4566_v61  ;;  %4092 = vmatprep.subr.bf16.mxu0 %v4567_v62  ;;  %v4626_v61 = vld [vmem:[%s5966_s1 + $0x390] sm:$0xff]   ;;  %v4627_v62 = vld [vmem:[%s5966_s1 + $0x358] sm:$0xff]  }
  0x3a   :  { %4114 = vmatprep.subr.bf16.mxu1 %v4568_v63  ;;  %v4628_v63 = vld [vmem:[%s5966_s1 + $0x3d8] sm:$0xff]  }
  0x3c   :  { %4093 = vmatpush3.bf16.msra.mxu0 %v4569_v0  ;;  %v4629_v0 = vld [vmem:[%s5966_s1 + $0x318] sm:$0xff]  }
  0x3d   :  { %4115 = vmatpush3.bf16.msra.mxu1 %v4570_v1  ;;  %4094 = vmatprep.subr.bf16.mxu0 %v4571_v2  ;;  %v4630_v1 = vld [vmem:[%s5966_s1 + $0x398] sm:$0xff]   ;;  %v4631_v2 = vld [vmem:[%s5966_s1 + $0x360] sm:$0xff]  }
  0x3e   :  { %4116 = vmatprep.subr.bf16.mxu1 %v4572_v3  ;;  %v4632_v3 = vld [vmem:[%s5966_s1 + $0x3e0] sm:$0xff]  }
  0x40   :  { %4095 = vmatpush3.bf16.msra.mxu0 %v4573_v4  ;;  %v4633_v4 = vld [vmem:[%s5966_s1 + $0x320] sm:$0xff]  }
  0x41   :  { %4117 = vmatpush3.bf16.msra.mxu1 %v4574_v5  ;;  %4124 = vmatprep.subr.bf16.mxu0 %v4579_v12  ;;  %v4634_v5 = vld [vmem:[%s5966_s1 + $0x3a0] sm:$0xff]   ;;  %v4641_v12 = vld [vmem:[%s5966_s1 + $0x330] sm:$0xff]  }
  0x42   :  { %4146 = vmatprep.subr.bf16.mxu1 %v4580_v13  ;;  %v4642_v13 = vld [vmem:[%s5966_s1 + $0x3b0] sm:$0xff]  }
  0x43   :  { %2861 = vmatmul.mubr.bf16.vlgmr.msra.gmra.mrb[4].mxu0 %v3671_v7  ;;  %v4636_v7 = vld [vmem:[%s5966_s1 + $0x3e8] sm:$0xff]  }
  0x44   :  { %2901 = vmatmul.mubr.bf16.vlgmr.msra.gmra.mrb[4].mxu1 %v3673_v10  ;;  %4125 = vmatpush3.bf16.msra.mxu0 %v4581_v14  ;;  %v4639_v10 = vld [vmem:[%s5966_s1 + $0x370] sm:$0xff]   ;;  %v4643_v14 = vld [vmem:[%s5966_s1 + $0x378] sm:$0xff]  }
  0x45   :  { %4147 = vmatpush3.bf16.msra.mxu1 %v4582_v15  ;;  %4126 = vmatprep.subr.bf16.mxu0 %v4583_v16  ;;  %v4644_v15 = vld [vmem:[%s5966_s1 + $0x3f8] sm:$0xff]  }
  0x46   :  { %4148 = vmatprep.subr.bf16.mxu1 %v4584_v17  ;;  %2940 = vmatprep.mubr.bf16.mxu0 %v3676_v47  ;;  %v4645_v16 = vld [vmem:[%s5966_s1 + $0x338] sm:$0xff]   ;;  %v4674_v47 = vld [vmem:[%s5966_s1 + $0x4a8] sm:$0xff]  }
  0x47   :  { %2980 = vmatprep.mubr.bf16.mxu1 %v3678_v49  ;;  %v4646_v17 = vld [vmem:[%s5966_s1 + $0x3b8] sm:$0xff]   ;;  %v4676_v49 = vld [vmem:[%s5966_s1 + $0x4f0] sm:$0xff]  }
  0x48   :  { %4127 = vmatpush3.bf16.msra.mxu0 %v4585_v18  ;;  %v27_v18 = vld [vmem:[%s5967_s0 + $0x30] sm:$0xff] }
  0x49   :  { %4149 = vmatpush3.bf16.msra.mxu1 %v4586_v19  ;;  %4128 = vmatprep.subr.bf16.mxu0 %v4587_v20  ;;  %v28_v19 = vld [vmem:[%s5967_s0 + $0x38] sm:$0xff]  ;;  %v3679_v20 = vcombine.low %v27_v18, %v27_v18 }
  0x4a   :  { %4150 = vmatprep.subr.bf16.mxu1 %v4588_v21  ;;  %v3680_v21 = vcombine.high %v27_v18, %v27_v18  ;;  %v4707_v18 = vld [vmem:[%s5966_s1 + $0x568] sm:$0xff]  }
  0x4c   :  { %4129 = vmatpush3.bf16.msra.mxu0 %v4589_v22  ;;  %v3681_v22 = vcombine.low %v28_v19, %v28_v19 }
  0x4d   :  { %4151 = vmatpush3.bf16.msra.mxu1 %v4590_v23  ;;  %4130 = vmatprep.subr.bf16.mxu0 %v4591_v24  ;;  %v4651_v23 = vld [vmem:[%s5966_s1 + $0x440] sm:$0xff]   ;;  %v3682_v24 = vcombine.high %v28_v19, %v28_v19  ;;  %v4708_v19 = vld [vmem:[%s5966_s1 + $0x5e8] sm:$0xff]  }
  0x4e   :  { %4152 = vmatprep.subr.bf16.mxu1 %v4592_v25  ;;  %v4652_v25 = vld [vmem:[%s5966_s1 + $0x4c0] sm:$0xff]  }
  0x50   :  { %4131 = vmatpush3.bf16.msra.mxu0 %v4593_v26  ;;  %v4653_v26 = vld [vmem:[%s5966_s1 + $0x400] sm:$0xff]  }
  0x51   :  { %4153 = vmatpush3.bf16.msra.mxu1 %v4594_v27  ;;  %4132 = vmatprep.subr.bf16.mxu0 %v4595_v28  ;;  %v4654_v27 = vld [vmem:[%s5966_s1 + $0x480] sm:$0xff]   ;;  %v4655_v28 = vld [vmem:[%s5966_s1 + $0x448] sm:$0xff]  }
  0x52   :  { %4154 = vmatprep.subr.bf16.mxu1 %v4596_v29  ;;  %v4656_v29 = vld [vmem:[%s5966_s1 + $0x4c8] sm:$0xff]  }
  0x54   :  { %4133 = vmatpush3.bf16.msra.mxu0 %v4597_v30  ;;  %v4657_v30 = vld [vmem:[%s5966_s1 + $0x408] sm:$0xff]  }
  0x55   :  { %4155 = vmatpush3.bf16.msra.mxu1 %v4598_v31  ;;  %4134 = vmatprep.subr.bf16.mxu0 %v4599_v32  ;;  %v4658_v31 = vld [vmem:[%s5966_s1 + $0x488] sm:$0xff]   ;;  %v4659_v32 = vld [vmem:[%s5966_s1 + $0x450] sm:$0xff]  }
  0x56   :  { %4156 = vmatprep.subr.bf16.mxu1 %v4600_v33  ;;  %v4660_v33 = vld [vmem:[%s5966_s1 + $0x4d0] sm:$0xff]  }
  0x58   :  { %4135 = vmatpush3.bf16.msra.mxu0 %v4601_v34  ;;  %v4661_v34 = vld [vmem:[%s5966_s1 + $0x410] sm:$0xff]  }
  0x59   :  { %4157 = vmatpush3.bf16.msra.mxu1 %v4602_v35  ;;  %4136 = vmatprep.subr.bf16.mxu0 %v4603_v36  ;;  %v4662_v35 = vld [vmem:[%s5966_s1 + $0x490] sm:$0xff]   ;;  %v4663_v36 = vld [vmem:[%s5966_s1 + $0x458] sm:$0xff]  }
  0x5a   :  { %4158 = vmatprep.subr.bf16.mxu1 %v4604_v37  ;;  %v4664_v37 = vld [vmem:[%s5966_s1 + $0x4d8] sm:$0xff]  }
  0x5c   :  { %4137 = vmatpush3.bf16.msra.mxu0 %v4605_v38  ;;  %v4665_v38 = vld [vmem:[%s5966_s1 + $0x418] sm:$0xff]  }
  0x5d   :  { %4159 = vmatpush3.bf16.msra.mxu1 %v4606_v39  ;;  %4138 = vmatprep.subr.bf16.mxu0 %v4607_v40  ;;  %v4666_v39 = vld [vmem:[%s5966_s1 + $0x498] sm:$0xff]   ;;  %v4667_v40 = vld [vmem:[%s5966_s1 + $0x460] sm:$0xff]  }
  0x5e   :  { %4160 = vmatprep.subr.bf16.mxu1 %v4608_v41  ;;  %v4668_v41 = vld [vmem:[%s5966_s1 + $0x4e0] sm:$0xff]  }
  0x60   :  { %4139 = vmatpush3.bf16.msra.mxu0 %v4609_v42  ;;  %v4669_v42 = vld [vmem:[%s5966_s1 + $0x420] sm:$0xff]  }
  0x61   :  { %4161 = vmatpush3.bf16.msra.mxu1 %v4610_v43  ;;  %4168 = vmatprep.subr.bf16.mxu0 %v4615_v50  ;;  %v4670_v43 = vld [vmem:[%s5966_s1 + $0x4a0] sm:$0xff]   ;;  %v4677_v50 = vld [vmem:[%s5966_s1 + $0x430] sm:$0xff]  }
  0x62   :  { %4190 = vmatprep.subr.bf16.mxu1 %v4616_v51  ;;  %v4678_v51 = vld [vmem:[%s5966_s1 + $0x4b0] sm:$0xff]  }
  0x63   :  { %2941 = vmatmul.mubr.bf16.vlgmr.msra.gmra.mrb[8].mxu0 %v3675_v46  ;;  %v4673_v46 = vld [vmem:[%s5966_s1 + $0x428] sm:$0xff]  }
  0x64   :  { %2981 = vmatmul.mubr.bf16.vlgmr.msra.gmra.mrb[8].mxu1 %v3677_v48  ;;  %4169 = vmatpush3.bf16.msra.mxu0 %v4617_v52  ;;  %v4675_v48 = vld [vmem:[%s5966_s1 + $0x470] sm:$0xff]   ;;  %v4679_v52 = vld [vmem:[%s5966_s1 + $0x478] sm:$0xff]  }
  0x65   :  { %4191 = vmatpush3.bf16.msra.mxu1 %v4618_v53  ;;  %4170 = vmatprep.subr.bf16.mxu0 %v4619_v54  ;;  %v4680_v53 = vld [vmem:[%s5966_s1 + $0x4f8] sm:$0xff]  }
  0x66   :  { %4192 = vmatprep.subr.bf16.mxu1 %v4620_v55  ;;  %3020 = vmatprep.mubr.bf16.mxu0 %v3680_v21  ;;  %v4681_v54 = vld [vmem:[%s5966_s1 + $0x438] sm:$0xff]   ;;  %v4710_v21 = vld [vmem:[%s5966_s1 + $0x5a8] sm:$0xff]  }
  0x67   :  { %3060 = vmatprep.mubr.bf16.mxu1 %v3682_v24  ;;  %v4682_v55 = vld [vmem:[%s5966_s1 + $0x4b8] sm:$0xff]   ;;  %v4713_v24 = vld [vmem:[%s5966_s1 + $0x530] sm:$0xff]  }
  0x68   :  { %4171 = vmatpush3.bf16.msra.mxu0 %v4621_v56  ;;  %v29_v56 = vld [vmem:[%s5967_s0 + $0x40] sm:$0xff] }
  0x69   :  { %4193 = vmatpush3.bf16.msra.mxu1 %v4622_v57  ;;  %4172 = vmatprep.subr.bf16.mxu0 %v4623_v58  ;;  %v3683_v57 = vcombine.low %v29_v56, %v29_v56  ;;  %v3684_v58 = vcombine.high %v29_v56, %v29_v56  ;;  %v4743_v56 = vld [vmem:[%s5966_s1 + $0x668] sm:$0xff]  }
  0x6a   :  { %4194 = vmatprep.subr.bf16.mxu1 %v4624_v59  ;;  %v30_v59 = vld [vmem:[%s5967_s0 + $0x48] sm:$0xff] }
  0x6c   :  { %4173 = vmatpush3.bf16.msra.mxu0 %v4625_v60  ;;  %v3685_v60 = vcombine.low %v30_v59, %v30_v59 }
  0x6d   :  { %4195 = vmatpush3.bf16.msra.mxu1 %v4626_v61  ;;  %4174 = vmatprep.subr.bf16.mxu0 %v4627_v62  ;;  %v3686_v61 = vcombine.high %v30_v59, %v30_v59  ;;  %v4687_v62 = vld [vmem:[%s5966_s1 + $0x540] sm:$0xff]   ;;  %v4746_v59 = vld [vmem:[%s5966_s1 + $0x6a8] sm:$0xff]  }
  0x6e   :  { %4196 = vmatprep.subr.bf16.mxu1 %v4628_v63  ;;  %v4688_v63 = vld [vmem:[%s5966_s1 + $0x5c0] sm:$0xff]  }
  0x70   :  { %4175 = vmatpush3.bf16.msra.mxu0 %v4629_v0  ;;  %v4689_v0 = vld [vmem:[%s5966_s1 + $0x500] sm:$0xff]  }
  0x71   :  { %4197 = vmatpush3.bf16.msra.mxu1 %v4630_v1  ;;  %4176 = vmatprep.subr.bf16.mxu0 %v4631_v2  ;;  %v4690_v1 = vld [vmem:[%s5966_s1 + $0x580] sm:$0xff]   ;;  %v4691_v2 = vld [vmem:[%s5966_s1 + $0x548] sm:$0xff]  }
  0x72   :  { %4198 = vmatprep.subr.bf16.mxu1 %v4632_v3  ;;  %v4692_v3 = vld [vmem:[%s5966_s1 + $0x5c8] sm:$0xff]  }
  0x74   :  { %4177 = vmatpush3.bf16.msra.mxu0 %v4633_v4  ;;  %v4693_v4 = vld [vmem:[%s5966_s1 + $0x508] sm:$0xff]  }
  0x75   :  { %4199 = vmatpush3.bf16.msra.mxu1 %v4634_v5  ;;  %4178 = vmatprep.subr.bf16.mxu0 %v4635_v6  ;;  %v4694_v5 = vld [vmem:[%s5966_s1 + $0x588] sm:$0xff]   ;;  %v4695_v6 = vld [vmem:[%s5966_s1 + $0x550] sm:$0xff]  }
  0x76   :  { %4200 = vmatprep.subr.bf16.mxu1 %v4636_v7  ;;  %v4696_v7 = vld [vmem:[%s5966_s1 + $0x5d0] sm:$0xff]  }
  0x78   :  { %4179 = vmatpush3.bf16.msra.mxu0 %v4637_v8  ;;  %v4697_v8 = vld [vmem:[%s5966_s1 + $0x510] sm:$0xff]  }
  0x79   :  { %4201 = vmatpush3.bf16.msra.mxu1 %v4638_v9  ;;  %4180 = vmatprep.subr.bf16.mxu0 %v4639_v10  ;;  %v4698_v9 = vld [vmem:[%s5966_s1 + $0x590] sm:$0xff]   ;;  %v4699_v10 = vld [vmem:[%s5966_s1 + $0x558] sm:$0xff]  }
  0x7a   :  { %4202 = vmatprep.subr.bf16.mxu1 %v4640_v11  ;;  %v4700_v11 = vld [vmem:[%s5966_s1 + $0x5d8] sm:$0xff]  }
  0x7c   :  { %4181 = vmatpush3.bf16.msra.mxu0 %v4641_v12  ;;  %v4701_v12 = vld [vmem:[%s5966_s1 + $0x518] sm:$0xff]  }
  0x7d   :  { %4203 = vmatpush3.bf16.msra.mxu1 %v4642_v13  ;;  %4182 = vmatprep.subr.bf16.mxu0 %v4643_v14  ;;  %v4702_v13 = vld [vmem:[%s5966_s1 + $0x598] sm:$0xff]   ;;  %v4703_v14 = vld [vmem:[%s5966_s1 + $0x560] sm:$0xff]  }
  0x7e   :  { %4204 = vmatprep.subr.bf16.mxu1 %v4644_v15  ;;  %v4704_v15 = vld [vmem:[%s5966_s1 + $0x5e0] sm:$0xff]  }
  0x80   :  { %4183 = vmatpush3.bf16.msra.mxu0 %v4645_v16  ;;  %v4705_v16 = vld [vmem:[%s5966_s1 + $0x520] sm:$0xff]  }
  0x81   :  { %4205 = vmatpush3.bf16.msra.mxu1 %v4646_v17  ;;  %4212 = vmatprep.subr.bf16.mxu0 %v4651_v23  ;;  %v4706_v17 = vld [vmem:[%s5966_s1 + $0x5a0] sm:$0xff]   ;;  %v4712_v23 = vld [vmem:[%s5966_s1 + $0x5f0] sm:$0xff]  }
  0x82   :  { %4234 = vmatprep.subr.bf16.mxu1 %v4652_v25  ;;  %v4714_v25 = vld [vmem:[%s5966_s1 + $0x5b0] sm:$0xff]  }
  0x83   :  { %3021 = vmatmul.mubr.bf16.vlgmr.msra.gmra.mrb[12].mxu0 %v3679_v20  ;;  %v4709_v20 = vld [vmem:[%s5966_s1 + $0x528] sm:$0xff]  }
  0x84   :  { %3061 = vmatmul.mubr.bf16.vlgmr.msra.gmra.mrb[12].mxu1 %v3681_v22  ;;  %4213 = vmatpush3.bf16.msra.mxu0 %v4653_v26  ;;  %v4711_v22 = vld [vmem:[%s5966_s1 + $0x570] sm:$0xff]   ;;  %v4715_v26 = vld [vmem:[%s5966_s1 + $0x578] sm:$0xff]  }
  0x85   :  { %4235 = vmatpush3.bf16.msra.mxu1 %v4654_v27  ;;  %4214 = vmatprep.subr.bf16.mxu0 %v4655_v28  ;;  %v4716_v27 = vld [vmem:[%s5966_s1 + $0x5f8] sm:$0xff]  }
  0x86   :  { %4236 = vmatprep.subr.bf16.mxu1 %v4656_v29  ;;  %3100 = vmatprep.mubr.bf16.mxu0 %v3684_v58  ;;  %v4717_v28 = vld [vmem:[%s5966_s1 + $0x538] sm:$0xff]   ;;  %v4745_v58 = vld [vmem:[%s5966_s1 + $0x628] sm:$0xff]  }
  0x87   :  { %3140 = vmatprep.mubr.bf16.mxu1 %v3686_v61  ;;  %v4718_v29 = vld [vmem:[%s5966_s1 + $0x5b8] sm:$0xff]   ;;  %v4748_v61 = vld [vmem:[%s5966_s1 + $0x6f0] sm:$0xff]  }
  0x88   :  { %4215 = vmatpush3.bf16.msra.mxu0 %v4657_v30  ;;  %v31_v30 = vld [vmem:[%s5967_s0 + $0x50] sm:$0xff] }
  0x89   :  { %4237 = vmatpush3.bf16.msra.mxu1 %v4658_v31  ;;  %4216 = vmatprep.subr.bf16.mxu0 %v4659_v32  ;;  %v32_v31 = vld [vmem:[%s5967_s0 + $0x58] sm:$0xff]  ;;  %v3687_v32 = vcombine.low %v31_v30, %v31_v30 }
  0x8a   :  { %4238 = vmatprep.subr.bf16.mxu1 %v4660_v33  ;;  %v3688_v33 = vcombine.high %v31_v30, %v31_v30  ;;  %v4778_v30 = vld [vmem:[%s5966_s1 + $0x7a0] sm:$0xff]  }
  0x8c   :  { %4217 = vmatpush3.bf16.msra.mxu0 %v4661_v34  ;;  %v3689_v34 = vcombine.low %v32_v31, %v32_v31 }
  0x8d   :  { %4239 = vmatpush3.bf16.msra.mxu1 %v4662_v35  ;;  %4218 = vmatprep.subr.bf16.mxu0 %v4663_v36  ;;  %v3690_v35 = vcombine.high %v32_v31, %v32_v31  ;;  %v4723_v36 = vld [vmem:[%s5966_s1 + $0x640] sm:$0xff]  }
  0x8e   :  { %4240 = vmatprep.subr.bf16.mxu1 %v4664_v37  ;;  %v4724_v37 = vld [vmem:[%s5966_s1 + $0x6c0] sm:$0xff]  }
  0x90   :  { %4219 = vmatpush3.bf16.msra.mxu0 %v4665_v38  ;;  %v4725_v38 = vld [vmem:[%s5966_s1 + $0x600] sm:$0xff]  }
  0x91   :  { %4241 = vmatpush3.bf16.msra.mxu1 %v4666_v39  ;;  %4220 = vmatprep.subr.bf16.mxu0 %v4667_v40  ;;  %v4726_v39 = vld [vmem:[%s5966_s1 + $0x680] sm:$0xff]   ;;  %v4727_v40 = vld [vmem:[%s5966_s1 + $0x648] sm:$0xff]  }
  0x92   :  { %4242 = vmatprep.subr.bf16.mxu1 %v4668_v41  ;;  %v4728_v41 = vld [vmem:[%s5966_s1 + $0x6c8] sm:$0xff]  }
  0x94   :  { %4221 = vmatpush3.bf16.msra.mxu0 %v4669_v42  ;;  %v4729_v42 = vld [vmem:[%s5966_s1 + $0x608] sm:$0xff]  }
  0x95   :  { %4243 = vmatpush3.bf16.msra.mxu1 %v4670_v43  ;;  %4222 = vmatprep.subr.bf16.mxu0 %v4671_v44  ;;  %v4730_v43 = vld [vmem:[%s5966_s1 + $0x688] sm:$0xff]   ;;  %v4731_v44 = vld [vmem:[%s5966_s1 + $0x650] sm:$0xff]  }
  0x96   :  { %4244 = vmatprep.subr.bf16.mxu1 %v4672_v45  ;;  %v4732_v45 = vld [vmem:[%s5966_s1 + $0x6d0] sm:$0xff]  }
  0x98   :  { %4223 = vmatpush3.bf16.msra.mxu0 %v4673_v46  ;;  %v4733_v46 = vld [vmem:[%s5966_s1 + $0x610] sm:$0xff]  }
  0x99   :  { %4245 = vmatpush3.bf16.msra.mxu1 %v4674_v47  ;;  %4224 = vmatprep.subr.bf16.mxu0 %v4675_v48  ;;  %v4734_v47 = vld [vmem:[%s5966_s1 + $0x690] sm:$0xff]   ;;  %v4735_v48 = vld [vmem:[%s5966_s1 + $0x658] sm:$0xff]  }
  0x9a   :  { %4246 = vmatprep.subr.bf16.mxu1 %v4676_v49  ;;  %v4736_v49 = vld [vmem:[%s5966_s1 + $0x6d8] sm:$0xff]  }
  0x9c   :  { %4225 = vmatpush3.bf16.msra.mxu0 %v4677_v50  ;;  %v4737_v50 = vld [vmem:[%s5966_s1 + $0x618] sm:$0xff]  }
  0x9d   :  { %4247 = vmatpush3.bf16.msra.mxu1 %v4678_v51  ;;  %4226 = vmatprep.subr.bf16.mxu0 %v4679_v52  ;;  %v4738_v51 = vld [vmem:[%s5966_s1 + $0x698] sm:$0xff]   ;;  %v4739_v52 = vld [vmem:[%s5966_s1 + $0x660] sm:$0xff]  }
  0x9e   :  { %4248 = vmatprep.subr.bf16.mxu1 %v4680_v53  ;;  %v4740_v53 = vld [vmem:[%s5966_s1 + $0x6e0] sm:$0xff]  }
  0xa0   :  { %4227 = vmatpush3.bf16.msra.mxu0 %v4681_v54  ;;  %v4741_v54 = vld [vmem:[%s5966_s1 + $0x620] sm:$0xff]  }
  0xa1   :  { %4249 = vmatpush3.bf16.msra.mxu1 %v4682_v55  ;;  %4256 = vmatprep.subr.bf16.mxu0 %v4687_v62  ;;  %v4742_v55 = vld [vmem:[%s5966_s1 + $0x6a0] sm:$0xff]   ;;  %v4749_v62 = vld [vmem:[%s5966_s1 + $0x630] sm:$0xff]  }
  0xa2   :  { %4278 = vmatprep.subr.bf16.mxu1 %v4688_v63  ;;  %v4750_v63 = vld [vmem:[%s5966_s1 + $0x6b0] sm:$0xff]  }
  0xa3   :  { %3101 = vmatmul.mubr.bf16.vlgmr.msra.gmra.mrb[16].mxu0 %v3683_v57  ;;  %v4744_v57 = vld [vmem:[%s5966_s1 + $0x6e8] sm:$0xff]  }
  0xa4   :  { %3141 = vmatmul.mubr.bf16.vlgmr.msra.gmra.mrb[16].mxu1 %v3685_v60  ;;  %4257 = vmatpush3.bf16.msra.mxu0 %v4689_v0  ;;  %v4747_v60 = vld [vmem:[%s5966_s1 + $0x670] sm:$0xff]   ;;  %v4751_v0 = vld [vmem:[%s5966_s1 + $0x678] sm:$0xff]  }
  0xa5   :  { %4279 = vmatpush3.bf16.msra.mxu1 %v4690_v1  ;;  %4258 = vmatprep.subr.bf16.mxu0 %v4691_v2  ;;  %v4752_v1 = vld [vmem:[%s5966_s1 + $0x6f8] sm:$0xff]  }
  0xa6   :  { %4280 = vmatprep.subr.bf16.mxu1 %v4692_v3  ;;  %3180 = vmatprep.mubr.bf16.mxu0 %v3688_v33  ;;  %v4753_v2 = vld [vmem:[%s5966_s1 + $0x638] sm:$0xff]  }
  0xa7   :  { %3220 = vmatprep.mubr.bf16.mxu1 %v3690_v35  ;;  %v4754_v3 = vld [vmem:[%s5966_s1 + $0x6b8] sm:$0xff]  }
  0xa8   :  { %4259 = vmatpush3.bf16.msra.mxu0 %v4693_v4  ;;  %v33_v4 = vld [vmem:[%s5967_s0 + $0x60] sm:$0xff] }
  0xa9   :  { %4281 = vmatpush3.bf16.msra.mxu1 %v4694_v5  ;;  %4260 = vmatprep.subr.bf16.mxu0 %v4695_v6  ;;  %v34_v5 = vld [vmem:[%s5967_s0 + $0x68] sm:$0xff]  ;;  %v3691_v6 = vcombine.low %v33_v4, %v33_v4 }
  0xaa   :  { %4282 = vmatprep.subr.bf16.mxu1 %v4696_v7  ;;  %v3692_v7 = vcombine.high %v33_v4, %v33_v4  ;;  %v4802_v4 = vld [vmem:[%s5966_s1 + $0x888] sm:$0xff]  }
  0xac   :  { %4261 = vmatpush3.bf16.msra.mxu0 %v4697_v8  ;;  %v3693_v8 = vcombine.low %v34_v5, %v34_v5 }
  0xad   :  { %4283 = vmatpush3.bf16.msra.mxu1 %v4698_v9  ;;  %4262 = vmatprep.subr.bf16.mxu0 %v4699_v10  ;;  %v4759_v9 = vld [vmem:[%s5966_s1 + $0x740] sm:$0xff]   ;;  %v3694_v10 = vcombine.high %v34_v5, %v34_v5  ;;  %v4803_v5 = vld [vmem:[%s5966_s1 + $0x850] sm:$0xff]  }
  0xae   :  { %4284 = vmatprep.subr.bf16.mxu1 %v4700_v11  ;;  %v4760_v11 = vld [vmem:[%s5966_s1 + $0x7c0] sm:$0xff]  }
  0xb0   :  { %4263 = vmatpush3.bf16.msra.mxu0 %v4701_v12  ;;  %v4761_v12 = vld [vmem:[%s5966_s1 + $0x700] sm:$0xff]  }
  0xb1   :  { %4285 = vmatpush3.bf16.msra.mxu1 %v4702_v13  ;;  %4264 = vmatprep.subr.bf16.mxu0 %v4703_v14  ;;  %v4762_v13 = vld [vmem:[%s5966_s1 + $0x780] sm:$0xff]   ;;  %v4763_v14 = vld [vmem:[%s5966_s1 + $0x748] sm:$0xff]  }
  0xb2   :  { %4286 = vmatprep.subr.bf16.mxu1 %v4704_v15  ;;  %v4764_v15 = vld [vmem:[%s5966_s1 + $0x7c8] sm:$0xff]  }
  0xb4   :  { %4265 = vmatpush3.bf16.msra.mxu0 %v4705_v16  ;;  %v4765_v16 = vld [vmem:[%s5966_s1 + $0x708] sm:$0xff]  }
  0xb5   :  { %4287 = vmatpush3.bf16.msra.mxu1 %v4706_v17  ;;  %4266 = vmatprep.subr.bf16.mxu0 %v4707_v18  ;;  %v4766_v17 = vld [vmem:[%s5966_s1 + $0x788] sm:$0xff]   ;;  %v4767_v18 = vld [vmem:[%s5966_s1 + $0x750] sm:$0xff]  }
  0xb6   :  { %4288 = vmatprep.subr.bf16.mxu1 %v4708_v19  ;;  %v4768_v19 = vld [vmem:[%s5966_s1 + $0x7d0] sm:$0xff]  }
  0xb8   :  { %4267 = vmatpush3.bf16.msra.mxu0 %v4709_v20  ;;  %v4769_v20 = vld [vmem:[%s5966_s1 + $0x710] sm:$0xff]  }
  0xb9   :  { %4289 = vmatpush3.bf16.msra.mxu1 %v4710_v21  ;;  %4268 = vmatprep.subr.bf16.mxu0 %v4711_v22  ;;  %v4770_v21 = vld [vmem:[%s5966_s1 + $0x790] sm:$0xff]   ;;  %v4771_v22 = vld [vmem:[%s5966_s1 + $0x758] sm:$0xff]  }
  0xba   :  { %4290 = vmatprep.subr.bf16.mxu1 %v4712_v23  ;;  %v4772_v23 = vld [vmem:[%s5966_s1 + $0x7d8] sm:$0xff]  }
  0xbc   :  { %4269 = vmatpush3.bf16.msra.mxu0 %v4713_v24  ;;  %v4773_v24 = vld [vmem:[%s5966_s1 + $0x718] sm:$0xff]  }
  0xbd   :  { %4291 = vmatpush3.bf16.msra.mxu1 %v4714_v25  ;;  %4270 = vmatprep.subr.bf16.mxu0 %v4715_v26  ;;  %v4774_v25 = vld [vmem:[%s5966_s1 + $0x798] sm:$0xff]   ;;  %v4775_v26 = vld [vmem:[%s5966_s1 + $0x760] sm:$0xff]  }
  0xbe   :  { %4292 = vmatprep.subr.bf16.mxu1 %v4716_v27  ;;  %v4776_v27 = vld [vmem:[%s5966_s1 + $0x7e0] sm:$0xff]  }
  0xc0   :  { %4271 = vmatpush3.bf16.msra.mxu0 %v4717_v28  ;;  %v4777_v28 = vld [vmem:[%s5966_s1 + $0x720] sm:$0xff]  }
  0xc1   :  { %4293 = vmatpush3.bf16.msra.mxu1 %v4718_v29  ;;  %4300 = vmatprep.subr.bf16.mxu0 %v4723_v36 }
  0xc2   :  { %4322 = vmatprep.subr.bf16.mxu1 %v4724_v37  ;;  %v4779_v37 = vld [vmem:[%s5966_s1 + $0x768] sm:$0xff]  }
  0xc3   :  { %3181 = vmatmul.mubr.bf16.vlgmr.msra.gmra.mrb[20].mxu0 %v3687_v32  ;;  %v3666_v32 = vld [vmem:[%s5968_s2] ss:$0 sm:$0xff] }
  0xc4   :  { %3221 = vmatmul.mubr.bf16.vlgmr.msra.gmra.mrb[20].mxu1 %v3689_v34  ;;  %4301 = vmatpush3.bf16.msra.mxu0 %v4725_v38 }
  0xc5   :  { %4323 = vmatpush3.bf16.msra.mxu1 %v4726_v39  ;;  %4302 = vmatprep.subr.bf16.mxu0 %v4727_v40  ;;  %v4780_v39 = vld [vmem:[%s5966_s1 + $0x7e8] sm:$0xff]  }
  0xc6   :  { %4324 = vmatprep.subr.bf16.mxu1 %v4728_v41  ;;  %3260 = vmatprep.mubr.bf16.mxu0 %v3692_v7  ;;  %v4805_v7 = vld [vmem:[%s5966_s1 + $0x810] sm:$0xff]  }
  0xc7   :  { %3300 = vmatprep.mubr.bf16.mxu1 %v3694_v10  ;;  %v4808_v10 = vld [vmem:[%s5966_s1 + $0x8d8] sm:$0xff]  }
  0xc8   :  { %4303 = vmatpush3.bf16.msra.mxu0 %v4729_v42  ;;  %v4781_v42 = vld [vmem:[%s5966_s1 + $0x728] sm:$0xff]  }
  0xc9   :  { %4325 = vmatpush3.bf16.msra.mxu1 %v4730_v43  ;;  %4304 = vmatprep.subr.bf16.mxu0 %v4731_v44  ;;  %v4782_v44 = vld [vmem:[%s5966_s1 + $0x7a8] sm:$0xff]  }
  0xca   :  { %4326 = vmatprep.subr.bf16.mxu1 %v4732_v45 }
  0xcc   :  { %4305 = vmatpush3.bf16.msra.mxu0 %v4733_v46 }
  0xcd   :  { %4327 = vmatpush3.bf16.msra.mxu1 %v4734_v47  ;;  %4306 = vmatprep.subr.bf16.mxu0 %v4735_v48  ;;  %v4783_v47 = vld [vmem:[%s5966_s1 + $0x770] sm:$0xff]  }
  0xce   :  { %4328 = vmatprep.subr.bf16.mxu1 %v4736_v49  ;;  %v4784_v48 = vld [vmem:[%s5966_s1 + $0x7f0] sm:$0xff]  }
  0xcf   :  { %v4785_v49 = vld [vmem:[%s5966_s1 + $0x730] sm:$0xff]  }
  0xd0   :  { %4307 = vmatpush3.bf16.msra.mxu0 %v4737_v50  ;;  %v4786_v50 = vld [vmem:[%s5966_s1 + $0x7b0] sm:$0xff]  }
  0xd1   :  { %4329 = vmatpush3.bf16.msra.mxu1 %v4738_v51  ;;  %4308 = vmatprep.subr.bf16.mxu0 %v4739_v52  ;;  %v4787_v51 = vld [vmem:[%s5966_s1 + $0x778] sm:$0xff]  }
  0xd2   :  { %4330 = vmatprep.subr.bf16.mxu1 %v4740_v53  ;;  %v4788_v52 = vld [vmem:[%s5966_s1 + $0x7f8] sm:$0xff]  }
  0xd3   :  { %v4789_v53 = vld [vmem:[%s5966_s1 + $0x738] sm:$0xff]  }
  0xd4   :  { %4309 = vmatpush3.bf16.msra.mxu0 %v4741_v54  ;;  %v4790_v54 = vld [vmem:[%s5966_s1 + $0x7b8] sm:$0xff]  }
  0xd5   :  { %4331 = vmatpush3.bf16.msra.mxu1 %v4742_v55  ;;  %4310 = vmatprep.subr.bf16.mxu0 %v4743_v56  ;;  %v35_v55 = vld [vmem:[%s5967_s0 + $0x70] sm:$0xff]  ;;  %v36_v56 = vld [vmem:[%s5967_s0 + $0x78] sm:$0xff] }
  0xd6   :  { %4332 = vmatprep.subr.bf16.mxu1 %v4744_v57  ;;  %v3695_v57 = vcombine.low %v35_v55, %v35_v55 }
  0xd8   :  { %4311 = vmatpush3.bf16.msra.mxu0 %v4745_v58  ;;  %v3696_v58 = vcombine.high %v35_v55, %v35_v55  ;;  %v4839_v55 = vld [vmem:[%s5966_s1 + $0x950] sm:$0xff]  }
  0xd9   :  { %4333 = vmatpush3.bf16.msra.mxu1 %v4746_v59  ;;  %4312 = vmatprep.subr.bf16.mxu0 %v4747_v60  ;;  %v3697_v59 = vcombine.low %v36_v56, %v36_v56  ;;  %v3698_v60 = vcombine.high %v36_v56, %v36_v56  ;;  %v4840_v56 = vld [vmem:[%s5966_s1 + $0x9d0] sm:$0xff]  }
  0xda   :  { %4334 = vmatprep.subr.bf16.mxu1 %v4748_v61  ;;  %v4795_v61 = vld [vmem:[%s5966_s1 + $0x840] sm:$0xff]  }
  0xdc   :  { %4313 = vmatpush3.bf16.msra.mxu0 %v4749_v62  ;;  %v4796_v62 = vld [vmem:[%s5966_s1 + $0x8c0] sm:$0xff]  }
  0xdd   :  { %4335 = vmatpush3.bf16.msra.mxu1 %v4750_v63  ;;  %4314 = vmatprep.subr.bf16.mxu0 %v4751_v0  ;;  %v4797_v63 = vld [vmem:[%s5966_s1 + $0x800] sm:$0xff]  }
  0xde   :  { %4336 = vmatprep.subr.bf16.mxu1 %v4752_v1  ;;  %v4798_v0 = vld [vmem:[%s5966_s1 + $0x880] sm:$0xff]   ;;  %v4799_v1 = vld [vmem:[%s5966_s1 + $0x848] sm:$0xff]  }
  0xe0   :  { %4315 = vmatpush3.bf16.msra.mxu0 %v4753_v2  ;;  %v4800_v2 = vld [vmem:[%s5966_s1 + $0x8c8] sm:$0xff]  }
  0xe1   :  { %4337 = vmatpush3.bf16.msra.mxu1 %v4754_v3  ;;  %4344 = vmatprep.subr.bf16.mxu0 %v4759_v9  ;;  %v4801_v3 = vld [vmem:[%s5966_s1 + $0x808] sm:$0xff]   ;;  %v4807_v9 = vld [vmem:[%s5966_s1 + $0x858] sm:$0xff]  }
  0xe2   :  { %4366 = vmatprep.subr.bf16.mxu1 %v4760_v11  ;;  %v4809_v11 = vld [vmem:[%s5966_s1 + $0x818] sm:$0xff]  }
  0xe3   :  { %3261 = vmatmul.mubr.bf16.vlgmr.msra.gmra.mrb[24].mxu0 %v3691_v6  ;;  %v4804_v6 = vld [vmem:[%s5966_s1 + $0x8d0] sm:$0xff]  }
  0xe4   :  { %3301 = vmatmul.mubr.bf16.vlgmr.msra.gmra.mrb[24].mxu1 %v3693_v8  ;;  %4345 = vmatpush3.bf16.msra.mxu0 %v4761_v12  ;;  %v4806_v8 = vld [vmem:[%s5966_s1 + $0x890] sm:$0xff]   ;;  %v4810_v12 = vld [vmem:[%s5966_s1 + $0x898] sm:$0xff]  }
  0xe5   :  { %4367 = vmatpush3.bf16.msra.mxu1 %v4762_v13  ;;  %4346 = vmatprep.subr.bf16.mxu0 %v4763_v14  ;;  %v4811_v13 = vld [vmem:[%s5966_s1 + $0x860] sm:$0xff]  }
  0xe6   :  { %4368 = vmatprep.subr.bf16.mxu1 %v4764_v15  ;;  %3340 = vmatprep.mubr.bf16.mxu0 %v3696_v58  ;;  %v4812_v14 = vld [vmem:[%s5966_s1 + $0x8e0] sm:$0xff]   ;;  %v4842_v58 = vld [vmem:[%s5966_s1 + $0x990] sm:$0xff]  }
  0xe7   :  { %3380 = vmatprep.mubr.bf16.mxu1 %v3698_v60  ;;  %v4813_v15 = vld [vmem:[%s5966_s1 + $0x820] sm:$0xff]   ;;  %v4844_v60 = vld [vmem:[%s5966_s1 + $0x9d8] sm:$0xff]  }
  0xe8   :  { %4347 = vmatpush3.bf16.msra.mxu0 %v4765_v16 }
  0xe9   :  { %4369 = vmatpush3.bf16.msra.mxu1 %v4766_v17  ;;  %4348 = vmatprep.subr.bf16.mxu0 %v4767_v18  ;;  %v4814_v17 = vld [vmem:[%s5966_s1 + $0x8a0] sm:$0xff]  }
  0xea   :  { %4370 = vmatprep.subr.bf16.mxu1 %v4768_v19 }
  0xec   :  { %4349 = vmatpush3.bf16.msra.mxu0 %v4769_v20 }
  0xed   :  { %4371 = vmatpush3.bf16.msra.mxu1 %v4770_v21  ;;  %4350 = vmatprep.subr.bf16.mxu0 %v4771_v22 }
  0xee   :  { %4372 = vmatprep.subr.bf16.mxu1 %v4772_v23  ;;  %v4815_v23 = vld [vmem:[%s5966_s1 + $0x868] sm:$0xff]  }
  0xf0   :  { %4351 = vmatpush3.bf16.msra.mxu0 %v4773_v24 }
  0xf1   :  { %4373 = vmatpush3.bf16.msra.mxu1 %v4774_v25  ;;  %4352 = vmatprep.subr.bf16.mxu0 %v4775_v26  ;;  %v4816_v25 = vld [vmem:[%s5966_s1 + $0x8e8] sm:$0xff]  }
  0xf2   :  { %4374 = vmatprep.subr.bf16.mxu1 %v4776_v27 }
  0xf4   :  { %4353 = vmatpush3.bf16.msra.mxu0 %v4777_v28  ;;  %v4817_v28 = vld [vmem:[%s5966_s1 + $0x828] sm:$0xff]  }
  0xf5   :  { %4375 = vmatpush3.bf16.msra.mxu1 %v4778_v30  ;;  %4354 = vmatprep.subr.bf16.mxu0 %v4779_v37  ;;  %v4818_v30 = vld [vmem:[%s5966_s1 + $0x8a8] sm:$0xff]   ;;  %v4823_v37 = vld [vmem:[%s5966_s1 + $0x878] sm:$0xff]  }
  0xf6   :  { %v4052_v29 = vpop.f32.mrb[0].mxu0  ;;  %4376 = vmatprep.subr.bf16.mxu1 %v4780_v39  ;;  %v4825_v39 = vld [vmem:[%s5966_s1 + $0x838] sm:$0xff]  }
  0xf7   :  { %v4074_v31 = vpop.f32.mrb[0].mxu1  ;;  %v4053_v33 = vpop.f32.mrb[1].mxu0 }
  0xf8   :  { %v4075_v34 = vpop.f32.mrb[1].mxu1  ;;  %v4054_v35 = vadd.f32 %v4053_v33, %v4052_v29  ;;  %v4055_v38 = vpop.f32.mrb[2].mxu0  ;;  %4355 = vmatpush3.bf16.msra.mxu0 %v4781_v42  ;;  %v4819_v33 = vld [vmem:[%s5966_s1 + $0x870] sm:$0xff]   ;;  %v38_v42 = vld [vmem:[%s5967_s0 + $0x88] sm:$0xff] }
  0xf9   :  { %v4076_v36 = vadd.f32 %v4075_v34, %v4074_v31  ;;  %v4077_v40 = vpop.f32.mrb[2].mxu1  ;;  %v4056_v43 = vpop.f32.mrb[3].mxu0  ;;  %4377 = vmatpush3.bf16.msra.mxu1 %v4782_v44  ;;  %4356 = vmatprep.subr.bf16.mxu0 %v4783_v47  ;;  %v4820_v34 = vld [vmem:[%s5966_s1 + $0x8f0] sm:$0xff]   ;;  %v4824_v38 = vld [vmem:[%s5966_s1 + $0x8f8] sm:$0xff]   ;;  %v4831_v47 = vld [vmem:[%s5966_s1 + $0x940] sm:$0xff]  }
  0xfa   :  { %v2783_v41 = vadd.f32 %v4054_v35, %v3666_v32  ;;  %v4078_v45 = vpop.f32.mrb[3].mxu1  ;;  %4378 = vmatprep.subr.bf16.mxu1 %v4784_v48  ;;  %v4821_v35 = vld [vmem:[%s5966_s1 + $0x830] sm:$0xff]   ;;  %v4826_v40 = vld [vmem:[%s5966_s1 + $0x8b8] sm:$0xff]   ;;  %v4832_v48 = vld [vmem:[%s5966_s1 + $0x9c0] sm:$0xff]  }
  0xfb   :  { %v3701_v45 = vcombine.low %v38_v42, %v38_v42 }
  0xfc   :  { %v5696_v46 = vadd.f32 %v4076_v36, %v2783_v41  ;;  %4357 = vmatpush3.bf16.msra.mxu0 %v4785_v49  ;;  %v4822_v36 = vld [vmem:[%s5966_s1 + $0x8b0] sm:$0xff]   ;;  %v37_v41 = vld [vmem:[%s5967_s0 + $0x80] sm:$0xff] }
  0xfd   :  { %4379 = vmatpush3.bf16.msra.mxu1 %v4786_v50  ;;  %4358 = vmatprep.subr.bf16.mxu0 %v4787_v51  ;;  %v3699_v43 = vcombine.low %v37_v41, %v37_v41  ;;  %v3700_v44 = vcombine.high %v37_v41, %v37_v41  ;;  %v4833_v49 = vld [vmem:[%s5966_s1 + $0x900] sm:$0xff]   ;;  %v4835_v51 = vld [vmem:[%s5966_s1 + $0x948] sm:$0xff]  }
  0xfe   :  { %4380 = vmatprep.subr.bf16.mxu1 %v4788_v52  ;;  %v4834_v50 = vld [vmem:[%s5966_s1 + $0x980] sm:$0xff]   ;;  %v4836_v52 = vld [vmem:[%s5966_s1 + $0x9c8] sm:$0xff]  }
 0x100   :  { %4359 = vmatpush3.bf16.msra.mxu0 %v4789_v53  ;;  %v4837_v53 = vld [vmem:[%s5966_s1 + $0x908] sm:$0xff]  }
 0x101   :  { %4381 = vmatpush3.bf16.msra.mxu1 %v4790_v54  ;;  %4388 = vmatprep.subr.bf16.mxu0 %v4795_v61  ;;  %v4838_v54 = vld [vmem:[%s5966_s1 + $0x988] sm:$0xff]   ;;  %v4845_v61 = vld [vmem:[%s5966_s1 + $0x918] sm:$0xff]  }
 0x102   :  { %4410 = vmatprep.subr.bf16.mxu1 %v4796_v62  ;;  %v4846_v62 = vld [vmem:[%s5966_s1 + $0x998] sm:$0xff]  }
 0x103   :  { %3341 = vmatmul.mubr.bf16.vlgmr.msra.gmra.mrb[28].mxu0 %v3695_v57  ;;  %v4841_v57 = vld [vmem:[%s5966_s1 + $0x910] sm:$0xff]  }
 0x104   :  { %3381 = vmatmul.mubr.bf16.vlgmr.msra.gmra.mrb[28].mxu1 %v3697_v59  ;;  %4389 = vmatpush3.bf16.msra.mxu0 %v4797_v63  ;;  %v4843_v59 = vld [vmem:[%s5966_s1 + $0x958] sm:$0xff]   ;;  %v4847_v63 = vld [vmem:[%s5966_s1 + $0x960] sm:$0xff]  }
 0x105   :  { %4411 = vmatpush3.bf16.msra.mxu1 %v4798_v0  ;;  %4390 = vmatprep.subr.bf16.mxu0 %v4799_v1  ;;  %v4848_v0 = vld [vmem:[%s5966_s1 + $0x9e0] sm:$0xff]  }
 0x106   :  { %4412 = vmatprep.subr.bf16.mxu1 %v4800_v2  ;;  %3420 = vmatprep.mubr.bf16.mxu0 %v3700_v44  ;;  %v4849_v2 = vld [vmem:[%s5966_s1 + $0x920] sm:$0xff]  }
 0x108   :  { %4391 = vmatpush3.bf16.msra.mxu0 %v4801_v3 }
 0x109   :  { %4413 = vmatpush3.bf16.msra.mxu1 %v4802_v4  ;;  %4392 = vmatprep.subr.bf16.mxu0 %v4803_v5  ;;  %v4850_v4 = vld [vmem:[%s5966_s1 + $0x9a0] sm:$0xff]  }
 0x10a   :  { %4414 = vmatprep.subr.bf16.mxu1 %v4804_v6 }
 0x10c   :  { %4393 = vmatpush3.bf16.msra.mxu0 %v4805_v7 }
 0x10d   :  { %4415 = vmatpush3.bf16.msra.mxu1 %v4806_v8  ;;  %4394 = vmatprep.subr.bf16.mxu0 %v4807_v9  ;;  %v4851_v8 = vld [vmem:[%s5966_s1 + $0x968] sm:$0xff]  }
 0x10e   :  { %4416 = vmatprep.subr.bf16.mxu1 %v4808_v10  ;;  %v4852_v10 = vld [vmem:[%s5966_s1 + $0x9e8] sm:$0xff]  }
 0x110   :  { %4395 = vmatpush3.bf16.msra.mxu0 %v4809_v11 }
 0x111   :  { %4417 = vmatpush3.bf16.msra.mxu1 %v4810_v12  ;;  %4396 = vmatprep.subr.bf16.mxu0 %v4811_v13 }
 0x112   :  { %4418 = vmatprep.subr.bf16.mxu1 %v4812_v14  ;;  %v4853_v14 = vld [vmem:[%s5966_s1 + $0x928] sm:$0xff]  }
 0x114   :  { %4397 = vmatpush3.bf16.msra.mxu0 %v4813_v15  ;;  %v4854_v15 = vld [vmem:[%s5966_s1 + $0x9a8] sm:$0xff]  }
 0x115   :  { %4419 = vmatpush3.bf16.msra.mxu1 %v4814_v17  ;;  %4398 = vmatprep.subr.bf16.mxu0 %v4815_v23  ;;  %v4859_v23 = vld [vmem:[%s5966_s1 + $0x978] sm:$0xff]  }
 0x116   :  { %v4096_v16 = vpop.f32.mrb[4].mxu0  ;;  %4420 = vmatprep.subr.bf16.mxu1 %v4816_v25  ;;  %v4861_v25 = vld [vmem:[%s5966_s1 + $0x938] sm:$0xff]  }
 0x117   :  { %v4118_v18 = vpop.f32.mrb[4].mxu1  ;;  %v4097_v19 = vpop.f32.mrb[5].mxu0 }
 0x118   :  { %v4119_v20 = vpop.f32.mrb[5].mxu1  ;;  %v4098_v21 = vadd.f32 %v4097_v19, %v4096_v16  ;;  %v4099_v24 = vpop.f32.mrb[6].mxu0  ;;  %4399 = vmatpush3.bf16.msra.mxu0 %v4817_v28  ;;  %v4855_v19 = vld [vmem:[%s5966_s1 + $0x970] sm:$0xff]   ;;  %v40_v28 = vld [vmem:[%s5967_s0 + $0x98] sm:$0xff] }
 0x119   :  { %v4120_v22 = vadd.f32 %v4119_v20, %v4118_v18  ;;  %v4121_v26 = vpop.f32.mrb[6].mxu1  ;;  %v4100_v29 = vpop.f32.mrb[7].mxu0  ;;  %4421 = vmatpush3.bf16.msra.mxu1 %v4818_v30  ;;  %4400 = vmatprep.subr.bf16.mxu0 %v4819_v33  ;;  %v4856_v20 = vld [vmem:[%s5966_s1 + $0x9f0] sm:$0xff]   ;;  %v4860_v24 = vld [vmem:[%s5966_s1 + $0x9f8] sm:$0xff]  }
 0x11a   :  { %v2863_v27 = vadd.f32 %v4098_v21, %v5696_v46  ;;  %v4122_v31 = vpop.f32.mrb[7].mxu1  ;;  %4422 = vmatprep.subr.bf16.mxu1 %v4820_v34  ;;  %v3702_v46 = vcombine.high %v38_v42, %v38_v42  ;;  %v4857_v21 = vld [vmem:[%s5966_s1 + $0x930] sm:$0xff]   ;;  %v4862_v26 = vld [vmem:[%s5966_s1 + $0x9b8] sm:$0xff]  }
 0x11b   :  { %v3705_v31 = vcombine.low %v40_v28, %v40_v28 }
 0x11c   :  { %v5801_v32 = vadd.f32 %v4120_v22, %v2863_v27  ;;  %4401 = vmatpush3.bf16.msra.mxu0 %v4821_v35  ;;  %3460 = vmatprep.mubr.bf16.mxu1 %v3702_v46  ;;  %v4858_v22 = vld [vmem:[%s5966_s1 + $0x9b0] sm:$0xff]  }
 0x11d   :  { %4423 = vmatpush3.bf16.msra.mxu1 %v4822_v36  ;;  %4402 = vmatprep.subr.bf16.mxu0 %v4823_v37  ;;  %v39_v27 = vld [vmem:[%s5967_s0 + $0x90] sm:$0xff] }
 0x11e   :  { %4424 = vmatprep.subr.bf16.mxu1 %v4824_v38  ;;  %v3703_v29 = vcombine.low %v39_v27, %v39_v27  ;;  %v3704_v30 = vcombine.high %v39_v27, %v39_v27 }
 0x120   :  { %4403 = vmatpush3.bf16.msra.mxu0 %v4825_v39 }
 0x121   :  { %4425 = vmatpush3.bf16.msra.mxu1 %v4826_v40  ;;  %4432 = vmatprep.subr.bf16.mxu0 %v4831_v47 }
 0x122   :  { %4454 = vmatprep.subr.bf16.mxu1 %v4832_v48 }
 0x123   :  { %3421 = vmatmul.mubr.bf16.vlgmr.msra.gmra.mrb[32].mxu0 %v3699_v43 }
 0x124   :  { %3461 = vmatmul.mubr.bf16.vlgmr.msra.gmra.mrb[32].mxu1 %v3701_v45  ;;  %4433 = vmatpush3.bf16.msra.mxu0 %v4833_v49 }
 0x125   :  { %4455 = vmatpush3.bf16.msra.mxu1 %v4834_v50  ;;  %4434 = vmatprep.subr.bf16.mxu0 %v4835_v51 }
 0x126   :  { %4456 = vmatprep.subr.bf16.mxu1 %v4836_v52  ;;  %3500 = vmatprep.mubr.bf16.mxu0 %v3704_v30 }
 0x128   :  { %4435 = vmatpush3.bf16.msra.mxu0 %v4837_v53 }
 0x129   :  { %4457 = vmatpush3.bf16.msra.mxu1 %v4838_v54  ;;  %4436 = vmatprep.subr.bf16.mxu0 %v4839_v55 }
 0x12a   :  { %4458 = vmatprep.subr.bf16.mxu1 %v4840_v56 }
 0x12c   :  { %4437 = vmatpush3.bf16.msra.mxu0 %v4841_v57  ;;  %v4875_v57 = vmov 0.0  }
 0x12d   :  { %4459 = vmatpush3.bf16.msra.mxu1 %v4842_v58  ;;  %4438 = vmatprep.subr.bf16.mxu0 %v4843_v59  ;;  %v4867_v58 = vld [vmem:[%s5969_s3] sm:$0xff]   ;;  %v4868_v59 = vld [vmem:[%s5969_s3 + $0x8] sm:$0xff]  }
 0x12e   :  { %4460 = vmatprep.subr.bf16.mxu1 %v4844_v60  ;;  %v4869_v60 = vld [vmem:[%s5969_s3 + $0x10] sm:$0xff]  }
 0x130   :  { %4439 = vmatpush3.bf16.msra.mxu0 %v4845_v61  ;;  %v4870_v61 = vld [vmem:[%s5969_s3 + $0x18] sm:$0xff]  }
 0x131   :  { %4461 = vmatpush3.bf16.msra.mxu1 %v4846_v62  ;;  %4440 = vmatprep.subr.bf16.mxu0 %v4847_v63  ;;  %v4871_v62 = vld [vmem:[%s5969_s3 + $0x20] sm:$0xff]  }
 0x132   :  { %4462 = vmatprep.subr.bf16.mxu1 %v4848_v0 }
 0x134   :  { %4441 = vmatpush3.bf16.msra.mxu0 %v4849_v2 }
 0x135   :  { %4463 = vmatpush3.bf16.msra.mxu1 %v4850_v4  ;;  %4442 = vmatprep.subr.bf16.mxu0 %v4851_v8 }
 0x136   :  { %v4140_v1 = vpop.f32.mrb[8].mxu0  ;;  %4464 = vmatprep.subr.bf16.mxu1 %v4852_v10  ;;  %v4872_v10 = vld [vmem:[%s5969_s3 + $0x28] sm:$0xff]  }
 0x137   :  { %v4162_v3 = vpop.f32.mrb[8].mxu1  ;;  %v4141_v5 = vpop.f32.mrb[9].mxu0 }
 0x138   :  { %v4142_v6 = vadd.f32 %v4141_v5, %v4140_v1  ;;  %v4163_v7 = vpop.f32.mrb[9].mxu1  ;;  %v4143_v11 = vpop.f32.mrb[10].mxu0  ;;  %4443 = vmatpush3.bf16.msra.mxu0 %v4853_v14 }
 0x139   :  { %v4164_v9 = vadd.f32 %v4163_v7, %v4162_v3  ;;  %v4165_v13 = vpop.f32.mrb[10].mxu1  ;;  %v4144_v16 = vpop.f32.mrb[11].mxu0  ;;  %4465 = vmatpush3.bf16.msra.mxu1 %v4854_v15  ;;  %4444 = vmatprep.subr.bf16.mxu0 %v4855_v19 }
 0x13a   :  { %v2943_v12 = vadd.f32 %v4142_v6, %v5801_v32  ;;  %v4166_v18 = vpop.f32.mrb[11].mxu1  ;;  %4466 = vmatprep.subr.bf16.mxu1 %v4856_v20  ;;  %v3706_v32 = vcombine.high %v40_v28, %v40_v28  ;;  %v4874_v13 = vld [vmem:[%s5969_s3 + $0x38] sm:$0xff]  }
 0x13c   :  { %v2983_v17 = vadd.f32 %v4164_v9, %v2943_v12  ;;  %4445 = vmatpush3.bf16.msra.mxu0 %v4857_v21  ;;  %3540 = vmatprep.mubr.bf16.mxu1 %v3706_v32  ;;  %v4873_v12 = vld [vmem:[%s5969_s3 + $0x30] sm:$0xff]  }
 0x13d   :  { %4467 = vmatpush3.bf16.msra.mxu1 %v4858_v22  ;;  %4446 = vmatprep.subr.bf16.mxu0 %v4859_v23 }
 0x13e   :  { %4468 = vmatprep.subr.bf16.mxu1 %v4860_v24 }
 0x140   :  { %4447 = vmatpush3.bf16.msra.mxu0 %v4861_v25 }
 0x141   :  { %4469 = vmatpush3.bf16.msra.mxu1 %v4862_v26  ;;  %4485 = vmatprep.subr.bf16.mxu0 %v4875_v57 }
 0x143   :  { %3501 = vmatmul.mubr.bf16.vlgmr.msra.gmra.mrb[36].mxu0 %v3703_v29 }
 0x144   :  { %3541 = vmatmul.mubr.bf16.vlgmr.msra.gmra.mrb[36].mxu1 %v3705_v31  ;;  %4486 = vmatpush3.bf16.msra.mxu0 %v4867_v58 }
 0x145   :  { %4487 = vmatprep.subr.bf16.mxu0 %v4875_v57  ;;  %4501 = vmatprep.mubr.msk.bf16.mxu0 %vm4876_vm0, %v4875_v57 }
 0x148   :  { %4488 = vmatpush3.bf16.msra.mxu0 %v4868_v59 }
 0x149   :  { %4489 = vmatprep.subr.bf16.mxu0 %v4875_v57 }
 0x14c   :  { %4490 = vmatpush3.bf16.msra.mxu0 %v4869_v60 }
 0x14d   :  { %4491 = vmatprep.subr.bf16.mxu0 %v4875_v57 }
 0x150   :  { %4492 = vmatpush3.bf16.msra.mxu0 %v4870_v61 }
 0x151   :  { %4493 = vmatprep.subr.bf16.mxu0 %v4875_v57 }
 0x154   :  { %4494 = vmatpush3.bf16.msra.mxu0 %v4871_v62 }
 0x155   :  { %4495 = vmatprep.subr.bf16.mxu0 %v4875_v57 }
 0x156   :  { %v4184_v33 = vpop.f32.mrb[12].mxu0 }
 0x157   :  { %v4206_v34 = vpop.f32.mrb[12].mxu1  ;;  %v4185_v35 = vpop.f32.mrb[13].mxu0 }
 0x158   :  { %v4186_v36 = vadd.f32 %v4185_v35, %v4184_v33  ;;  %v4207_v37 = vpop.f32.mrb[13].mxu1  ;;  %v4187_v38 = vpop.f32.mrb[14].mxu0  ;;  %4496 = vmatpush3.bf16.msra.mxu0 %v4872_v10 }
 0x159   :  { %v4208_v39 = vadd.f32 %v4207_v37, %v4206_v34  ;;  %v4209_v40 = vpop.f32.mrb[14].mxu1  ;;  %v4188_v41 = vpop.f32.mrb[15].mxu0  ;;  %4497 = vmatprep.subr.bf16.mxu0 %v4875_v57 }
 0x15a   :  { %v3023_v42 = vadd.f32 %v4186_v36, %v2983_v17  ;;  %v4210_v43 = vpop.f32.mrb[15].mxu1 }
 0x15c   :  { %v3063_v44 = vadd.f32 %v4208_v39, %v3023_v42  ;;  %4498 = vmatpush3.bf16.msra.mxu0 %v4873_v12 }
 0x15d   :  { %4499 = vmatprep.subr.bf16.mxu0 %v4875_v57 }
 0x160   :  { %4500 = vmatpush3.bf16.msra.mxu0 %v4874_v13 }
 0x176   :  { %v4228_v45 = vpop.f32.mrb[16].mxu0 }
 0x177   :  { %v4250_v46 = vpop.f32.mrb[16].mxu1  ;;  %v4229_v47 = vpop.f32.mrb[17].mxu0 }
 0x178   :  { %v4251_v48 = vpop.f32.mrb[17].mxu1  ;;  %v4230_v49 = vadd.f32 %v4229_v47, %v4228_v45  ;;  %v4231_v51 = vpop.f32.mrb[18].mxu0 }
 0x179   :  { %v4252_v50 = vadd.f32 %v4251_v48, %v4250_v46  ;;  %v4253_v52 = vpop.f32.mrb[18].mxu1  ;;  %v4232_v53 = vpop.f32.mrb[19].mxu0 }
 0x17a   :  { %v4254_v54 = vpop.f32.mrb[19].mxu1  ;;  %v3103_v55 = vadd.f32 %v4230_v49, %v3063_v44 }
 0x17c   :  { %v3143_v56 = vadd.f32 %v4252_v50, %v3103_v55 }
 0x196   :  { %v4272_v63 = vpop.f32.mrb[20].mxu0 }
 0x197   :  { %v4294_v0 = vpop.f32.mrb[20].mxu1  ;;  %v4273_v1 = vpop.f32.mrb[21].mxu0 }
 0x198   :  { %v4274_v2 = vadd.f32 %v4273_v1, %v4272_v63  ;;  %v4295_v3 = vpop.f32.mrb[21].mxu1  ;;  %v4275_v4 = vpop.f32.mrb[22].mxu0 }
 0x199   :  { %v4296_v5 = vadd.f32 %v4295_v3, %v4294_v0  ;;  %v4297_v6 = vpop.f32.mrb[22].mxu1  ;;  %v4276_v7 = vpop.f32.mrb[23].mxu0  ;;  %v4027_v0 = vld [vmem:[%s5970_s4] ss:$0 sm:$0xff] }
 0x19a   :  { %v3183_v8 = vadd.f32 %v4274_v2, %v3143_v56  ;;  %v4298_v9 = vpop.f32.mrb[23].mxu1 }
 0x19c   :  { %v3223_v11 = vadd.f32 %v4296_v5, %v3183_v8 }
 0x1b6   :  { %v4316_v14 = vpop.f32.mrb[24].mxu0 }
 0x1b7   :  { %v4338_v15 = vpop.f32.mrb[24].mxu1  ;;  %v4317_v16 = vpop.f32.mrb[25].mxu0 }
 0x1b8   :  { %v4318_v17 = vadd.f32 %v4317_v16, %v4316_v14  ;;  %v4339_v18 = vpop.f32.mrb[25].mxu1  ;;  %v4319_v19 = vpop.f32.mrb[26].mxu0 }
 0x1b9   :  { %v4340_v20 = vadd.f32 %v4339_v18, %v4338_v15  ;;  %v4341_v21 = vpop.f32.mrb[26].mxu1  ;;  %v4320_v22 = vpop.f32.mrb[27].mxu0 }
 0x1ba   :  { %v3263_v23 = vadd.f32 %v4318_v17, %v3223_v11  ;;  %v4342_v24 = vpop.f32.mrb[27].mxu1 }
 0x1bc   :  { %v3303_v25 = vadd.f32 %v4340_v20, %v3263_v23 }
 0x1d6   :  { %v4360_v26 = vpop.f32.mrb[28].mxu0 }
 0x1d7   :  { %v4382_v27 = vpop.f32.mrb[28].mxu1  ;;  %v4361_v28 = vpop.f32.mrb[29].mxu0 }
 0x1d8   :  { %v4362_v29 = vadd.f32 %v4361_v28, %v4360_v26  ;;  %v4383_v30 = vpop.f32.mrb[29].mxu1  ;;  %v4363_v31 = vpop.f32.mrb[30].mxu0 }
 0x1d9   :  { %v4384_v32 = vadd.f32 %v4383_v30, %v4382_v27  ;;  %v4385_v33 = vpop.f32.mrb[30].mxu1  ;;  %v4364_v34 = vpop.f32.mrb[31].mxu0 }
 0x1da   :  { %v3343_v35 = vadd.f32 %v4362_v29, %v3303_v25  ;;  %v4386_v36 = vpop.f32.mrb[31].mxu1 }
 0x1dc   :  { %v3383_v37 = vadd.f32 %v4384_v32, %v3343_v35 }
 0x1f6   :  { %v4404_v38 = vpop.f32.mrb[32].mxu0 }
 0x1f7   :  { %v4426_v39 = vpop.f32.mrb[32].mxu1  ;;  %v4405_v40 = vpop.f32.mrb[33].mxu0 }
 0x1f8   :  { %v4406_v41 = vadd.f32 %v4405_v40, %v4404_v38  ;;  %v4427_v42 = vpop.f32.mrb[33].mxu1  ;;  %v4407_v43 = vpop.f32.mrb[34].mxu0 }
 0x1f9   :  { %v4428_v44 = vadd.f32 %v4427_v42, %v4426_v39  ;;  %v4429_v45 = vpop.f32.mrb[34].mxu1  ;;  %v4408_v46 = vpop.f32.mrb[35].mxu0 }
 0x1fa   :  { %v3423_v47 = vadd.f32 %v4406_v41, %v3383_v37  ;;  %v4430_v48 = vpop.f32.mrb[35].mxu1 }
 0x1fc   :  { %v3463_v49 = vadd.f32 %v4428_v44, %v3423_v47 }
 0x216   :  { %v4448_v50 = vpop.f32.mrb[36].mxu0 }
 0x217   :  { %v4470_v51 = vpop.f32.mrb[36].mxu1  ;;  %v4449_v52 = vpop.f32.mrb[37].mxu0 }
 0x218   :  { %v4450_v53 = vadd.f32 %v4449_v52, %v4448_v50  ;;  %v4471_v54 = vpop.f32.mrb[37].mxu1  ;;  %v4451_v55 = vpop.f32.mrb[38].mxu0 }
 0x219   :  { %v4472_v56 = vadd.f32 %v4471_v54, %v4470_v51  ;;  %v4473_v57 = vpop.f32.mrb[38].mxu1  ;;  %v4452_v58 = vpop.f32.mrb[39].mxu0 }
 0x21a   :  { %v3503_v59 = vadd.f32 %v4450_v53, %v3463_v49  ;;  %v4474_v60 = vpop.f32.mrb[39].mxu1 }
 0x21c   :  { %v3543_v61 = vadd.f32 %v4472_v56, %v3503_v59 }
 0x21e   :  { %v3548_v62 = vmax.f32 %v3543_v61, 0.0 }
 0x220   :  { %v3549_v63 = vpack.c.bf16 %v3548_v62, %v3548_v62 }
 0x222   :  { %4502 = vmatmul.mubr.bf16.vlgmr.msra.gmra.mrb[40].mxu0 %v3549_v63 }
 0x2f5   :  { %v3655_v1 = vpop.f32.mrb[40].mxu0 }
 0x2f6   :  { %v3656_v2 = vadd.f32 %v4027_v0, %v3655_v1  ;;  %v4503_v3 = vpop.f32.mrb[41].mxu0 }
 0x2f7   :  { %v3658_v4 = vpop.f32.mrb[42].mxu0 }
 0x2f8   :  { %3661 = vst [vmem:[%s5971_s5] sm:$0xff] %v3656_v2  ;;  %v4504_v5 = vpop.f32.mrb[43].mxu0 }

// kernel: simple_cnn_forward.2
= control target key start
LH: loop header
LB: loop body
LE: loop exit
PB: predicated region body
PF: predicated region fallthrough
CT: control target
= control target key end

     0   :  { %10 = vsyncpa [#allocation6], 0  ;;  %s21156_s18 = smov 0   ;;  %s22909_s0 = inlined_call_operand.vmem [shape: bf16[2,1024,8], index: 0, kind: input, shape index: {}]   ;;  %s22910_s1 = inlined_call_operand.vmem [shape: bf16[9,8,128], index: 1, kind: input, shape index: {}]   ;;  %s22911_s2 = inlined_call_operand.vmem [shape: f32[1,128], index: 2, kind: input, shape index: {}]   ;;  %s22912_s3 = inlined_call_operand.hbm [shape: bf16[9,128,128], index: 3, kind: input, shape index: {}]   ;;  %s22913_s4 = inlined_call_operand.vmem [shape: f32[1,128], index: 4, kind: input, shape index: {}]   ;;  %s22914_s5 = inlined_call_operand.vmem [shape: bf16[2,5,8,128], index: 5, kind: output, shape index: {}]  }
   0x1 LB: > { %s21162_s19 = sadd.s32 4294967295, %s21121_s18   ;;  %p16334_p0 = scmp.ge.s32.totalorder %s21121_s18, 1  ;;  %s21121_s18 = sphi %s21156_s18, %s16_s18  }
   0x2   : > { %p157_p1 = scmp.lt.s32.totalorder %s21121_s18, 3  ;;  %s21123_s20 = smov [#allocation5]  }
   0x3   : > { %s175_s21 = sshll.u32 %s21123_s20, 4  ;;  %p22915_p3 = scmp.eq.s32.totalorder %s21162_s19, 0  ;;  %s176_s21 = int_to_ptr.vmem [resolvable:$true] %s175_s21 }
   0x4   : > { %p21166_p2 = pnand %p16334_p0, %p157_p1  ;;  %s21083_s26 = scalar_lea.hbm %s22912_s3, 9216 }
   0x5   : > { %p21084_p6 = scmp.ne.s32.totalorder %s22912_s3, %s21083_s26  ;;  %p21090_p10 = scmp.lt.u32.totalorder %s21083_s26, %s22912_s3 }
   0x6   : > { %s22917_s22 = scalar_select %p21166_p2, 1, 0 }
   0x7   : > { %p20514_p4 = pneg %p21166_p2 }
   0x9   : > { %p21175_p5 = pnand %p22915_p3, %p20514_p4 }
   0xb   : > { %p21085_p7 = pneg %p21175_p5 }
   0xd   : > { %p21086_p8 = pnand %p21085_p7, %p21084_p6 }
   0xf   : > { %p21087_p9 = pneg %p21086_p8 }
  0x11   : > { %p21092_p11 = pnand %p21090_p10, %p21087_p9 }
  0x13   : > { %21095 = shalt.err (!%p21092_p11)
}
  0x14   : > { %s21096_s6 = scalar_lea.vmem %s176_s21, 9216  ;;  %p21104_p1 = scmp.lt.s32.totalorder %s176_s21, %s176_s21 }
  0x15   : > { %p21097_p12 = scmp.ne.s32.totalorder %s176_s21, %s21096_s6  ;;  %p21105_p4 = scmp.lt.s32.totalorder %s21096_s6, %s21096_s6 }
  0x17   : > { %p21099_p13 = pnand %p21097_p12, %p21085_p7  ;;  %p21106_p3 = por %p21105_p4, %p21104_p1 }
  0x19   : > { %p21100_p0 = pneg %p21099_p13 }
  0x1b   : > { %p21107_p2 = pnand %p21106_p3, %p21100_p0 }
  0x1d   : > { %21110 = shalt.err (!%p21107_p2)
}
  0x1e   : > { %s21124_s7 = smov 64   ;;  %s21125_s8 = smov 4  }
  0x1f   : > { %20517 = dma.hbm_to_vmem [thread:$0]  (!%p21175_p5), %s22912_s3, 9216, %s176_s21, [#allocation6], %s21124_s7, %s21124_s7, %s21125_s8  }
  0x20   : > { %p22919_p6 = scmp.ne.s32.totalorder %s22917_s22, 0 }
  0x21   : > { %p22920_p8 = scmp.eq.s32.totalorder (!%p22919_p6), %s21162_s19, 0 }
  0x22   : > { %202 = sbr.rel (%p22919_p6) target bundleno = 1902 (0x76e), region = 40 }
  0x29   : > { %21116 = dma.done.wait (%p22920_p8), [#allocation6], 9216   ;;  %p22921_p7 = pmov %p22920_p8 }
  0x2a   : > { %p230_p2 = scmp.lt.s32.totalorder %s21162_s19, 1  ;;  %vm765_vm0 = vcmask 1043456   ;;  %vm608_vm1 = vcmask 64512   ;;  %v347_v0 = vld [vmem:[%s22910_s1] sm:$0xf]  ;;  %vm3403_vm3 = vcmask 1046528  }
  0x2b   : > { %21118 = vsyncadd (%p22921_p7), [#allocation6], 4294958080  ;;  %v16658_v1 = vld [vmem:[%s22910_s1 + $0xc] sm:$0xf]  ;;  %20499 = vmatprep.subr.msk.bf16.mxu1 %vm765_vm0, %v347_v0  ;;  %v767_v2 = vsel %vm765_vm0, %v347_v0, 0 }
  0x2c   : > { %s22923_s19 = smov (!%p230_p2, %s21162_s19), 1  ;;  %20502 = vmatprep.subr.msk.bf16.mxu0 %vm765_vm0, %v16658_v1  ;;  %v21221_v3 = vsel %vm765_vm0, %v16658_v1, 0  ;;  %18020 = vmatpush3.bf16.msra.mxu1 %v767_v2  ;;  %v16763_v8 = vld [vmem:[%s22910_s1 + $0x10] sm:$0xf]  ;;  %v16869_v32 = vld [vmem:[%s22910_s1 + $0x14] sm:$0xf] }
  0x2d   : > { %s17368_s11 = sshll.u32 %s22923_s19, 9  ;;  %18338 = vmatpush3.bf16.msra.mxu0 %v21221_v3  ;;  %v6662_v9 = vsel %vm765_vm0, %v16763_v8, 0  ;;  %vm1692_vm2 = vsmask.f32 7424  ;;  %s20509_s24 = smul.u32 20, %s22923_s19 }
  0x2e   : > { %s21209_s14 = scalar_lea.vmem %s22909_s0, %s17368_s11  ;;  %20504 = vmatprep.subr.msk.bf16.mxu0 %vm765_vm0, %v16763_v8 }
  0x2f   : > { %v20531_v4 = vld [vmem:[%s21209_s14] sm:$0xff]   ;;  %v20532_v5 = vld [vmem:[%s21209_s14 + $0x10] sm:$0xff]   ;;  %v20533_v6 = vld [vmem:[%s21209_s14 + $0x8] sm:$0xff]   ;;  %s22898_s27 = scalar_lea.vmem %s22914_s5, %s20509_s24 }
  0x30   : > { %18021 = vmatprep.mubr.msk.bf16.mxu1 %vm608_vm1, %v20531_v4  ;;  %18339 = vmatprep.mubr.msk.bf16.mxu0 %vm608_vm1, %v20532_v5  ;;  %v20534_v7 = vld [vmem:[%s21209_s14 + $0x18] sm:$0xff]   ;;  %v20535_v10 = vld [vmem:[%s21209_s14 + $0x10] sm:$0xff]   ;;  %v20536_v11 = vld [vmem:[%s21209_s14 + $0x20] sm:$0xff]  }
  0x31   : > { %18022 = vmatmul.mubr.msk.bf16.vlgmr.msra.gmra.mrb[0].mxu1 %vm608_vm1, %v20533_v6  ;;  %18340 = vmatmul.mubr.msk.bf16.vlgmr.msra.gmra.mrb[0].mxu0 %vm608_vm1, %v20534_v7  ;;  %v20537_v12 = vld [vmem:[%s21209_s14 + $0x18] sm:$0xff]   ;;  %v20538_v13 = vld [vmem:[%s21209_s14 + $0x28] sm:$0xff]   ;;  %v20539_v14 = vld [vmem:[%s21209_s14 + $0x20] sm:$0xff]  }
  0x32   : > { %18444 = vmatpush3.bf16.msra.mxu0 %v6662_v9  ;;  %18025 = vmatprep.mubr.msk.bf16.mxu1 %vm608_vm1, %v20535_v10  ;;  %v20540_v15 = vld [vmem:[%s21209_s14 + $0x30] sm:$0xff]   ;;  %v20541_v16 = vld [vmem:[%s21209_s14 + $0x28] sm:$0xff]   ;;  %v20542_v17 = vld [vmem:[%s21209_s14 + $0x38] sm:$0xff]  }
  0x33   : > { %18343 = vmatprep.mubr.msk.bf16.mxu0 %vm608_vm1, %v20536_v11  ;;  %v20543_v18 = vld [vmem:[%s21209_s14 + $0x30] sm:$0xff]   ;;  %v20544_v19 = vld [vmem:[%s21209_s14 + $0x40] sm:$0xff]   ;;  %v20545_v20 = vld [vmem:[%s21209_s14 + $0x38] sm:$0xff]   ;;  %20505 = vmatprep.subr.msk.bf16.mxu0 %vm765_vm0, %v16869_v32  ;;  %v8057_v11 = vsel %vm765_vm0, %v16869_v32, 0 }
  0x34   : > { %v20546_v21 = vld [vmem:[%s21209_s14 + $0x48] sm:$0xff]   ;;  %v20547_v22 = vld [vmem:[%s21209_s14 + $0x40] sm:$0xff]   ;;  %v20548_v23 = vld [vmem:[%s21209_s14 + $0x50] sm:$0xff]  }
  0x35   : > { %v20549_v24 = vld [vmem:[%s21209_s14 + $0x48] sm:$0xff]   ;;  %v20550_v25 = vld [vmem:[%s21209_s14 + $0x58] sm:$0xff]   ;;  %v20551_v26 = vld [vmem:[%s21209_s14 + $0x50] sm:$0xff]  }
  0x36   : > { %v20552_v27 = vld [vmem:[%s21209_s14 + $0x60] sm:$0xff]   ;;  %v20553_v28 = vld [vmem:[%s21209_s14 + $0x58] sm:$0xff]   ;;  %v20554_v29 = vld [vmem:[%s21209_s14 + $0x68] sm:$0xff]  }
  0x37   : > { %v20555_v30 = vld [vmem:[%s21209_s14 + $0x60] sm:$0xff]   ;;  %v20556_v31 = vld [vmem:[%s21209_s14 + $0x70] sm:$0xff]   ;;  %v20557_v33 = vld [vmem:[%s21209_s14 + $0x68] sm:$0xff]  }
  0x38   : > { %v20558_v34 = vld [vmem:[%s21209_s14 + $0x78] sm:$0xff]   ;;  %v20559_v35 = vld [vmem:[%s21209_s14 + $0x70] sm:$0xff]   ;;  %v20560_v36 = vld [vmem:[%s21209_s14 + $0x80] sm:$0xff]  }
  0x39   : > { %18026 = vmatmul.mubr.msk.bf16.gmra.mrb[4].mxu1 %vm608_vm1, %v20537_v12  ;;  %18344 = vmatmul.mubr.msk.bf16.gmra.mrb[4].mxu0 %vm608_vm1, %v20538_v13  ;;  %v20561_v37 = vld [vmem:[%s21209_s14 + $0x78] sm:$0xff]   ;;  %v20562_v38 = vld [vmem:[%s21209_s14 + $0x88] sm:$0xff]   ;;  %v20563_v39 = vld [vmem:[%s21209_s14 + $0x80] sm:$0xff]  }
  0x3a   : > { %18029 = vmatprep.mubr.msk.bf16.mxu1 %vm608_vm1, %v20539_v14  ;;  %18347 = vmatprep.mubr.msk.bf16.mxu0 %vm608_vm1, %v20540_v15  ;;  %v20564_v40 = vld [vmem:[%s21209_s14 + $0x90] sm:$0xff]   ;;  %v20573_v42 = vld [vmem:[%s21209_s14 + $0x18] sm:$0xff]   ;;  %v20565_v43 = vld [vmem:[%s21209_s14 + $0x88] sm:$0xff]  }
  0x3b   : > { %v20572_v41 = vld [vmem:[%s21209_s14 + $0x10] sm:$0xff]   ;;  %v20566_v45 = vld [vmem:[%s21209_s14 + $0x98] sm:$0xff]   ;;  %v20568_v47 = vld [vmem:[%s21209_s14 + $0xa0] sm:$0xff]   ;;  %v6093_v48 = vshll.u32 %v20573_v42, 16  ;;  %v6097_v59 = vshrl.u32 %v20573_v42, 16 }
  0x3c   : > { %v6088_v44 = vshll.u32 %v20572_v41, 16  ;;  %v20567_v46 = vld [vmem:[%s21209_s14 + $0x90] sm:$0xff]   ;;  %v6086_v49 = vshrl.u32 %v20572_v41, 16  ;;  %v20575_v51 = vld [vmem:[%s21209_s14 + $0x20] sm:$0xff]   ;;  %v20577_v53 = vld [vmem:[%s21209_s14 + $0x28] sm:$0xff]  }
  0x3d   : > { %v6095_v52 = vrot.slane %v6093_v48, 1  ;;  %v20569_v55 = vld [vmem:[%s21209_s14 + $0x98] sm:$0xff]   ;;  %v20570_v56 = vld [vmem:[%s21209_s14 + $0xa8] sm:$0xff]   ;;  %v20571_v57 = vld [vmem:[%s21209_s14 + $0xa0] sm:$0xff]   ;;  %v6101_v58 = vshll.u32 %v20575_v51, 16  ;;  %v6105_v61 = vshrl.u32 %v20575_v51, 16 }
  0x3e   : > { %v6090_v50 = vrot.slane %v6088_v44, 1  ;;  %v6109_v62 = vshll.u32 %v20577_v53, 16  ;;  %v20579_v0 = vld [vmem:[%s21209_s14 + $0x30] sm:$0xff]   ;;  %v20574_v2 = vld [vmem:[%s21209_s14 + $0xa8] sm:$0xff]   ;;  %v20581_v6 = vld [vmem:[%s21209_s14 + $0x38] sm:$0xff]   ;;  %v6113_v8 = vshrl.u32 %v20577_v53, 16 }
  0x3f   : > { %v6103_v63 = vrot.slane %v6101_v58, 1  ;;  %v6099_v1 = vor.u32 %v6097_v59, %v6095_v52  ;;  %v20576_v7 = vld [vmem:[%s21209_s14 + $0xb0] sm:$0xff]   ;;  %v6117_v9 = vshll.u32 %v20579_v0, 16  ;;  %v6121_v13 = vshrl.u32 %v20579_v0, 16  ;;  %v20583_v15 = vld [vmem:[%s21209_s14 + $0x40] sm:$0xff]  }
  0x40   : > { %v6091_v54 = vor.u32 %v6090_v50, %v6086_v49  ;;  %v6111_v5 = vrot.slane %v6109_v62, 1  ;;  %v6125_v14 = vshll.u32 %v20581_v6, 16  ;;  %v20591_v44 = vld [vmem:[%s21209_s14 + $0x60] sm:$0xff]   ;;  %v20593_v49 = vld [vmem:[%s21209_s14 + $0x68] sm:$0xff]   ;;  %v20595_v58 = vld [vmem:[%s21209_s14 + $0x70] sm:$0xff]  }
  0x41   : > { %18030 = vmatmul.mubr.msk.bf16.gmra.mrb[8].mxu1 %vm608_vm1, %v20541_v16  ;;  %18348 = vmatmul.mubr.msk.bf16.gmra.mrb[8].mxu0 %vm608_vm1, %v20542_v17  ;;  %v6107_v4 = vor.u32 %v6105_v61, %v6103_v63  ;;  %v6104_v10 = vsel %vm1692_vm2, %v6099_v1, %v6103_v63  ;;  %v6119_v16 = vrot.slane %v6117_v9, 1  ;;  %v20588_v50 = vld [vmem:[%s21209_s14 + $0xe0] sm:$0xff]   ;;  %v6165_v51 = vshll.u32 %v20591_v44, 16  ;;  %v20597_v62 = vld [vmem:[%s21209_s14 + $0x78] sm:$0xff]   ;;  %v20590_v63 = vld [vmem:[%s21209_s14 + $0xe8] sm:$0xff]  }
  0x42   : > { %18033 = vmatprep.mubr.msk.bf16.mxu1 %vm608_vm1, %v20543_v18  ;;  %18351 = vmatprep.mubr.msk.bf16.mxu0 %vm608_vm1, %v20544_v19  ;;  %v6096_v60 = vsel %vm1692_vm2, %v6091_v54, %v6095_v52  ;;  %v6115_v17 = vor.u32 %v6113_v8, %v6111_v5  ;;  %v20585_v18 = vld [vmem:[%s21209_s14 + $0x48] sm:$0xff]   ;;  %v20592_v0 = vld [vmem:[%s21209_s14 + $0xf0] sm:$0xff]   ;;  %v16446_v1 = vld [vmem:[%s22910_s1 + $0x4] sm:$0xf]  ;;  %v6185_v8 = vshrl.u32 %v20595_v58, 16  ;;  %v6189_v9 = vshll.u32 %v20597_v62, 16 }
  0x43   : > { %v6112_v12 = vsel %vm1692_vm2, %v6107_v4, %v6111_v5  ;;  %v6123_v19 = vor.u32 %v6121_v13, %v6119_v16  ;;  %20500 = vmatprep.subr.msk.bf16.mxu1 %vm765_vm0, %v16446_v1  ;;  %v2270_v4 = vsel %vm765_vm0, %v16446_v1, 0 }
  0x44   : > { %18126 = vmatpush3.bf16.msra.mxu1 %v2270_v4  ;;  %v20615_v4 = vld [vmem:[%s21209_s14 + $0xc0] sm:$0xff]  }
  0x49   : > { %18034 = vmatmul.mubr.msk.bf16.gmra.mrb[12].mxu1 %vm608_vm1, %v20545_v20  ;;  %18352 = vmatmul.mubr.msk.bf16.gmra.mrb[12].mxu0 %vm608_vm1, %v20546_v21  ;;  %v6127_v20 = vrot.slane %v6125_v14, 1  ;;  %v20578_v21 = vld [vmem:[%s21209_s14 + $0xb8] sm:$0xff]   ;;  %v6191_v14 = vrot.slane %v6189_v9, 1 }
  0x4a   : > { %18037 = vmatprep.mubr.msk.bf16.mxu1 %vm608_vm1, %v20547_v22  ;;  %18355 = vmatprep.mubr.msk.bf16.mxu0 %vm608_vm1, %v20548_v23  ;;  %v6133_v22 = vshll.u32 %v20583_v15, 16  ;;  %v20580_v23 = vld [vmem:[%s21209_s14 + $0xc0] sm:$0xff]   ;;  %v20610_v9 = vld [vmem:[%s21209_s14 + $0x138] sm:$0xff]  }
  0x51   : > { %18038 = vmatmul.mubr.msk.bf16.gmra.mrb[16].mxu1 %vm608_vm1, %v20549_v24  ;;  %18356 = vmatmul.mubr.msk.bf16.gmra.mrb[16].mxu0 %vm608_vm1, %v20550_v25  ;;  %v6120_v24 = vsel %vm1692_vm2, %v6115_v17, %v6119_v16  ;;  %v6129_v25 = vshrl.u32 %v20581_v6, 16  ;;  %v6177_v6 = vshrl.u32 %v20593_v49, 16  ;;  %v20594_v16 = vld [vmem:[%s21209_s14 + $0xf8] sm:$0xff]   ;;  %v20596_v17 = vld [vmem:[%s21209_s14 + $0x100] sm:$0xff]  }
  0x52   : > { %18041 = vmatprep.mubr.msk.bf16.mxu1 %vm608_vm1, %v20551_v26  ;;  %18359 = vmatprep.mubr.msk.bf16.mxu0 %vm608_vm1, %v20552_v27  ;;  %v6137_v26 = vshrl.u32 %v20583_v15, 16  ;;  %v6141_v27 = vshll.u32 %v20585_v18, 16  ;;  %v20601_v15 = vld [vmem:[%s21209_s14 + $0x88] sm:$0xff]  }
  0x59   : > { %18042 = vmatmul.mubr.msk.bf16.gmra.mrb[20].mxu1 %vm608_vm1, %v20553_v28  ;;  %18360 = vmatmul.mubr.msk.bf16.gmra.mrb[20].mxu0 %vm608_vm1, %v20554_v29  ;;  %v6128_v28 = vsel %vm1692_vm2, %v6123_v19, %v6127_v20  ;;  %v6135_v29 = vrot.slane %v6133_v22, 1 }
  0x5a   : > { %18045 = vmatprep.mubr.msk.bf16.mxu1 %vm608_vm1, %v20555_v30  ;;  %18363 = vmatprep.mubr.msk.bf16.mxu0 %vm608_vm1, %v20556_v31  ;;  %v20587_v30 = vld [vmem:[%s21209_s14 + $0x50] sm:$0xff]   ;;  %v6131_v31 = vor.u32 %v6129_v25, %v6127_v20  ;;  %v6193_v20 = vshrl.u32 %v20597_v62, 16 }
  0x5b   : > { %v6139_v32 = vor.u32 %v6137_v26, %v6135_v29  ;;  %v6153_v41 = vshrl.u32 %v20587_v30, 16  ;;  %v20603_v25 = vld [vmem:[%s21209_s14 + $0x90] sm:$0xff]  }
  0x5c   : > { %v6195_v26 = vor.u32 %v6193_v20, %v6191_v14 }
  0x61   : > { %18046 = vmatmul.mubr.msk.bf16.gmra.mrb[24].mxu1 %vm608_vm1, %v20557_v33  ;;  %18364 = vmatmul.mubr.msk.bf16.gmra.mrb[24].mxu0 %vm608_vm1, %v20558_v34  ;;  %v6143_v33 = vrot.slane %v6141_v27, 1  ;;  %v20589_v34 = vld [vmem:[%s21209_s14 + $0x58] sm:$0xff]  }
  0x62   : > { %18049 = vmatprep.mubr.msk.bf16.mxu1 %vm608_vm1, %v20559_v35  ;;  %18367 = vmatprep.mubr.msk.bf16.mxu0 %vm608_vm1, %v20560_v36  ;;  %v20582_v35 = vld [vmem:[%s21209_s14 + $0xc8] sm:$0xff]   ;;  %v20584_v36 = vld [vmem:[%s21209_s14 + $0xd0] sm:$0xff]   ;;  %v6157_v42 = vshll.u32 %v20589_v34, 16  ;;  %v6161_v53 = vshrl.u32 %v20589_v34, 16  ;;  %v6209_v34 = vshrl.u32 %v20601_v15, 16 }
  0x64   : > { %v6159_v48 = vrot.slane %v6157_v42, 1 }
  0x66   : > { %v6163_v59 = vor.u32 %v6161_v53, %v6159_v48  ;;  %v20611_v53 = vld [vmem:[%s21209_s14 + $0xb0] sm:$0xff]  }
  0x69   : > { %18050 = vmatmul.mubr.msk.bf16.gmra.mrb[28].mxu1 %vm608_vm1, %v20561_v37  ;;  %18368 = vmatmul.mubr.msk.bf16.gmra.mrb[28].mxu0 %vm608_vm1, %v20562_v38  ;;  %v6149_v37 = vshll.u32 %v20587_v30, 16  ;;  %v6136_v38 = vsel %vm1692_vm2, %v6131_v31, %v6135_v29  ;;  %v20605_v29 = vld [vmem:[%s21209_s14 + $0x98] sm:$0xff]   ;;  %v20598_v30 = vld [vmem:[%s21209_s14 + $0x108] sm:$0xff]   ;;  %v20600_v31 = vld [vmem:[%s21209_s14 + $0x110] sm:$0xff]  }
  0x6a   : > { %18053 = vmatprep.mubr.msk.bf16.mxu1 %vm608_vm1, %v20563_v39  ;;  %18371 = vmatprep.mubr.msk.bf16.mxu0 %vm608_vm1, %v20564_v40  ;;  %v6145_v39 = vshrl.u32 %v20585_v18, 16  ;;  %v6144_v40 = vsel %vm1692_vm2, %v6139_v32, %v6143_v33  ;;  %v6213_v32 = vshll.u32 %v20603_v25, 16 }
  0x71   : > { %18054 = vmatmul.mubr.msk.bf16.gmra.mrb[32].mxu1 %vm608_vm1, %v20565_v43  ;;  %18372 = vmatmul.mubr.msk.bf16.gmra.mrb[32].mxu0 %vm608_vm1, %v20566_v45  ;;  %v6151_v43 = vrot.slane %v6149_v37, 1  ;;  %v6147_v45 = vor.u32 %v6145_v39, %v6143_v33  ;;  %v6221_v37 = vshll.u32 %v20605_v29, 16  ;;  %v20607_v39 = vld [vmem:[%s21209_s14 + $0xa0] sm:$0xff]  }
  0x72   : > { %18057 = vmatprep.mubr.msk.bf16.mxu1 %vm608_vm1, %v20567_v46  ;;  %18375 = vmatprep.mubr.msk.bf16.mxu0 %vm608_vm1, %v20568_v47  ;;  %v20586_v46 = vld [vmem:[%s21209_s14 + $0xd8] sm:$0xff]  }
  0x73   : > { %v6155_v47 = vor.u32 %v6153_v41, %v6151_v43  ;;  %v6152_v52 = vsel %vm1692_vm2, %v6147_v45, %v6151_v43  ;;  %v6223_v42 = vrot.slane %v6221_v37, 1  ;;  %v20609_v43 = vld [vmem:[%s21209_s14 + $0xa8] sm:$0xff]   ;;  %v20604_v45 = vld [vmem:[%s21209_s14 + $0x120] sm:$0xff]   ;;  %v20618_v37 = vld [vmem:[%s21209_s14 + $0x158] sm:$0xff]  }
  0x74   : > { %v6241_v62 = vshrl.u32 %v20609_v43, 16 }
  0x75   : > { %v6160_v54 = vsel %vm1692_vm2, %v6155_v47, %v6159_v48  ;;  %v6225_v48 = vshrl.u32 %v20605_v29, 16 }
  0x79   : > { %18058 = vmatmul.mubr.msk.bf16.gmra.mrb[36].mxu1 %vm608_vm1, %v20569_v55  ;;  %18376 = vmatmul.mubr.msk.bf16.gmra.mrb[36].mxu0 %vm608_vm1, %v20570_v56  ;;  %v6169_v55 = vshrl.u32 %v20591_v44, 16  ;;  %v6173_v56 = vshll.u32 %v20593_v49, 16  ;;  %v20602_v44 = vld [vmem:[%s21209_s14 + $0x118] sm:$0xff]  }
  0x7a   : > { %18061 = vmatprep.mubr.msk.bf16.mxu1 %vm608_vm1, %v20571_v57  ;;  %18445 = vmatprep.mubr.msk.bf16.mxu0 %vm608_vm1, %v6096_v60  ;;  %v6167_v57 = vrot.slane %v6165_v51, 1  ;;  %v6237_v51 = vshll.u32 %v20609_v43, 16 }
  0x7b   : > { %v6175_v61 = vrot.slane %v6173_v56, 1 }
  0x7c   : > { %v6171_v60 = vor.u32 %v6169_v55, %v6167_v57  ;;  %v6168_v5 = vsel %vm1692_vm2, %v6163_v59, %v6167_v57  ;;  %v6239_v56 = vrot.slane %v6237_v51, 1  ;;  %v20613_v57 = vld [vmem:[%s21209_s14 + $0xb8] sm:$0xff]   ;;  %v20608_v59 = vld [vmem:[%s21209_s14 + $0x130] sm:$0xff]  }
  0x7d   : > { %v6253_v1 = vshll.u32 %v20613_v57, 16 }
  0x81   : > { %18062 = vmatmul.mubr.msk.bf16.gmra.mrb[40].mxu1 %vm608_vm1, %v20574_v2  ;;  %18446 = vmatmul.mubr.msk.bf16.vlgmr.msra.gmra.mrb[0].mxu0 %vm608_vm1, %v6104_v10  ;;  %v6181_v2 = vshll.u32 %v20595_v58, 16  ;;  %v20606_v58 = vld [vmem:[%s21209_s14 + $0x128] sm:$0xff]  }
  0x82   : > { %18065 = vmatprep.mubr.msk.bf16.mxu1 %vm608_vm1, %v20576_v7  ;;  %18550 = vmatpush3.bf16.msra.mxu0 %v8057_v11  ;;  %v6176_v7 = vsel %vm1692_vm2, %v6171_v60, %v6175_v61  ;;  %v20599_v11 = vld [vmem:[%s21209_s14 + $0x80] sm:$0xff]   ;;  %v6245_v60 = vshll.u32 %v20611_v53, 16 }
  0x83   : > { %18449 = vmatprep.mubr.msk.bf16.mxu0 %vm608_vm1, %v6112_v12  ;;  %v6183_v10 = vrot.slane %v6181_v2, 1  ;;  %v6179_v12 = vor.u32 %v6177_v6, %v6175_v61  ;;  %v6197_v18 = vshll.u32 %v20599_v11, 16  ;;  %v6201_v22 = vshrl.u32 %v20599_v11, 16 }
  0x84   : > { %v6247_v2 = vrot.slane %v6245_v60, 1  ;;  %v6261_v11 = vshll.u32 %v20615_v4, 16 }
  0x85   : > { %v6187_v13 = vor.u32 %v6185_v8, %v6183_v10  ;;  %v6184_v19 = vsel %vm1692_vm2, %v6179_v12, %v6183_v10  ;;  %v20617_v8 = vld [vmem:[%s21209_s14 + $0xc8] sm:$0xff]   ;;  %v20612_v10 = vld [vmem:[%s21209_s14 + $0x140] sm:$0xff]  }
  0x89   : > { %18066 = vmatmul.mubr.msk.bf16.gmra.mrb[44].mxu1 %vm608_vm1, %v20578_v21  ;;  %18450 = vmatmul.mubr.msk.bf16.gmra.mrb[4].mxu0 %vm608_vm1, %v6120_v24  ;;  %v6192_v21 = vsel %vm1692_vm2, %v6187_v13, %v6191_v14  ;;  %v6199_v24 = vrot.slane %v6197_v18, 1  ;;  %v6257_v13 = vshrl.u32 %v20613_v57, 16  ;;  %v20619_v18 = vld [vmem:[%s21209_s14 + $0xd0] sm:$0xff]  }
  0x8a   : > { %18069 = vmatprep.mubr.msk.bf16.mxu1 %vm608_vm1, %v20580_v23  ;;  %18453 = vmatprep.mubr.msk.bf16.mxu0 %vm608_vm1, %v6128_v28  ;;  %v6205_v23 = vshll.u32 %v20601_v15, 16  ;;  %v6265_v15 = vshrl.u32 %v20615_v4, 16  ;;  %v6281_v29 = vshrl.u32 %v20619_v18, 16  ;;  %v20628_v4 = vld [vmem:[%s21209_s14 + $0x180] sm:$0xff]  }
  0x8b   : > { %v6203_v27 = vor.u32 %v6201_v22, %v6199_v24  ;;  %v6200_v33 = vsel %vm1692_vm2, %v6195_v26, %v6199_v24  ;;  %v20621_v22 = vld [vmem:[%s21209_s14 + $0xd8] sm:$0xff]   ;;  %v20616_v24 = vld [vmem:[%s21209_s14 + $0x150] sm:$0xff]  }
  0x8c   : > { %v6207_v28 = vrot.slane %v6205_v23, 1  ;;  %v20614_v23 = vld [vmem:[%s21209_s14 + $0x148] sm:$0xff]  }
  0x91   : > { %18070 = vmatmul.mubr.msk.bf16.gmra.mrb[48].mxu1 %vm608_vm1, %v20582_v35  ;;  %18454 = vmatmul.mubr.msk.bf16.gmra.mrb[8].mxu0 %vm608_vm1, %v6136_v38  ;;  %v6208_v35 = vsel %vm1692_vm2, %v6203_v27, %v6207_v28  ;;  %v6215_v38 = vrot.slane %v6213_v32, 1  ;;  %v6273_v27 = vshrl.u32 %v20617_v8, 16  ;;  %v20623_v32 = vld [vmem:[%s21209_s14 + $0xe0] sm:$0xff]  }
  0x92   : > { %18073 = vmatprep.mubr.msk.bf16.mxu1 %vm608_vm1, %v20584_v36  ;;  %18457 = vmatprep.mubr.msk.bf16.mxu0 %vm608_vm1, %v6144_v40  ;;  %v6217_v36 = vshrl.u32 %v20603_v25, 16  ;;  %v6211_v40 = vor.u32 %v6209_v34, %v6207_v28  ;;  %v6277_v25 = vshll.u32 %v20619_v18, 16  ;;  %v6297_v43 = vshrl.u32 %v20623_v32, 16  ;;  %v20638_v18 = vld [vmem:[%s21209_s14 + $0x118] sm:$0xff]  }
  0x94   : > { %v6219_v41 = vor.u32 %v6217_v36, %v6215_v38  ;;  %v6216_v47 = vsel %vm1692_vm2, %v6211_v40, %v6215_v38  ;;  %v20625_v36 = vld [vmem:[%s21209_s14 + $0xe8] sm:$0xff]   ;;  %v20620_v38 = vld [vmem:[%s21209_s14 + $0x160] sm:$0xff]  }
  0x96   : > { %v6224_v49 = vsel %vm1692_vm2, %v6219_v41, %v6223_v42  ;;  %v6289_v41 = vshrl.u32 %v20621_v22, 16 }
  0x99   : > { %18074 = vmatmul.mubr.msk.bf16.gmra.mrb[52].mxu1 %vm608_vm1, %v20586_v46  ;;  %18458 = vmatmul.mubr.msk.bf16.gmra.mrb[12].mxu0 %vm608_vm1, %v6152_v52  ;;  %v6229_v46 = vshll.u32 %v20607_v39, 16 }
  0x9a   : > { %18077 = vmatprep.mubr.msk.bf16.mxu1 %vm608_vm1, %v20588_v50  ;;  %18461 = vmatprep.mubr.msk.bf16.mxu0 %vm608_vm1, %v6160_v54  ;;  %v6233_v50 = vshrl.u32 %v20607_v39, 16  ;;  %v6227_v54 = vor.u32 %v6225_v48, %v6223_v42  ;;  %v6293_v39 = vshll.u32 %v20623_v32, 16  ;;  %v20622_v48 = vld [vmem:[%s21209_s14 + $0x168] sm:$0xff]  }
  0x9b   : > { %v6231_v52 = vrot.slane %v6229_v46, 1  ;;  %v20627_v46 = vld [vmem:[%s21209_s14 + $0xf0] sm:$0xff]  }
  0x9d   : > { %v6235_v55 = vor.u32 %v6233_v50, %v6231_v52  ;;  %v6232_v61 = vsel %vm1692_vm2, %v6227_v54, %v6231_v52  ;;  %v20629_v52 = vld [vmem:[%s21209_s14 + $0xf8] sm:$0xff]   ;;  %v6309_v54 = vshll.u32 %v20627_v46, 16 }
  0x9f   : > { %v6311_v60 = vrot.slane %v6309_v54, 1 }
  0xa1   : > { %18078 = vmatmul.mubr.msk.bf16.gmra.mrb[56].mxu1 %vm608_vm1, %v20590_v63  ;;  %18462 = vmatmul.mubr.msk.bf16.gmra.mrb[16].mxu0 %vm608_vm1, %v6168_v5  ;;  %v6240_v63 = vsel %vm1692_vm2, %v6235_v55, %v6239_v56  ;;  %v6243_v5 = vor.u32 %v6241_v62, %v6239_v56  ;;  %v6305_v56 = vshrl.u32 %v20625_v36, 16 }
  0xa2   : > { %18081 = vmatprep.mubr.msk.bf16.mxu1 %vm608_vm1, %v20592_v0  ;;  %18465 = vmatprep.mubr.msk.bf16.mxu0 %vm608_vm1, %v6176_v7  ;;  %v6249_v0 = vshrl.u32 %v20611_v53, 16  ;;  %v6255_v7 = vrot.slane %v6253_v1, 1  ;;  %v20624_v53 = vld [vmem:[%s21209_s14 + $0x170] sm:$0xff]   ;;  %v20633_v1 = vld [vmem:[%s21209_s14 + $0x108] sm:$0xff]  }
  0xa3   : > { %v6248_v12 = vsel %vm1692_vm2, %v6243_v5, %v6247_v2 }
  0xa4   : > { %v6251_v6 = vor.u32 %v6249_v0, %v6247_v2  ;;  %v20626_v2 = vld [vmem:[%s21209_s14 + $0x178] sm:$0xff]  }
  0xa6   : > { %v6256_v14 = vsel %vm1692_vm2, %v6251_v6, %v6255_v7  ;;  %v20636_v6 = vld [vmem:[%s21209_s14] sm:$0xff]  }
  0xa9   : > { %18082 = vmatmul.mubr.msk.bf16.gmra.mrb[60].mxu1 %vm608_vm1, %v20594_v16  ;;  %18466 = vmatmul.mubr.msk.bf16.gmra.mrb[20].mxu0 %vm608_vm1, %v6184_v19  ;;  %v6269_v16 = vshll.u32 %v20617_v8, 16  ;;  %v6259_v19 = vor.u32 %v6257_v13, %v6255_v7  ;;  %v6321_v8 = vshrl.u32 %v20629_v52, 16  ;;  %v20637_v13 = vld [vmem:[%s21209_s14 + $0x8] sm:$0xff]  }
  0xaa   : > { %18085 = vmatprep.mubr.msk.bf16.mxu1 %vm608_vm1, %v20596_v17  ;;  %18469 = vmatprep.mubr.msk.bf16.mxu0 %vm608_vm1, %v6192_v21  ;;  %v6263_v17 = vrot.slane %v6261_v11, 1  ;;  %v6333_v11 = vshll.u32 %v20633_v1, 16 }
  0xab   : > { %v6271_v21 = vrot.slane %v6269_v16, 1  ;;  %v20630_v16 = vld [vmem:[%s21209_s14 + $0x188] sm:$0xff]  }
  0xac   : > { %v6267_v20 = vor.u32 %v6265_v15, %v6263_v17  ;;  %v6264_v26 = vsel %vm1692_vm2, %v6259_v19, %v6263_v17  ;;  %v1696_v15 = vshll.u32 %v20636_v6, 16  ;;  %v20632_v19 = vld [vmem:[%s21209_s14 + $0x190] sm:$0xff]  }
  0xae   : > { %v6272_v28 = vsel %vm1692_vm2, %v6267_v20, %v6271_v21 }
  0xb1   : > { %18086 = vmatmul.mubr.msk.bf16.gmra.mrb[64].mxu1 %vm608_vm1, %v20598_v30  ;;  %18470 = vmatmul.mubr.msk.bf16.gmra.mrb[24].mxu0 %vm608_vm1, %v6200_v33  ;;  %v6285_v30 = vshll.u32 %v20621_v22, 16  ;;  %v6275_v33 = vor.u32 %v6273_v27, %v6271_v21  ;;  %v6335_v21 = vrot.slane %v6333_v11, 1  ;;  %v6337_v22 = vshrl.u32 %v20633_v1, 16  ;;  %v20646_v1 = vld [vmem:[%s21209_s14 + $0x138] sm:$0xff]  }
  0xb2   : > { %18089 = vmatprep.mubr.msk.bf16.mxu1 %vm608_vm1, %v20600_v31  ;;  %18473 = vmatprep.mubr.msk.bf16.mxu0 %vm608_vm1, %v6208_v35  ;;  %v6279_v31 = vrot.slane %v6277_v25, 1  ;;  %v1701_v25 = vshll.u32 %v20637_v13, 16  ;;  %v1698_v27 = vrot.slane %v1696_v15, 1 }
  0xb3   : > { %v6287_v35 = vrot.slane %v6285_v30, 1  ;;  %v6349_v30 = vshll.u32 %v20638_v18, 16 }
  0xb4   : > { %v6283_v34 = vor.u32 %v6281_v29, %v6279_v31  ;;  %v6280_v40 = vsel %vm1692_vm2, %v6275_v33, %v6279_v31  ;;  %v20640_v31 = vld [vmem:[%s21209_s14 + $0x120] sm:$0xff]   ;;  %v20641_v33 = vld [vmem:[%s21209_s14 + $0x18] sm:$0xff]  }
  0xb6   : > { %v6288_v42 = vsel %vm1692_vm2, %v6283_v34, %v6287_v35  ;;  %v6339_v34 = vor.u32 %v6337_v22, %v6335_v21 }
  0xb9   : > { %18090 = vmatmul.mubr.msk.bf16.gmra.mrb[68].mxu1 %vm608_vm1, %v20602_v44  ;;  %18474 = vmatmul.mubr.msk.bf16.gmra.mrb[28].mxu0 %vm608_vm1, %v6216_v47  ;;  %v6301_v44 = vshll.u32 %v20625_v36, 16  ;;  %v16975_v47 = vld [vmem:[%s22910_s1 + $0x18] sm:$0xf]  ;;  %v1705_v36 = vshrl.u32 %v20637_v13, 16  ;;  %v6381_v13 = vshll.u32 %v20646_v1, 16 }
  0xba   : > { %18093 = vmatprep.mubr.msk.bf16.mxu1 %vm608_vm1, %v20604_v45  ;;  %18477 = vmatprep.mubr.msk.bf16.mxu0 %vm608_vm1, %v6224_v49  ;;  %v6295_v45 = vrot.slane %v6293_v39, 1  ;;  %v6291_v49 = vor.u32 %v6289_v41, %v6287_v35  ;;  %v1703_v39 = vrot.slane %v1701_v25, 1  ;;  %v6353_v41 = vshrl.u32 %v20638_v18, 16 }
  0xbb   : > { %20506 = vmatprep.subr.msk.bf16.mxu0 %vm765_vm0, %v16975_v47  ;;  %v6303_v51 = vrot.slane %v6301_v44, 1  ;;  %v1717_v47 = vshll.u32 %v20641_v33, 16  ;;  %v6385_v25 = vshrl.u32 %v20646_v1, 16  ;;  %v20657_v1 = vld [vmem:[%s21209_s14 + $0x58] sm:$0xff]  }
  0xbc   : > { %v6299_v50 = vor.u32 %v6297_v43, %v6295_v45  ;;  %v6296_v55 = vsel %vm1692_vm2, %v6291_v49, %v6295_v45  ;;  %v6357_v45 = vshll.u32 %v20640_v31, 16  ;;  %v20643_v49 = vld [vmem:[%s21209_s14 + $0x20] sm:$0xff]  }
  0xbd   : > { %v6307_v62 = vor.u32 %v6305_v56, %v6303_v51  ;;  %v20645_v56 = vld [vmem:[%s21209_s14 + $0x28] sm:$0xff]  }
  0xbe   : > { %v6304_v57 = vsel %vm1692_vm2, %v6299_v50, %v6303_v51 }
  0xbf   : > { %v6312_v7 = vsel %vm1692_vm2, %v6307_v62, %v6311_v60  ;;  %v1719_v62 = vrot.slane %v1717_v47, 1 }
  0xc1   : > { %18094 = vmatmul.mubr.msk.bf16.gmra.mrb[72].mxu1 %vm608_vm1, %v20606_v58  ;;  %18478 = vmatmul.mubr.msk.bf16.gmra.mrb[32].mxu0 %vm608_vm1, %v6232_v61  ;;  %v6313_v58 = vshrl.u32 %v20627_v46, 16  ;;  %v20631_v61 = vld [vmem:[%s21209_s14 + $0x100] sm:$0xff]  }
  0xc2   : > { %18097 = vmatprep.mubr.msk.bf16.mxu1 %vm608_vm1, %v20608_v59  ;;  %18481 = vmatprep.mubr.msk.bf16.mxu0 %vm608_vm1, %v6240_v63  ;;  %v6317_v59 = vshll.u32 %v20629_v52, 16  ;;  %v6325_v5 = vshll.u32 %v20631_v61, 16 }
  0xc3   : > { %v6315_v63 = vor.u32 %v6313_v58, %v6311_v60  ;;  %v1721_v60 = vshrl.u32 %v20641_v33, 16  ;;  %v20651_v33 = vld [vmem:[%s21209_s14 + $0x40] sm:$0xff]  }
  0xc4   : > { %v6319_v0 = vrot.slane %v6317_v59, 1  ;;  %v6359_v59 = vrot.slane %v6357_v45, 1 }
  0xc5   : > { %v1723_v18 = vor.u32 %v1721_v60, %v1719_v62 }
  0xc6   : > { %v6323_v17 = vor.u32 %v6321_v8, %v6319_v0 }
  0xc9   : > { %18098 = vmatmul.mubr.msk.bf16.gmra.mrb[76].mxu1 %vm608_vm1, %v20610_v9  ;;  %18482 = vmatmul.mubr.msk.bf16.gmra.mrb[36].mxu0 %vm608_vm1, %v6248_v12  ;;  %v6329_v9 = vshrl.u32 %v20631_v61, 16  ;;  %v20635_v12 = vld [vmem:[%s21209_s14 + $0x110] sm:$0xff]  }
  0xca   : > { %18101 = vmatprep.mubr.msk.bf16.mxu1 %vm608_vm1, %v20612_v10  ;;  %18485 = vmatprep.mubr.msk.bf16.mxu0 %vm608_vm1, %v6256_v14  ;;  %v6320_v10 = vsel %vm1692_vm2, %v6315_v63, %v6319_v0  ;;  %v6327_v14 = vrot.slane %v6325_v5, 1  ;;  %v1725_v0 = vshll.u32 %v20643_v49, 16  ;;  %v1729_v5 = vshrl.u32 %v20643_v49, 16 }
  0xcc   : > { %v6331_v20 = vor.u32 %v6329_v9, %v6327_v14  ;;  %v6328_v29 = vsel %vm1692_vm2, %v6323_v17, %v6327_v14  ;;  %v20647_v9 = vld [vmem:[%s21209_s14 + $0x30] sm:$0xff]   ;;  %v20648_v14 = vld [vmem:[%s21209_s14 + $0x140] sm:$0xff]   ;;  %v20649_v17 = vld [vmem:[%s21209_s14 + $0x38] sm:$0xff]  }
  0xcd   : > { %v1753_v45 = vshrl.u32 %v20649_v17, 16 }
  0xce   : > { %v6336_v32 = vsel %vm1692_vm2, %v6331_v20, %v6335_v21  ;;  %v1737_v21 = vshrl.u32 %v20645_v56, 16 }
  0xd1   : > { %18102 = vmatmul.mubr.msk.bf16.gmra.mrb[80].mxu1 %vm608_vm1, %v20614_v23  ;;  %18486 = vmatmul.mubr.msk.bf16.gmra.mrb[40].mxu0 %vm608_vm1, %v6264_v26  ;;  %v6341_v23 = vshll.u32 %v20635_v12, 16  ;;  %v6345_v26 = vshrl.u32 %v20635_v12, 16 }
  0xd2   : > { %18105 = vmatprep.mubr.msk.bf16.mxu1 %vm608_vm1, %v20616_v24  ;;  %18489 = vmatprep.mubr.msk.bf16.mxu0 %vm608_vm1, %v6272_v28  ;;  %v1694_v24 = vshrl.u32 %v20636_v6, 16  ;;  %v20639_v28 = vld [vmem:[%s21209_s14 + $0x10] sm:$0xff]  }
  0xd3   : > { %v6343_v35 = vrot.slane %v6341_v23, 1  ;;  %v1709_v44 = vshll.u32 %v20639_v28, 16  ;;  %v1713_v46 = vshrl.u32 %v20639_v28, 16  ;;  %v6383_v28 = vrot.slane %v6381_v13, 1 }
  0xd5   : > { %v6347_v43 = vor.u32 %v6345_v26, %v6343_v35  ;;  %v6344_v50 = vsel %vm1692_vm2, %v6339_v34, %v6343_v35  ;;  %v20650_v26 = vld [vmem:[%s21209_s14 + $0x148] sm:$0xff]  }
  0xd6   : > { %v6401_v49 = vshrl.u32 %v20650_v26, 16 }
  0xd9   : > { %18106 = vmatmul.mubr.msk.bf16.gmra.mrb[84].mxu1 %vm608_vm1, %v20618_v37  ;;  %18490 = vmatmul.mubr.msk.bf16.gmra.mrb[44].mxu0 %vm608_vm1, %v6280_v40  ;;  %v20634_v37 = vld [vmem:[%s21209_s14 + $0x198] sm:$0xff]   ;;  %v6351_v40 = vrot.slane %v6349_v30, 1  ;;  %v1745_v30 = vshrl.u32 %v20647_v9, 16 }
  0xda   : > { %18109 = vmatprep.mubr.msk.bf16.mxu1 %vm608_vm1, %v20620_v38  ;;  %18493 = vmatprep.mubr.msk.bf16.mxu0 %vm608_vm1, %v6288_v42  ;;  %v1699_v38 = vor.u32 %v1698_v27, %v1694_v24  ;;  %v20642_v42 = vld [vmem:[%s21209_s14 + $0x128] sm:$0xff]   ;;  %v1741_v24 = vshll.u32 %v20647_v9, 16 }
  0xdb   : > { %v6365_v52 = vshll.u32 %v20642_v42, 16  ;;  %v6352_v54 = vsel %vm1692_vm2, %v6347_v43, %v6351_v40  ;;  %v6355_v58 = vor.u32 %v6353_v41, %v6351_v40  ;;  %v20653_v41 = vld [vmem:[%s21209_s14 + $0x48] sm:$0xff]   ;;  %v6387_v43 = vor.u32 %v6385_v25, %v6383_v28 }
  0xdc   : > { %v1704_v51 = vsel %vm1692_vm2, %v1699_v38, %v1703_v39  ;;  %v20652_v38 = vld [vmem:[%s21209_s14 + $0x150] sm:$0xff]   ;;  %v1743_v40 = vrot.slane %v1741_v24, 1 }
  0xdd   : > { %v6367_v63 = vrot.slane %v6365_v52, 1  ;;  %v6360_v11 = vsel %vm1692_vm2, %v6355_v58, %v6359_v59 }
  0xe1   : > { %18110 = vmatmul.mubr.msk.bf16.gmra.mrb[88].mxu1 %vm608_vm1, %v20622_v48  ;;  %18494 = vmatmul.mubr.msk.bf16.gmra.mrb[48].mxu0 %vm608_vm1, %v6296_v55  ;;  %v6361_v48 = vshrl.u32 %v20640_v31, 16  ;;  %v1711_v55 = vrot.slane %v1709_v44, 1  ;;  %v1749_v31 = vshll.u32 %v20649_v17, 16 }
  0xe2   : > { %18113 = vmatprep.mubr.msk.bf16.mxu1 %vm608_vm1, %v20624_v53  ;;  %18497 = vmatprep.mubr.msk.bf16.mxu0 %vm608_vm1, %v6304_v57  ;;  %v20644_v53 = vld [vmem:[%s21209_s14 + $0x130] sm:$0xff]   ;;  %v1707_v57 = vor.u32 %v1705_v36, %v1703_v39 }
  0xe3   : > { %v1715_v61 = vor.u32 %v1713_v46, %v1711_v55  ;;  %v6373_v6 = vshll.u32 %v20644_v53, 16  ;;  %v6377_v8 = vshrl.u32 %v20644_v53, 16  ;;  %v1747_v46 = vor.u32 %v1745_v30, %v1743_v40 }
  0xe4   : > { %v1751_v47 = vrot.slane %v1749_v31, 1  ;;  %v6405_v53 = vshll.u32 %v20652_v38, 16 }
  0xe5   : > { %v1720_v12 = vsel %vm1692_vm2, %v1715_v61, %v1719_v62  ;;  %v6375_v20 = vrot.slane %v6373_v6, 1  ;;  %v20656_v62 = vld [vmem:[%s21209_s14 + $0x160] sm:$0xff]   ;;  %v1769_v6 = vshrl.u32 %v20653_v41, 16 }
  0xe6   : > { %v1752_v60 = vsel %vm1692_vm2, %v1747_v46, %v1751_v47  ;;  %v6425_v17 = vshrl.u32 %v20656_v62, 16 }
  0xe7   : > { %v6379_v27 = vor.u32 %v6377_v8, %v6375_v20 }
  0xe9   : > { %18114 = vmatmul.mubr.msk.bf16.gmra.mrb[92].mxu1 %vm608_vm1, %v20626_v2  ;;  %18498 = vmatmul.mubr.msk.bf16.gmra.mrb[52].mxu0 %vm608_vm1, %v6312_v7  ;;  %v6363_v2 = vor.u32 %v6361_v48, %v6359_v59  ;;  %v1733_v7 = vshll.u32 %v20645_v56, 16  ;;  %v6384_v39 = vsel %vm1692_vm2, %v6379_v27, %v6383_v28  ;;  %v1757_v48 = vshll.u32 %v20651_v33, 16 }
  0xea   : > { %18117 = vmatprep.mubr.msk.bf16.mxu1 %vm608_vm1, %v20628_v4  ;;  %18501 = vmatprep.mubr.msk.bf16.mxu0 %vm608_vm1, %v6320_v10  ;;  %v6369_v4 = vshrl.u32 %v20642_v42, 16  ;;  %v1712_v10 = vsel %vm1692_vm2, %v1707_v57, %v1711_v55  ;;  %v1765_v55 = vshll.u32 %v20653_v41, 16  ;;  %v6409_v56 = vshrl.u32 %v20652_v38, 16  ;;  %v20655_v57 = vld [vmem:[%s21209_s14 + $0x50] sm:$0xff]  }
  0xeb   : > { %v6368_v15 = vsel %vm1692_vm2, %v6363_v2, %v6367_v63  ;;  %v1735_v23 = vrot.slane %v1733_v7, 1  ;;  %v1755_v2 = vor.u32 %v1753_v45, %v1751_v47  ;;  %v1773_v9 = vshll.u32 %v20655_v57, 16  ;;  %v20664_v47 = vld [vmem:[%s21209_s14 + $0x180] sm:$0xff]  }
  0xec   : > { %v1767_v8 = vrot.slane %v1765_v55, 1 }
  0xed   : > { %v1739_v42 = vor.u32 %v1737_v21, %v1735_v23  ;;  %v1775_v25 = vrot.slane %v1773_v9, 1 }
  0xee   : > { %v1771_v27 = vor.u32 %v1769_v6, %v1767_v8 }
  0xef   : > { %v1744_v58 = vsel %vm1692_vm2, %v1739_v42, %v1743_v40  ;;  %v20663_v42 = vld [vmem:[%s21209_s14 + $0x70] sm:$0xff]  }
  0xf1   : > { %18118 = vmatmul.mubr.msk.bf16.gmra.mrb[96].mxu1 %vm608_vm1, %v20630_v16  ;;  %18502 = vmatmul.mubr.msk.bf16.gmra.mrb[56].mxu0 %vm608_vm1, %v6328_v29  ;;  %v1727_v16 = vrot.slane %v1725_v0, 1  ;;  %v6389_v29 = vshll.u32 %v20648_v14, 16  ;;  %v1759_v0 = vrot.slane %v1757_v48, 1 }
  0xf2   : > { %18121 = vmatprep.mubr.msk.bf16.mxu1 %vm608_vm1, %v20632_v19  ;;  %18505 = vmatprep.mubr.msk.bf16.mxu0 %vm608_vm1, %v6336_v32  ;;  %v6371_v19 = vor.u32 %v6369_v4, %v6367_v63  ;;  %v6393_v32 = vshrl.u32 %v20648_v14, 16  ;;  %v6421_v14 = vshll.u32 %v20656_v62, 16 }
  0xf3   : > { %v1731_v22 = vor.u32 %v1729_v5, %v1727_v16  ;;  %v1728_v34 = vsel %vm1692_vm2, %v1723_v18, %v1727_v16  ;;  %v6391_v44 = vrot.slane %v6389_v29, 1  ;;  %v6407_v5 = vrot.slane %v6405_v53, 1  ;;  %v20659_v18 = vld [vmem:[%s21209_s14 + $0x60] sm:$0xff]  }
  0xf4   : > { %v6376_v35 = vsel %vm1692_vm2, %v6371_v19, %v6375_v20  ;;  %v1781_v16 = vshll.u32 %v20657_v1, 16  ;;  %v1760_v19 = vsel %vm1692_vm2, %v1755_v2, %v1759_v0  ;;  %v6423_v29 = vrot.slane %v6421_v14, 1 }
  0xf5   : > { %v1736_v36 = vsel %vm1692_vm2, %v1731_v22, %v1735_v23  ;;  %v6392_v59 = vsel %vm1692_vm2, %v6387_v43, %v6391_v44  ;;  %v20660_v23 = vld [vmem:[%s21209_s14 + $0x170] sm:$0xff]   ;;  %v1793_v38 = vshrl.u32 %v20659_v18, 16  ;;  %v1776_v43 = vsel %vm1692_vm2, %v1771_v27, %v1775_v25 }
  0xf6   : > { %v1783_v30 = vrot.slane %v1781_v16, 1  ;;  %v6441_v41 = vshrl.u32 %v20660_v23, 16  ;;  %v6457_v2 = vshrl.u32 %v20664_v47, 16 }
  0xf9   : > { %18122 = vmatmul.mubr.msk.bf16.gmra.mrb[100].mxu1 %vm608_vm1, %v20634_v37  ;;  %18506 = vmatmul.mubr.msk.bf16.gmra.mrb[60].mxu0 %vm608_vm1, %v6344_v50  ;;  %v6397_v37 = vshll.u32 %v20650_v26, 16  ;;  %v20654_v50 = vld [vmem:[%s21209_s14 + $0x158] sm:$0xff]   ;;  %v20661_v26 = vld [vmem:[%s21209_s14 + $0x68] sm:$0xff]  }
  0xfa   : > { %18127 = vmatprep.mubr.msk.bf16.mxu1 %vm608_vm1, %v1704_v51  ;;  %18509 = vmatprep.mubr.msk.bf16.mxu0 %vm608_vm1, %v6352_v54  ;;  %v6395_v51 = vor.u32 %v6393_v32, %v6391_v44  ;;  %v1761_v54 = vshrl.u32 %v20651_v33, 16  ;;  %v6413_v61 = vshll.u32 %v20654_v50, 16  ;;  %v1785_v33 = vshrl.u32 %v20657_v1, 16 }
  0xfb   : > { %v6399_v52 = vrot.slane %v6397_v37, 1  ;;  %v1797_v40 = vshll.u32 %v20661_v26, 16 }
  0xfc   : > { %v1763_v7 = vor.u32 %v1761_v54, %v1759_v0  ;;  %v6415_v13 = vrot.slane %v6413_v61, 1  ;;  %v1809_v0 = vshrl.u32 %v20663_v42, 16 }
  0xfd   : > { %v6400_v63 = vsel %vm1692_vm2, %v6395_v51, %v6399_v52  ;;  %v6403_v4 = vor.u32 %v6401_v49, %v6399_v52  ;;  %v1787_v51 = vor.u32 %v1785_v33, %v1783_v30  ;;  %v1799_v53 = vrot.slane %v1797_v40, 1  ;;  %v20672_v33 = vld [vmem:[%s21209_s14 + $0x1a0] sm:$0xff]  }
  0xfe   : > { %v1768_v21 = vsel %vm1692_vm2, %v1763_v7, %v1767_v8 }
  0xff   : > { %v6408_v20 = vsel %vm1692_vm2, %v6403_v4, %v6407_v5 }
 0x101   : > { %18128 = vmatmul.mubr.msk.bf16.vlgmr.msra.gmra.mrb[0].mxu1 %vm608_vm1, %v1712_v10  ;;  %18510 = vmatmul.mubr.msk.bf16.gmra.mrb[64].mxu0 %vm608_vm1, %v6360_v11  ;;  %v6417_v10 = vshrl.u32 %v20654_v50, 16  ;;  %v20658_v11 = vld [vmem:[%s21209_s14 + $0x168] sm:$0xff]   ;;  %v20665_v50 = vld [vmem:[%s21209_s14 + $0x78] sm:$0xff]  }
 0x102   : > { %18131 = vmatprep.mubr.msk.bf16.mxu1 %vm608_vm1, %v1720_v12  ;;  %18513 = vmatprep.mubr.msk.bf16.mxu0 %vm608_vm1, %v6368_v15  ;;  %v6411_v12 = vor.u32 %v6409_v56, %v6407_v5  ;;  %v1777_v15 = vshrl.u32 %v20655_v57, 16  ;;  %v6429_v22 = vshll.u32 %v20658_v11, 16  ;;  %v6433_v37 = vshrl.u32 %v20658_v11, 16  ;;  %v20668_v5 = vld [vmem:[%s21209_s14 + $0x190] sm:$0xff]  }
 0x103   : > { %v6419_v28 = vor.u32 %v6417_v10, %v6415_v13  ;;  %v1801_v56 = vshrl.u32 %v20661_v26, 16  ;;  %v1805_v57 = vshll.u32 %v20663_v42, 16  ;;  %v1813_v1 = vshll.u32 %v20665_v50, 16 }
 0x104   : > { %v6416_v24 = vsel %vm1692_vm2, %v6411_v12, %v6415_v13  ;;  %v1779_v31 = vor.u32 %v1777_v15, %v1775_v25  ;;  %v6431_v32 = vrot.slane %v6429_v22, 1  ;;  %v20669_v12 = vld [vmem:[%s21209_s14 + $0x88] sm:$0xff]   ;;  %v6473_v27 = vshrl.u32 %v20668_v5, 16 }
 0x105   : > { %v6424_v44 = vsel %vm1692_vm2, %v6419_v28, %v6423_v29  ;;  %v1807_v11 = vrot.slane %v1805_v57, 1  ;;  %v1803_v13 = vor.u32 %v1801_v56, %v1799_v53  ;;  %v1815_v16 = vrot.slane %v1813_v1, 1  ;;  %v20671_v28 = vld [vmem:[%s21209_s14 + $0x90] sm:$0xff]  }
 0x106   : > { %v1784_v45 = vsel %vm1692_vm2, %v1779_v31, %v1783_v30  ;;  %v6435_v54 = vor.u32 %v6433_v37, %v6431_v32  ;;  %v1829_v26 = vshll.u32 %v20669_v12, 16  ;;  %v1833_v42 = vshrl.u32 %v20669_v12, 16  ;;  %v20680_v12 = vld [vmem:[%s21209_s14 + $0xb0] sm:$0xff]  }
 0x107   : > { %v6489_v56 = vshrl.u32 %v20672_v33, 16 }
 0x109   : > { %18132 = vmatmul.mubr.msk.bf16.gmra.mrb[4].mxu1 %vm608_vm1, %v1728_v34  ;;  %18514 = vmatmul.mubr.msk.bf16.gmra.mrb[68].mxu0 %vm608_vm1, %v6376_v35  ;;  %v1789_v34 = vshll.u32 %v20659_v18, 16  ;;  %v20662_v35 = vld [vmem:[%s21209_s14 + $0x178] sm:$0xff]  }
 0x10a   : > { %18135 = vmatprep.mubr.msk.bf16.mxu1 %vm608_vm1, %v1736_v36  ;;  %18517 = vmatprep.mubr.msk.bf16.mxu0 %vm608_vm1, %v6384_v39  ;;  %v6427_v36 = vor.u32 %v6425_v17, %v6423_v29  ;;  %v6437_v39 = vshll.u32 %v20660_v23, 16  ;;  %v6445_v46 = vshll.u32 %v20662_v35, 16  ;;  %v6449_v62 = vshrl.u32 %v20662_v35, 16 }
 0x10b   : > { %v1791_v49 = vrot.slane %v1789_v34, 1  ;;  %v1811_v17 = vor.u32 %v1809_v0, %v1807_v11  ;;  %v1808_v29 = vsel %vm1692_vm2, %v1803_v13, %v1807_v11  ;;  %v1837_v35 = vshll.u32 %v20671_v28, 16  ;;  %v20679_v11 = vld [vmem:[%s21209_s14 + $0x18] sm:$0xff]  }
 0x10c   : > { %v6432_v48 = vsel %vm1692_vm2, %v6427_v36, %v6431_v32  ;;  %v6439_v52 = vrot.slane %v6437_v39, 1  ;;  %v6447_v61 = vrot.slane %v6445_v46, 1  ;;  %v20673_v36 = vld [vmem:[%s21209_s14 + $0x98] sm:$0xff]  }
 0x10d   : > { %v1795_v55 = vor.u32 %v1793_v38, %v1791_v49  ;;  %v1792_v4 = vsel %vm1692_vm2, %v1787_v51, %v1791_v49  ;;  %v1816_v31 = vsel %vm1692_vm2, %v1811_v17, %v1815_v16  ;;  %v1841_v49 = vshrl.u32 %v20671_v28, 16  ;;  %v20675_v51 = vld [vmem:[%s21209_s14 + $0xa0] sm:$0xff]  }
 0x10e   : > { %v6440_v6 = vsel %vm1692_vm2, %v6435_v54, %v6439_v52  ;;  %v6451_v14 = vor.u32 %v6449_v62, %v6447_v61 }
 0x10f   : > { %v1800_v7 = vsel %vm1692_vm2, %v1795_v55, %v1799_v53  ;;  %v20676_v53 = vld [vmem:[%s21209_s14 + $0x1b0] ss:$0 sps:$4 sm:$0x11]  }
 0x111   : > { %18136 = vmatmul.mubr.msk.bf16.gmra.mrb[8].mxu1 %vm608_vm1, %v1744_v58  ;;  %18518 = vmatmul.mubr.msk.bf16.gmra.mrb[72].mxu0 %vm608_vm1, %v6392_v59  ;;  %v20666_v58 = vld [vmem:[%s21209_s14 + $0x188] sm:$0xff]   ;;  %v20667_v59 = vld [vmem:[%s21209_s14 + $0x80] sm:$0xff]  }
 0x112   : > { %18139 = vmatprep.mubr.msk.bf16.mxu1 %vm608_vm1, %v1752_v60  ;;  %18521 = vmatprep.mubr.msk.bf16.mxu0 %vm608_vm1, %v6400_v63  ;;  %v6443_v60 = vor.u32 %v6441_v41, %v6439_v52  ;;  %v6453_v63 = vshll.u32 %v20664_v47, 16  ;;  %v6461_v8 = vshll.u32 %v20666_v58, 16  ;;  %v1821_v9 = vshll.u32 %v20667_v59, 16 }
 0x113   : > { %v1825_v25 = vshrl.u32 %v20667_v59, 16  ;;  %v1831_v41 = vrot.slane %v1829_v26, 1  ;;  %v6485_v47 = vshll.u32 %v20672_v33, 16  ;;  %v1853_v59 = vshll.u32 %v20675_v51, 16  ;;  %v20683_v33 = vld [vmem:[%s21209_s14 + $0x28] sm:$0xff]  }
 0x114   : > { %v6448_v10 = vsel %vm1692_vm2, %v6443_v60, %v6447_v61  ;;  %v6455_v15 = vrot.slane %v6453_v63, 1  ;;  %v6463_v18 = vrot.slane %v6461_v8, 1  ;;  %v1823_v23 = vrot.slane %v1821_v9, 1  ;;  %v20677_v60 = vld [vmem:[%s21209_s14 + $0xa8] sm:$0xff]  }
 0x115   : > { %v1835_v61 = vor.u32 %v1833_v42, %v1831_v41  ;;  %v6487_v63 = vrot.slane %v6485_v47, 1  ;;  %v1855_v8 = vrot.slane %v1853_v59, 1  ;;  %v1857_v9 = vshrl.u32 %v20675_v51, 16  ;;  %v21077_v42 = vld [vmem:[%s22910_s1 + $0x18] sm:$0xf]  ;;  %v20685_v51 = vld [vmem:[%s21209_s14 + $0x30] sm:$0xff]  }
 0x116   : > { %v6459_v22 = vor.u32 %v6457_v2, %v6455_v15  ;;  %v6456_v30 = vsel %vm1692_vm2, %v6451_v14, %v6455_v15  ;;  %v1827_v40 = vor.u32 %v1825_v25, %v1823_v23  ;;  %v1849_v2 = vshrl.u32 %v20673_v36, 16 }
 0x117   : > { %v7796_v25 = vrot.slane %v20679_v11, 1  ;;  %v1865_v26 = vshrl.u32 %v20677_v60, 16  ;;  %v7800_v47 = vrot.slane %v20683_v33, 1  ;;  %v20691_v11 = vld [vmem:[%s21209_s14 + $0x48] sm:$0xff]  }
 0x118   : > { %v6464_v34 = vsel %vm1692_vm2, %v6459_v22, %v6463_v18  ;;  %v1832_v55 = vsel %vm1692_vm2, %v1827_v40, %v1831_v41 }
 0x119   : > { %18140 = vmatmul.mubr.msk.bf16.gmra.mrb[12].mxu1 %vm608_vm1, %v1760_v19  ;;  %18522 = vmatmul.mubr.msk.bf16.gmra.mrb[76].mxu0 %vm608_vm1, %v6408_v20  ;;  %v1817_v19 = vshrl.u32 %v20665_v50, 16  ;;  %v6465_v20 = vshrl.u32 %v20666_v58, 16  ;;  %v1845_v50 = vshll.u32 %v20673_v36, 16 }
 0x11a   : > { %18143 = vmatprep.mubr.msk.bf16.mxu1 %vm608_vm1, %v1768_v21  ;;  %18525 = vmatprep.mubr.msk.bf16.mxu0 %vm608_vm1, %v6416_v24  ;;  %v20670_v21 = vld [vmem:[%s21209_s14 + $0x198] sm:$0xff]   ;;  %v6469_v24 = vshll.u32 %v20668_v5, 16  ;;  %v6491_v5 = vor.u32 %v6489_v56, %v6487_v63  ;;  %v21078_v56 = vld [vmem:[%s22910_s1 + $0xc] sm:$0xf] }
 0x11b   : > { %v6477_v32 = vshll.u32 %v20670_v21, 16  ;;  %v1819_v37 = vor.u32 %v1817_v19, %v1815_v16  ;;  %v6467_v38 = vor.u32 %v6465_v20, %v6463_v18  ;;  %v1847_v1 = vrot.slane %v1845_v50, 1  ;;  %v20678_v16 = vld [vmem:[%s21209_s14 + $0x10] sm:$0xfe]   ;;  %v20682_v19 = vld [vmem:[%s21209_s14 + $0xb8] sm:$0xff]  }
 0x11c   : > { %v6471_v39 = vrot.slane %v6469_v24, 1  ;;  %v1869_v18 = vshll.u32 %v20680_v12, 16  ;;  %v7795_v28 = vrot.slane %v20678_v16, 1  ;;  %v1881_v50 = vshrl.u32 %v20682_v19, 16  ;;  %v20694_v16 = vld [vmem:[%s21209_s14 + $0xe8] sm:$0xff]  }
 0x11d   : > { %v6479_v46 = vrot.slane %v6477_v32, 1  ;;  %v1824_v52 = vsel %vm1692_vm2, %v1819_v37, %v1823_v23  ;;  %v1851_v20 = vor.u32 %v1849_v2, %v1847_v1  ;;  %v1859_v23 = vor.u32 %v1857_v9, %v1855_v8 }
 0x11e   : > { %v6472_v54 = vsel %vm1692_vm2, %v6467_v38, %v6471_v39  ;;  %v1877_v32 = vshll.u32 %v20682_v19, 16  ;;  %v20686_v38 = vld [vmem:[%s21209_s14 + $0xc8] sm:$0xff]  }
 0x11f   : > { %v1897_v2 = vshrl.u32 %v20686_v38, 16 }
 0x121   : > { %18144 = vmatmul.mubr.msk.bf16.gmra.mrb[16].mxu1 %vm608_vm1, %v1776_v43  ;;  %18526 = vmatmul.mubr.msk.bf16.gmra.mrb[80].mxu0 %vm608_vm1, %v6424_v44  ;;  %v6481_v43 = vshrl.u32 %v20670_v21, 16  ;;  %v20674_v44 = vld [vmem:[%s21209_s14 + $0x1a8] sm:$0xff]  }
 0x122   : > { %18147 = vmatprep.mubr.msk.bf16.mxu1 %vm608_vm1, %v1784_v45  ;;  %18529 = vmatprep.mubr.msk.bf16.mxu0 %vm608_vm1, %v6432_v48  ;;  %v6475_v45 = vor.u32 %v6473_v27, %v6471_v39  ;;  %v1839_v48 = vrot.slane %v1837_v35, 1  ;;  %v6493_v57 = vshll.u32 %v20674_v44, 16  ;;  %v20684_v27 = vld [vmem:[%s21209_s14 + $0xc0] sm:$0xff]   ;;  %v7797_v39 = vsel %vm3403_vm3, %v7795_v28, %v7796_v25 }
 0x123   : > { %v6483_v62 = vor.u32 %v6481_v43, %v6479_v46  ;;  %v1885_v37 = vshll.u32 %v20684_v27, 16  ;;  %v9343_v43 = vsel %vm765_vm0, %v21077_v42, 0  ;;  %v1925_v28 = vshll.u32 %v20694_v16, 16  ;;  %v20700_v42 = vld [vmem:[%s21209_s14 + $0x100] sm:$0xff]  }
 0x124   : > { %v6480_v58 = vsel %vm1692_vm2, %v6475_v45, %v6479_v46  ;;  %v1843_v0 = vor.u32 %v1841_v49, %v1839_v48  ;;  %v1840_v13 = vsel %vm1692_vm2, %v1835_v61, %v1839_v48  ;;  %v1879_v46 = vrot.slane %v1877_v32, 1  ;;  %v20688_v48 = vld [vmem:[%s21209_s14 + $0xd0] sm:$0xff]   ;;  %v20690_v61 = vld [vmem:[%s21209_s14 + $0xd8] sm:$0xff]  }
 0x125   : > { %v6488_v14 = vsel %vm1692_vm2, %v6483_v62, %v6487_v63  ;;  %v1905_v9 = vshrl.u32 %v20688_v48, 16 }
 0x126   : > { %v1848_v15 = vsel %vm1692_vm2, %v1843_v0, %v1847_v1  ;;  %v1883_v63 = vor.u32 %v1881_v50, %v1879_v46  ;;  %v7802_v0 = vrot.slane %v20685_v51, 1  ;;  %v1949_v51 = vshll.u32 %v20700_v42, 16 }
 0x129   : > { %18148 = vmatmul.mubr.msk.bf16.gmra.mrb[20].mxu1 %vm608_vm1, %v1792_v4  ;;  %18530 = vmatmul.mubr.msk.bf16.gmra.mrb[84].mxu0 %vm608_vm1, %v6440_v6  ;;  %v6497_v4 = vshrl.u32 %v20674_v44, 16  ;;  %v6495_v6 = vrot.slane %v6493_v57, 1  ;;  %v16552_v44 = vld [vmem:[%s22910_s1 + $0x8] sm:$0xf] }
 0x12a   : > { %18151 = vmatprep.mubr.msk.bf16.mxu1 %vm608_vm1, %v1800_v7  ;;  %18533 = vmatprep.mubr.msk.bf16.mxu0 %vm608_vm1, %v6448_v10  ;;  %v6501_v7 = vshll.u32 %v20676_v53, 16  ;;  %v1861_v10 = vshll.u32 %v20677_v60, 16  ;;  %v3666_v49 = vsel %vm765_vm0, %v16552_v44, 0  ;;  %v1889_v53 = vshrl.u32 %v20684_v27, 16 }
 0x12b   : > { %v6496_v17 = vsel %vm1692_vm2, %v6491_v5, %v6495_v6  ;;  %v6499_v21 = vor.u32 %v6497_v4, %v6495_v6  ;;  %20501 = vmatprep.subr.msk.bf16.mxu1 %vm765_vm0, %v16552_v44  ;;  %v1901_v60 = vshll.u32 %v20688_v48, 16  ;;  %v20692_v6 = vld [vmem:[%s21209_s14 + $0xe0] sm:$0xff]  }
 0x12c   : > { %v6503_v22 = vrot.slane %v6501_v7, 1  ;;  %v1863_v24 = vrot.slane %v1861_v10, 1  ;;  %18232 = vmatpush3.bf16.msra.mxu1 %v3666_v49  ;;  %v1909_v10 = vshll.u32 %v20690_v61, 16  ;;  %v1921_v27 = vshrl.u32 %v20692_v6, 16  ;;  %v20697_v44 = vld [vmem:[%s21209_s14 + $0x60] sm:$0xff]  }
 0x12d   : > { %20503 = vmatprep.subr.msk.bf16.mxu1 %vm765_vm0, %v21078_v56  ;;  %v1903_v7 = vrot.slane %v1901_v60, 1  ;;  %v20704_v60 = vld [vmem:[%s21209_s14 + $0x110] sm:$0xff]  }
 0x12e   : > { %v6504_v35 = vsel %vm1692_vm2, %v6499_v21, %v6503_v22  ;;  %v1864_v36 = vsel %vm1692_vm2, %v1859_v23, %v1863_v24  ;;  %v1867_v40 = vor.u32 %v1865_v26, %v1863_v24  ;;  %v1913_v21 = vshrl.u32 %v20690_v61, 16  ;;  %v20696_v24 = vld [vmem:[%s21209_s14 + $0xf0] sm:$0xff]  }
 0x12f   : > { %v1907_v22 = vor.u32 %v1905_v9, %v1903_v7  ;;  %v1911_v23 = vrot.slane %v1909_v10, 1  ;;  %v20693_v26 = vld [vmem:[%s21209_s14 + $0x50] sm:$0xff]   ;;  %v1933_v33 = vshll.u32 %v20696_v24, 16  ;;  %v1951_v61 = vrot.slane %v1949_v51, 1  ;;  %v20716_v51 = vld [vmem:[%s21209_s14 + $0x140] sm:$0xff]  }
 0x131   : > { %18152 = vmatmul.mubr.msk.bf16.gmra.mrb[24].mxu1 %vm608_vm1, %v1808_v29  ;;  %18534 = vmatmul.mubr.msk.bf16.gmra.mrb[88].mxu0 %vm608_vm1, %v6456_v30  ;;  %v20681_v29 = vld [vmem:[%s21209_s14 + $0x20] sm:$0xff]   ;;  %v1871_v30 = vrot.slane %v1869_v18, 1  ;;  %v1912_v32 = vsel %vm1692_vm2, %v1907_v22, %v1911_v23 }
 0x132   : > { %18155 = vmatprep.mubr.msk.bf16.mxu1 %vm608_vm1, %v1816_v31  ;;  %18537 = vmatprep.mubr.msk.bf16.mxu0 %vm608_vm1, %v6464_v34  ;;  %v1873_v31 = vshrl.u32 %v20680_v12, 16  ;;  %v1856_v34 = vsel %vm1692_vm2, %v1851_v20, %v1855_v8  ;;  %v7798_v41 = vrot.slane %v20681_v29, 1  ;;  %v20689_v8 = vld [vmem:[%s21209_s14 + $0x40] sm:$0xff]   ;;  %v7808_v20 = vrot.slane %v20691_v11, 1  ;;  %v20695_v29 = vld [vmem:[%s21209_s14 + $0x58] sm:$0xff]  }
 0x133   : > { %v1872_v57 = vsel %vm1692_vm2, %v1867_v40, %v1871_v30  ;;  %v7806_v19 = vrot.slane %v20689_v8, 1 }
 0x134   : > { %v1875_v45 = vor.u32 %v1873_v31, %v1871_v30  ;;  %v7801_v62 = vsel %vm3403_vm3, %v7798_v41, %v7800_v47 }
 0x136   : > { %v1880_v59 = vsel %vm1692_vm2, %v1875_v45, %v1879_v46  ;;  %v1937_v45 = vshrl.u32 %v20696_v24, 16 }
 0x139   : > { %18156 = vmatmul.mubr.msk.bf16.gmra.mrb[28].mxu1 %vm608_vm1, %v1824_v52  ;;  %18538 = vmatmul.mubr.msk.bf16.gmra.mrb[92].mxu0 %vm608_vm1, %v6472_v54  ;;  %v1887_v52 = vrot.slane %v1885_v37, 1  ;;  %v1893_v54 = vshll.u32 %v20686_v38, 16  ;;  %v7810_v37 = vrot.slane %v20693_v26, 1  ;;  %v7812_v38 = vrot.slane %v20695_v29, 1 }
 0x13a   : > { %18159 = vmatprep.mubr.msk.bf16.mxu1 %vm608_vm1, %v1832_v55  ;;  %18541 = vmatprep.mubr.msk.bf16.mxu0 %vm608_vm1, %v6480_v58  ;;  %v20687_v55 = vld [vmem:[%s21209_s14 + $0x38] sm:$0xff]   ;;  %v7799_v58 = vsel %vm3403_vm3, %v7796_v25, %v7798_v41  ;;  %v1927_v41 = vrot.slane %v1925_v28, 1 }
 0x13b   : > { %v7804_v1 = vrot.slane %v20687_v55, 1  ;;  %v1891_v4 = vor.u32 %v1889_v53, %v1887_v52  ;;  %v1895_v5 = vrot.slane %v1893_v54, 1  ;;  %v1888_v12 = vsel %vm1692_vm2, %v1883_v63, %v1887_v52  ;;  %v20702_v52 = vld [vmem:[%s21209_s14 + $0x108] sm:$0xff]  }
 0x13c   : > { %v7811_v49 = vsel %vm3403_vm3, %v7808_v20, %v7810_v37  ;;  %v7813_v53 = vsel %vm3403_vm3, %v7810_v37, %v7812_v38  ;;  %v7814_v55 = vrot.slane %v20697_v44, 1  ;;  %v1953_v63 = vshrl.u32 %v20700_v42, 16 }
 0x13d   : > { %v1899_v18 = vor.u32 %v1897_v2, %v1895_v5  ;;  %v7807_v31 = vsel %vm3403_vm3, %v7804_v1, %v7806_v19 }
 0x13f   : > { %v1904_v30 = vsel %vm1692_vm2, %v1899_v18, %v1903_v7  ;;  %v20706_v7 = vld [vmem:[%s21209_s14 + $0x118] sm:$0xff]   ;;  %v1969_v18 = vshrl.u32 %v20704_v60, 16 }
 0x141   : > { %18160 = vmatmul.mubr.msk.bf16.gmra.mrb[32].mxu1 %vm608_vm1, %v1840_v13  ;;  %18542 = vmatmul.mubr.msk.bf16.gmra.mrb[96].mxu0 %vm608_vm1, %v6488_v14  ;;  %v7803_v13 = vsel %vm3403_vm3, %v7800_v47, %v7802_v0  ;;  %v1896_v14 = vsel %vm1692_vm2, %v1891_v4, %v1895_v5  ;;  %v20699_v47 = vld [vmem:[%s21209_s14 + $0x68] sm:$0xff]   ;;  %v7815_v4 = vsel %vm3403_vm3, %v7812_v38, %v7814_v55  ;;  %v20711_v38 = vld [vmem:[%s21209_s14 + $0x98] sm:$0xff]  }
 0x142   : > { %18163 = vmatprep.mubr.msk.bf16.mxu1 %vm608_vm1, %v1848_v15  ;;  %18545 = vmatprep.mubr.msk.bf16.mxu0 %vm608_vm1, %v6496_v17  ;;  %v1917_v15 = vshll.u32 %v20692_v6, 16  ;;  %v7805_v17 = vsel %vm3403_vm3, %v7802_v0, %v7804_v1  ;;  %v7816_v56 = vrot.slane %v20699_v47, 1  ;;  %v1957_v0 = vshll.u32 %v20702_v52, 16  ;;  %v20703_v1 = vld [vmem:[%s21209_s14 + $0x78] sm:$0xff]  }
 0x143   : > { %v1965_v6 = vshll.u32 %v20704_v60, 16  ;;  %v7820_v11 = vrot.slane %v20703_v1, 1  ;;  %v7828_v47 = vrot.slane %v20711_v38, 1  ;;  %v2013_v60 = vshll.u32 %v20716_v51, 16 }
 0x144   : > { %v1919_v25 = vrot.slane %v1917_v15, 1  ;;  %v7817_v8 = vsel %vm3403_vm3, %v7814_v55, %v7816_v56  ;;  %v20708_v15 = vld [vmem:[%s21209_s14 + $0x120] sm:$0xff]  }
 0x145   : > { %v1981_v24 = vshll.u32 %v20708_v15, 16 }
 0x146   : > { %v1923_v40 = vor.u32 %v1921_v27, %v1919_v25 }
 0x148   : > { %v1928_v50 = vsel %vm1692_vm2, %v1923_v40, %v1927_v41 }
 0x149   : > { %18164 = vmatmul.mubr.msk.bf16.gmra.mrb[36].mxu1 %vm608_vm1, %v1856_v34  ;;  %18546 = vmatmul.mubr.msk.bf16.gmra.mrb[100].mxu0 %vm608_vm1, %v6504_v35  ;;  %v20698_v34 = vld [vmem:[%s21209_s14 + $0xf8] sm:$0xff]   ;;  %v7809_v35 = vsel %vm3403_vm3, %v7806_v19, %v7808_v20  ;;  %v1973_v19 = vshll.u32 %v20706_v7, 16  ;;  %v20707_v20 = vld [vmem:[%s21209_s14 + $0x88] sm:$0xff]  }
 0x14a   : > { %18167 = vmatprep.mubr.msk.bf16.mxu1 %vm608_vm1, %v1864_v36  ;;  %18551 = vmatprep.mubr.msk.bf16.mxu0 %vm608_vm1, %v7797_v39  ;;  %v1915_v36 = vor.u32 %v1913_v21, %v1911_v23  ;;  %v1929_v39 = vshrl.u32 %v20694_v16, 16  ;;  %v1941_v46 = vshll.u32 %v20698_v34, 16  ;;  %v1967_v16 = vrot.slane %v1965_v6, 1  ;;  %v20720_v6 = vld [vmem:[%s21209_s14 + $0x150] sm:$0xff]  }
 0x14b   : > { %v7824_v29 = vrot.slane %v20707_v20, 1 }
 0x14c   : > { %v1920_v48 = vsel %vm1692_vm2, %v1915_v36, %v1919_v25  ;;  %v1931_v54 = vor.u32 %v1929_v39, %v1927_v41  ;;  %v20710_v25 = vld [vmem:[%s21209_s14 + $0x128] sm:$0xff]   ;;  %v1985_v36 = vshrl.u32 %v20708_v15, 16  ;;  %v2029_v15 = vshll.u32 %v20720_v6, 16 }
 0x14d   : > { %v1989_v37 = vshll.u32 %v20710_v25, 16 }
 0x151   : > { %18168 = vmatmul.mubr.msk.bf16.gmra.mrb[40].mxu1 %vm608_vm1, %v1872_v57  ;;  %18552 = vmatmul.mubr.msk.bf16.vlgmr.msra.gmra.mrb[0].mxu0 %vm608_vm1, %v7799_v58  ;;  %v1945_v57 = vshrl.u32 %v20698_v34, 16  ;;  %v1983_v34 = vrot.slane %v1981_v24, 1 }
 0x152   : > { %18171 = vmatprep.mubr.msk.bf16.mxu1 %vm608_vm1, %v1880_v59  ;;  %18656 = vmatpush3.bf16.msra.mxu0 %v9343_v43  ;;  %v1935_v43 = vrot.slane %v1933_v33, 1  ;;  %v1943_v59 = vrot.slane %v1941_v46, 1  ;;  %v20712_v33 = vld [vmem:[%s21209_s14 + $0x130] sm:$0xff]  }
 0x153   : > { %18555 = vmatprep.mubr.msk.bf16.mxu0 %vm608_vm1, %v7801_v62  ;;  %v20701_v62 = vld [vmem:[%s21209_s14 + $0x70] sm:$0xff]   ;;  %v1997_v42 = vshll.u32 %v20712_v33, 16 }
 0x154   : > { %v1939_v58 = vor.u32 %v1937_v45, %v1935_v43  ;;  %v1936_v2 = vsel %vm1692_vm2, %v1931_v54, %v1935_v43  ;;  %v1947_v9 = vor.u32 %v1945_v57, %v1943_v59  ;;  %v7818_v10 = vrot.slane %v20701_v62, 1  ;;  %v20714_v43 = vld [vmem:[%s21209_s14 + $0x138] sm:$0xff]  }
 0x155   : > { %v2001_v54 = vshrl.u32 %v20712_v33, 16  ;;  %v2005_v55 = vshll.u32 %v20714_v43, 16 }
 0x156   : > { %v1944_v5 = vsel %vm1692_vm2, %v1939_v58, %v1943_v59  ;;  %v1952_v21 = vsel %vm1692_vm2, %v1947_v9, %v1951_v61  ;;  %v7819_v22 = vsel %vm3403_vm3, %v7816_v56, %v7818_v10  ;;  %v7821_v26 = vsel %vm3403_vm3, %v7818_v10, %v7820_v11  ;;  %v20715_v56 = vld [vmem:[%s21209_s14 + $0xa8] sm:$0xff]  }
 0x157   : > { %v7832_v1 = vrot.slane %v20715_v56, 1  ;;  %v2017_v9 = vshrl.u32 %v20716_v51, 16 }
 0x159   : > { %18172 = vmatmul.mubr.msk.bf16.gmra.mrb[44].mxu1 %vm608_vm1, %v1888_v12  ;;  %18556 = vmatmul.mubr.msk.bf16.gmra.mrb[4].mxu0 %vm608_vm1, %v7803_v13  ;;  %v1961_v12 = vshrl.u32 %v20702_v52, 16  ;;  %v1955_v13 = vor.u32 %v1953_v63, %v1951_v61  ;;  %v1999_v52 = vrot.slane %v1997_v42, 1  ;;  %v20718_v61 = vld [vmem:[%s21209_s14 + $0x148] sm:$0xff]  }
 0x15a   : > { %18175 = vmatprep.mubr.msk.bf16.mxu1 %vm608_vm1, %v1896_v14  ;;  %18559 = vmatprep.mubr.msk.bf16.mxu0 %vm608_vm1, %v7805_v17  ;;  %v1959_v14 = vrot.slane %v1957_v0, 1  ;;  %v20705_v17 = vld [vmem:[%s21209_s14 + $0x80] sm:$0xff]   ;;  %v2021_v10 = vshll.u32 %v20718_v61, 16  ;;  %v2025_v20 = vshrl.u32 %v20718_v61, 16 }
 0x15b   : > { %v7822_v28 = vrot.slane %v20705_v17, 1 }
 0x15c   : > { %v1960_v23 = vsel %vm1692_vm2, %v1955_v13, %v1959_v14  ;;  %v1963_v27 = vor.u32 %v1961_v12, %v1959_v14  ;;  %v20719_v12 = vld [vmem:[%s21209_s14 + $0xb8] sm:$0xff]  }
 0x15d   : > { %v7823_v40 = vsel %vm3403_vm3, %v7820_v11, %v7822_v28  ;;  %v7825_v44 = vsel %vm3403_vm3, %v7822_v28, %v7824_v29  ;;  %v7836_v24 = vrot.slane %v20719_v12, 1 }
 0x15e   : > { %v1968_v39 = vsel %vm1692_vm2, %v1963_v27, %v1967_v16  ;;  %v2033_v27 = vshrl.u32 %v20720_v6, 16 }
 0x161   : > { %18176 = vmatmul.mubr.msk.bf16.gmra.mrb[48].mxu1 %vm608_vm1, %v1904_v30  ;;  %18560 = vmatmul.mubr.msk.bf16.gmra.mrb[8].mxu0 %vm608_vm1, %v7807_v31  ;;  %v1977_v30 = vshrl.u32 %v20706_v7, 16  ;;  %v1971_v31 = vor.u32 %v1969_v18, %v1967_v16  ;;  %v2015_v7 = vrot.slane %v2013_v60, 1  ;;  %v20722_v16 = vld [vmem:[%s21209_s14 + $0x158] sm:$0xff]  }
 0x162   : > { %18179 = vmatprep.mubr.msk.bf16.mxu1 %vm608_vm1, %v1912_v32  ;;  %18563 = vmatprep.mubr.msk.bf16.mxu0 %vm608_vm1, %v7809_v35  ;;  %v1975_v32 = vrot.slane %v1973_v19, 1  ;;  %v20709_v35 = vld [vmem:[%s21209_s14 + $0x90] sm:$0xff]   ;;  %v2037_v28 = vshll.u32 %v20722_v16, 16 }
 0x163   : > { %v7826_v46 = vrot.slane %v20709_v35, 1  ;;  %v20726_v35 = vld [vmem:[%s21209_s14 + $0x168] sm:$0xff]  }
 0x164   : > { %v1976_v41 = vsel %vm1692_vm2, %v1971_v31, %v1975_v32  ;;  %v1979_v45 = vor.u32 %v1977_v30, %v1975_v32  ;;  %v20725_v31 = vld [vmem:[%s21209_s14 + $0xd0] sm:$0xff]   ;;  %v2039_v42 = vrot.slane %v2037_v28, 1 }
 0x165   : > { %v7827_v58 = vsel %vm3403_vm3, %v7824_v29, %v7826_v46  ;;  %v7829_v62 = vsel %vm3403_vm3, %v7826_v46, %v7828_v47  ;;  %v20723_v29 = vld [vmem:[%s21209_s14 + $0xc8] sm:$0xff]   ;;  %v2053_v46 = vshll.u32 %v20726_v35, 16 }
 0x166   : > { %v1984_v57 = vsel %vm1692_vm2, %v1979_v45, %v1983_v34 }
 0x169   : > { %18180 = vmatmul.mubr.msk.bf16.gmra.mrb[52].mxu1 %vm608_vm1, %v1920_v48  ;;  %18564 = vmatmul.mubr.msk.bf16.gmra.mrb[12].mxu0 %vm608_vm1, %v7811_v49  ;;  %v1993_v48 = vshrl.u32 %v20710_v25, 16  ;;  %v1987_v49 = vor.u32 %v1985_v36, %v1983_v34  ;;  %v20721_v25 = vld [vmem:[%s21209_s14 + $0xc0] sm:$0xff]  }
 0x16a   : > { %18183 = vmatprep.mubr.msk.bf16.mxu1 %vm608_vm1, %v1928_v50  ;;  %18567 = vmatprep.mubr.msk.bf16.mxu0 %vm608_vm1, %v7813_v53  ;;  %v1991_v50 = vrot.slane %v1989_v37, 1  ;;  %v20713_v53 = vld [vmem:[%s21209_s14 + $0xa0] sm:$0xff]   ;;  %v7838_v38 = vrot.slane %v20721_v25, 1 }
 0x16b   : > { %v7830_v0 = vrot.slane %v20713_v53, 1  ;;  %v2057_v53 = vshrl.u32 %v20726_v35, 16 }
 0x16c   : > { %v1992_v59 = vsel %vm1692_vm2, %v1987_v49, %v1991_v50  ;;  %v1995_v63 = vor.u32 %v1993_v48, %v1991_v50  ;;  %v20728_v48 = vld [vmem:[%s21209_s14 + $0x170] sm:$0xff]   ;;  %v7839_v50 = vsel %vm3403_vm3, %v7836_v24, %v7838_v38 }
 0x16d   : > { %v7831_v13 = vsel %vm3403_vm3, %v7828_v47, %v7830_v0  ;;  %v7833_v17 = vsel %vm3403_vm3, %v7830_v0, %v7832_v1  ;;  %v20727_v47 = vld [vmem:[%s21209_s14 + $0xd8] sm:$0xff]   ;;  %v2061_v60 = vshll.u32 %v20728_v48, 16  ;;  %v2065_v61 = vshrl.u32 %v20728_v48, 16 }
 0x16e   : > { %v2000_v11 = vsel %vm1692_vm2, %v1995_v63, %v1999_v52  ;;  %v20731_v63 = vld [vmem:[%s21209_s14 + $0xe8] sm:$0xff]  }
 0x171   : > { %18184 = vmatmul.mubr.msk.bf16.gmra.mrb[56].mxu1 %vm608_vm1, %v1936_v2  ;;  %18568 = vmatmul.mubr.msk.bf16.gmra.mrb[16].mxu0 %vm608_vm1, %v7815_v4  ;;  %v2009_v2 = vshrl.u32 %v20714_v43, 16  ;;  %v2003_v4 = vor.u32 %v2001_v54, %v1999_v52  ;;  %v20730_v54 = vld [vmem:[%s21209_s14 + $0x178] sm:$0xff]  }
 0x172   : > { %18187 = vmatprep.mubr.msk.bf16.mxu1 %vm608_vm1, %v1944_v5  ;;  %18571 = vmatprep.mubr.msk.bf16.mxu0 %vm608_vm1, %v7817_v8  ;;  %v2007_v5 = vrot.slane %v2005_v55, 1  ;;  %v20717_v8 = vld [vmem:[%s21209_s14 + $0xb0] sm:$0xff]   ;;  %v2069_v0 = vshll.u32 %v20730_v54, 16  ;;  %v2073_v12 = vshrl.u32 %v20730_v54, 16 }
 0x173   : > { %v7834_v19 = vrot.slane %v20717_v8, 1  ;;  %v20734_v8 = vld [vmem:[%s21209_s14 + $0x188] sm:$0xff]  }
 0x174   : > { %v2008_v14 = vsel %vm1692_vm2, %v2003_v4, %v2007_v5  ;;  %v2011_v18 = vor.u32 %v2009_v2, %v2007_v5 }
 0x175   : > { %v7835_v32 = vsel %vm3403_vm3, %v7832_v1, %v7834_v19  ;;  %v7837_v36 = vsel %vm3403_vm3, %v7834_v19, %v7836_v24  ;;  %v20732_v1 = vld [vmem:[%s21209_s14 + $0x180] sm:$0xff]   ;;  %v20735_v19 = vld [vmem:[%s21209_s14 + $0xf8] sm:$0xff]  }
 0x176   : > { %v2016_v30 = vsel %vm1692_vm2, %v2011_v18, %v2015_v7  ;;  %v2085_v18 = vshll.u32 %v20734_v8, 16 }
 0x179   : > { %18188 = vmatmul.mubr.msk.bf16.gmra.mrb[60].mxu1 %vm608_vm1, %v1952_v21  ;;  %18572 = vmatmul.mubr.msk.bf16.gmra.mrb[20].mxu0 %vm608_vm1, %v7819_v22  ;;  %v2019_v21 = vor.u32 %v2017_v9, %v2015_v7  ;;  %v2023_v22 = vrot.slane %v2021_v10, 1  ;;  %v2063_v7 = vrot.slane %v2061_v60, 1 }
 0x17a   : > { %18191 = vmatprep.mubr.msk.bf16.mxu1 %vm608_vm1, %v1960_v23  ;;  %18575 = vmatprep.mubr.msk.bf16.mxu0 %vm608_vm1, %v7821_v26  ;;  %v20724_v23 = vld [vmem:[%s21209_s14 + $0x160] sm:$0xff]   ;;  %v2031_v26 = vrot.slane %v2029_v15, 1  ;;  %v2077_v15 = vshll.u32 %v20732_v1, 16 }
 0x17b   : > { %v2024_v33 = vsel %vm1692_vm2, %v2019_v21, %v2023_v22  ;;  %v2045_v34 = vshll.u32 %v20724_v23, 16  ;;  %v2027_v37 = vor.u32 %v2025_v20, %v2023_v22  ;;  %v2049_v45 = vshrl.u32 %v20724_v23, 16  ;;  %v20736_v21 = vld [vmem:[%s21209_s14 + $0x190] sm:$0xff]  }
 0x17c   : > { %v2079_v25 = vrot.slane %v2077_v15, 1  ;;  %v2097_v35 = vshrl.u32 %v20736_v21, 16  ;;  %v20750_v15 = vld [vmem:[%s21209_s14 + $0x130] sm:$0xff]  }
 0x17d   : > { %v2047_v43 = vrot.slane %v2045_v34, 1  ;;  %v2032_v49 = vsel %vm1692_vm2, %v2027_v37, %v2031_v26  ;;  %v20737_v34 = vld [vmem:[%s21209_s14 + $0x100] sm:$0xff]  }
 0x17f   : > { %v2051_v56 = vor.u32 %v2049_v45, %v2047_v43  ;;  %v7854_v45 = vrot.slane %v20737_v34, 1 }
 0x181   : > { %18192 = vmatmul.mubr.msk.bf16.gmra.mrb[64].mxu1 %vm608_vm1, %v1968_v39  ;;  %18576 = vmatmul.mubr.msk.bf16.gmra.mrb[24].mxu0 %vm608_vm1, %v7823_v40  ;;  %v7840_v39 = vrot.slane %v20723_v29, 1  ;;  %v2041_v40 = vshrl.u32 %v20722_v16, 16  ;;  %v20733_v16 = vld [vmem:[%s21209_s14 + $0xf0] sm:$0xff]   ;;  %v2089_v29 = vshrl.u32 %v20734_v8, 16 }
 0x182   : > { %18195 = vmatprep.mubr.msk.bf16.mxu1 %vm608_vm1, %v1976_v41  ;;  %18579 = vmatprep.mubr.msk.bf16.mxu0 %vm608_vm1, %v7825_v44  ;;  %v2035_v41 = vor.u32 %v2033_v27, %v2031_v26  ;;  %v7842_v44 = vrot.slane %v20725_v31, 1  ;;  %v20738_v26 = vld [vmem:[%s21209_s14 + $0x198] sm:$0xff]   ;;  %v7850_v28 = vrot.slane %v20733_v16, 1  ;;  %v2087_v31 = vrot.slane %v2085_v18, 1  ;;  %v20751_v16 = vld [vmem:[%s21209_s14 + $0x28] sm:$0xff]  }
 0x183   : > { %v7841_v52 = vsel %vm3403_vm3, %v7838_v38, %v7840_v39  ;;  %v2043_v55 = vor.u32 %v2041_v40, %v2039_v42  ;;  %v20740_v40 = vld [vmem:[%s21209_s14 + $0x1a0] ss:$0 sps:$4 sm:$0x11]   ;;  %v2105_v48 = vshrl.u32 %v20738_v26, 16 }
 0x184   : > { %v2040_v51 = vsel %vm1692_vm2, %v2035_v41, %v2039_v42  ;;  %v7843_v4 = vsel %vm3403_vm3, %v7840_v39, %v7842_v44 }
 0x185   : > { %v2048_v2 = vsel %vm1692_vm2, %v2043_v55, %v2047_v43  ;;  %v20739_v43 = vld [vmem:[%s21209_s14 + $0x108] sm:$0xff]  }
 0x189   : > { %18196 = vmatmul.mubr.msk.bf16.gmra.mrb[68].mxu1 %vm608_vm1, %v1984_v57  ;;  %18580 = vmatmul.mubr.msk.bf16.gmra.mrb[28].mxu0 %vm608_vm1, %v7827_v58  ;;  %v17080_v57 = vld [vmem:[%s22910_s1 + $0x1c] sm:$0xf]  ;;  %v2055_v58 = vrot.slane %v2053_v46, 1 }
 0x18a   : > { %18199 = vmatprep.mubr.msk.bf16.mxu1 %vm608_vm1, %v1992_v59  ;;  %18583 = vmatprep.mubr.msk.bf16.mxu0 %vm608_vm1, %v7829_v62  ;;  %v7844_v59 = vrot.slane %v20727_v47, 1  ;;  %v20729_v62 = vld [vmem:[%s21209_s14 + $0xe0] sm:$0xff]  }
 0x18b   : > { %20507 = vmatprep.subr.msk.bf16.mxu0 %vm765_vm0, %v17080_v57  ;;  %v2056_v5 = vsel %vm1692_vm2, %v2051_v56, %v2055_v58  ;;  %v2059_v9 = vor.u32 %v2057_v53, %v2055_v58  ;;  %v7846_v10 = vrot.slane %v20729_v62, 1  ;;  %v20743_v53 = vld [vmem:[%s21209_s14 + $0x8] sm:$0xff]   ;;  %v20744_v58 = vld [vmem:[%s21209_s14 + $0x118] sm:$0xff]  }
 0x18c   : > { %v7845_v6 = vsel %vm3403_vm3, %v7842_v44, %v7844_v59  ;;  %v2091_v44 = vor.u32 %v2089_v29, %v2087_v31 }
 0x18d   : > { %v2064_v20 = vsel %vm1692_vm2, %v2059_v9, %v2063_v7  ;;  %v7847_v22 = vsel %vm3403_vm3, %v7844_v59, %v7846_v10  ;;  %v20748_v9 = vld [vmem:[%s21209_s14 + $0x128] sm:$0xff]  }
 0x191   : > { %18200 = vmatmul.mubr.msk.bf16.gmra.mrb[72].mxu1 %vm608_vm1, %v2000_v11  ;;  %18584 = vmatmul.mubr.msk.bf16.gmra.mrb[32].mxu0 %vm608_vm1, %v7831_v13  ;;  %v7848_v11 = vrot.slane %v20731_v63, 1  ;;  %v2067_v13 = vor.u32 %v2065_v61, %v2063_v7  ;;  %v3405_v63 = vrot.slane %v20743_v53, 1 }
 0x192   : > { %18203 = vmatprep.mubr.msk.bf16.mxu1 %vm608_vm1, %v2008_v14  ;;  %18587 = vmatprep.mubr.msk.bf16.mxu0 %vm608_vm1, %v7833_v17  ;;  %v2071_v14 = vrot.slane %v2069_v0, 1  ;;  %v2081_v17 = vshrl.u32 %v20732_v1, 16  ;;  %v7860_v0 = vrot.slane %v20744_v58, 1  ;;  %v20745_v1 = vld [vmem:[%s21209_s14 + $0x10] sm:$0xff]  }
 0x193   : > { %v7849_v24 = vsel %vm3403_vm3, %v7846_v10, %v7848_v11  ;;  %v7851_v38 = vsel %vm3403_vm3, %v7848_v11, %v7850_v28  ;;  %v3407_v10 = vrot.slane %v20745_v1, 1 }
 0x194   : > { %v2072_v23 = vsel %vm1692_vm2, %v2067_v13, %v2071_v14  ;;  %v2075_v27 = vor.u32 %v2073_v12, %v2071_v14  ;;  %v7864_v13 = vrot.slane %v20748_v9, 1  ;;  %v20749_v14 = vld [vmem:[%s21209_s14 + $0x20] sm:$0xff]  }
 0x196   : > { %v2080_v37 = vsel %vm1692_vm2, %v2075_v27, %v2079_v25  ;;  %v20754_v27 = vld [vmem:[%s21209_s14 + $0x140] sm:$0xff]  }
 0x197   : > { %v7870_v34 = vrot.slane %v20754_v27, 1 }
 0x199   : > { %18204 = vmatmul.mubr.msk.bf16.gmra.mrb[76].mxu1 %vm608_vm1, %v2016_v30  ;;  %18588 = vmatmul.mubr.msk.bf16.gmra.mrb[36].mxu0 %vm608_vm1, %v7835_v32  ;;  %v2083_v30 = vor.u32 %v2081_v17, %v2079_v25  ;;  %v7852_v32 = vrot.slane %v20735_v19, 1  ;;  %v3408_v17 = vsel %vm3403_vm3, %v3405_v63, %v3407_v10 }
 0x19a   : > { %18207 = vmatprep.mubr.msk.bf16.mxu1 %vm608_vm1, %v2024_v33  ;;  %18591 = vmatprep.mubr.msk.bf16.mxu0 %vm608_vm1, %v7837_v36  ;;  %v2093_v33 = vshll.u32 %v20736_v21, 16  ;;  %v2101_v36 = vshll.u32 %v20738_v26, 16  ;;  %v20752_v21 = vld [vmem:[%s21209_s14 + $0x138] sm:$0xff]   ;;  %v20753_v26 = vld [vmem:[%s21209_s14 + $0x30] sm:$0xff]  }
 0x19b   : > { %v2088_v39 = vsel %vm1692_vm2, %v2083_v30, %v2087_v31  ;;  %v7853_v41 = vsel %vm3403_vm3, %v7850_v28, %v7852_v32  ;;  %v7855_v55 = vsel %vm3403_vm3, %v7852_v32, %v7854_v45  ;;  %v7868_v25 = vrot.slane %v20752_v21, 1  ;;  %v20755_v28 = vld [vmem:[%s21209_s14 + $0x38] sm:$0xff]  }
 0x19c   : > { %v2095_v42 = vrot.slane %v2093_v33, 1  ;;  %v2103_v47 = vrot.slane %v2101_v36, 1  ;;  %v20756_v33 = vld [vmem:[%s21209_s14 + $0x148] sm:$0xff]  }
 0x19d   : > { %v7872_v36 = vrot.slane %v20756_v33, 1 }
 0x19e   : > { %v2099_v46 = vor.u32 %v2097_v35, %v2095_v42  ;;  %v2096_v54 = vsel %vm1692_vm2, %v2091_v44, %v2095_v42  ;;  %v2107_v59 = vor.u32 %v2105_v48, %v2103_v47  ;;  %v3417_v35 = vrot.slane %v20755_v28, 1  ;;  %v20760_v44 = vld [vmem:[%s21209_s14 + $0x158] sm:$0xff]  }
 0x19f   : > { %v7876_v48 = vrot.slane %v20760_v44, 1 }
 0x1a0   : > { %v2104_v56 = vsel %vm1692_vm2, %v2099_v46, %v2103_v47 }
 0x1a1   : > { %18208 = vmatmul.mubr.msk.bf16.gmra.mrb[80].mxu1 %vm608_vm1, %v2032_v49  ;;  %18592 = vmatmul.mubr.msk.bf16.gmra.mrb[40].mxu0 %vm608_vm1, %v7839_v50  ;;  %v7856_v49 = vrot.slane %v20739_v43, 1  ;;  %v20741_v50 = vld [vmem:[%s21209_s14 + $0x110] sm:$0xff]   ;;  %v7873_v43 = vsel %vm3403_vm3, %v7870_v34, %v7872_v36 }
 0x1a2   : > { %18211 = vmatprep.mubr.msk.bf16.mxu1 %vm608_vm1, %v2040_v51  ;;  %18595 = vmatprep.mubr.msk.bf16.mxu0 %vm608_vm1, %v7841_v52  ;;  %v2109_v51 = vshll.u32 %v20740_v40, 16  ;;  %v20742_v52 = vld [vmem:[%s21209_s14] sm:$0xfe]   ;;  %v7858_v61 = vrot.slane %v20741_v50, 1 }
 0x1a3   : > { %v7857_v57 = vsel %vm3403_vm3, %v7854_v45, %v7856_v49  ;;  %v3404_v62 = vrot.slane %v20742_v52, 1  ;;  %v20762_v50 = vld [vmem:[%s21209_s14 + $0x160] sm:$0xff]  }
 0x1a4   : > { %v2111_v60 = vrot.slane %v2109_v51, 1  ;;  %v7861_v8 = vsel %vm3403_vm3, %v7858_v61, %v7860_v0  ;;  %v20763_v51 = vld [vmem:[%s21209_s14 + $0x58] sm:$0xff]   ;;  %v7878_v58 = vrot.slane %v20762_v50, 1 }
 0x1a5   : > { %v3406_v7 = vsel %vm3403_vm3, %v3404_v62, %v3405_v63  ;;  %v20766_v62 = vld [vmem:[%s21209_s14 + $0x170] sm:$0xff]   ;;  %v20767_v63 = vld [vmem:[%s21209_s14 + $0x68] sm:$0xff]  }
 0x1a6   : > { %v7879_v1 = vsel %vm3403_vm3, %v7876_v48, %v7878_v58 }
 0x1a9   : > { %18212 = vmatmul.mubr.msk.bf16.gmra.mrb[84].mxu1 %vm608_vm1, %v2048_v2  ;;  %18596 = vmatmul.mubr.msk.bf16.gmra.mrb[44].mxu0 %vm608_vm1, %v7843_v4  ;;  %v20746_v2 = vld [vmem:[%s21209_s14 + $0x120] sm:$0xff]   ;;  %v20747_v4 = vld [vmem:[%s21209_s14 + $0x18] sm:$0xff]  }
 0x1aa   : > { %18215 = vmatprep.mubr.msk.bf16.mxu1 %vm608_vm1, %v2056_v5  ;;  %18599 = vmatprep.mubr.msk.bf16.mxu0 %vm608_vm1, %v7845_v6  ;;  %v2112_v5 = vsel %vm1692_vm2, %v2107_v59, %v2111_v60  ;;  %v7859_v6 = vsel %vm3403_vm3, %v7856_v49, %v7858_v61  ;;  %v7862_v11 = vrot.slane %v20746_v2, 1  ;;  %v3409_v12 = vrot.slane %v20747_v4, 1  ;;  %v20761_v49 = vld [vmem:[%s21209_s14 + $0x50] sm:$0xff]   ;;  %v20765_v61 = vld [vmem:[%s21209_s14 + $0x60] sm:$0xff]  }
 0x1ab   : > { %v3425_v59 = vrot.slane %v20763_v51, 1 }
 0x1ac   : > { %v7863_v18 = vsel %vm3403_vm3, %v7860_v0, %v7862_v11  ;;  %v3410_v19 = vsel %vm3403_vm3, %v3407_v10, %v3409_v12  ;;  %v20769_v10 = vld [vmem:[%s21209_s14 + $0x70] sm:$0xff]  }
 0x1b1   : > { %18216 = vmatmul.mubr.msk.bf16.gmra.mrb[88].mxu1 %vm608_vm1, %v2064_v20  ;;  %18600 = vmatmul.mubr.msk.bf16.gmra.mrb[48].mxu0 %vm608_vm1, %v7847_v22  ;;  %v7865_v20 = vsel %vm3403_vm3, %v7862_v11, %v7864_v13  ;;  %v3411_v22 = vrot.slane %v20749_v14, 1  ;;  %v20770_v11 = vld [vmem:[%s21209_s14 + $0x180] sm:$0xff]  }
 0x1b2   : > { %18219 = vmatprep.mubr.msk.bf16.mxu1 %vm608_vm1, %v2072_v23  ;;  %18603 = vmatprep.mubr.msk.bf16.mxu0 %vm608_vm1, %v7849_v24  ;;  %v7866_v23 = vrot.slane %v20750_v15, 1  ;;  %v3413_v24 = vrot.slane %v20751_v16, 1 }
 0x1b3   : > { %v3412_v29 = vsel %vm3403_vm3, %v3409_v12, %v3411_v22  ;;  %v20771_v12 = vld [vmem:[%s21209_s14 + $0x78] sm:$0xff]  }
 0x1b4   : > { %v7867_v30 = vsel %vm3403_vm3, %v7864_v13, %v7866_v23  ;;  %v3414_v31 = vsel %vm3403_vm3, %v3411_v22, %v3413_v24  ;;  %v7869_v32 = vsel %vm3403_vm3, %v7866_v23, %v7868_v25  ;;  %v20773_v22 = vld [vmem:[%s21209_s14 + $0x80] sm:$0xff]   ;;  %v20774_v23 = vld [vmem:[%s21209_s14 + $0x190] sm:$0xff]  }
 0x1b9   : > { %18220 = vmatmul.mubr.msk.bf16.gmra.mrb[92].mxu1 %vm608_vm1, %v2080_v37  ;;  %18604 = vmatmul.mubr.msk.bf16.gmra.mrb[52].mxu0 %vm608_vm1, %v7851_v38  ;;  %v20757_v37 = vld [vmem:[%s21209_s14 + $0x40] sm:$0xff]   ;;  %v20758_v38 = vld [vmem:[%s21209_s14 + $0x150] sm:$0xff]  }
 0x1ba   : > { %18223 = vmatprep.mubr.msk.bf16.mxu1 %vm608_vm1, %v2088_v39  ;;  %18607 = vmatprep.mubr.msk.bf16.mxu0 %vm608_vm1, %v7853_v41  ;;  %v20759_v39 = vld [vmem:[%s21209_s14 + $0x48] sm:$0xff]   ;;  %v7871_v41 = vsel %vm3403_vm3, %v7868_v25, %v7870_v34  ;;  %v3419_v45 = vrot.slane %v20757_v37, 1  ;;  %v7874_v46 = vrot.slane %v20758_v38, 1  ;;  %v20778_v34 = vld [vmem:[%s21209_s14 + $0x1a0] sm:$0xff]  }
 0x1bb   : > { %v3421_v47 = vrot.slane %v20759_v39, 1 }
 0x1bc   : > { %v3420_v52 = vsel %vm3403_vm3, %v3417_v35, %v3419_v45  ;;  %v7875_v53 = vsel %vm3403_vm3, %v7872_v36, %v7874_v46 }
 0x1c1   : > { %18224 = vmatmul.mubr.msk.bf16.gmra.mrb[96].mxu1 %vm608_vm1, %v2096_v54  ;;  %18608 = vmatmul.mubr.msk.bf16.gmra.mrb[56].mxu0 %vm608_vm1, %v7855_v55  ;;  %v3422_v54 = vsel %vm3403_vm3, %v3419_v45, %v3421_v47  ;;  %v7877_v55 = vsel %vm3403_vm3, %v7874_v46, %v7876_v48  ;;  %v20781_v45 = vld [vmem:[%s21209_s14 + $0xa0] sm:$0xff]   ;;  %v20782_v46 = vld [vmem:[%s21209_s14 + $0x1b0] ss:$0 sps:$4 sm:$0x11]  }
 0x1c2   : > { %18227 = vmatprep.mubr.msk.bf16.mxu1 %vm608_vm1, %v2104_v56  ;;  %18611 = vmatprep.mubr.msk.bf16.mxu0 %vm608_vm1, %v7857_v57  ;;  %v20764_v56 = vld [vmem:[%s21209_s14 + $0x168] sm:$0xff]   ;;  %v3423_v57 = vrot.slane %v20761_v49, 1 }
 0x1c3   : > { %v7880_v60 = vrot.slane %v20764_v56, 1  ;;  %v20784_v56 = vld [vmem:[%s21209_s14 + $0x20] sm:$0xff]  }
 0x1c4   : > { %v3424_v0 = vsel %vm3403_vm3, %v3421_v47, %v3423_v57  ;;  %v3426_v2 = vsel %vm3403_vm3, %v3423_v57, %v3425_v59  ;;  %v20783_v47 = vld [vmem:[%s21209_s14 + $0xa8] sm:$0xff]   ;;  %v20787_v57 = vld [vmem:[%s21209_s14 + $0xb8] sm:$0xff]  }
 0x1c5   : > { %v7881_v4 = vsel %vm3403_vm3, %v7878_v58, %v7880_v60 }
 0x1c9   : > { %18228 = vmatmul.mubr.msk.bf16.gmra.mrb[100].mxu1 %vm608_vm1, %v2112_v5  ;;  %18612 = vmatmul.mubr.msk.bf16.gmra.mrb[60].mxu0 %vm608_vm1, %v7859_v6  ;;  %v20768_v5 = vld [vmem:[%s21209_s14 + $0x178] sm:$0xff]   ;;  %v3427_v6 = vrot.slane %v20765_v61, 1 }
 0x1ca   : > { %18233 = vmatprep.mubr.msk.bf16.mxu1 %vm608_vm1, %v3406_v7  ;;  %18615 = vmatprep.mubr.msk.bf16.mxu0 %vm608_vm1, %v7861_v8  ;;  %v7882_v7 = vrot.slane %v20766_v62, 1  ;;  %v3429_v8 = vrot.slane %v20767_v63, 1  ;;  %v7884_v9 = vrot.slane %v20768_v5, 1  ;;  %v21079_v62 = vld [vmem:[%s22910_s1 + $0x1c] sm:$0xf]  ;;  %v20788_v5 = vld [vmem:[%s21209_s14 + $0x30] sm:$0xff]  }
 0x1cb   : > { %v3428_v13 = vsel %vm3403_vm3, %v3425_v59, %v3427_v6  ;;  %v11053_v63 = vsel %vm765_vm0, %v21079_v62, 0  ;;  %v20819_v62 = vld [vmem:[%s21209_s14 + $0x138] sm:$0xff]  }
 0x1cc   : > { %v7883_v14 = vsel %vm3403_vm3, %v7880_v60, %v7882_v7  ;;  %v3430_v15 = vsel %vm3403_vm3, %v3427_v6, %v3429_v8  ;;  %v7885_v16 = vsel %vm3403_vm3, %v7882_v7, %v7884_v9 }
 0x1d1   : > { %18234 = vmatmul.mubr.msk.bf16.vlgmr.msra.gmra.mrb[0].mxu1 %vm608_vm1, %v3408_v17  ;;  %18616 = vmatmul.mubr.msk.bf16.gmra.mrb[64].mxu0 %vm608_vm1, %v7863_v18  ;;  %v20772_v17 = vld [vmem:[%s21209_s14 + $0x188] sm:$0xff]   ;;  %v3431_v18 = vrot.slane %v20769_v10, 1  ;;  %v20793_v10 = vld [vmem:[%s21209_s14 + $0xd0] sm:$0xff]  }
 0x1d2   : > { %18237 = vmatprep.mubr.msk.bf16.mxu1 %vm608_vm1, %v3410_v19  ;;  %18619 = vmatprep.mubr.msk.bf16.mxu0 %vm608_vm1, %v7865_v20  ;;  %v7886_v19 = vrot.slane %v20770_v11, 1  ;;  %v3433_v20 = vrot.slane %v20771_v12, 1  ;;  %v7888_v21 = vrot.slane %v20772_v17, 1  ;;  %v20795_v11 = vld [vmem:[%s21209_s14 + $0xd8] sm:$0xff]  }
 0x1d3   : > { %19298 = vmatpush3.bf16.msra.mxu1 %v21221_v3  ;;  %v3415_v3 = vrot.slane %v20753_v26, 1  ;;  %v3432_v25 = vsel %vm3403_vm3, %v3429_v8, %v3431_v18  ;;  %v20790_v12 = vld [vmem:[%s21209_s14 + $0x38] sm:$0xff]   ;;  %v3457_v17 = vrot.slane %v20795_v11, 1 }
 0x1d4   : > { %v7887_v26 = vsel %vm3403_vm3, %v7884_v9, %v7886_v19  ;;  %v3434_v27 = vsel %vm3403_vm3, %v3431_v18, %v3433_v20  ;;  %v7889_v28 = vsel %vm3403_vm3, %v7886_v19, %v7888_v21  ;;  %v20797_v18 = vld [vmem:[%s21209_s14 + $0xe0] sm:$0xff]   ;;  %v20799_v19 = vld [vmem:[%s21209_s14 + $0xe8] sm:$0xff]   ;;  %v20822_v11 = vld [vmem:[%s21209_s14 + $0xb8] sm:$0xff]  }
 0x1d5   : > { %v3416_v40 = vsel %vm3403_vm3, %v3413_v24, %v3415_v3  ;;  %v3418_v42 = vsel %vm3403_vm3, %v3415_v3, %v3417_v35  ;;  %v20775_v24 = vld [vmem:[%s21209_s14 + $0x88] sm:$0xff]   ;;  %v20777_v3 = vld [vmem:[%s21209_s14 + $0x90] sm:$0xff]   ;;  %v20779_v35 = vld [vmem:[%s21209_s14 + $0x98] sm:$0xff]  }
 0x1d9   : > { %18238 = vmatmul.mubr.msk.bf16.gmra.mrb[4].mxu1 %vm608_vm1, %v3412_v29  ;;  %18620 = vmatmul.mubr.msk.bf16.gmra.mrb[68].mxu0 %vm608_vm1, %v7867_v30  ;;  %v20776_v29 = vld [vmem:[%s21209_s14 + $0x198] sm:$0xff]   ;;  %v3435_v30 = vrot.slane %v20773_v22, 1 }
 0x1da   : > { %18241 = vmatprep.mubr.msk.bf16.mxu1 %vm608_vm1, %v3414_v31  ;;  %18623 = vmatprep.mubr.msk.bf16.mxu0 %vm608_vm1, %v7869_v32  ;;  %v7890_v31 = vrot.slane %v20774_v23, 1  ;;  %v3437_v32 = vrot.slane %v20775_v24, 1  ;;  %v7892_v33 = vrot.slane %v20776_v29, 1  ;;  %v20796_v23 = vld [vmem:[%s21209_s14 + $0x50] sm:$0xff]   ;;  %v3459_v24 = vrot.slane %v20797_v18, 1 }
 0x1db   : > { %v3436_v36 = vsel %vm3403_vm3, %v3433_v20, %v3435_v30  ;;  %v20794_v20 = vld [vmem:[%s21209_s14 + $0x48] sm:$0xff]  }
 0x1dc   : > { %v7891_v37 = vsel %vm3403_vm3, %v7888_v21, %v7890_v31  ;;  %v3438_v38 = vsel %vm3403_vm3, %v3435_v30, %v3437_v32  ;;  %v7893_v39 = vsel %vm3403_vm3, %v7890_v31, %v7892_v33  ;;  %v3460_v29 = vsel %vm3403_vm3, %v3457_v17, %v3459_v24  ;;  %v20800_v31 = vld [vmem:[%s21209_s14 + $0x60] sm:$0xff]  }
 0x1e1   : > { %18242 = vmatmul.mubr.msk.bf16.gmra.mrb[8].mxu1 %vm608_vm1, %v3416_v40  ;;  %18624 = vmatmul.mubr.msk.bf16.gmra.mrb[72].mxu0 %vm608_vm1, %v7871_v41  ;;  %v20780_v40 = vld [vmem:[%s21209_s14 + $0x1a8] sm:$0xff]   ;;  %v3439_v41 = vrot.slane %v20777_v3, 1  ;;  %v20805_v3 = vld [vmem:[%s21209_s14 + $0x100] sm:$0xff]  }
 0x1e2   : > { %18245 = vmatprep.mubr.msk.bf16.mxu1 %vm608_vm1, %v3418_v42  ;;  %18627 = vmatprep.mubr.msk.bf16.mxu0 %vm608_vm1, %v7873_v43  ;;  %v7894_v42 = vrot.slane %v20778_v34, 1  ;;  %v3441_v43 = vrot.slane %v20779_v35, 1  ;;  %v7896_v44 = vrot.slane %v20780_v40, 1  ;;  %v20802_v34 = vld [vmem:[%s21209_s14 + $0x68] sm:$0xff]  }
 0x1e3   : > { %v3440_v48 = vsel %vm3403_vm3, %v3437_v32, %v3439_v41 }
 0x1e4   : > { %v7895_v49 = vsel %vm3403_vm3, %v7892_v33, %v7894_v42  ;;  %v3442_v50 = vsel %vm3403_vm3, %v3439_v41, %v3441_v43  ;;  %v7897_v51 = vsel %vm3403_vm3, %v7894_v42, %v7896_v44  ;;  %v20806_v42 = vld [vmem:[%s21209_s14 + $0x78] sm:$0xff]  }
 0x1e9   : > { %18246 = vmatmul.mubr.msk.bf16.gmra.mrb[12].mxu1 %vm608_vm1, %v3420_v52  ;;  %18628 = vmatmul.mubr.msk.bf16.gmra.mrb[76].mxu0 %vm608_vm1, %v7875_v53  ;;  %v3443_v52 = vrot.slane %v20781_v45, 1  ;;  %v7898_v53 = vrot.slane %v20782_v46, 1  ;;  %v20808_v45 = vld [vmem:[%s21209_s14 + $0x80] sm:$0xff]   ;;  %v20811_v46 = vld [vmem:[%s21209_s14 + $0x118] sm:$0xff]  }
 0x1ea   : > { %18249 = vmatprep.mubr.msk.bf16.mxu1 %vm608_vm1, %v3422_v54  ;;  %18631 = vmatprep.mubr.msk.bf16.mxu0 %vm608_vm1, %v7877_v55  ;;  %v3445_v54 = vrot.slane %v20783_v47, 1  ;;  %v20785_v55 = vld [vmem:[%s21209_s14 + $0xb0] sm:$0xff]  }
 0x1eb   : > { %v3444_v58 = vsel %vm3403_vm3, %v3441_v43, %v3443_v52  ;;  %v7899_v59 = vsel %vm3403_vm3, %v7896_v44, %v7898_v53  ;;  %v3447_v61 = vrot.slane %v20785_v55, 1  ;;  %v20809_v43 = vld [vmem:[%s21209_s14 + $0x110] sm:$0xff]  }
 0x1ec   : > { %v3446_v60 = vsel %vm3403_vm3, %v3443_v52, %v3445_v54  ;;  %v3471_v47 = vrot.slane %v20809_v43, 1  ;;  %v20812_v53 = vld [vmem:[%s21209_s14 + $0x90] sm:$0xff]   ;;  %v20838_v43 = vld [vmem:[%s21209_s14 + $0xf8] sm:$0xff]  }
 0x1ed   : > { %v3448_v6 = vsel %vm3403_vm3, %v3445_v54, %v3447_v61  ;;  %v20815_v54 = vld [vmem:[%s21209_s14 + $0x128] sm:$0xff]  }
 0x1f1   : > { %18250 = vmatmul.mubr.msk.bf16.gmra.mrb[16].mxu1 %vm608_vm1, %v3424_v0  ;;  %18632 = vmatmul.mubr.msk.bf16.gmra.mrb[80].mxu0 %vm608_vm1, %v7879_v1  ;;  %v20789_v0 = vld [vmem:[%s21209_s14 + $0xc0] sm:$0xff]   ;;  %v3449_v1 = vrot.slane %v20787_v57, 1 }
 0x1f2   : > { %18253 = vmatprep.mubr.msk.bf16.mxu1 %vm608_vm1, %v3426_v2  ;;  %18635 = vmatprep.mubr.msk.bf16.mxu0 %vm608_vm1, %v7881_v4  ;;  %v20791_v2 = vld [vmem:[%s21209_s14 + $0xc8] sm:$0xff]   ;;  %v3451_v8 = vrot.slane %v20789_v0, 1  ;;  %v3481_v0 = vrot.slane %v20819_v62, 1  ;;  %v20851_v62 = vld [vmem:[%s21209_s14 + $0xc0] sm:$0xff]  }
 0x1f3   : > { %v20786_v4 = vld [vmem:[%s21209_s14 + $0x28] sm:$0xff]   ;;  %v3450_v7 = vsel %vm3403_vm3, %v3447_v61, %v3449_v1  ;;  %v3453_v9 = vrot.slane %v20791_v2, 1  ;;  %v20816_v61 = vld [vmem:[%s21209_s14 + $0xa0] sm:$0xff]  }
 0x1f4   : > { %v20818_v2 = vld [vmem:[%s21209_s14 + $0xa8] sm:$0xff]  }
 0x1f9   : > { %18254 = vmatmul.mubr.msk.bf16.gmra.mrb[20].mxu1 %vm608_vm1, %v3428_v13  ;;  %18636 = vmatmul.mubr.msk.bf16.gmra.mrb[84].mxu0 %vm608_vm1, %v7883_v14  ;;  %v3452_v13 = vsel %vm3403_vm3, %v3449_v1, %v3451_v8  ;;  %v3454_v14 = vsel %vm3403_vm3, %v3451_v8, %v3453_v9 }
 0x1fa   : > { %18257 = vmatprep.mubr.msk.bf16.mxu1 %vm608_vm1, %v3430_v15  ;;  %18639 = vmatprep.mubr.msk.bf16.mxu0 %vm608_vm1, %v7885_v16  ;;  %v20792_v15 = vld [vmem:[%s21209_s14 + $0x40] sm:$0xff]   ;;  %v3455_v16 = vrot.slane %v20793_v10, 1 }
 0x1fc   : > { %v3456_v21 = vsel %vm3403_vm3, %v3453_v9, %v3455_v16  ;;  %v3458_v22 = vsel %vm3403_vm3, %v3455_v16, %v3457_v17 }
 0x201   : > { %18258 = vmatmul.mubr.msk.bf16.gmra.mrb[24].mxu1 %vm608_vm1, %v3432_v25  ;;  %18640 = vmatmul.mubr.msk.bf16.gmra.mrb[88].mxu0 %vm608_vm1, %v7887_v26  ;;  %v3461_v25 = vrot.slane %v20799_v19, 1  ;;  %v20801_v26 = vld [vmem:[%s21209_s14 + $0xf0] sm:$0xff]   ;;  %v20826_v19 = vld [vmem:[%s21209_s14 + $0xc8] sm:$0xff]  }
 0x202   : > { %18261 = vmatprep.mubr.msk.bf16.mxu1 %vm608_vm1, %v3434_v27  ;;  %18643 = vmatprep.mubr.msk.bf16.mxu0 %vm608_vm1, %v7889_v28  ;;  %v20803_v27 = vld [vmem:[%s21209_s14 + $0xf8] sm:$0xff]   ;;  %v3463_v32 = vrot.slane %v20801_v26, 1 }
 0x203   : > { %v20798_v28 = vld [vmem:[%s21209_s14 + $0x58] sm:$0xff]   ;;  %v3462_v30 = vsel %vm3403_vm3, %v3459_v24, %v3461_v25  ;;  %v3465_v33 = vrot.slane %v20803_v27, 1 }
 0x204   : > { %v3464_v35 = vsel %vm3403_vm3, %v3461_v25, %v3463_v32  ;;  %v22060_v25 = vld [vmem:[%s22910_s1 + $0x20] sm:$0xf] }
 0x209   : > { %18262 = vmatmul.mubr.msk.bf16.gmra.mrb[28].mxu1 %vm608_vm1, %v3436_v36  ;;  %18644 = vmatmul.mubr.msk.bf16.gmra.mrb[92].mxu0 %vm608_vm1, %v7891_v37  ;;  %v3466_v36 = vsel %vm3403_vm3, %v3463_v32, %v3465_v33  ;;  %v20804_v37 = vld [vmem:[%s21209_s14 + $0x70] sm:$0xff]   ;;  %v20835_v32 = vld [vmem:[%s21209_s14 + $0x178] sm:$0xff]  }
 0x20a   : > { %18265 = vmatprep.mubr.msk.bf16.mxu1 %vm608_vm1, %v3438_v38  ;;  %18647 = vmatprep.mubr.msk.bf16.mxu0 %vm608_vm1, %v7893_v39  ;;  %v20807_v38 = vld [vmem:[%s21209_s14 + $0x108] sm:$0xff]   ;;  %v3467_v39 = vrot.slane %v20805_v3, 1  ;;  %v3497_v3 = vrot.slane %v20835_v32, 1 }
 0x20b   : > { %v3469_v40 = vrot.slane %v20807_v38, 1  ;;  %v20836_v38 = vld [vmem:[%s21209_s14 + $0xf0] sm:$0xff]  }
 0x20c   : > { %v3468_v41 = vsel %vm3403_vm3, %v3465_v33, %v3467_v39 }
 0x20d   : > { %v3470_v44 = vsel %vm3403_vm3, %v3467_v39, %v3469_v40  ;;  %v20839_v39 = vld [vmem:[%s21209_s14 + $0x188] sm:$0xff]  }
 0x211   : > { %18266 = vmatmul.mubr.msk.bf16.gmra.mrb[32].mxu1 %vm608_vm1, %v3440_v48  ;;  %18648 = vmatmul.mubr.msk.bf16.gmra.mrb[96].mxu0 %vm608_vm1, %v7895_v49  ;;  %v3473_v48 = vrot.slane %v20811_v46, 1  ;;  %v3472_v49 = vsel %vm3403_vm3, %v3469_v40, %v3471_v47  ;;  %v20840_v46 = vld [vmem:[%s21209_s14 + $0x100] sm:$0xff]  }
 0x212   : > { %18269 = vmatprep.mubr.msk.bf16.mxu1 %vm608_vm1, %v3442_v50  ;;  %18651 = vmatprep.mubr.msk.bf16.mxu0 %vm608_vm1, %v7897_v51  ;;  %v20810_v50 = vld [vmem:[%s21209_s14 + $0x88] sm:$0xff]   ;;  %v20813_v51 = vld [vmem:[%s21209_s14 + $0x120] sm:$0xff]  }
 0x213   : > { %v3474_v52 = vsel %vm3403_vm3, %v3471_v47, %v3473_v48  ;;  %v3475_v55 = vrot.slane %v20813_v51, 1  ;;  %v20843_v47 = vld [vmem:[%s21209_s14 + $0x198] sm:$0xff]   ;;  %v20842_v51 = vld [vmem:[%s21209_s14 + $0x108] sm:$0xff]  }
 0x215   : > { %v3476_v57 = vsel %vm3403_vm3, %v3473_v48, %v3475_v55 }
 0x219   : > { %18270 = vmatmul.mubr.msk.bf16.gmra.mrb[36].mxu1 %vm608_vm1, %v3444_v58  ;;  %18652 = vmatmul.mubr.msk.bf16.gmra.mrb[100].mxu0 %vm608_vm1, %v7899_v59  ;;  %v20814_v58 = vld [vmem:[%s21209_s14 + $0x98] sm:$0xff]   ;;  %v20817_v59 = vld [vmem:[%s21209_s14 + $0x130] sm:$0xff]  }
 0x21a   : > { %18273 = vmatprep.mubr.msk.bf16.mxu1 %vm608_vm1, %v3446_v60  ;;  %18657 = vmatprep.mubr.msk.bf16.mxu0 %vm608_vm1, %v20784_v56  ;;  %v3477_v56 = vrot.slane %v20815_v54, 1  ;;  %v20844_v54 = vld [vmem:[%s21209_s14 + $0x110] sm:$0xff]  }
 0x21c   : > { %v3478_v60 = vsel %vm3403_vm3, %v3475_v55, %v3477_v56 }
 0x221   : > { %18274 = vmatmul.mubr.msk.bf16.gmra.mrb[40].mxu1 %vm608_vm1, %v3448_v6  ;;  %18658 = vmatmul.mubr.msk.bf16.vlgmr.msra.gmra.mrb[0].mxu0 %vm608_vm1, %v20786_v4  ;;  %v20821_v4 = vld [vmem:[%s21209_s14 + $0x140] sm:$0xff]   ;;  %v20820_v6 = vld [vmem:[%s21209_s14 + $0xb0] sm:$0xff]  }
 0x222   : > { %18277 = vmatprep.mubr.msk.bf16.mxu1 %vm608_vm1, %v3450_v7  ;;  %18762 = vmatpush3.bf16.msra.mxu0 %v11053_v63  ;;  %v3479_v63 = vrot.slane %v20817_v59, 1  ;;  %v20823_v7 = vld [vmem:[%s21209_s14 + $0x148] sm:$0xff]   ;;  %v3483_v8 = vrot.slane %v20821_v4, 1  ;;  %v20848_v59 = vld [vmem:[%s21209_s14 + $0x120] sm:$0xff]  }
 0x223   : > { %18661 = vmatprep.mubr.msk.bf16.mxu0 %vm608_vm1, %v20788_v5  ;;  %v3485_v9 = vrot.slane %v20823_v7, 1  ;;  %20508 = vmatprep.subr.msk.bf16.mxu0 %vm765_vm0, %v22060_v25 }
 0x224   : > { %v3480_v1 = vsel %vm3403_vm3, %v3477_v56, %v3479_v63  ;;  %v3482_v5 = vsel %vm3403_vm3, %v3479_v63, %v3481_v0  ;;  %v3484_v10 = vsel %vm3403_vm3, %v3481_v0, %v3483_v8  ;;  %v20852_v63 = vld [vmem:[%s21209_s14 + $0x130] sm:$0xff]  }
 0x229   : > { %18278 = vmatmul.mubr.msk.bf16.gmra.mrb[44].mxu1 %vm608_vm1, %v3452_v13  ;;  %18662 = vmatmul.mubr.msk.bf16.gmra.mrb[4].mxu0 %vm608_vm1, %v20790_v12  ;;  %v20825_v12 = vld [vmem:[%s21209_s14 + $0x150] sm:$0xff]   ;;  %v3486_v13 = vsel %vm3403_vm3, %v3483_v8, %v3485_v9  ;;  %v20856_v8 = vld [vmem:[%s21209_s14 + $0x140] sm:$0xff]  }
 0x22a   : > { %18281 = vmatprep.mubr.msk.bf16.mxu1 %vm608_vm1, %v3454_v14  ;;  %18665 = vmatprep.mubr.msk.bf16.mxu0 %vm608_vm1, %v20792_v15  ;;  %v20824_v14 = vld [vmem:[%s21209_s14 + $0xc0] sm:$0xff]   ;;  %v20827_v15 = vld [vmem:[%s21209_s14 + $0x158] sm:$0xff]   ;;  %v3487_v16 = vrot.slane %v20825_v12, 1 }
 0x22b   : > { %v3489_v17 = vrot.slane %v20827_v15, 1 }
 0x22c   : > { %v3488_v18 = vsel %vm3403_vm3, %v3485_v9, %v3487_v16 }
 0x231   : > { %18282 = vmatmul.mubr.msk.bf16.gmra.mrb[48].mxu1 %vm608_vm1, %v3456_v21  ;;  %18666 = vmatmul.mubr.msk.bf16.gmra.mrb[8].mxu0 %vm608_vm1, %v20794_v20  ;;  %v20829_v20 = vld [vmem:[%s21209_s14 + $0x160] sm:$0xff]   ;;  %v3490_v21 = vsel %vm3403_vm3, %v3487_v16, %v3489_v17  ;;  %v20860_v16 = vld [vmem:[%s21209_s14 + $0x150] sm:$0xff]  }
 0x232   : > { %18285 = vmatprep.mubr.msk.bf16.mxu1 %vm608_vm1, %v3458_v22  ;;  %18669 = vmatprep.mubr.msk.bf16.mxu0 %vm608_vm1, %v20796_v23  ;;  %v20828_v22 = vld [vmem:[%s21209_s14 + $0xd0] sm:$0xff]   ;;  %v20831_v23 = vld [vmem:[%s21209_s14 + $0x168] sm:$0xff]   ;;  %v3491_v24 = vrot.slane %v20829_v20, 1 }
 0x233   : > { %v3493_v26 = vrot.slane %v20831_v23, 1 }
 0x234   : > { %v3492_v27 = vsel %vm3403_vm3, %v3489_v17, %v3491_v24 }
 0x239   : > { %18286 = vmatmul.mubr.msk.bf16.gmra.mrb[52].mxu1 %vm608_vm1, %v3460_v29  ;;  %18670 = vmatmul.mubr.msk.bf16.gmra.mrb[12].mxu0 %vm608_vm1, %v20798_v28  ;;  %v20830_v28 = vld [vmem:[%s21209_s14 + $0xd8] sm:$0xff]   ;;  %v20833_v29 = vld [vmem:[%s21209_s14 + $0x170] sm:$0xff]  }
 0x23a   : > { %18289 = vmatprep.mubr.msk.bf16.mxu1 %vm608_vm1, %v3462_v30  ;;  %18673 = vmatprep.mubr.msk.bf16.mxu0 %vm608_vm1, %v20800_v31  ;;  %v3494_v30 = vsel %vm3403_vm3, %v3491_v24, %v3493_v26  ;;  %v20832_v31 = vld [vmem:[%s21209_s14 + $0xe0] sm:$0xff]   ;;  %v3495_v33 = vrot.slane %v20833_v29, 1 }
 0x23b   : > { %v20864_v24 = vld [vmem:[%s21209_s14 + $0x160] sm:$0xff]  }
 0x241   : > { %18290 = vmatmul.mubr.msk.bf16.gmra.mrb[56].mxu1 %vm608_vm1, %v3464_v35  ;;  %18674 = vmatmul.mubr.msk.bf16.gmra.mrb[16].mxu0 %vm608_vm1, %v20802_v34  ;;  %v3496_v34 = vsel %vm3403_vm3, %v3493_v26, %v3495_v33  ;;  %v20834_v35 = vld [vmem:[%s21209_s14 + $0xe8] sm:$0xff]  }
 0x242   : > { %18293 = vmatprep.mubr.msk.bf16.mxu1 %vm608_vm1, %v3466_v36  ;;  %18677 = vmatprep.mubr.msk.bf16.mxu0 %vm608_vm1, %v20804_v37  ;;  %v20837_v36 = vld [vmem:[%s21209_s14 + $0x180] sm:$0xff]   ;;  %v3498_v37 = vsel %vm3403_vm3, %v3495_v33, %v3497_v3  ;;  %v20868_v33 = vld [vmem:[%s21209_s14 + $0x170] sm:$0xff]  }
 0x243   : > { %v3499_v40 = vrot.slane %v20837_v36, 1 }
 0x249   : > { %18294 = vmatmul.mubr.msk.bf16.gmra.mrb[60].mxu1 %vm608_vm1, %v3468_v41  ;;  %18678 = vmatmul.mubr.msk.bf16.gmra.mrb[20].mxu0 %vm608_vm1, %v20806_v42  ;;  %v3501_v41 = vrot.slane %v20839_v39, 1  ;;  %v3500_v42 = vsel %vm3403_vm3, %v3497_v3, %v3499_v40 }
 0x24a   : > { %18297 = vmatprep.mubr.msk.bf16.mxu1 %vm608_vm1, %v3470_v44  ;;  %18681 = vmatprep.mubr.msk.bf16.mxu0 %vm608_vm1, %v20808_v45  ;;  %v20841_v44 = vld [vmem:[%s21209_s14 + $0x190] sm:$0xff]  }
 0x24b   : > { %v3502_v45 = vsel %vm3403_vm3, %v3499_v40, %v3501_v41  ;;  %v3503_v48 = vrot.slane %v20841_v44, 1  ;;  %v20872_v40 = vld [vmem:[%s21209_s14 + $0x180] sm:$0xff]  }
 0x251   : > { %18298 = vmatmul.mubr.msk.bf16.gmra.mrb[64].mxu1 %vm608_vm1, %v3472_v49  ;;  %18682 = vmatmul.mubr.msk.bf16.gmra.mrb[24].mxu0 %vm608_vm1, %v20810_v50  ;;  %v3505_v49 = vrot.slane %v20843_v47, 1  ;;  %v3504_v50 = vsel %vm3403_vm3, %v3501_v41, %v3503_v48 }
 0x252   : > { %18301 = vmatprep.mubr.msk.bf16.mxu1 %vm608_vm1, %v3474_v52  ;;  %18685 = vmatprep.mubr.msk.bf16.mxu0 %vm608_vm1, %v20812_v53  ;;  %v20845_v52 = vld [vmem:[%s21209_s14 + $0x1a0] ss:$0 sps:$4 sm:$0x11]  }
 0x253   : > { %v3506_v53 = vsel %vm3403_vm3, %v3503_v48, %v3505_v49  ;;  %v3507_v55 = vrot.slane %v20845_v52, 1  ;;  %v20876_v48 = vld [vmem:[%s21209_s14 + $0x190] sm:$0xff]  }
 0x255   : > { %v3508_v56 = vsel %vm3403_vm3, %v3505_v49, %v3507_v55 }
 0x259   : > { %18302 = vmatmul.mubr.msk.bf16.gmra.mrb[68].mxu1 %vm608_vm1, %v3476_v57  ;;  %18686 = vmatmul.mubr.msk.bf16.gmra.mrb[28].mxu0 %vm608_vm1, %v20814_v58  ;;  %v20846_v57 = vld [vmem:[%s21209_s14 + $0x118] sm:$0xff]   ;;  %v20847_v58 = vld [vmem:[%s21209_s14 + $0xb0] sm:$0xff]  }
 0x25a   : > { %18305 = vmatprep.mubr.msk.bf16.mxu1 %vm608_vm1, %v3478_v60  ;;  %18689 = vmatprep.mubr.msk.bf16.mxu0 %vm608_vm1, %v20816_v61  ;;  %v20849_v60 = vld [vmem:[%s21209_s14 + $0xb8] sm:$0xff]   ;;  %v20850_v61 = vld [vmem:[%s21209_s14 + $0x128] sm:$0xff]  }
 0x261   : > { %18306 = vmatmul.mubr.msk.bf16.gmra.mrb[72].mxu1 %vm608_vm1, %v3480_v1  ;;  %18690 = vmatmul.mubr.msk.bf16.gmra.mrb[32].mxu0 %vm608_vm1, %v20818_v2  ;;  %v20853_v2 = vld [vmem:[%s21209_s14 + $0xc8] sm:$0xff]  }
 0x262   : > { %18309 = vmatprep.mubr.msk.bf16.mxu1 %vm608_vm1, %v3482_v5  ;;  %18693 = vmatprep.mubr.msk.bf16.mxu0 %vm608_vm1, %v20820_v6  ;;  %v20854_v5 = vld [vmem:[%s21209_s14 + $0x138] sm:$0xff]   ;;  %v20855_v6 = vld [vmem:[%s21209_s14 + $0xd0] sm:$0xff]  }
 0x269   : > { %18310 = vmatmul.mubr.msk.bf16.gmra.mrb[76].mxu1 %vm608_vm1, %v3484_v10  ;;  %18694 = vmatmul.mubr.msk.bf16.gmra.mrb[36].mxu0 %vm608_vm1, %v20822_v11  ;;  %v20857_v11 = vld [vmem:[%s21209_s14 + $0xd8] sm:$0xff]  }
 0x26a   : > { %18313 = vmatprep.mubr.msk.bf16.mxu1 %vm608_vm1, %v3486_v13  ;;  %18697 = vmatprep.mubr.msk.bf16.mxu0 %vm608_vm1, %v20824_v14  ;;  %v20858_v13 = vld [vmem:[%s21209_s14 + $0x148] sm:$0xff]   ;;  %v20859_v14 = vld [vmem:[%s21209_s14 + $0xe0] sm:$0xff]  }
 0x271   : > { %18314 = vmatmul.mubr.msk.bf16.gmra.mrb[80].mxu1 %vm608_vm1, %v3488_v18  ;;  %18698 = vmatmul.mubr.msk.bf16.gmra.mrb[40].mxu0 %vm608_vm1, %v20826_v19  ;;  %v20861_v19 = vld [vmem:[%s21209_s14 + $0xe8] sm:$0xff]  }
 0x272   : > { %18317 = vmatprep.mubr.msk.bf16.mxu1 %vm608_vm1, %v3490_v21  ;;  %18701 = vmatprep.mubr.msk.bf16.mxu0 %vm608_vm1, %v20828_v22  ;;  %v20862_v21 = vld [vmem:[%s21209_s14 + $0x158] sm:$0xff]   ;;  %v20863_v22 = vld [vmem:[%s21209_s14 + $0xf0] sm:$0xff]  }
 0x279   : > { %18318 = vmatmul.mubr.msk.bf16.gmra.mrb[84].mxu1 %vm608_vm1, %v3492_v27  ;;  %18702 = vmatmul.mubr.msk.bf16.gmra.mrb[44].mxu0 %vm608_vm1, %v20830_v28  ;;  %v20865_v28 = vld [vmem:[%s21209_s14 + $0xf8] sm:$0xff]  }
 0x27a   : > { %18321 = vmatprep.mubr.msk.bf16.mxu1 %vm608_vm1, %v3494_v30  ;;  %18705 = vmatprep.mubr.msk.bf16.mxu0 %vm608_vm1, %v20832_v31  ;;  %v20866_v30 = vld [vmem:[%s21209_s14 + $0x168] sm:$0xff]   ;;  %v20867_v31 = vld [vmem:[%s21209_s14 + $0x100] sm:$0xff]  }
 0x281   : > { %18322 = vmatmul.mubr.msk.bf16.gmra.mrb[88].mxu1 %vm608_vm1, %v3496_v34  ;;  %18706 = vmatmul.mubr.msk.bf16.gmra.mrb[48].mxu0 %vm608_vm1, %v20834_v35  ;;  %v20869_v35 = vld [vmem:[%s21209_s14 + $0x108] sm:$0xff]  }
 0x282   : > { %18325 = vmatprep.mubr.msk.bf16.mxu1 %vm608_vm1, %v3498_v37  ;;  %18709 = vmatprep.mubr.msk.bf16.mxu0 %vm608_vm1, %v20836_v38  ;;  %v20870_v37 = vld [vmem:[%s21209_s14 + $0x178] sm:$0xff]   ;;  %v20871_v38 = vld [vmem:[%s21209_s14 + $0x110] sm:$0xff]  }
 0x289   : > { %18326 = vmatmul.mubr.msk.bf16.gmra.mrb[92].mxu1 %vm608_vm1, %v3500_v42  ;;  %18710 = vmatmul.mubr.msk.bf16.gmra.mrb[52].mxu0 %vm608_vm1, %v20838_v43  ;;  %v20873_v43 = vld [vmem:[%s21209_s14 + $0x118] sm:$0xff]  }
 0x28a   : > { %18329 = vmatprep.mubr.msk.bf16.mxu1 %vm608_vm1, %v3502_v45  ;;  %18713 = vmatprep.mubr.msk.bf16.mxu0 %vm608_vm1, %v20840_v46  ;;  %v20874_v45 = vld [vmem:[%s21209_s14 + $0x188] sm:$0xff]   ;;  %v20875_v46 = vld [vmem:[%s21209_s14 + $0x120] sm:$0xff]  }
 0x291   : > { %18330 = vmatmul.mubr.msk.bf16.gmra.mrb[96].mxu1 %vm608_vm1, %v3504_v50  ;;  %18714 = vmatmul.mubr.msk.bf16.gmra.mrb[56].mxu0 %vm608_vm1, %v20842_v51  ;;  %v20877_v51 = vld [vmem:[%s21209_s14 + $0x128] sm:$0xff]  }
 0x292   : > { %18333 = vmatprep.mubr.msk.bf16.mxu1 %vm608_vm1, %v3506_v53  ;;  %18717 = vmatprep.mubr.msk.bf16.mxu0 %vm608_vm1, %v20844_v54  ;;  %v20878_v53 = vld [vmem:[%s21209_s14 + $0x198] sm:$0xff]   ;;  %v20879_v54 = vld [vmem:[%s21209_s14 + $0x130] sm:$0xff]  }
 0x299   : > { %18334 = vmatmul.mubr.msk.bf16.gmra.mrb[100].mxu1 %vm608_vm1, %v3508_v56  ;;  %18718 = vmatmul.mubr.msk.bf16.gmra.mrb[60].mxu0 %vm608_vm1, %v20846_v57  ;;  %v20880_v56 = vld [vmem:[%s21209_s14 + $0x1a0] sm:$0xff]  }
 0x29a   : > { %18379 = vmatprep.mubr.msk.bf16.mxu1 %vm608_vm1, %v20847_v58  ;;  %18721 = vmatprep.mubr.msk.bf16.mxu0 %vm608_vm1, %v20848_v59  ;;  %v20888_v57 = vld [vmem:[%s21209_s14 + $0x20] sm:$0xff]   ;;  %v20889_v59 = vld [vmem:[%s21209_s14 + $0x28] sm:$0xff]  }
 0x2a1   : > { %18380 = vmatmul.mubr.msk.bf16.vlgmr.msra.gmra.mrb[40].mxu1 %vm608_vm1, %v20849_v60  ;;  %18722 = vmatmul.mubr.msk.bf16.gmra.mrb[64].mxu0 %vm608_vm1, %v20850_v61  ;;  %v10479_v60 = vshll.u32 %v20888_v57, 16 }
 0x2a2   : > { %18383 = vmatprep.mubr.msk.bf16.mxu1 %vm608_vm1, %v20851_v62  ;;  %18725 = vmatprep.mubr.msk.bf16.mxu0 %vm608_vm1, %v20852_v63  ;;  %v20881_v62 = vld [vmem:[%s21209_s14 + $0x138] sm:$0xff]  }
 0x2a4   : > { %v18235_v0 = vpop.f32.mrb[0].mxu1 }
 0x2a5   : > { %19299 = vst [vmem:[#allocation2 + $0x10] sm:$0xff] %v18235_v0  ;;  %v3702_v1 = vpop.f32.mrb[1].mxu1  ;;  %v20882_v0 = vld [vmem:[%s21209_s14 + $0x1a8] sm:$0xff]  }
 0x2a6   : > { %19302 = vst [vmem:[#allocation2] sm:$0xff] %v3702_v1  ;;  %v18236_v4 = vpop.f32.mrb[2].mxu1  ;;  %v20883_v1 = vld [vmem:[%s21209_s14 + $0x140] sm:$0xff]  }
 0x2a7   : > { %19305 = vst [vmem:[#allocation2 + $0x18] sm:$0xff] %v18236_v4  ;;  %v3705_v7 = vpop.f32.mrb[3].mxu1  ;;  %v20884_v4 = vld [vmem:[%s21209_s14 + $0x1b0] sm:$0xff]  }
 0x2a8   : > { %19308 = vst [vmem:[#allocation2 + $0x8] sm:$0xff] %v3705_v7  ;;  %v10484_v7 = vshll.u32 %v20889_v59, 16 }
 0x2a9   : > { %18384 = vmatmul.mubr.msk.bf16.gmra.mrb[44].mxu1 %vm608_vm1, %v20853_v2  ;;  %18726 = vmatmul.mubr.msk.bf16.gmra.mrb[68].mxu0 %vm608_vm1, %v20854_v5  ;;  %v10477_v5 = vshrl.u32 %v20888_v57, 16  ;;  %v20903_v57 = vld [vmem:[%s21209_s14 + $0x60] sm:$0xff]  }
 0x2aa   : > { %18387 = vmatprep.mubr.msk.bf16.mxu1 %vm608_vm1, %v20855_v6  ;;  %18729 = vmatprep.mubr.msk.bf16.mxu0 %vm608_vm1, %v20856_v8  ;;  %v10481_v6 = vrot.slane %v10479_v60, 1  ;;  %v20891_v8 = vld [vmem:[%s21209_s14 + $0x30] sm:$0xff]  }
 0x2ac   : > { %v18239_v9 = vpop.f32.mrb[4].mxu1 }
 0x2ad   : > { %19311 = vst [vmem:[#allocation2 + $0x30] sm:$0xff] %v18239_v9  ;;  %v3718_v10 = vpop.f32.mrb[5].mxu1 }
 0x2ae   : > { %19314 = vst [vmem:[#allocation2 + $0x20] sm:$0xff] %v3718_v10  ;;  %v18240_v12 = vpop.f32.mrb[6].mxu1  ;;  %v10482_v10 = vor.u32 %v10481_v6, %v10477_v5  ;;  %v10544_v5 = vshrl.u32 %v20903_v57, 16 }
 0x2af   : > { %19317 = vst [vmem:[#allocation2 + $0x38] sm:$0xff] %v18240_v12  ;;  %v3721_v15 = vpop.f32.mrb[7].mxu1  ;;  %v20893_v12 = vld [vmem:[%s21209_s14 + $0x38] sm:$0xff]  }
 0x2b0   : > { %19320 = vst [vmem:[#allocation2 + $0x28] sm:$0xff] %v3721_v15 }
 0x2b1   : > { %18388 = vmatmul.mubr.msk.bf16.gmra.mrb[48].mxu1 %vm608_vm1, %v20857_v11  ;;  %18730 = vmatmul.mubr.msk.bf16.gmra.mrb[72].mxu0 %vm608_vm1, %v20858_v13  ;;  %v10486_v11 = vrot.slane %v10484_v7, 1 }
 0x2b2   : > { %18391 = vmatprep.mubr.msk.bf16.mxu1 %vm608_vm1, %v20859_v14  ;;  %18733 = vmatprep.mubr.msk.bf16.mxu0 %vm608_vm1, %v20860_v16  ;;  %v20885_v14 = vld [vmem:[%s21209_s14 + $0x148] sm:$0xff]   ;;  %v20886_v16 = vld [vmem:[%s21209_s14 + $0x1b8] sm:$0xff]  }
 0x2b4   : > { %v18243_v17 = vpop.f32.mrb[8].mxu1 }
 0x2b5   : > { %19323 = vst [vmem:[#allocation2 + $0x50] sm:$0xff] %v18243_v17  ;;  %v3734_v18 = vpop.f32.mrb[9].mxu1  ;;  %v20887_v17 = vld [vmem:[%s21209_s14 + $0x150] sm:$0xff]  }
 0x2b6   : > { %19326 = vst [vmem:[#allocation2 + $0x40] sm:$0xff] %v3734_v18  ;;  %v18244_v20 = vpop.f32.mrb[10].mxu1  ;;  %v10492_v18 = vshll.u32 %v20891_v8, 16 }
 0x2b7   : > { %19329 = vst [vmem:[#allocation2 + $0x58] sm:$0xff] %v18244_v20  ;;  %v3737_v23 = vpop.f32.mrb[11].mxu1  ;;  %v10488_v20 = vshrl.u32 %v20889_v59, 16 }
 0x2b8   : > { %19332 = vst [vmem:[#allocation2 + $0x48] sm:$0xff] %v3737_v23  ;;  %v10500_v23 = vshll.u32 %v20893_v12, 16 }
 0x2b9   : > { %18392 = vmatmul.mubr.msk.bf16.gmra.mrb[52].mxu1 %vm608_vm1, %v20861_v19  ;;  %18734 = vmatmul.mubr.msk.bf16.gmra.mrb[76].mxu0 %vm608_vm1, %v20862_v21  ;;  %v10487_v21 = vsel %vm1692_vm2, %v10482_v10, %v10486_v11 }
 0x2ba   : > { %18395 = vmatprep.mubr.msk.bf16.mxu1 %vm608_vm1, %v20863_v22  ;;  %18737 = vmatprep.mubr.msk.bf16.mxu0 %vm608_vm1, %v20864_v24  ;;  %v10496_v22 = vshrl.u32 %v20891_v8, 16  ;;  %v10494_v24 = vrot.slane %v10492_v18, 1  ;;  %v20907_v8 = vld [vmem:[%s21209_s14 + $0x70] sm:$0xff]  }
 0x2bc   : > { %v18247_v26 = vpop.f32.mrb[12].mxu1 }
 0x2bd   : > { %19335 = vst [vmem:[#allocation2 + $0x70] sm:$0xff] %v18247_v26  ;;  %v3750_v27 = vpop.f32.mrb[13].mxu1  ;;  %v20895_v26 = vld [vmem:[%s21209_s14 + $0x40] sm:$0xff]  }
 0x2be   : > { %19338 = vst [vmem:[#allocation2 + $0x60] sm:$0xff] %v3750_v27  ;;  %v18248_v29 = vpop.f32.mrb[14].mxu1  ;;  %v10490_v27 = vor.u32 %v10488_v20, %v10486_v11 }
 0x2bf   : > { %19341 = vst [vmem:[#allocation2 + $0x78] sm:$0xff] %v18248_v29  ;;  %v3753_v32 = vpop.f32.mrb[15].mxu1  ;;  %v10498_v29 = vor.u32 %v10496_v22, %v10494_v24  ;;  %v20911_v22 = vld [vmem:[%s21209_s14 + $0x80] sm:$0xff]  }
 0x2c0   : > { %19344 = vst [vmem:[#allocation2 + $0x68] sm:$0xff] %v3753_v32 }
 0x2c1   : > { %18396 = vmatmul.mubr.msk.bf16.gmra.mrb[56].mxu1 %vm608_vm1, %v20865_v28  ;;  %18738 = vmatmul.mubr.msk.bf16.gmra.mrb[80].mxu0 %vm608_vm1, %v20866_v30  ;;  %v10502_v30 = vrot.slane %v10500_v23, 1 }
 0x2c2   : > { %18399 = vmatprep.mubr.msk.bf16.mxu1 %vm608_vm1, %v20867_v31  ;;  %18741 = vmatprep.mubr.msk.bf16.mxu0 %vm608_vm1, %v20868_v33  ;;  %v20897_v31 = vld [vmem:[%s21209_s14 + $0x48] sm:$0xff]   ;;  %v20890_v33 = vld [vmem:[%s21209_s14 + $0x158] sm:$0xff]  }
 0x2c4   : > { %v18251_v3 = vpop.f32.mrb[16].mxu1 }
 0x2c5   : > { %19347 = vst [vmem:[#allocation2 + $0x90] sm:$0xff] %v18251_v3  ;;  %v3766_v34 = vpop.f32.mrb[17].mxu1 }
 0x2c6   : > { %19350 = vst [vmem:[#allocation2 + $0x80] sm:$0xff] %v3766_v34  ;;  %v18252_v36 = vpop.f32.mrb[18].mxu1  ;;  %v20892_v34 = vld [vmem:[%s21209_s14 + $0x160] sm:$0xff]  }
 0x2c7   : > { %19353 = vst [vmem:[#allocation2 + $0x98] sm:$0xff] %v18252_v36  ;;  %v3769_v39 = vpop.f32.mrb[19].mxu1 }
 0x2c8   : > { %19356 = vst [vmem:[#allocation2 + $0x88] sm:$0xff] %v3769_v39  ;;  %v12448_v39 = vsel %vm765_vm0, %v22060_v25, 0 }
 0x2c9   : > { %18400 = vmatmul.mubr.msk.bf16.gmra.mrb[60].mxu1 %vm608_vm1, %v20869_v35  ;;  %18742 = vmatmul.mubr.msk.bf16.gmra.mrb[84].mxu0 %vm608_vm1, %v20870_v37  ;;  %v10508_v35 = vshll.u32 %v20895_v26, 16  ;;  %v10495_v37 = vsel %vm1692_vm2, %v10490_v27, %v10494_v24  ;;  %v20912_v27 = vld [vmem:[%s21209_s14 + $0x88] sm:$0xff]  }
 0x2ca   : > { %18403 = vmatprep.mubr.msk.bf16.mxu1 %vm608_vm1, %v20871_v38  ;;  %18745 = vmatprep.mubr.msk.bf16.mxu0 %vm608_vm1, %v20872_v40  ;;  %v10504_v38 = vshrl.u32 %v20893_v12, 16  ;;  %v10503_v40 = vsel %vm1692_vm2, %v10498_v29, %v10502_v30  ;;  %v20909_v12 = vld [vmem:[%s21209_s14 + $0x78] sm:$0xff]   ;;  %v20908_v29 = vld [vmem:[%s21209_s14 + $0x1a0] sm:$0xff]  }
 0x2cb   : > { %v10564_v20 = vshll.u32 %v20909_v12, 16 }
 0x2cc   : > { %v18255_v41 = vpop.f32.mrb[20].mxu1 }
 0x2cd   : > { %19359 = vst [vmem:[#allocation2 + $0xb0] sm:$0xff] %v18255_v41  ;;  %v3782_v42 = vpop.f32.mrb[21].mxu1  ;;  %v10512_v41 = vshrl.u32 %v20895_v26, 16  ;;  %v10566_v26 = vrot.slane %v10564_v20, 1 }
 0x2ce   : > { %19362 = vst [vmem:[#allocation2 + $0xa0] sm:$0xff] %v3782_v42  ;;  %v18256_v44 = vpop.f32.mrb[22].mxu1  ;;  %v10516_v42 = vshll.u32 %v20897_v31, 16 }
 0x2cf   : > { %19365 = vst [vmem:[#allocation2 + $0xb8] sm:$0xff] %v18256_v44  ;;  %v3785_v47 = vpop.f32.mrb[23].mxu1  ;;  %v20899_v44 = vld [vmem:[%s21209_s14 + $0x50] sm:$0xff]  }
 0x2d0   : > { %19368 = vst [vmem:[#allocation2 + $0xa8] sm:$0xff] %v3785_v47  ;;  %v10518_v25 = vrot.slane %v10516_v42, 1  ;;  %v20901_v47 = vld [vmem:[%s21209_s14 + $0x58] sm:$0xff]  }
 0x2d1   : > { %18404 = vmatmul.mubr.msk.bf16.gmra.mrb[64].mxu1 %vm608_vm1, %v20873_v43  ;;  %18746 = vmatmul.mubr.msk.bf16.gmra.mrb[88].mxu0 %vm608_vm1, %v20874_v45  ;;  %v10510_v43 = vrot.slane %v10508_v35, 1  ;;  %v10506_v45 = vor.u32 %v10504_v38, %v10502_v30  ;;  %v10572_v30 = vshll.u32 %v20911_v22, 16 }
 0x2d2   : > { %18407 = vmatprep.mubr.msk.bf16.mxu1 %vm608_vm1, %v20875_v46  ;;  %18749 = vmatprep.mubr.msk.bf16.mxu0 %vm608_vm1, %v20876_v48  ;;  %v20894_v48 = vld [vmem:[%s21209_s14 + $0x168] sm:$0xff]  }
 0x2d3   : > { %v10514_v46 = vor.u32 %v10512_v41, %v10510_v43  ;;  %v10574_v35 = vrot.slane %v10572_v30, 1  ;;  %v20910_v41 = vld [vmem:[%s21209_s14 + $0x1a8] sm:$0xff]  }
 0x2d4   : > { %v18259_v49 = vpop.f32.mrb[24].mxu1 }
 0x2d5   : > { %19371 = vst [vmem:[#allocation2 + $0xd0] sm:$0xff] %v18259_v49  ;;  %v3798_v50 = vpop.f32.mrb[25].mxu1  ;;  %v20896_v49 = vld [vmem:[%s21209_s14 + $0x170] sm:$0xff]  }
 0x2d6   : > { %19374 = vst [vmem:[#allocation2 + $0xc0] sm:$0xff] %v3798_v50  ;;  %v18260_v52 = vpop.f32.mrb[26].mxu1  ;;  %v10524_v50 = vshll.u32 %v20899_v44, 16 }
 0x2d7   : > { %19377 = vst [vmem:[#allocation2 + $0xd8] sm:$0xff] %v18260_v52  ;;  %v3801_v55 = vpop.f32.mrb[27].mxu1  ;;  %v10520_v52 = vshrl.u32 %v20897_v31, 16 }
 0x2d8   : > { %19380 = vst [vmem:[#allocation2 + $0xc8] sm:$0xff] %v3801_v55  ;;  %v10532_v55 = vshll.u32 %v20901_v47, 16 }
 0x2d9   : > { %18408 = vmatmul.mubr.msk.bf16.gmra.mrb[68].mxu1 %vm608_vm1, %v20877_v51  ;;  %18750 = vmatmul.mubr.msk.bf16.gmra.mrb[92].mxu0 %vm608_vm1, %v20878_v53  ;;  %v10511_v51 = vsel %vm1692_vm2, %v10506_v45, %v10510_v43  ;;  %v10519_v53 = vsel %vm1692_vm2, %v10514_v46, %v10518_v25 }
 0x2da   : > { %18411 = vmatprep.mubr.msk.bf16.mxu1 %vm608_vm1, %v20879_v54  ;;  %18753 = vmatprep.mubr.msk.bf16.mxu0 %vm608_vm1, %v20880_v56  ;;  %v10528_v54 = vshrl.u32 %v20899_v44, 16  ;;  %v10526_v56 = vrot.slane %v10524_v50, 1  ;;  %v10534_v60 = vrot.slane %v10532_v55, 1  ;;  %v10584_v44 = vshrl.u32 %v20912_v27, 16 }
 0x2dc   : > { %v18263_v58 = vpop.f32.mrb[28].mxu1  ;;  %v10530_v59 = vor.u32 %v10528_v54, %v10526_v56 }
 0x2dd   : > { %19383 = vst [vmem:[#allocation2 + $0xf0] sm:$0xff] %v18263_v58  ;;  %v3814_v61 = vpop.f32.mrb[29].mxu1  ;;  %v10522_v58 = vor.u32 %v10520_v52, %v10518_v25  ;;  %v20916_v52 = vld [vmem:[%s21209_s14 + $0xa8] sm:$0xff]  }
 0x2de   : > { %19386 = vst [vmem:[#allocation2 + $0xe0] sm:$0xff] %v3814_v61  ;;  %v18264_v63 = vpop.f32.mrb[30].mxu1  ;;  %v20905_v61 = vld [vmem:[%s21209_s14 + $0x68] sm:$0xff]  }
 0x2df   : > { %19389 = vst [vmem:[#allocation2 + $0xf8] sm:$0xff] %v18264_v63  ;;  %v3817_v2 = vpop.f32.mrb[31].mxu1  ;;  %v20900_v63 = vld [vmem:[%s21209_s14 + $0x180] sm:$0xff]   ;;  %v10548_v6 = vshll.u32 %v20905_v61, 16 }
 0x2e0   : > { %19392 = vst [vmem:[#allocation2 + $0xe8] sm:$0xff] %v3817_v2  ;;  %v10536_v2 = vshrl.u32 %v20901_v47, 16 }
 0x2e1   : > { %18412 = vmatmul.mubr.msk.bf16.gmra.mrb[72].mxu1 %vm608_vm1, %v20881_v62  ;;  %18754 = vmatmul.mubr.msk.bf16.gmra.mrb[96].mxu0 %vm608_vm1, %v20882_v0  ;;  %v20898_v62 = vld [vmem:[%s21209_s14 + $0x178] sm:$0xff]   ;;  %v10540_v0 = vshll.u32 %v20903_v57, 16  ;;  %v10550_v11 = vrot.slane %v10548_v6, 1 }
 0x2e2   : > { %18415 = vmatprep.mubr.msk.bf16.mxu1 %vm608_vm1, %v20883_v1  ;;  %18757 = vmatprep.mubr.msk.bf16.mxu0 %vm608_vm1, %v20884_v4  ;;  %v10527_v1 = vsel %vm1692_vm2, %v10522_v58, %v10526_v56  ;;  %v10535_v4 = vsel %vm1692_vm2, %v10530_v59, %v10534_v60  ;;  %v10612_v58 = vshll.u32 %v20916_v52, 16 }
 0x2e3   : > { %v10542_v7 = vrot.slane %v10540_v0, 1  ;;  %v20918_v0 = vld [vmem:[%s21209_s14 + $0xb8] sm:$0xff]  }
 0x2e4   : > { %v18267_v9 = vpop.f32.mrb[32].mxu1 }
 0x2e5   : > { %19395 = vst [vmem:[#allocation2 + $0x110] sm:$0xff] %v18267_v9  ;;  %v3830_v13 = vpop.f32.mrb[33].mxu1  ;;  %v10538_v9 = vor.u32 %v10536_v2, %v10534_v60  ;;  %v10546_v10 = vor.u32 %v10544_v5, %v10542_v7  ;;  %v20917_v60 = vld [vmem:[%s21209_s14 + $0xb0] sm:$0xff]  }
 0x2e6   : > { %19398 = vst [vmem:[#allocation2 + $0x100] sm:$0xff] %v3830_v13  ;;  %v18268_v15 = vpop.f32.mrb[34].mxu1  ;;  %v20902_v13 = vld [vmem:[%s21209_s14 + $0x188] sm:$0xff]   ;;  %v10624_v6 = vshrl.u32 %v20917_v60, 16 }
 0x2e7   : > { %19401 = vst [vmem:[#allocation2 + $0x118] sm:$0xff] %v18268_v15  ;;  %v3833_v19 = vpop.f32.mrb[35].mxu1  ;;  %v10556_v15 = vshll.u32 %v20907_v8, 16  ;;  %v10551_v18 = vsel %vm1692_vm2, %v10546_v10, %v10550_v11 }
 0x2e8   : > { %19404 = vst [vmem:[#allocation2 + $0x108] sm:$0xff] %v3833_v19  ;;  %v10560_v19 = vshrl.u32 %v20907_v8, 16 }
 0x2e9   : > { %18416 = vmatmul.mubr.msk.bf16.gmra.mrb[76].mxu1 %vm608_vm1, %v20885_v14  ;;  %18758 = vmatmul.mubr.msk.bf16.gmra.mrb[100].mxu0 %vm608_vm1, %v20886_v16  ;;  %v20904_v14 = vld [vmem:[%s21209_s14 + $0x190] sm:$0xff]   ;;  %v10543_v16 = vsel %vm1692_vm2, %v10538_v9, %v10542_v7  ;;  %v10628_v7 = vshll.u32 %v20918_v0, 16  ;;  %v20919_v9 = vld [vmem:[%s21209_s14 + $0xc0] sm:$0xff]  }
 0x2ea   : > { %18419 = vmatprep.mubr.msk.bf16.mxu1 %vm608_vm1, %v20887_v17  ;;  %18763 = vmatprep.mubr.msk.bf16.mxu0 %vm608_vm1, %v10487_v21  ;;  %v10552_v17 = vshrl.u32 %v20905_v61, 16  ;;  %v10558_v21 = vrot.slane %v10556_v15, 1 }
 0x2ec   : > { %v18271_v28 = vpop.f32.mrb[36].mxu1  ;;  %v10554_v23 = vor.u32 %v10552_v17, %v10550_v11  ;;  %v10562_v24 = vor.u32 %v10560_v19, %v10558_v21 }
 0x2ed   : > { %19407 = vst [vmem:[#allocation2 + $0x130] sm:$0xff] %v18271_v28  ;;  %v3846_v32 = vpop.f32.mrb[37].mxu1  ;;  %v20906_v28 = vld [vmem:[%s21209_s14 + $0x198] sm:$0xff]  }
 0x2ee   : > { %19410 = vst [vmem:[#allocation2 + $0x120] sm:$0xff] %v3846_v32  ;;  %v18272_v3 = vpop.f32.mrb[38].mxu1  ;;  %v10559_v31 = vsel %vm1692_vm2, %v10554_v23, %v10558_v21  ;;  %v10568_v32 = vshrl.u32 %v20909_v12, 16  ;;  %v10630_v12 = vrot.slane %v10628_v7, 1  ;;  %v20921_v21 = vld [vmem:[%s21209_s14 + $0xd0] sm:$0xff]  }
 0x2ef   : > { %19413 = vst [vmem:[#allocation2 + $0x138] sm:$0xff] %v18272_v3  ;;  %v3849_v36 = vpop.f32.mrb[39].mxu1  ;;  %v10576_v3 = vshrl.u32 %v20911_v22, 16 }
 0x2f0   : > { %19416 = vst [vmem:[#allocation2 + $0x128] sm:$0xff] %v3849_v36  ;;  %v20913_v36 = vld [vmem:[%s21209_s14 + $0x90] sm:$0xff]  }
 0x2f1   : > { %18420 = vmatmul.mubr.msk.bf16.gmra.mrb[80].mxu1 %vm608_vm1, %v20890_v33  ;;  %18764 = vmatmul.mubr.msk.bf16.vlgmr.msra.gmra.mrb[0].mxu0 %vm608_vm1, %v10495_v37  ;;  %v10567_v33 = vsel %vm1692_vm2, %v10562_v24, %v10566_v26  ;;  %v10570_v37 = vor.u32 %v10568_v32, %v10566_v26  ;;  %v10578_v38 = vor.u32 %v10576_v3, %v10574_v35  ;;  %v10588_v42 = vshll.u32 %v20913_v36, 16  ;;  %v20922_v26 = vld [vmem:[%s21209_s14 + $0xd8] sm:$0xff]   ;;  %v20923_v3 = vld [vmem:[%s21209_s14 + $0xe0] sm:$0xff]  }
 0x2f2   : > { %18423 = vmatprep.mubr.msk.bf16.mxu1 %vm608_vm1, %v20892_v34  ;;  %18868 = vmatpush3.bf16.msra.mxu0 %v12448_v39  ;;  %v10580_v34 = vshll.u32 %v20912_v27, 16  ;;  %v10592_v46 = vshrl.u32 %v20913_v36, 16  ;;  %v10652_v27 = vshll.u32 %v20921_v21, 16  ;;  %v10660_v32 = vshll.u32 %v20922_v26, 16 }
 0x2f3   : > { %18767 = vmatprep.mubr.msk.bf16.mxu0 %vm608_vm1, %v10503_v40  ;;  %v20914_v40 = vld [vmem:[%s21209_s14 + $0x98] sm:$0xff]   ;;  %v10575_v43 = vsel %vm1692_vm2, %v10570_v37, %v10574_v35  ;;  %v10590_v47 = vrot.slane %v10588_v42, 1  ;;  %v20924_v37 = vld [vmem:[%s21209_s14 + $0xe8] sm:$0xff]   ;;  %v10672_v42 = vshrl.u32 %v20923_v3, 16 }
 0x2f4   : > { %v10582_v39 = vrot.slane %v10580_v34, 1  ;;  %v10596_v25 = vshll.u32 %v20914_v40, 16  ;;  %v10600_v55 = vshrl.u32 %v20914_v40, 16  ;;  %v10662_v36 = vrot.slane %v10660_v32, 1 }
 0x2f5   : > { %v10594_v50 = vor.u32 %v10592_v46, %v10590_v47  ;;  %v10664_v40 = vshrl.u32 %v20922_v26, 16 }
 0x2f6   : > { %v10583_v45 = vsel %vm1692_vm2, %v10578_v38, %v10582_v39  ;;  %v10668_v38 = vshll.u32 %v20923_v3, 16  ;;  %v20934_v3 = vld [vmem:[%s21209_s14 + $0x138] sm:$0xff]  }
 0x2f7   : > { %v10666_v46 = vor.u32 %v10664_v40, %v10662_v36 }
 0x2f9   : > { %18424 = vmatmul.mubr.msk.bf16.gmra.mrb[84].mxu1 %vm608_vm1, %v20894_v48  ;;  %18768 = vmatmul.mubr.msk.bf16.gmra.mrb[4].mxu0 %vm608_vm1, %v10511_v51  ;;  %v20915_v48 = vld [vmem:[%s21209_s14 + $0xa0] sm:$0xff]   ;;  %v10598_v51 = vrot.slane %v10596_v25, 1 }
 0x2fa   : > { %18427 = vmatprep.mubr.msk.bf16.mxu1 %vm608_vm1, %v20896_v49  ;;  %18771 = vmatprep.mubr.msk.bf16.mxu0 %vm608_vm1, %v10519_v53  ;;  %v10586_v49 = vor.u32 %v10584_v44, %v10582_v39  ;;  %v10604_v53 = vshll.u32 %v20915_v48, 16  ;;  %v10608_v57 = vshrl.u32 %v20915_v48, 16  ;;  %v10670_v44 = vrot.slane %v10668_v38, 1  ;;  %v20926_v48 = vld [vmem:[%s21209_s14 + $0xf8] sm:$0xff]  }
 0x2fb   : > { %v10599_v56 = vsel %vm1692_vm2, %v10594_v50, %v10598_v51  ;;  %v10602_v61 = vor.u32 %v10600_v55, %v10598_v51  ;;  %v10680_v51 = vshrl.u32 %v20924_v37, 16 }
 0x2fc   : > { %v10591_v54 = vsel %vm1692_vm2, %v10586_v49, %v10590_v47  ;;  %v10606_v59 = vrot.slane %v10604_v53, 1  ;;  %v10674_v25 = vor.u32 %v10672_v42, %v10670_v44  ;;  %v10671_v50 = vsel %vm1692_vm2, %v10666_v46, %v10670_v44 }
 0x2fe   : > { %v10607_v2 = vsel %vm1692_vm2, %v10602_v61, %v10606_v59 }
 0x301   : > { %18428 = vmatmul.mubr.msk.bf16.gmra.mrb[88].mxu1 %vm608_vm1, %v20898_v62  ;;  %18772 = vmatmul.mubr.msk.bf16.gmra.mrb[8].mxu0 %vm608_vm1, %v10527_v1  ;;  %v10610_v62 = vor.u32 %v10608_v57, %v10606_v59  ;;  %v10620_v1 = vshll.u32 %v20917_v60, 16  ;;  %v20928_v60 = vld [vmem:[%s21209_s14 + $0x108] sm:$0xff]  }
 0x302   : > { %18431 = vmatprep.mubr.msk.bf16.mxu1 %vm608_vm1, %v20900_v63  ;;  %18775 = vmatprep.mubr.msk.bf16.mxu0 %vm608_vm1, %v10535_v4  ;;  %v10614_v63 = vrot.slane %v10612_v58, 1  ;;  %v10616_v4 = vshrl.u32 %v20916_v52, 16 }
 0x303   : > { %v10622_v8 = vrot.slane %v10620_v1, 1 }
 0x304   : > { %v10615_v5 = vsel %vm1692_vm2, %v10610_v62, %v10614_v63  ;;  %v10618_v10 = vor.u32 %v10616_v4, %v10614_v63  ;;  %v10696_v63 = vshrl.u32 %v20926_v48, 16 }
 0x305   : > { %v10626_v11 = vor.u32 %v10624_v6, %v10622_v8 }
 0x306   : > { %v10623_v15 = vsel %vm1692_vm2, %v10618_v10, %v10622_v8 }
 0x307   : > { %v10631_v17 = vsel %vm1692_vm2, %v10626_v11, %v10630_v12 }
 0x309   : > { %18432 = vmatmul.mubr.msk.bf16.gmra.mrb[92].mxu1 %vm608_vm1, %v20902_v13  ;;  %18776 = vmatmul.mubr.msk.bf16.gmra.mrb[12].mxu0 %vm608_vm1, %v10543_v16  ;;  %v20920_v13 = vld [vmem:[%s21209_s14 + $0xc8] sm:$0xff]   ;;  %v10632_v16 = vshrl.u32 %v20918_v0, 16 }
 0x30a   : > { %18435 = vmatprep.mubr.msk.bf16.mxu1 %vm608_vm1, %v20904_v14  ;;  %18779 = vmatprep.mubr.msk.bf16.mxu0 %vm608_vm1, %v10551_v18  ;;  %v10636_v14 = vshll.u32 %v20919_v9, 16  ;;  %v10640_v18 = vshrl.u32 %v20919_v9, 16  ;;  %v10644_v19 = vshll.u32 %v20920_v13, 16  ;;  %v20930_v9 = vld [vmem:[%s21209_s14 + $0x118] sm:$0xff]  }
 0x30b   : > { %v10634_v22 = vor.u32 %v10632_v16, %v10630_v12  ;;  %v10712_v12 = vshrl.u32 %v20928_v60, 16 }
 0x30c   : > { %v10638_v20 = vrot.slane %v10636_v14, 1  ;;  %v10646_v24 = vrot.slane %v10644_v19, 1 }
 0x30e   : > { %v10642_v23 = vor.u32 %v10640_v18, %v10638_v20 }
 0x310   : > { %v10647_v30 = vsel %vm1692_vm2, %v10642_v23, %v10646_v24 }
 0x311   : > { %18436 = vmatmul.mubr.msk.bf16.gmra.mrb[96].mxu1 %vm608_vm1, %v20906_v28  ;;  %18780 = vmatmul.mubr.msk.bf16.gmra.mrb[16].mxu0 %vm608_vm1, %v10559_v31  ;;  %v10639_v28 = vsel %vm1692_vm2, %v10634_v22, %v10638_v20  ;;  %v10656_v31 = vshrl.u32 %v20921_v21, 16  ;;  %v20932_v21 = vld [vmem:[%s21209_s14 + $0x128] sm:$0xff]  }
 0x312   : > { %18439 = vmatprep.mubr.msk.bf16.mxu1 %vm608_vm1, %v20908_v29  ;;  %18783 = vmatprep.mubr.msk.bf16.mxu0 %vm608_vm1, %v10567_v33  ;;  %v10648_v29 = vshrl.u32 %v20920_v13, 16  ;;  %v10654_v33 = vrot.slane %v10652_v27, 1 }
 0x314   : > { %v10650_v34 = vor.u32 %v10648_v29, %v10646_v24  ;;  %v10658_v35 = vor.u32 %v10656_v31, %v10654_v33  ;;  %v10728_v24 = vshrl.u32 %v20930_v9, 16 }
 0x316   : > { %v10655_v39 = vsel %vm1692_vm2, %v10650_v34, %v10654_v33 }
 0x319   : > { %18440 = vmatmul.mubr.msk.bf16.gmra.mrb[100].mxu1 %vm608_vm1, %v20910_v41  ;;  %18784 = vmatmul.mubr.msk.bf16.gmra.mrb[20].mxu0 %vm608_vm1, %v10575_v43  ;;  %v10663_v41 = vsel %vm1692_vm2, %v10658_v35, %v10662_v36  ;;  %v10676_v43 = vshll.u32 %v20924_v37, 16  ;;  %v10744_v36 = vshrl.u32 %v20932_v21, 16 }
 0x31a   : > { %18787 = vmatprep.mubr.msk.bf16.mxu0 %vm608_vm1, %v10583_v45  ;;  %v20925_v45 = vld [vmem:[%s21209_s14 + $0xf0] sm:$0xff]  }
 0x31b   : > { %v10678_v47 = vrot.slane %v10676_v43, 1  ;;  %v10684_v49 = vshll.u32 %v20925_v45, 16  ;;  %v10688_v53 = vshrl.u32 %v20925_v45, 16  ;;  %v20936_v45 = vld [vmem:[%s21209_s14 + $0x148] sm:$0xff]  }
 0x31d   : > { %v10679_v52 = vsel %vm1692_vm2, %v10674_v25, %v10678_v47  ;;  %v10686_v55 = vrot.slane %v10684_v49, 1  ;;  %v10682_v57 = vor.u32 %v10680_v51, %v10678_v47  ;;  %v10760_v47 = vshrl.u32 %v20934_v3, 16 }
 0x31f   : > { %v10690_v58 = vor.u32 %v10688_v53, %v10686_v55  ;;  %v10687_v62 = vsel %vm1692_vm2, %v10682_v57, %v10686_v55  ;;  %v20938_v57 = vld [vmem:[%s21209_s14 + $0x158] sm:$0xff]  }
 0x321   : > { %18788 = vmatmul.mubr.msk.bf16.gmra.mrb[24].mxu0 %vm608_vm1, %v10591_v54  ;;  %v10692_v54 = vshll.u32 %v20926_v48, 16 }
 0x322   : > { %18791 = vmatprep.mubr.msk.bf16.mxu0 %vm608_vm1, %v10599_v56  ;;  %v20927_v56 = vld [vmem:[%s21209_s14 + $0x100] sm:$0xff]  }
 0x323   : > { %v10694_v59 = vrot.slane %v10692_v54, 1  ;;  %v10700_v61 = vshll.u32 %v20927_v56, 16  ;;  %v10704_v1 = vshrl.u32 %v20927_v56, 16 }
 0x325   : > { %v10695_v0 = vsel %vm1692_vm2, %v10690_v58, %v10694_v59  ;;  %v10702_v4 = vrot.slane %v10700_v61, 1  ;;  %v10698_v6 = vor.u32 %v10696_v63, %v10694_v59  ;;  %v10776_v63 = vshrl.u32 %v20936_v45, 16 }
 0x327   : > { %v10706_v7 = vor.u32 %v10704_v1, %v10702_v4  ;;  %v10703_v11 = vsel %vm1692_vm2, %v10698_v6, %v10702_v4 }
 0x329   : > { %18792 = vmatmul.mubr.msk.bf16.gmra.mrb[28].mxu0 %vm608_vm1, %v10607_v2  ;;  %v10708_v2 = vshll.u32 %v20928_v60, 16 }
 0x32a   : > { %18795 = vmatprep.mubr.msk.bf16.mxu0 %vm608_vm1, %v10615_v5  ;;  %v20929_v5 = vld [vmem:[%s21209_s14 + $0x110] sm:$0xff]  }
 0x32b   : > { %v10710_v8 = vrot.slane %v10708_v2, 1  ;;  %v10716_v10 = vshll.u32 %v20929_v5, 16  ;;  %v10720_v14 = vshrl.u32 %v20929_v5, 16  ;;  %v10788_v2 = vshll.u32 %v20938_v57, 16  ;;  %v20939_v5 = vld [vmem:[%s21209_s14 + $0x160] sm:$0xff]  }
 0x32d   : > { %v10711_v13 = vsel %vm1692_vm2, %v10706_v7, %v10710_v8  ;;  %v10718_v16 = vrot.slane %v10716_v10, 1  ;;  %v10714_v18 = vor.u32 %v10712_v12, %v10710_v8  ;;  %v20940_v10 = vld [vmem:[%s21209_s14 + $0x168] sm:$0xff]  }
 0x32f   : > { %v10722_v19 = vor.u32 %v10720_v14, %v10718_v16  ;;  %v10719_v23 = vsel %vm1692_vm2, %v10714_v18, %v10718_v16  ;;  %v10792_v16 = vshrl.u32 %v20938_v57, 16  ;;  %v10800_v18 = vshrl.u32 %v20939_v5, 16  ;;  %v20946_v57 = vld [vmem:[%s21209_s14 + $0x198] sm:$0xff]  }
 0x331   : > { %18796 = vmatmul.mubr.msk.bf16.gmra.mrb[32].mxu0 %vm608_vm1, %v10623_v15  ;;  %v10724_v15 = vshll.u32 %v20930_v9, 16  ;;  %v10790_v9 = vrot.slane %v10788_v2, 1  ;;  %v10852_v2 = vshll.u32 %v20946_v57, 16 }
 0x332   : > { %18799 = vmatprep.mubr.msk.bf16.mxu0 %vm608_vm1, %v10631_v17  ;;  %v20931_v17 = vld [vmem:[%s21209_s14 + $0x120] sm:$0xff]  }
 0x333   : > { %v10726_v20 = vrot.slane %v10724_v15, 1  ;;  %v10732_v22 = vshll.u32 %v20931_v17, 16  ;;  %v10736_v27 = vshrl.u32 %v20931_v17, 16 }
 0x335   : > { %v10727_v26 = vsel %vm1692_vm2, %v10722_v19, %v10726_v20  ;;  %v10734_v29 = vrot.slane %v10732_v22, 1  ;;  %v10730_v31 = vor.u32 %v10728_v24, %v10726_v20  ;;  %v10804_v19 = vshll.u32 %v20940_v10, 16 }
 0x336   : > { %v10794_v22 = vor.u32 %v10792_v16, %v10790_v9  ;;  %v10856_v16 = vshrl.u32 %v20946_v57, 16 }
 0x337   : > { %v10738_v32 = vor.u32 %v10736_v27, %v10734_v29  ;;  %v10735_v35 = vsel %vm1692_vm2, %v10730_v31, %v10734_v29  ;;  %v20942_v27 = vld [vmem:[%s21209_s14 + $0x178] sm:$0xff]  }
 0x339   : > { %18800 = vmatmul.mubr.msk.bf16.gmra.mrb[36].mxu0 %vm608_vm1, %v10639_v28  ;;  %v10740_v28 = vshll.u32 %v20932_v21, 16  ;;  %v20941_v21 = vld [vmem:[%s21209_s14 + $0x170] sm:$0xff]  }
 0x33a   : > { %18803 = vmatprep.mubr.msk.bf16.mxu0 %vm608_vm1, %v10647_v30  ;;  %v20933_v30 = vld [vmem:[%s21209_s14 + $0x130] sm:$0xff]  }
 0x33b   : > { %v10742_v33 = vrot.slane %v10740_v28, 1  ;;  %v10748_v34 = vshll.u32 %v20933_v30, 16  ;;  %v10752_v38 = vshrl.u32 %v20933_v30, 16  ;;  %v10812_v30 = vshll.u32 %v20941_v21, 16 }
 0x33d   : > { %v10743_v37 = vsel %vm1692_vm2, %v10738_v32, %v10742_v33  ;;  %v10750_v40 = vrot.slane %v10748_v34, 1  ;;  %v10746_v42 = vor.u32 %v10744_v36, %v10742_v33  ;;  %v10808_v33 = vshrl.u32 %v20940_v10, 16  ;;  %v20948_v10 = vld [vmem:[%s21209_s14 + $0x1a8] sm:$0xff]  }
 0x33e   : > { %v10816_v34 = vshrl.u32 %v20941_v21, 16  ;;  %v10814_v36 = vrot.slane %v10812_v30, 1  ;;  %v20949_v21 = vld [vmem:[%s21209_s14 + $0x1b0] sm:$0xff]  }
 0x33f   : > { %v10754_v43 = vor.u32 %v10752_v38, %v10750_v40  ;;  %v10751_v25 = vsel %vm1692_vm2, %v10746_v42, %v10750_v40  ;;  %v20944_v42 = vld [vmem:[%s21209_s14 + $0x188] sm:$0xff]   ;;  %v10876_v30 = vshll.u32 %v20949_v21, 16 }
 0x340   : > { %v10818_v40 = vor.u32 %v10816_v34, %v10814_v36  ;;  %v10880_v34 = vshrl.u32 %v20949_v21, 16 }
 0x341   : > { %18804 = vmatmul.mubr.msk.bf16.gmra.mrb[40].mxu0 %vm608_vm1, %v10655_v39  ;;  %v10756_v39 = vshll.u32 %v20934_v3, 16 }
 0x342   : > { %18807 = vmatprep.mubr.msk.bf16.mxu0 %vm608_vm1, %v10663_v41  ;;  %v20935_v41 = vld [vmem:[%s21209_s14 + $0x140] sm:$0xff]  }
 0x343   : > { %v10758_v44 = vrot.slane %v10756_v39, 1  ;;  %v10764_v46 = vshll.u32 %v20935_v41, 16  ;;  %v10768_v49 = vshrl.u32 %v20935_v41, 16 }
 0x345   : > { %v10759_v48 = vsel %vm1692_vm2, %v10754_v43, %v10758_v44  ;;  %v10766_v51 = vrot.slane %v10764_v46, 1  ;;  %v10762_v53 = vor.u32 %v10760_v47, %v10758_v44  ;;  %v10824_v47 = vshrl.u32 %v20942_v27, 16 }
 0x347   : > { %v10770_v55 = vor.u32 %v10768_v49, %v10766_v51 }
 0x349   : > { %18808 = vmatmul.mubr.msk.bf16.gmra.mrb[44].mxu0 %vm608_vm1, %v10671_v50  ;;  %v10772_v50 = vshll.u32 %v20936_v45, 16 }
 0x34a   : > { %18811 = vmatprep.mubr.msk.bf16.mxu0 %vm608_vm1, %v10679_v52  ;;  %v20937_v52 = vld [vmem:[%s21209_s14 + $0x150] sm:$0xff]  }
 0x34b   : > { %v10774_v56 = vrot.slane %v10772_v50, 1  ;;  %v10780_v60 = vshll.u32 %v20937_v52, 16  ;;  %v10784_v1 = vshrl.u32 %v20937_v52, 16  ;;  %v10836_v50 = vshll.u32 %v20944_v42, 16  ;;  %v20945_v52 = vld [vmem:[%s21209_s14 + $0x190] sm:$0xff]  }
 0x34d   : > { %v10782_v4 = vrot.slane %v10780_v60, 1  ;;  %v10778_v6 = vor.u32 %v10776_v63, %v10774_v56  ;;  %v10844_v60 = vshll.u32 %v20945_v52, 16  ;;  %v10840_v63 = vshrl.u32 %v20944_v42, 16 }
 0x34f   : > { %v10786_v8 = vor.u32 %v10784_v1, %v10782_v4  ;;  %v10783_v15 = vsel %vm1692_vm2, %v10778_v6, %v10782_v4  ;;  %v10848_v1 = vshrl.u32 %v20945_v52, 16  ;;  %v10846_v4 = vrot.slane %v10844_v60, 1 }
 0x351   : > { %18812 = vmatmul.mubr.msk.bf16.gmra.mrb[48].mxu0 %vm608_vm1, %v10687_v62  ;;  %v10767_v62 = vsel %vm1692_vm2, %v10762_v53, %v10766_v51  ;;  %v10791_v17 = vsel %vm1692_vm2, %v10786_v8, %v10790_v9  ;;  %v10850_v8 = vor.u32 %v10848_v1, %v10846_v4  ;;  %v10854_v9 = vrot.slane %v10852_v2, 1 }
 0x352   : > { %18815 = vmatprep.mubr.msk.bf16.mxu0 %vm608_vm1, %v10695_v0  ;;  %v10775_v0 = vsel %vm1692_vm2, %v10770_v55, %v10774_v56  ;;  %v10838_v56 = vrot.slane %v10836_v50, 1 }
 0x354   : > { %v10842_v6 = vor.u32 %v10840_v63, %v10838_v56 }
 0x359   : > { %18816 = vmatmul.mubr.msk.bf16.gmra.mrb[52].mxu0 %vm608_vm1, %v10703_v11 }
 0x35a   : > { %18819 = vmatprep.mubr.msk.bf16.mxu0 %vm608_vm1, %v10711_v13  ;;  %v10796_v13 = vshll.u32 %v20939_v5, 16  ;;  %v20947_v5 = vld [vmem:[%s21209_s14 + $0x1a0] sm:$0xff]  }
 0x35c   : > { %v10798_v20 = vrot.slane %v10796_v13, 1  ;;  %v10860_v13 = vshll.u32 %v20947_v5, 16 }
 0x35e   : > { %v10802_v24 = vor.u32 %v10800_v18, %v10798_v20  ;;  %v10799_v32 = vsel %vm1692_vm2, %v10794_v22, %v10798_v20  ;;  %v10864_v18 = vshrl.u32 %v20947_v5, 16  ;;  %v10862_v20 = vrot.slane %v10860_v13, 1 }
 0x35f   : > { %v10858_v22 = vor.u32 %v10856_v16, %v10854_v9  ;;  %v20958_v16 = vld [vmem:[%s21209_s14 + $0x50] sm:$0xff]  }
 0x361   : > { %18820 = vmatmul.mubr.msk.bf16.gmra.mrb[56].mxu0 %vm608_vm1, %v10719_v23 }
 0x362   : > { %18823 = vmatprep.mubr.msk.bf16.mxu0 %vm608_vm1, %v10727_v26  ;;  %v10806_v26 = vrot.slane %v10804_v19, 1  ;;  %v10868_v19 = vshll.u32 %v20948_v10, 16 }
 0x364   : > { %v10807_v3 = vsel %vm1692_vm2, %v10802_v24, %v10806_v26  ;;  %v10810_v38 = vor.u32 %v10808_v33, %v10806_v26  ;;  %v10866_v24 = vor.u32 %v10864_v18, %v10862_v20  ;;  %v10870_v26 = vrot.slane %v10868_v19, 1  ;;  %v20959_v18 = vld [vmem:[%s21209_s14 + $0x58] sm:$0xff]  }
 0x365   : > { %v10872_v33 = vshrl.u32 %v20948_v10, 16  ;;  %v12197_v19 = vrot.slane %v20958_v16, 1  ;;  %v12199_v21 = vrot.slane %v20959_v18, 1  ;;  %v20973_v16 = vld [vmem:[%s21209_s14 + $0xc8] sm:$0xff]  }
 0x366   : > { %v12227_v18 = vrot.slane %v20973_v16, 1 }
 0x369   : > { %18824 = vmatmul.mubr.msk.bf16.gmra.mrb[60].mxu0 %vm608_vm1, %v10735_v35  ;;  %v10820_v35 = vshll.u32 %v20942_v27, 16  ;;  %v20950_v27 = vld [vmem:[%s21209_s14 + $0x1b8] sm:$0xff]  }
 0x36a   : > { %18827 = vmatprep.mubr.msk.bf16.mxu0 %vm608_vm1, %v10743_v37  ;;  %v20943_v37 = vld [vmem:[%s21209_s14 + $0x180] sm:$0xff]  }
 0x36b   : > { %v10822_v41 = vrot.slane %v10820_v35, 1  ;;  %v10828_v45 = vshll.u32 %v20943_v37, 16  ;;  %v10832_v49 = vshrl.u32 %v20943_v37, 16  ;;  %v10884_v35 = vshll.u32 %v20950_v27, 16 }
 0x36c   : > { %v10874_v37 = vor.u32 %v10872_v33, %v10870_v26 }
 0x36d   : > { %v10830_v51 = vrot.slane %v10828_v45, 1  ;;  %v10826_v53 = vor.u32 %v10824_v47, %v10822_v41 }
 0x36f   : > { %v10834_v55 = vor.u32 %v10832_v49, %v10830_v51  ;;  %v20953_v49 = vld [vmem:[%s21209_s14 + $0x28] sm:$0xff]  }
 0x371   : > { %18828 = vmatmul.mubr.msk.bf16.gmra.mrb[64].mxu0 %vm608_vm1, %v10751_v25  ;;  %v10815_v25 = vsel %vm1692_vm2, %v10810_v38, %v10814_v36  ;;  %v10878_v36 = vrot.slane %v10876_v30, 1  ;;  %v20951_v38 = vld [vmem:[%s21209_s14 + $0x1c0] ss:$0 sps:$4 sm:$0x11]  }
 0x372   : > { %18831 = vmatprep.mubr.msk.bf16.mxu0 %vm608_vm1, %v10759_v48  ;;  %v10823_v48 = vsel %vm1692_vm2, %v10818_v40, %v10822_v41  ;;  %v10886_v41 = vrot.slane %v10884_v35, 1 }
 0x373   : > { %v10882_v40 = vor.u32 %v10880_v34, %v10878_v36  ;;  %v10879_v45 = vsel %vm1692_vm2, %v10874_v37, %v10878_v36  ;;  %v20962_v36 = vld [vmem:[%s21209_s14 + $0x70] sm:$0xff]  }
 0x374   : > { %v18381_v54 = vpop.f32.mrb[40].mxu1 }
 0x375   : > { %19419 = vst [vmem:[#allocation2 + $0x150] sm:$0xff] %v18381_v54  ;;  %v5148_v58 = vpop.f32.mrb[41].mxu1  ;;  %v10887_v47 = vsel %vm1692_vm2, %v10882_v40, %v10886_v41 }
 0x376   : > { %19422 = vst [vmem:[#allocation2 + $0x140] sm:$0xff] %v5148_v58  ;;  %v18382_v59 = vpop.f32.mrb[42].mxu1 }
 0x377   : > { %19425 = vst [vmem:[#allocation2 + $0x158] sm:$0xff] %v18382_v59  ;;  %v5151_v61 = vpop.f32.mrb[43].mxu1 }
 0x378   : > { %19428 = vst [vmem:[#allocation2 + $0x148] sm:$0xff] %v5151_v61 }
 0x379   : > { %18832 = vmatmul.mubr.msk.bf16.gmra.mrb[68].mxu0 %vm608_vm1, %v10767_v62  ;;  %v10831_v62 = vsel %vm1692_vm2, %v10826_v53, %v10830_v51 }
 0x37a   : > { %18835 = vmatprep.mubr.msk.bf16.mxu0 %vm608_vm1, %v10775_v0  ;;  %v10839_v0 = vsel %vm1692_vm2, %v10834_v55, %v10838_v56 }
 0x37c   : > { %v18385_v7 = vpop.f32.mrb[44].mxu1 }
 0x37d   : > { %19431 = vst [vmem:[#allocation2 + $0x170] sm:$0xff] %v18385_v7  ;;  %v5164_v11 = vpop.f32.mrb[45].mxu1 }
 0x37e   : > { %19434 = vst [vmem:[#allocation2 + $0x160] sm:$0xff] %v5164_v11  ;;  %v18386_v12 = vpop.f32.mrb[46].mxu1 }
 0x37f   : > { %19437 = vst [vmem:[#allocation2 + $0x178] sm:$0xff] %v18386_v12  ;;  %v5167_v14 = vpop.f32.mrb[47].mxu1 }
 0x380   : > { %19440 = vst [vmem:[#allocation2 + $0x168] sm:$0xff] %v5167_v14 }
 0x381   : > { %18836 = vmatmul.mubr.msk.bf16.gmra.mrb[72].mxu0 %vm608_vm1, %v10783_v15  ;;  %v10847_v15 = vsel %vm1692_vm2, %v10842_v6, %v10846_v4  ;;  %v20956_v6 = vld [vmem:[%s21209_s14 + $0x40] sm:$0xff]  }
 0x382   : > { %18839 = vmatprep.mubr.msk.bf16.mxu0 %vm608_vm1, %v10791_v17  ;;  %v10855_v17 = vsel %vm1692_vm2, %v10850_v8, %v10854_v9  ;;  %v20957_v8 = vld [vmem:[%s21209_s14 + $0x48] sm:$0xff]   ;;  %v12193_v9 = vrot.slane %v20956_v6, 1 }
 0x384   : > { %v18389_v23 = vpop.f32.mrb[48].mxu1 }
 0x385   : > { %19443 = vst [vmem:[#allocation2 + $0x190] sm:$0xff] %v18389_v23  ;;  %v5180_v28 = vpop.f32.mrb[49].mxu1 }
 0x386   : > { %19446 = vst [vmem:[#allocation2 + $0x180] sm:$0xff] %v5180_v28  ;;  %v18390_v29 = vpop.f32.mrb[50].mxu1 }
 0x387   : > { %19449 = vst [vmem:[#allocation2 + $0x198] sm:$0xff] %v18390_v29  ;;  %v5183_v31 = vpop.f32.mrb[51].mxu1 }
 0x388   : > { %19452 = vst [vmem:[#allocation2 + $0x188] sm:$0xff] %v5183_v31 }
 0x389   : > { %18840 = vmatmul.mubr.msk.bf16.gmra.mrb[76].mxu0 %vm608_vm1, %v10799_v32  ;;  %v10863_v32 = vsel %vm1692_vm2, %v10858_v22, %v10862_v20 }
 0x38a   : > { %18843 = vmatprep.mubr.msk.bf16.mxu0 %vm608_vm1, %v10807_v3  ;;  %v10871_v3 = vsel %vm1692_vm2, %v10866_v24, %v10870_v26 }
 0x38c   : > { %v18393_v39 = vpop.f32.mrb[52].mxu1 }
 0x38d   : > { %19455 = vst [vmem:[#allocation2 + $0x1b0] sm:$0xff] %v18393_v39  ;;  %v5196_v43 = vpop.f32.mrb[53].mxu1 }
 0x38e   : > { %19458 = vst [vmem:[#allocation2 + $0x1a0] sm:$0xff] %v5196_v43  ;;  %v18394_v44 = vpop.f32.mrb[54].mxu1 }
 0x38f   : > { %19461 = vst [vmem:[#allocation2 + $0x1b8] sm:$0xff] %v18394_v44  ;;  %v5199_v46 = vpop.f32.mrb[55].mxu1 }
 0x390   : > { %19464 = vst [vmem:[#allocation2 + $0x1a8] sm:$0xff] %v5199_v46  ;;  %v10888_v46 = vshrl.u32 %v20950_v27, 16  ;;  %v20960_v27 = vld [vmem:[%s21209_s14 + $0x60] sm:$0xff]  }
 0x391   : > { %18844 = vmatmul.mubr.msk.bf16.gmra.mrb[80].mxu0 %vm608_vm1, %v10815_v25  ;;  %v10892_v25 = vshll.u32 %v20951_v38, 16  ;;  %v12201_v30 = vrot.slane %v20960_v27, 1  ;;  %v20963_v38 = vld [vmem:[%s21209_s14 + $0x78] sm:$0xff]   ;;  %v20976_v27 = vld [vmem:[%s21209_s14 + $0xe0] sm:$0xff]  }
 0x392   : > { %18847 = vmatprep.mubr.msk.bf16.mxu0 %vm608_vm1, %v10823_v48  ;;  %v20952_v48 = vld [vmem:[%s21209_s14 + $0x20] sm:$0xfe]   ;;  %v10890_v50 = vor.u32 %v10888_v46, %v10886_v41  ;;  %v12207_v41 = vrot.slane %v20963_v38, 1 }
 0x393   : > { %v10894_v51 = vrot.slane %v10892_v25, 1  ;;  %v12186_v53 = vrot.slane %v20952_v48, 1  ;;  %v12202_v35 = vsel %vm3403_vm3, %v12199_v21, %v12201_v30  ;;  %v20964_v46 = vld [vmem:[%s21209_s14 + $0x80] sm:$0xff]  }
 0x394   : > { %v18397_v54 = vpop.f32.mrb[56].mxu1  ;;  %v12209_v48 = vrot.slane %v20964_v46, 1  ;;  %v20980_v38 = vld [vmem:[%s21209_s14 + $0x100] sm:$0xff]   ;;  %v21006_v46 = vld [vmem:[#allocation5 + $0x8] sm:$0xff]  }
 0x395   : > { %19467 = vst [vmem:[#allocation2 + $0x1d0] sm:$0xff] %v18397_v54  ;;  %v5212_v58 = vpop.f32.mrb[57].mxu1  ;;  %v12187_v54 = vrot.slane %v20953_v49, 1 }
 0x396   : > { %19470 = vst [vmem:[#allocation2 + $0x1c0] sm:$0xff] %v5212_v58  ;;  %v18398_v59 = vpop.f32.mrb[58].mxu1  ;;  %v10895_v58 = vsel %vm1692_vm2, %v10890_v50, %v10894_v51 }
 0x397   : > { %19473 = vst [vmem:[#allocation2 + $0x1d8] sm:$0xff] %v18398_v59  ;;  %v5215_v61 = vpop.f32.mrb[59].mxu1  ;;  %v20954_v59 = vld [vmem:[%s21209_s14 + $0x30] sm:$0xff]   ;;  %v12188_v60 = vsel %vm3403_vm3, %v12186_v53, %v12187_v54 }
 0x398   : > { %19476 = vst [vmem:[#allocation2 + $0x1c8] sm:$0xff] %v5215_v61  ;;  %v20955_v61 = vld [vmem:[%s21209_s14 + $0x38] sm:$0xff]  }
 0x399   : > { %18848 = vmatmul.mubr.msk.bf16.gmra.mrb[84].mxu0 %vm608_vm1, %v10831_v62  ;;  %v12189_v62 = vrot.slane %v20954_v59, 1 }
 0x39a   : > { %18851 = vmatprep.mubr.msk.bf16.mxu0 %vm608_vm1, %v10839_v0  ;;  %v12191_v0 = vrot.slane %v20955_v61, 1 }
 0x39b   : > { %v12190_v5 = vsel %vm3403_vm3, %v12187_v54, %v12189_v62  ;;  %v12210_v54 = vsel %vm3403_vm3, %v12207_v41, %v12209_v48 }
 0x39c   : > { %v18401_v7 = vpop.f32.mrb[60].mxu1 }
 0x39d   : > { %19479 = vst [vmem:[#allocation2 + $0x1f0] sm:$0xff] %v18401_v7  ;;  %v5228_v11 = vpop.f32.mrb[61].mxu1  ;;  %v12192_v7 = vsel %vm3403_vm3, %v12189_v62, %v12191_v0 }
 0x39e   : > { %19482 = vst [vmem:[#allocation2 + $0x1e0] sm:$0xff] %v5228_v11  ;;  %v18402_v12 = vpop.f32.mrb[62].mxu1  ;;  %v12195_v11 = vrot.slane %v20957_v8, 1  ;;  %v20970_v8 = vld [vmem:[%s21209_s14 + $0xb0] sm:$0xff]  }
 0x39f   : > { %19485 = vst [vmem:[#allocation2 + $0x1f8] sm:$0xff] %v18402_v12  ;;  %v5231_v14 = vpop.f32.mrb[63].mxu1 }
 0x3a0   : > { %19488 = vst [vmem:[#allocation2 + $0x1e8] sm:$0xff] %v5231_v14  ;;  %v12198_v26 = vsel %vm3403_vm3, %v12195_v11, %v12197_v19 }
 0x3a1   : > { %18852 = vmatmul.mubr.msk.bf16.gmra.mrb[88].mxu0 %vm608_vm1, %v10847_v15  ;;  %v12194_v15 = vsel %vm3403_vm3, %v12191_v0, %v12193_v9 }
 0x3a2   : > { %18855 = vmatprep.mubr.msk.bf16.mxu0 %vm608_vm1, %v10855_v17  ;;  %v12196_v17 = vsel %vm3403_vm3, %v12193_v9, %v12195_v11  ;;  %v12221_v11 = vrot.slane %v20970_v8, 1  ;;  %v20989_v8 = vld [vmem:[%s21209_s14 + $0x148] sm:$0xff]  }
 0x3a4   : > { %v18405_v23 = vpop.f32.mrb[64].mxu1 }
 0x3a5   : > { %19491 = vst [vmem:[#allocation2 + $0x210] sm:$0xff] %v18405_v23  ;;  %v5244_v28 = vpop.f32.mrb[65].mxu1 }
 0x3a6   : > { %19494 = vst [vmem:[#allocation2 + $0x200] sm:$0xff] %v5244_v28  ;;  %v18406_v29 = vpop.f32.mrb[66].mxu1  ;;  %v12200_v28 = vsel %vm3403_vm3, %v12197_v19, %v12199_v21 }
 0x3a7   : > { %19497 = vst [vmem:[#allocation2 + $0x218] sm:$0xff] %v18406_v29  ;;  %v5247_v31 = vpop.f32.mrb[67].mxu1  ;;  %v20961_v29 = vld [vmem:[%s21209_s14 + $0x68] sm:$0xff]  }
 0x3a8   : > { %19500 = vst [vmem:[#allocation2 + $0x208] sm:$0xff] %v5247_v31 }
 0x3a9   : > { %18856 = vmatmul.mubr.msk.bf16.gmra.mrb[92].mxu0 %vm608_vm1, %v10863_v32  ;;  %v12203_v32 = vrot.slane %v20961_v29, 1  ;;  %v20977_v29 = vld [vmem:[%s21209_s14 + $0xe8] sm:$0xff]  }
 0x3aa   : > { %18859 = vmatprep.mubr.msk.bf16.mxu0 %vm608_vm1, %v10871_v3 }
 0x3ab   : > { %v12204_v37 = vsel %vm3403_vm3, %v12201_v30, %v12203_v32  ;;  %v12233_v30 = vrot.slane %v20976_v27, 1  ;;  %v20995_v27 = vld [vmem:[%s21209_s14 + $0x178] sm:$0xff]  }
 0x3ac   : > { %v18409_v39 = vpop.f32.mrb[68].mxu1 }
 0x3ad   : > { %19503 = vst [vmem:[#allocation2 + $0x230] sm:$0xff] %v18409_v39  ;;  %v5260_v42 = vpop.f32.mrb[69].mxu1  ;;  %v12205_v39 = vrot.slane %v20962_v36, 1 }
 0x3ae   : > { %19506 = vst [vmem:[#allocation2 + $0x220] sm:$0xff] %v5260_v42  ;;  %v18410_v43 = vpop.f32.mrb[70].mxu1 }
 0x3af   : > { %19509 = vst [vmem:[#allocation2 + $0x238] sm:$0xff] %v18410_v43  ;;  %v5263_v44 = vpop.f32.mrb[71].mxu1  ;;  %v12208_v25 = vsel %vm3403_vm3, %v12205_v39, %v12207_v41  ;;  %v12241_v41 = vrot.slane %v20980_v38, 1  ;;  %v20999_v38 = vld [vmem:[%s21209_s14 + $0x198] sm:$0xff]  }
 0x3b0   : > { %19512 = vst [vmem:[#allocation2 + $0x228] sm:$0xff] %v5263_v44 }
 0x3b1   : > { %18860 = vmatmul.mubr.msk.bf16.gmra.mrb[96].mxu0 %vm608_vm1, %v10879_v45  ;;  %v12206_v45 = vsel %vm3403_vm3, %v12203_v32, %v12205_v39 }
 0x3b2   : > { %18863 = vmatprep.mubr.msk.bf16.mxu0 %vm608_vm1, %v10887_v47  ;;  %v20965_v47 = vld [vmem:[%s21209_s14 + $0x88] sm:$0xff]  }
 0x3b3   : > { %v12211_v50 = vrot.slane %v20965_v47, 1  ;;  %v20983_v47 = vld [vmem:[%s21209_s14 + $0x118] sm:$0xff]  }
 0x3b4   : > { %v18413_v52 = vpop.f32.mrb[72].mxu1 }
 0x3b5   : > { %19515 = vst [vmem:[#allocation2 + $0x250] sm:$0xff] %v18413_v52  ;;  %v5276_v55 = vpop.f32.mrb[73].mxu1 }
 0x3b6   : > { %19518 = vst [vmem:[#allocation2 + $0x240] sm:$0xff] %v5276_v55  ;;  %v18414_v56 = vpop.f32.mrb[74].mxu1  ;;  %v20966_v55 = vld [vmem:[%s21209_s14 + $0x90] sm:$0xff]  }
 0x3b7   : > { %19521 = vst [vmem:[#allocation2 + $0x258] sm:$0xff] %v18414_v56  ;;  %v5279_v57 = vpop.f32.mrb[75].mxu1  ;;  %v12212_v56 = vsel %vm3403_vm3, %v12209_v48, %v12211_v50 }
 0x3b8   : > { %19524 = vst [vmem:[#allocation2 + $0x248] sm:$0xff] %v5279_v57  ;;  %v20967_v57 = vld [vmem:[%s21209_s14 + $0x98] sm:$0xff]  }
 0x3b9   : > { %18864 = vmatmul.mubr.msk.bf16.gmra.mrb[100].mxu0 %vm608_vm1, %v10895_v58  ;;  %v12213_v58 = vrot.slane %v20966_v55, 1  ;;  %v20985_v55 = vld [vmem:[%s21209_s14 + $0x128] sm:$0xff]  }
 0x3ba   : > { %18869 = vmatprep.mubr.msk.bf16.mxu0 %vm608_vm1, %v12188_v60  ;;  %v12215_v60 = vrot.slane %v20967_v57, 1  ;;  %v21009_v57 = vld [vmem:[#allocation5 + $0x20] sm:$0xff]  }
 0x3bb   : > { %v12214_v0 = vsel %vm3403_vm3, %v12211_v50, %v12213_v58  ;;  %v12247_v50 = vrot.slane %v20983_v47, 1  ;;  %v21002_v47 = vld [vmem:[%s21209_s14 + $0x1b0] sm:$0xff]  }
 0x3bc   : > { %v18417_v63 = vpop.f32.mrb[76].mxu1 }
 0x3bd   : > { %19527 = vst [vmem:[#allocation2 + $0x270] sm:$0xff] %v18417_v63  ;;  %v5292_v1 = vpop.f32.mrb[77].mxu1 }
 0x3be   : > { %19530 = vst [vmem:[#allocation2 + $0x260] sm:$0xff] %v5292_v1  ;;  %v18418_v2 = vpop.f32.mrb[78].mxu1  ;;  %v20968_v1 = vld [vmem:[%s21209_s14 + $0xa0] sm:$0xff]  }
 0x3bf   : > { %19533 = vst [vmem:[#allocation2 + $0x278] sm:$0xff] %v18418_v2  ;;  %v5295_v4 = vpop.f32.mrb[79].mxu1  ;;  %v12216_v2 = vsel %vm3403_vm3, %v12213_v58, %v12215_v60  ;;  %v12251_v58 = vrot.slane %v20985_v55, 1 }
 0x3c0   : > { %19536 = vst [vmem:[#allocation2 + $0x268] sm:$0xff] %v5295_v4  ;;  %v20969_v4 = vld [vmem:[%s21209_s14 + $0xa8] sm:$0xff]  }
 0x3c1   : > { %18870 = vmatmul.mubr.msk.bf16.vlgmr.msra.gmra.mrb[0].mxu0 %vm608_vm1, %v12190_v5  ;;  %v12217_v5 = vrot.slane %v20968_v1, 1  ;;  %v12219_v6 = vrot.slane %v20969_v4, 1  ;;  %v21011_v1 = vld [vmem:[#allocation5 + $0x30] sm:$0xff]  }
 0x3c2   : > { %18873 = vmatprep.mubr.msk.bf16.mxu0 %vm608_vm1, %v12192_v7 }
 0x3c3   : > { %v12218_v7 = vsel %vm3403_vm3, %v12215_v60, %v12217_v5  ;;  %v12220_v9 = vsel %vm3403_vm3, %v12217_v5, %v12219_v6  ;;  %v20986_v60 = vld [vmem:[%s21209_s14 + $0x130] sm:$0xff]   ;;  %v20988_v5 = vld [vmem:[%s21209_s14 + $0x140] sm:$0xff]  }
 0x3c4   : > { %v18421_v10 = vpop.f32.mrb[80].mxu1 }
 0x3c5   : > { %19539 = vst [vmem:[#allocation2 + $0x290] sm:$0xff] %v18421_v10  ;;  %v5308_v12 = vpop.f32.mrb[81].mxu1  ;;  %v20971_v10 = vld [vmem:[%s21209_s14 + $0xb8] sm:$0xff]  }
 0x3c6   : > { %19542 = vst [vmem:[#allocation2 + $0x280] sm:$0xff] %v5308_v12  ;;  %v18422_v13 = vpop.f32.mrb[82].mxu1  ;;  %v12223_v12 = vrot.slane %v20971_v10, 1  ;;  %v12259_v10 = vrot.slane %v20989_v8, 1 }
 0x3c7   : > { %19545 = vst [vmem:[#allocation2 + $0x298] sm:$0xff] %v18422_v13  ;;  %v5311_v14 = vpop.f32.mrb[83].mxu1  ;;  %v12222_v13 = vsel %vm3403_vm3, %v12219_v6, %v12221_v11  ;;  %v21012_v6 = vld [vmem:[#allocation5 + $0x38] sm:$0xff]  }
 0x3c8   : > { %19548 = vst [vmem:[#allocation2 + $0x288] sm:$0xff] %v5311_v14  ;;  %v20972_v14 = vld [vmem:[%s21209_s14 + $0xc0] sm:$0xff]  }
 0x3c9   : > { %18874 = vmatmul.mubr.msk.bf16.gmra.mrb[4].mxu0 %vm608_vm1, %v12194_v15  ;;  %v12224_v15 = vsel %vm3403_vm3, %v12221_v11, %v12223_v12 }
 0x3ca   : > { %18877 = vmatprep.mubr.msk.bf16.mxu0 %vm608_vm1, %v12196_v17  ;;  %v12225_v17 = vrot.slane %v20972_v14, 1  ;;  %v20991_v14 = vld [vmem:[%s21209_s14 + $0x158] sm:$0xff]  }
 0x3cb   : > { %v12263_v16 = vrot.slane %v20991_v14, 1 }
 0x3cc   : > { %v18425_v20 = vpop.f32.mrb[84].mxu1  ;;  %v12226_v19 = vsel %vm3403_vm3, %v12223_v12, %v12225_v17  ;;  %v12228_v21 = vsel %vm3403_vm3, %v12225_v17, %v12227_v18  ;;  %v20990_v12 = vld [vmem:[%s21209_s14 + $0x150] sm:$0xff]  }
 0x3cd   : > { %19551 = vst [vmem:[#allocation2 + $0x2b0] sm:$0xff] %v18425_v20  ;;  %v5324_v22 = vpop.f32.mrb[85].mxu1  ;;  %v20974_v20 = vld [vmem:[%s21209_s14 + $0xd0] sm:$0xff]  }
 0x3ce   : > { %19554 = vst [vmem:[#allocation2 + $0x2a0] sm:$0xff] %v5324_v22  ;;  %v18426_v23 = vpop.f32.mrb[86].mxu1  ;;  %v20975_v22 = vld [vmem:[%s21209_s14 + $0xd8] sm:$0xff]  }
 0x3cf   : > { %19557 = vst [vmem:[#allocation2 + $0x2b8] sm:$0xff] %v18426_v23  ;;  %v5327_v24 = vpop.f32.mrb[87].mxu1  ;;  %v12229_v23 = vrot.slane %v20974_v20, 1  ;;  %v20993_v20 = vld [vmem:[%s21209_s14 + $0x168] sm:$0xff]  }
 0x3d0   : > { %19560 = vst [vmem:[#allocation2 + $0x2a8] sm:$0xff] %v5327_v24  ;;  %v12231_v24 = vrot.slane %v20975_v22, 1  ;;  %v12267_v22 = vrot.slane %v20993_v20, 1 }
 0x3d1   : > { %18878 = vmatmul.mubr.msk.bf16.gmra.mrb[8].mxu0 %vm608_vm1, %v12198_v26  ;;  %v12230_v26 = vsel %vm3403_vm3, %v12227_v18, %v12229_v23  ;;  %v20992_v18 = vld [vmem:[%s21209_s14 + $0x160] sm:$0xff]  }
 0x3d2   : > { %18881 = vmatprep.mubr.msk.bf16.mxu0 %vm608_vm1, %v12200_v28  ;;  %v12232_v28 = vsel %vm3403_vm3, %v12229_v23, %v12231_v24  ;;  %v12234_v32 = vsel %vm3403_vm3, %v12231_v24, %v12233_v30  ;;  %v20994_v24 = vld [vmem:[%s21209_s14 + $0x170] sm:$0xff]  }
 0x3d4   : > { %v18429_v31 = vpop.f32.mrb[88].mxu1 }
 0x3d5   : > { %19563 = vst [vmem:[#allocation2 + $0x2d0] sm:$0xff] %v18429_v31  ;;  %v5340_v33 = vpop.f32.mrb[89].mxu1  ;;  %v12235_v31 = vrot.slane %v20977_v29, 1  ;;  %v12271_v29 = vrot.slane %v20995_v27, 1 }
 0x3d6   : > { %19566 = vst [vmem:[#allocation2 + $0x2c0] sm:$0xff] %v5340_v33  ;;  %v18430_v3 = vpop.f32.mrb[90].mxu1  ;;  %v20978_v33 = vld [vmem:[%s21209_s14 + $0xf0] sm:$0xff]  }
 0x3d7   : > { %19569 = vst [vmem:[#allocation2 + $0x2d8] sm:$0xff] %v18430_v3  ;;  %v5343_v34 = vpop.f32.mrb[91].mxu1  ;;  %v12236_v3 = vsel %vm3403_vm3, %v12233_v30, %v12235_v31 }
 0x3d8   : > { %19572 = vst [vmem:[#allocation2 + $0x2c8] sm:$0xff] %v5343_v34  ;;  %v20979_v34 = vld [vmem:[%s21209_s14 + $0xf8] sm:$0xff]  }
 0x3d9   : > { %18882 = vmatmul.mubr.msk.bf16.gmra.mrb[12].mxu0 %vm608_vm1, %v12202_v35  ;;  %v12237_v35 = vrot.slane %v20978_v33, 1  ;;  %v12239_v36 = vrot.slane %v20979_v34, 1  ;;  %v20997_v33 = vld [vmem:[%s21209_s14 + $0x188] sm:$0xff]  }
 0x3da   : > { %18885 = vmatprep.mubr.msk.bf16.mxu0 %vm608_vm1, %v12204_v37  ;;  %v12275_v34 = vrot.slane %v20997_v33, 1  ;;  %v19333_v33 = vld [vmem:[#allocation2 + $0x48] sm:$0xff] }
 0x3db   : > { %v12238_v37 = vsel %vm3403_vm3, %v12235_v31, %v12237_v35  ;;  %v12240_v39 = vsel %vm3403_vm3, %v12237_v35, %v12239_v36  ;;  %v20996_v31 = vld [vmem:[%s21209_s14 + $0x180] sm:$0xff]  }
 0x3dc   : > { %v18433_v40 = vpop.f32.mrb[92].mxu1 }
 0x3dd   : > { %19575 = vst [vmem:[#allocation2 + $0x2f0] sm:$0xff] %v18433_v40  ;;  %v5356_v42 = vpop.f32.mrb[93].mxu1  ;;  %v20981_v40 = vld [vmem:[%s21209_s14 + $0x108] sm:$0xff]  }
 0x3de   : > { %19578 = vst [vmem:[#allocation2 + $0x2e0] sm:$0xff] %v5356_v42  ;;  %v18434_v43 = vpop.f32.mrb[94].mxu1  ;;  %v21005_v42 = vld [vmem:[#allocation5] sm:$0xff]  }
 0x3df   : > { %19581 = vst [vmem:[#allocation2 + $0x2f8] sm:$0xff] %v18434_v43  ;;  %v5359_v44 = vpop.f32.mrb[95].mxu1  ;;  %v12243_v43 = vrot.slane %v20981_v40, 1  ;;  %18973 = vmatprep.subr.bf16.mxu1 %v21005_v42  ;;  %v12279_v40 = vrot.slane %v20999_v38, 1 }
 0x3e0   : > { %19584 = vst [vmem:[#allocation2 + $0x2e8] sm:$0xff] %v5359_v44  ;;  %18974 = vmatpush3.bf16.msra.mxu1 %v21005_v42  ;;  %v12242_v44 = vsel %vm3403_vm3, %v12239_v36, %v12241_v41  ;;  %v20998_v36 = vld [vmem:[%s21209_s14 + $0x190] sm:$0xff]   ;;  %v21000_v42 = vld [vmem:[%s21209_s14 + $0x1a0] sm:$0xff]  }
 0x3e1   : > { %18886 = vmatmul.mubr.msk.bf16.gmra.mrb[16].mxu0 %vm608_vm1, %v12206_v45  ;;  %v20982_v45 = vld [vmem:[%s21209_s14 + $0x110] sm:$0xff]   ;;  %18975 = vmatprep.subr.bf16.mxu1 %v21006_v46 }
 0x3e2   : > { %18889 = vmatprep.mubr.msk.bf16.mxu0 %vm608_vm1, %v12208_v25  ;;  %v12244_v25 = vsel %vm3403_vm3, %v12241_v41, %v12243_v43  ;;  %v12245_v48 = vrot.slane %v20982_v45, 1  ;;  %v12281_v45 = vrot.slane %v21000_v42, 1  ;;  %v22531_v42 = vld [vmem:[%s22911_s2] ss:$0 sm:$0xff] }
 0x3e4   : > { %v18437_v49 = vpop.f32.mrb[96].mxu1  ;;  %18976 = vmatpush3.bf16.msra.mxu1 %v21006_v46 }
 0x3e5   : > { %19587 = vst [vmem:[#allocation2 + $0x310] sm:$0xff] %v18437_v49  ;;  %v5372_v51 = vpop.f32.mrb[97].mxu1  ;;  %v21007_v49 = vld [vmem:[#allocation5 + $0x10] sm:$0xff]  }
 0x3e6   : > { %19590 = vst [vmem:[#allocation2 + $0x300] sm:$0xff] %v5372_v51  ;;  %v18438_v52 = vpop.f32.mrb[98].mxu1  ;;  %18977 = vmatprep.subr.bf16.mxu1 %v21007_v49  ;;  %v12246_v51 = vsel %vm3403_vm3, %v12243_v43, %v12245_v48 }
 0x3e7   : > { %19593 = vst [vmem:[#allocation2 + $0x318] sm:$0xff] %v18438_v52  ;;  %v5375_v53 = vpop.f32.mrb[99].mxu1  ;;  %v20984_v52 = vld [vmem:[%s21209_s14 + $0x120] sm:$0xff]  }
 0x3e8   : > { %19596 = vst [vmem:[#allocation2 + $0x308] sm:$0xff] %v5375_v53  ;;  %18978 = vmatpush3.bf16.msra.mxu1 %v21007_v49  ;;  %v21008_v53 = vld [vmem:[#allocation5 + $0x18] sm:$0xff]   ;;  %v21003_v49 = vld [vmem:[%s21209_s14 + $0x1b8] sm:$0xff]  }
 0x3e9   : > { %18890 = vmatmul.mubr.msk.bf16.gmra.mrb[20].mxu0 %vm608_vm1, %v12210_v54  ;;  %v12248_v54 = vsel %vm3403_vm3, %v12245_v48, %v12247_v50  ;;  %18979 = vmatprep.subr.bf16.mxu1 %v21008_v53 }
 0x3ea   : > { %18893 = vmatprep.mubr.msk.bf16.mxu0 %vm608_vm1, %v12212_v56  ;;  %v12249_v56 = vrot.slane %v20984_v52, 1 }
 0x3ec   : > { %v18441_v59 = vpop.f32.mrb[100].mxu1  ;;  %18980 = vmatpush3.bf16.msra.mxu1 %v21008_v53  ;;  %v21004_v53 = vld [vmem:[%s21209_s14 + $0x1c0] ss:$0 sps:$4 sm:$0x11]  }
 0x3ed   : > { %19599 = vst [vmem:[#allocation2 + $0x330] sm:$0xff] %v18441_v59  ;;  %v5388_v61 = vpop.f32.mrb[101].mxu1  ;;  %18981 = vmatprep.subr.bf16.mxu1 %v21009_v57  ;;  %v12250_v59 = vsel %vm3403_vm3, %v12247_v50, %v12249_v56  ;;  %v12285_v50 = vrot.slane %v21002_v47, 1  ;;  %v12289_v55 = vrot.slane %v21004_v53, 1  ;;  %v19342_v53 = vld [vmem:[#allocation2 + $0x78] sm:$0xff] }
 0x3ee   : > { %19602 = vst [vmem:[#allocation2 + $0x320] sm:$0xff] %v5388_v61  ;;  %v18442_v62 = vpop.f32.mrb[102].mxu1  ;;  %v21010_v61 = vld [vmem:[#allocation5 + $0x28] sm:$0xff]  }
 0x3ef   : > { %19605 = vst [vmem:[#allocation2 + $0x338] sm:$0xff] %v18442_v62  ;;  %v5391_v63 = vpop.f32.mrb[103].mxu1  ;;  %v12252_v62 = vsel %vm3403_vm3, %v12249_v56, %v12251_v58 }
 0x3f0   : > { %19608 = vst [vmem:[#allocation2 + $0x328] sm:$0xff] %v5391_v63  ;;  %18982 = vmatpush3.bf16.msra.mxu1 %v21009_v57  ;;  %v20987_v63 = vld [vmem:[%s21209_s14 + $0x138] sm:$0xff]  }
 0x3f1   : > { %18894 = vmatmul.mubr.msk.bf16.gmra.mrb[24].mxu0 %vm608_vm1, %v12214_v0  ;;  %18983 = vmatprep.subr.bf16.mxu1 %v21010_v61  ;;  %v12253_v0 = vrot.slane %v20986_v60, 1 }
 0x3f2   : > { %18897 = vmatprep.mubr.msk.bf16.mxu0 %vm608_vm1, %v12216_v2  ;;  %v12255_v2 = vrot.slane %v20987_v63, 1 }
 0x3f3   : > { %v12254_v4 = vsel %vm3403_vm3, %v12251_v58, %v12253_v0  ;;  %v19300_v58 = vld [vmem:[#allocation2 + $0x10] sm:$0xff] }
 0x3f4   : > { %18984 = vmatpush3.bf16.msra.mxu1 %v21010_v61  ;;  %v19303_v61 = vld [vmem:[#allocation2] sm:$0xff] }
 0x3f5   : > { %18985 = vmatprep.subr.bf16.mxu1 %v21011_v1 }
 0x3f8   : > { %18986 = vmatpush3.bf16.msra.mxu1 %v21011_v1 }
 0x3f9   : > { %18898 = vmatmul.mubr.msk.bf16.gmra.mrb[28].mxu0 %vm608_vm1, %v12218_v7  ;;  %v12256_v7 = vsel %vm3403_vm3, %v12253_v0, %v12255_v2  ;;  %18987 = vmatprep.subr.bf16.mxu1 %v21012_v6  ;;  %v19306_v0 = vld [vmem:[#allocation2 + $0x18] sm:$0xff] }
 0x3fa   : > { %18901 = vmatprep.mubr.msk.bf16.mxu0 %vm608_vm1, %v12220_v9  ;;  %v12257_v9 = vrot.slane %v20988_v5, 1 }
 0x3fc   : > { %18988 = vmatpush3.bf16.msra.mxu1 %v21012_v6  ;;  %v12258_v11 = vsel %vm3403_vm3, %v12255_v2, %v12257_v9 }
 0x401   : > { %18902 = vmatmul.mubr.msk.bf16.gmra.mrb[32].mxu0 %vm608_vm1, %v12222_v13  ;;  %v12260_v13 = vsel %vm3403_vm3, %v12257_v9, %v12259_v10 }
 0x402   : > { %18905 = vmatprep.mubr.msk.bf16.mxu0 %vm608_vm1, %v12224_v15  ;;  %v12261_v15 = vrot.slane %v20990_v12, 1 }
 0x404   : > { %v12262_v17 = vsel %vm3403_vm3, %v12259_v10, %v12261_v15  ;;  %v19315_v10 = vld [vmem:[#allocation2 + $0x20] sm:$0xff] }
 0x409   : > { %18906 = vmatmul.mubr.msk.bf16.gmra.mrb[36].mxu0 %vm608_vm1, %v12226_v19  ;;  %v12264_v19 = vsel %vm3403_vm3, %v12261_v15, %v12263_v16 }
 0x40a   : > { %18909 = vmatprep.mubr.msk.bf16.mxu0 %vm608_vm1, %v12228_v21  ;;  %v12265_v21 = vrot.slane %v20992_v18, 1 }
 0x40c   : > { %v12266_v23 = vsel %vm3403_vm3, %v12263_v16, %v12265_v21  ;;  %v19321_v16 = vld [vmem:[#allocation2 + $0x28] sm:$0xff] }
 0x411   : > { %18910 = vmatmul.mubr.msk.bf16.gmra.mrb[40].mxu0 %vm608_vm1, %v12230_v26  ;;  %v12268_v26 = vsel %vm3403_vm3, %v12265_v21, %v12267_v22 }
 0x412   : > { %18913 = vmatprep.mubr.msk.bf16.mxu0 %vm608_vm1, %v12232_v28  ;;  %v12269_v28 = vrot.slane %v20994_v24, 1 }
 0x414   : > { %v12270_v30 = vsel %vm3403_vm3, %v12267_v22, %v12269_v28  ;;  %v19327_v22 = vld [vmem:[#allocation2 + $0x40] sm:$0xff] }
 0x419   : > { %18914 = vmatmul.mubr.msk.bf16.gmra.mrb[44].mxu0 %vm608_vm1, %v12234_v32  ;;  %v12272_v32 = vsel %vm3403_vm3, %v12269_v28, %v12271_v29  ;;  %v19330_v28 = vld [vmem:[#allocation2 + $0x58] sm:$0xff] }
 0x41a   : > { %18917 = vmatprep.mubr.msk.bf16.mxu0 %vm608_vm1, %v12236_v3  ;;  %v12273_v3 = vrot.slane %v20996_v31, 1 }
 0x41c   : > { %v12274_v35 = vsel %vm3403_vm3, %v12271_v29, %v12273_v3 }
 0x421   : > { %18918 = vmatmul.mubr.msk.bf16.gmra.mrb[48].mxu0 %vm608_vm1, %v12238_v37  ;;  %v12276_v37 = vsel %vm3403_vm3, %v12273_v3, %v12275_v34 }
 0x422   : > { %18921 = vmatprep.mubr.msk.bf16.mxu0 %vm608_vm1, %v12240_v39  ;;  %v12277_v39 = vrot.slane %v20998_v36, 1 }
 0x424   : > { %v12278_v41 = vsel %vm3403_vm3, %v12275_v34, %v12277_v39  ;;  %v12280_v43 = vsel %vm3403_vm3, %v12277_v39, %v12279_v40 }
 0x429   : > { %18922 = vmatmul.mubr.msk.bf16.gmra.mrb[52].mxu0 %vm608_vm1, %v12242_v44  ;;  %v21001_v44 = vld [vmem:[%s21209_s14 + $0x1a8] sm:$0xff]  }
 0x42a   : > { %18925 = vmatprep.mubr.msk.bf16.mxu0 %vm608_vm1, %v12244_v25  ;;  %v12283_v46 = vrot.slane %v21001_v44, 1  ;;  %v12282_v25 = vsel %vm3403_vm3, %v12279_v40, %v12281_v45 }
 0x42c   : > { %v12284_v48 = vsel %vm3403_vm3, %v12281_v45, %v12283_v46  ;;  %v12286_v52 = vsel %vm3403_vm3, %v12283_v46, %v12285_v50  ;;  %v19336_v46 = vld [vmem:[#allocation2 + $0x70] sm:$0xff] }
 0x431   : > { %18926 = vmatmul.mubr.msk.bf16.gmra.mrb[56].mxu0 %vm608_vm1, %v12246_v51  ;;  %v12287_v51 = vrot.slane %v21003_v49, 1  ;;  %v19339_v49 = vld [vmem:[#allocation2 + $0x60] sm:$0xff] }
 0x432   : > { %18929 = vmatprep.mubr.msk.bf16.mxu0 %vm608_vm1, %v12248_v54 }
 0x433   : > { %v12288_v54 = vsel %vm3403_vm3, %v12285_v50, %v12287_v51  ;;  %v12290_v56 = vsel %vm3403_vm3, %v12287_v51, %v12289_v55 }
 0x439   : > { %18930 = vmatmul.mubr.msk.bf16.gmra.mrb[60].mxu0 %vm608_vm1, %v12250_v59 }
 0x43a   : > { %18933 = vmatprep.mubr.msk.bf16.mxu0 %vm608_vm1, %v12252_v62 }
 0x441   : > { %18934 = vmatmul.mubr.msk.bf16.gmra.mrb[64].mxu0 %vm608_vm1, %v12254_v4  ;;  %v19309_v4 = vld [vmem:[#allocation2 + $0x8] sm:$0xff] }
 0x442   : > { %18937 = vmatprep.mubr.msk.bf16.mxu0 %vm608_vm1, %v12256_v7  ;;  %v19312_v7 = vld [vmem:[#allocation2 + $0x30] sm:$0xff] }
 0x449   : > { %18938 = vmatmul.mubr.msk.bf16.gmra.mrb[68].mxu0 %vm608_vm1, %v12258_v11 }
 0x44a   : > { %18941 = vmatprep.mubr.msk.bf16.mxu0 %vm608_vm1, %v12260_v13  ;;  %v19318_v13 = vld [vmem:[#allocation2 + $0x38] sm:$0xff] }
 0x451   : > { %18942 = vmatmul.mubr.msk.bf16.gmra.mrb[72].mxu0 %vm608_vm1, %v12262_v17 }
 0x452   : > { %18945 = vmatprep.mubr.msk.bf16.mxu0 %vm608_vm1, %v12264_v19  ;;  %v19324_v19 = vld [vmem:[#allocation2 + $0x50] sm:$0xff] }
 0x459   : > { %18946 = vmatmul.mubr.msk.bf16.gmra.mrb[76].mxu0 %vm608_vm1, %v12266_v23 }
 0x45a   : > { %18949 = vmatprep.mubr.msk.bf16.mxu0 %vm608_vm1, %v12268_v26 }
 0x461   : > { %18950 = vmatmul.mubr.msk.bf16.gmra.mrb[80].mxu0 %vm608_vm1, %v12270_v30 }
 0x462   : > { %18953 = vmatprep.mubr.msk.bf16.mxu0 %vm608_vm1, %v12272_v32 }
 0x469   : > { %18954 = vmatmul.mubr.msk.bf16.gmra.mrb[84].mxu0 %vm608_vm1, %v12274_v35 }
 0x46a   : > { %18957 = vmatprep.mubr.msk.bf16.mxu0 %vm608_vm1, %v12276_v37 }
 0x471   : > { %18958 = vmatmul.mubr.msk.bf16.gmra.mrb[88].mxu0 %vm608_vm1, %v12278_v41 }
 0x472   : > { %18961 = vmatprep.mubr.msk.bf16.mxu0 %vm608_vm1, %v12280_v43  ;;  %v22533_v43 = vld [vmem:[#allocation5 + $0x40] sm:$0xff]  }
 0x473   : > { %19009 = vmatprep.subr.bf16.mxu1 %v22533_v43 }
 0x479   : > { %18962 = vmatmul.mubr.msk.bf16.gmra.mrb[92].mxu0 %vm608_vm1, %v12282_v25 }
 0x47a   : > { %18965 = vmatprep.mubr.msk.bf16.mxu0 %vm608_vm1, %v12284_v48 }
 0x481   : > { %18966 = vmatmul.mubr.msk.bf16.gmra.mrb[96].mxu0 %vm608_vm1, %v12286_v52 }
 0x482   : > { %18969 = vmatprep.mubr.msk.bf16.mxu0 %vm608_vm1, %v12288_v54 }
 0x489   : > { %18970 = vmatmul.mubr.msk.bf16.gmra.mrb[100].mxu0 %vm608_vm1, %v12290_v56 }
 0x494   : > { %v18871_v57 = vpop.f32.mrb[0].mxu0 }
 0x495   : > { %v19301_v59 = vadd.f32 %v19300_v58, %v18871_v57  ;;  %v12484_v60 = vpop.f32.mrb[1].mxu0  ;;  %v19345_v57 = vld [vmem:[#allocation2 + $0x68] sm:$0xff] }
 0x496   : > { %v19304_v62 = vadd.f32 %v19303_v61, %v12484_v60  ;;  %v18872_v63 = vpop.f32.mrb[2].mxu0 }
 0x497   : > { %13109 = vst [vmem:[#allocation2 + $0x10] sm:$0xff] %v19301_v59  ;;  %v19307_v1 = vadd.f32 %v19306_v0, %v18872_v63  ;;  %v12487_v2 = vpop.f32.mrb[3].mxu0  ;;  %v19348_v63 = vld [vmem:[#allocation2 + $0x90] sm:$0xff] }
 0x498   : > { %13107 = vst [vmem:[#allocation2] sm:$0xff] %v19304_v62  ;;  %v19310_v5 = vadd.f32 %v19309_v4, %v12487_v2  ;;  %v19351_v2 = vld [vmem:[#allocation2 + $0x80] sm:$0xff] }
 0x499   : > { %13110 = vst [vmem:[#allocation2 + $0x18] sm:$0xff] %v19307_v1 }
 0x49a   : > { %13108 = vst [vmem:[#allocation2 + $0x8] sm:$0xff] %v19310_v5 }
 0x49c   : > { %v18875_v6 = vpop.f32.mrb[4].mxu0 }
 0x49d   : > { %v19313_v8 = vadd.f32 %v19312_v7, %v18875_v6  ;;  %v12500_v9 = vpop.f32.mrb[5].mxu0 }
 0x49e   : > { %v19316_v11 = vadd.f32 %v19315_v10, %v12500_v9  ;;  %v18876_v12 = vpop.f32.mrb[6].mxu0 }
 0x49f   : > { %13113 = vst [vmem:[#allocation2 + $0x30] sm:$0xff] %v19313_v8  ;;  %v19319_v14 = vadd.f32 %v19318_v13, %v18876_v12  ;;  %v12503_v15 = vpop.f32.mrb[7].mxu0  ;;  %v19354_v8 = vld [vmem:[#allocation2 + $0x98] sm:$0xff]  ;;  %v19357_v13 = vld [vmem:[#allocation2 + $0x88] sm:$0xff] }
 0x4a0   : > { %13111 = vst [vmem:[#allocation2 + $0x20] sm:$0xff] %v19316_v11  ;;  %v19322_v17 = vadd.f32 %v19321_v16, %v12503_v15  ;;  %v13213_v23 = vld [vmem:[#allocation2 + $0x10] ss:$2 sm:$0xff]  ;;  %v13217_v24 = vld [vmem:[#allocation2 + $0x11] ss:$2 sm:$0xff] }
 0x4a1   : > { %13114 = vst [vmem:[#allocation2 + $0x38] sm:$0xff] %v19319_v14  ;;  %v13211_v29 = vld [vmem:[#allocation2] ss:$2 sm:$0xff]  ;;  %v13215_v30 = vld [vmem:[#allocation2 + $0x1] ss:$2 sm:$0xff]  ;;  %v13227_v36 = vmax.f32 %v13213_v23, %v13217_v24 }
 0x4a2   : > { %13112 = vst [vmem:[#allocation2 + $0x28] sm:$0xff] %v19322_v17  ;;  %v13226_v40 = vmax.f32 %v13211_v29, %v13215_v30  ;;  %v19363_v30 = vld [vmem:[#allocation2 + $0xa0] sm:$0xff] }
 0x4a4   : > { %v18879_v18 = vpop.f32.mrb[8].mxu0 }
 0x4a5   : > { %v19325_v20 = vadd.f32 %v19324_v19, %v18879_v18  ;;  %v12516_v21 = vpop.f32.mrb[9].mxu0 }
 0x4a6   : > { %v19328_v26 = vadd.f32 %v19327_v22, %v12516_v21  ;;  %v18880_v27 = vpop.f32.mrb[10].mxu0 }
 0x4a7   : > { %13117 = vst [vmem:[#allocation2 + $0x50] sm:$0xff] %v19325_v20  ;;  %v19331_v31 = vadd.f32 %v19330_v28, %v18880_v27  ;;  %v12519_v32 = vpop.f32.mrb[11].mxu0  ;;  %v19360_v27 = vld [vmem:[#allocation2 + $0xb0] sm:$0xff] }
 0x4a8   : > { %v13221_v3 = vld [vmem:[#allocation2 + $0x30] ss:$2 sm:$0xff]  ;;  %v13225_v34 = vld [vmem:[#allocation2 + $0x31] ss:$2 sm:$0xff]  ;;  %13115 = vst [vmem:[#allocation2 + $0x40] sm:$0xff] %v19328_v26  ;;  %v19334_v35 = vadd.f32 %v19333_v33, %v12519_v32 }
 0x4a9   : > { %v13229_v37 = vmax.f32 %v13221_v3, %v13225_v34  ;;  %v13219_v38 = vld [vmem:[#allocation2 + $0x20] ss:$2 sm:$0xff]  ;;  %v13223_v39 = vld [vmem:[#allocation2 + $0x21] ss:$2 sm:$0xff]  ;;  %13118 = vst [vmem:[#allocation2 + $0x58] sm:$0xff] %v19331_v31  ;;  %v19366_v3 = vld [vmem:[#allocation2 + $0xb8] sm:$0xff] }
 0x4aa   : > { %v13228_v41 = vmax.f32 %v13219_v38, %v13223_v39  ;;  %13116 = vst [vmem:[#allocation2 + $0x48] sm:$0xff] %v19334_v35 }
 0x4ab   : > { %v13231_v44 = vmax.f32 %v13227_v36, %v13229_v37  ;;  %v19369_v37 = vld [vmem:[#allocation2 + $0xa8] sm:$0xff] }
 0x4ac   : > { %v18883_v45 = vpop.f32.mrb[12].mxu0  ;;  %v13230_v25 = vmax.f32 %v13226_v40, %v13228_v41 }
 0x4ad   : > { %v19337_v47 = vadd.f32 %v19336_v46, %v18883_v45  ;;  %v12532_v48 = vpop.f32.mrb[13].mxu0  ;;  %v13239_v50 = vadd.f32 %v22531_v42, %v13231_v44  ;;  %v21014_v44 = vld [vmem:[#allocation5 + $0x48] sm:$0xff]  }
 0x4ae   : > { %v19340_v51 = vadd.f32 %v19339_v49, %v12532_v48  ;;  %v18884_v52 = vpop.f32.mrb[14].mxu0  ;;  %v13238_v54 = vadd.f32 %v22531_v42, %v13230_v25  ;;  %v19372_v46 = vld [vmem:[#allocation2 + $0xd0] sm:$0xff]  ;;  %v19375_v48 = vld [vmem:[#allocation2 + $0xc0] sm:$0xff]  ;;  %v19378_v49 = vld [vmem:[#allocation2 + $0xd8] sm:$0xff] }
 0x4af   : > { %13121 = vst [vmem:[#allocation2 + $0x70] sm:$0xff] %v19337_v47  ;;  %v19343_v55 = vadd.f32 %v19342_v53, %v18884_v52  ;;  %v12535_v56 = vpop.f32.mrb[15].mxu0  ;;  %v13241_v58 = vmax.f32 %v13239_v50, 0.0 }
 0x4b0   : > { %13119 = vst [vmem:[#allocation2 + $0x60] sm:$0xff] %v19340_v51  ;;  %v19346_v59 = vadd.f32 %v19345_v57, %v12535_v56  ;;  %v13240_v60 = vmax.f32 %v13238_v54, 0.0  ;;  %v13247_v4 = vld [vmem:[#allocation2 + $0x50] ss:$2 sm:$0xff]  ;;  %v13251_v5 = vld [vmem:[#allocation2 + $0x51] ss:$2 sm:$0xff] }
 0x4b1   : > { %13122 = vst [vmem:[#allocation2 + $0x78] sm:$0xff] %v19343_v55  ;;  %v13245_v9 = vld [vmem:[#allocation2 + $0x40] ss:$2 sm:$0xff]  ;;  %v13249_v10 = vld [vmem:[#allocation2 + $0x41] ss:$2 sm:$0xff]  ;;  %v13261_v17 = vmax.f32 %v13247_v4, %v13251_v5  ;;  %v21015_v54 = vld [vmem:[#allocation5 + $0x50] sm:$0xff]  }
 0x4b2   : > { %13120 = vst [vmem:[#allocation2 + $0x68] sm:$0xff] %v19346_v59  ;;  %v13242_v61 = vpack.c.bf16 %v13241_v58, %v13240_v60  ;;  %v13260_v21 = vmax.f32 %v13245_v9, %v13249_v10  ;;  %v19381_v59 = vld [vmem:[#allocation2 + $0xc8] sm:$0xff]  ;;  %v21016_v5 = vld [vmem:[#allocation5 + $0x58] sm:$0xff]  }
 0x4b4   : > { %v18887_v62 = vpop.f32.mrb[16].mxu0  ;;  %13243 = vst [vmem:[#allocation4] sm:$0xff] %v13242_v61  ;;  %18989 = vmatprep.mubr.bf16.mxu1 %v13242_v61 }
 0x4b5   : > { %v19349_v0 = vadd.f32 %v19348_v63, %v18887_v62  ;;  %v12548_v1 = vpop.f32.mrb[17].mxu0 }
 0x4b6   : > { %v19352_v6 = vadd.f32 %v19351_v2, %v12548_v1  ;;  %v18888_v7 = vpop.f32.mrb[18].mxu0 }
 0x4b7   : > { %13125 = vst [vmem:[#allocation2 + $0x90] sm:$0xff] %v19349_v0  ;;  %v19355_v11 = vadd.f32 %v19354_v8, %v18888_v7  ;;  %v12551_v12 = vpop.f32.mrb[19].mxu0  ;;  %v19384_v8 = vld [vmem:[#allocation2 + $0xf0] sm:$0xff] }
 0x4b8   : > { %v13255_v14 = vld [vmem:[#allocation2 + $0x70] ss:$2 sm:$0xff]  ;;  %v13259_v15 = vld [vmem:[#allocation2 + $0x71] ss:$2 sm:$0xff]  ;;  %13123 = vst [vmem:[#allocation2 + $0x80] sm:$0xff] %v19352_v6  ;;  %v19358_v16 = vadd.f32 %v19357_v13, %v12551_v12  ;;  %v19387_v12 = vld [vmem:[#allocation2 + $0xe0] sm:$0xff] }
 0x4b9   : > { %v13263_v18 = vmax.f32 %v13255_v14, %v13259_v15  ;;  %v13253_v19 = vld [vmem:[#allocation2 + $0x60] ss:$2 sm:$0xff]  ;;  %v13257_v20 = vld [vmem:[#allocation2 + $0x61] ss:$2 sm:$0xff]  ;;  %13126 = vst [vmem:[#allocation2 + $0x98] sm:$0xff] %v19355_v11 }
 0x4ba   : > { %v13262_v22 = vmax.f32 %v13253_v19, %v13257_v20  ;;  %13124 = vst [vmem:[#allocation2 + $0x88] sm:$0xff] %v19358_v16  ;;  %v19390_v16 = vld [vmem:[#allocation2 + $0xf8] sm:$0xff] }
 0x4bb   : > { %v13265_v23 = vmax.f32 %v13261_v17, %v13263_v18  ;;  %v21017_v18 = vld [vmem:[#allocation5 + $0x60] sm:$0xff]  }
 0x4bc   : > { %v13264_v24 = vmax.f32 %v13260_v21, %v13262_v22  ;;  %v18891_v26 = vpop.f32.mrb[20].mxu0  ;;  %v19393_v22 = vld [vmem:[#allocation2 + $0xe8] sm:$0xff] }
 0x4bd   : > { %v19361_v28 = vadd.f32 %v19360_v27, %v18891_v26  ;;  %v12564_v29 = vpop.f32.mrb[21].mxu0  ;;  %v13267_v31 = vadd.f32 %v22531_v42, %v13265_v23 }
 0x4be   : > { %v19364_v32 = vadd.f32 %v19363_v30, %v12564_v29  ;;  %v18892_v33 = vpop.f32.mrb[22].mxu0  ;;  %v13266_v34 = vadd.f32 %v22531_v42, %v13264_v24 }
 0x4bf   : > { %13129 = vst [vmem:[#allocation2 + $0xb0] sm:$0xff] %v19361_v28  ;;  %v19367_v35 = vadd.f32 %v19366_v3, %v18892_v33  ;;  %v12567_v36 = vpop.f32.mrb[23].mxu0  ;;  %v13269_v38 = vmax.f32 %v13267_v31, 0.0  ;;  %v21018_v28 = vld [vmem:[#allocation5 + $0x68] sm:$0xff]  }
 0x4c0   : > { %13127 = vst [vmem:[#allocation2 + $0xa0] sm:$0xff] %v19364_v32  ;;  %v19370_v39 = vadd.f32 %v19369_v37, %v12567_v36  ;;  %v13268_v40 = vmax.f32 %v13266_v34, 0.0  ;;  %v13275_v50 = vld [vmem:[#allocation2 + $0x90] ss:$2 sm:$0xff]  ;;  %v13279_v51 = vld [vmem:[#allocation2 + $0x91] ss:$2 sm:$0xff] }
 0x4c1   : > { %13130 = vst [vmem:[#allocation2 + $0xb8] sm:$0xff] %v19367_v35  ;;  %v13273_v55 = vld [vmem:[#allocation2 + $0x80] ss:$2 sm:$0xff]  ;;  %v13277_v56 = vld [vmem:[#allocation2 + $0x81] ss:$2 sm:$0xff]  ;;  %v13289_v63 = vmax.f32 %v13275_v50, %v13279_v51  ;;  %v19396_v31 = vld [vmem:[#allocation2 + $0x110] sm:$0xff] }
 0x4c2   : > { %13128 = vst [vmem:[#allocation2 + $0xa8] sm:$0xff] %v19370_v39  ;;  %v22540_v41 = vpack.c.bf16 %v13269_v38, %v13268_v40  ;;  %v13288_v2 = vmax.f32 %v13273_v55, %v13277_v56  ;;  %v19399_v35 = vld [vmem:[#allocation2 + $0x100] sm:$0xff]  ;;  %v19402_v36 = vld [vmem:[#allocation2 + $0x118] sm:$0xff] }
 0x4c3   : > { %v21019_v37 = vld [vmem:[#allocation5 + $0x70] sm:$0xff]  }
 0x4c4   : > { %v18895_v45 = vpop.f32.mrb[24].mxu0  ;;  %13271 = vst [vmem:[#allocation4 + $0x8] sm:$0xff] %v22540_v41  ;;  %18990 = vmatmul.mubr.bf16.vlgmr.msra.gmra.mrb[104].mxu1 %v22540_v41  ;;  %v13823_v19 = vshll.u32 %v22540_v41, 16  ;;  %v13827_v32 = vshrl.u32 %v22540_v41, 16 }
 0x4c5   : > { %v19373_v25 = vadd.f32 %v19372_v46, %v18895_v45  ;;  %v12580_v47 = vpop.f32.mrb[25].mxu0  ;;  %19010 = vmatpush3.bf16.msra.mxu1 %v22533_v43 }
 0x4c6   : > { %v19376_v52 = vadd.f32 %v19375_v48, %v12580_v47  ;;  %v18896_v53 = vpop.f32.mrb[26].mxu0  ;;  %19011 = vmatprep.subr.bf16.mxu1 %v21014_v44  ;;  %v22550_v29 = vrot.slane %v13823_v19, 1 }
 0x4c7   : > { %13133 = vst [vmem:[#allocation2 + $0xd0] sm:$0xff] %v19373_v25  ;;  %v19379_v57 = vadd.f32 %v19378_v49, %v18896_v53  ;;  %v12583_v58 = vpop.f32.mrb[27].mxu0  ;;  %v19405_v49 = vld [vmem:[#allocation2 + $0x108] sm:$0xff] }
 0x4c8   : > { %v13283_v60 = vld [vmem:[#allocation2 + $0xb0] ss:$2 sm:$0xff]  ;;  %v13287_v61 = vld [vmem:[#allocation2 + $0xb1] ss:$2 sm:$0xff]  ;;  %13131 = vst [vmem:[#allocation2 + $0xc0] sm:$0xff] %v19376_v52  ;;  %v19382_v62 = vadd.f32 %v19381_v59, %v12583_v58  ;;  %v13829_v45 = vor.u32 %v13827_v32, %v22550_v29 }
 0x4c9   : > { %v13291_v0 = vmax.f32 %v13283_v60, %v13287_v61  ;;  %v13281_v1 = vld [vmem:[#allocation2 + $0xa0] ss:$2 sm:$0xff]  ;;  %v13285_v43 = vld [vmem:[#allocation2 + $0xa1] ss:$2 sm:$0xff]  ;;  %13134 = vst [vmem:[#allocation2 + $0xd8] sm:$0xff] %v19379_v57  ;;  %19012 = vmatpush3.bf16.msra.mxu1 %v21014_v44  ;;  %v19426_v32 = vld [vmem:[#allocation2 + $0x158] sm:$0xff] }
 0x4ca   : > { %v13290_v4 = vmax.f32 %v13281_v1, %v13285_v43  ;;  %13132 = vst [vmem:[#allocation2 + $0xc8] sm:$0xff] %v19382_v62  ;;  %19013 = vmatprep.subr.bf16.mxu1 %v21015_v54  ;;  %v21020_v60 = vld [vmem:[#allocation5 + $0x78] sm:$0xff]  }
 0x4cb   : > { %v13293_v6 = vmax.f32 %v13289_v63, %v13291_v0  ;;  %v19408_v0 = vld [vmem:[#allocation2 + $0x130] sm:$0xff] }
 0x4cc   : > { %v18899_v7 = vpop.f32.mrb[28].mxu0  ;;  %v13292_v9 = vmax.f32 %v13288_v2, %v13290_v4 }
 0x4cd   : > { %v19385_v10 = vadd.f32 %v19384_v8, %v18899_v7  ;;  %v12596_v11 = vpop.f32.mrb[29].mxu0  ;;  %v13295_v13 = vadd.f32 %v22531_v42, %v13293_v6  ;;  %19014 = vmatpush3.bf16.msra.mxu1 %v21015_v54 }
 0x4ce   : > { %v19388_v14 = vadd.f32 %v19387_v12, %v12596_v11  ;;  %v18900_v15 = vpop.f32.mrb[30].mxu0  ;;  %v13294_v17 = vadd.f32 %v22531_v42, %v13292_v9  ;;  %19015 = vmatprep.subr.bf16.mxu1 %v21016_v5  ;;  %v19414_v9 = vld [vmem:[#allocation2 + $0x138] sm:$0xff]  ;;  %v22565_v11 = vld [vmem:[#allocation5 + $0x80] sm:$0xff]  }
 0x4cf   : > { %13137 = vst [vmem:[#allocation2 + $0xf0] sm:$0xff] %v19385_v10  ;;  %v19391_v20 = vadd.f32 %v19390_v16, %v18900_v15  ;;  %v12599_v21 = vpop.f32.mrb[31].mxu0  ;;  %v13297_v23 = vmax.f32 %v13295_v13, 0.0  ;;  %v19417_v15 = vld [vmem:[#allocation2 + $0x128] sm:$0xff] }
 0x4d0   : > { %13135 = vst [vmem:[#allocation2 + $0xe0] sm:$0xff] %v19388_v14  ;;  %v19394_v24 = vadd.f32 %v19393_v22, %v12599_v21  ;;  %v13296_v26 = vmax.f32 %v13294_v17, 0.0  ;;  %v13303_v38 = vld [vmem:[#allocation2 + $0xd0] ss:$2 sm:$0xff]  ;;  %v13307_v39 = vld [vmem:[#allocation2 + $0xd1] ss:$2 sm:$0xff] }
 0x4d1   : > { %13138 = vst [vmem:[#allocation2 + $0xf8] sm:$0xff] %v19391_v20  ;;  %19016 = vmatpush3.bf16.msra.mxu1 %v21016_v5  ;;  %v13301_v25 = vld [vmem:[#allocation2 + $0xc0] ss:$2 sm:$0xff]  ;;  %v13305_v47 = vld [vmem:[#allocation2 + $0xc1] ss:$2 sm:$0xff]  ;;  %v13317_v54 = vmax.f32 %v13303_v38, %v13307_v39 }
 0x4d2   : > { %13136 = vst [vmem:[#allocation2 + $0xe8] sm:$0xff] %v19394_v24  ;;  %v22548_v27 = vpack.c.bf16 %v13297_v23, %v13296_v26  ;;  %19017 = vmatprep.subr.bf16.mxu1 %v21017_v18  ;;  %v13316_v58 = vmax.f32 %v13301_v25, %v13305_v47  ;;  %v19411_v5 = vld [vmem:[#allocation2 + $0x120] sm:$0xff]  ;;  %v19420_v23 = vld [vmem:[#allocation2 + $0x150] sm:$0xff] }
 0x4d4   : > { %v18903_v30 = vpop.f32.mrb[32].mxu0  ;;  %13299 = vst [vmem:[#allocation4 + $0x10] sm:$0xff] %v22548_v27  ;;  %18993 = vmatprep.mubr.bf16.mxu1 %v22548_v27  ;;  %v13831_v33 = vshll.u32 %v22548_v27, 16  ;;  %v13835_v24 = vshrl.u32 %v22548_v27, 16 }
 0x4d5   : > { %v19397_v3 = vadd.f32 %v19396_v31, %v18903_v30  ;;  %v12612_v34 = vpop.f32.mrb[33].mxu0  ;;  %19018 = vmatpush3.bf16.msra.mxu1 %v21017_v18  ;;  %v19423_v31 = vld [vmem:[#allocation2 + $0x140] sm:$0xff] }
 0x4d6   : > { %v19400_v40 = vadd.f32 %v19399_v35, %v12612_v34  ;;  %v18904_v44 = vpop.f32.mrb[34].mxu0  ;;  %19019 = vmatprep.subr.bf16.mxu1 %v21018_v28  ;;  %v22557_v46 = vrot.slane %v13831_v33, 1 }
 0x4d7   : > { %13141 = vst [vmem:[#allocation2 + $0x110] sm:$0xff] %v19397_v3  ;;  %v19403_v41 = vadd.f32 %v19402_v36, %v18904_v44  ;;  %v12615_v48 = vpop.f32.mrb[35].mxu0 }
 0x4d8   : > { %v13311_v50 = vld [vmem:[#allocation2 + $0xf0] ss:$2 sm:$0xff]  ;;  %v13315_v51 = vld [vmem:[#allocation2 + $0xf1] ss:$2 sm:$0xff]  ;;  %13139 = vst [vmem:[#allocation2 + $0x100] sm:$0xff] %v19400_v40  ;;  %v19406_v52 = vadd.f32 %v19405_v49, %v12615_v48  ;;  %v22561_v53 = vsel %vm1692_vm2, %v13829_v45, %v22557_v46  ;;  %v13837_v36 = vor.u32 %v13835_v24, %v22557_v46  ;;  %v19429_v45 = vld [vmem:[#allocation2 + $0x148] sm:$0xff] }
 0x4d9   : > { %v13319_v55 = vmax.f32 %v13311_v50, %v13315_v51  ;;  %v13309_v56 = vld [vmem:[#allocation2 + $0xe0] ss:$2 sm:$0xff]  ;;  %v13313_v57 = vld [vmem:[#allocation2 + $0xe1] ss:$2 sm:$0xff]  ;;  %13142 = vst [vmem:[#allocation2 + $0x118] sm:$0xff] %v19403_v41  ;;  %19020 = vmatpush3.bf16.msra.mxu1 %v21018_v28  ;;  %v19450_v24 = vld [vmem:[#allocation2 + $0x198] sm:$0xff] }
 0x4da   : > { %v13318_v59 = vmax.f32 %v13309_v56, %v13313_v57  ;;  %13140 = vst [vmem:[#allocation2 + $0x108] sm:$0xff] %v19406_v52  ;;  %19021 = vmatprep.subr.bf16.mxu1 %v21019_v37  ;;  %v19432_v57 = vld [vmem:[#allocation2 + $0x170] sm:$0xff] }
 0x4db   : > { %v13321_v61 = vmax.f32 %v13317_v54, %v13319_v55  ;;  %v14132_v62 = vld [vmem:[#allocation4 + $0x10] sm:$0xff] }
 0x4dc   : > { %v18907_v63 = vpop.f32.mrb[36].mxu0  ;;  %v13320_v1 = vmax.f32 %v13316_v58, %v13318_v59  ;;  %v14705_v43 = vshll.u32 %v14132_v62, 16  ;;  %v14709_v17 = vshrl.u32 %v14132_v62, 16  ;;  %v19435_v62 = vld [vmem:[#allocation2 + $0x160] sm:$0xff] }
 0x4dd   : > { %v19409_v2 = vadd.f32 %v19408_v0, %v18907_v63  ;;  %v12628_v4 = vpop.f32.mrb[37].mxu0  ;;  %v13323_v6 = vadd.f32 %v22531_v42, %v13321_v61  ;;  %19022 = vmatpush3.bf16.msra.mxu1 %v21019_v37 }
 0x4de   : > { %v19412_v7 = vadd.f32 %v19411_v5, %v12628_v4  ;;  %v18908_v8 = vpop.f32.mrb[38].mxu0  ;;  %v13322_v10 = vadd.f32 %v22531_v42, %v13320_v1  ;;  %19023 = vmatprep.subr.bf16.mxu1 %v21020_v60  ;;  %v22567_v12 = vrot.slane %v14705_v43, 1  ;;  %v19438_v43 = vld [vmem:[#allocation2 + $0x178] sm:$0xff] }
 0x4df   : > { %13145 = vst [vmem:[#allocation2 + $0x130] sm:$0xff] %v19409_v2  ;;  %v19415_v13 = vadd.f32 %v19414_v9, %v18908_v8  ;;  %v12631_v14 = vpop.f32.mrb[39].mxu0  ;;  %v13325_v16 = vmax.f32 %v13323_v6, 0.0 }
 0x4e0   : > { %13143 = vst [vmem:[#allocation2 + $0x120] sm:$0xff] %v19412_v7  ;;  %v19418_v18 = vadd.f32 %v19417_v15, %v12631_v14  ;;  %v13324_v19 = vmax.f32 %v13322_v10, 0.0  ;;  %v22570_v20 = vor.u32 %v14709_v17, %v22567_v12  ;;  %v13331_v33 = vld [vmem:[#allocation2 + $0x110] ss:$2 sm:$0xff]  ;;  %v13335_v3 = vld [vmem:[#allocation2 + $0x111] ss:$2 sm:$0xff] }
 0x4e1   : > { %13146 = vst [vmem:[#allocation2 + $0x138] sm:$0xff] %v19415_v13  ;;  %19024 = vmatpush3.bf16.msra.mxu1 %v21020_v60  ;;  %v13329_v38 = vld [vmem:[#allocation2 + $0x100] ss:$2 sm:$0xff]  ;;  %v13333_v39 = vld [vmem:[#allocation2 + $0x101] ss:$2 sm:$0xff]  ;;  %v13345_v48 = vmax.f32 %v13331_v33, %v13335_v3 }
 0x4e2   : > { %13144 = vst [vmem:[#allocation2 + $0x128] sm:$0xff] %v19418_v18  ;;  %v22572_v21 = vpack.c.bf16 %v13325_v16, %v13324_v19  ;;  %19045 = vmatprep.subr.bf16.mxu1 %v22565_v11  ;;  %v13344_v46 = vmax.f32 %v13329_v38, %v13333_v39  ;;  %v19441_v7 = vld [vmem:[#allocation2 + $0x168] sm:$0xff]  ;;  %v19444_v16 = vld [vmem:[#allocation2 + $0x190] sm:$0xff] }
 0x4e4   : > { %v18911_v22 = vpop.f32.mrb[40].mxu0  ;;  %13327 = vst [vmem:[#allocation4 + $0x18] sm:$0xff] %v22572_v21  ;;  %18994 = vmatmul.mubr.bf16.gmra.mrb[108].mxu1 %v22572_v21  ;;  %v13839_v26 = vshll.u32 %v22572_v21, 16  ;;  %v13843_v17 = vshrl.u32 %v22572_v21, 16 }
 0x4e5   : > { %v19421_v28 = vadd.f32 %v19420_v23, %v18911_v22  ;;  %v12644_v30 = vpop.f32.mrb[41].mxu0  ;;  %v19447_v23 = vld [vmem:[#allocation2 + $0x180] sm:$0xff] }
 0x4e6   : > { %v19424_v34 = vadd.f32 %v19423_v31, %v12644_v30  ;;  %v18912_v35 = vpop.f32.mrb[42].mxu0  ;;  %v13841_v37 = vrot.slane %v13839_v26, 1 }
 0x4e7   : > { %13149 = vst [vmem:[#allocation2 + $0x150] sm:$0xff] %v19421_v28  ;;  %v19427_v40 = vadd.f32 %v19426_v32, %v18912_v35  ;;  %v12647_v44 = vpop.f32.mrb[43].mxu0 }
 0x4e8   : > { %v13339_v27 = vld [vmem:[#allocation2 + $0x130] ss:$2 sm:$0xff]  ;;  %v13343_v25 = vld [vmem:[#allocation2 + $0x131] ss:$2 sm:$0xff]  ;;  %13147 = vst [vmem:[#allocation2 + $0x140] sm:$0xff] %v19424_v34  ;;  %v19430_v47 = vadd.f32 %v19429_v45, %v12647_v44  ;;  %v22581_v41 = vsel %vm1692_vm2, %v13837_v36, %v13841_v37  ;;  %v13845_v31 = vor.u32 %v13843_v17, %v13841_v37  ;;  %v19453_v36 = vld [vmem:[#allocation2 + $0x188] sm:$0xff] }
 0x4e9   : > { %v13347_v49 = vmax.f32 %v13339_v27, %v13343_v25  ;;  %v13337_v50 = vld [vmem:[#allocation2 + $0x120] ss:$2 sm:$0xff]  ;;  %v13341_v51 = vld [vmem:[#allocation2 + $0x121] ss:$2 sm:$0xff]  ;;  %13150 = vst [vmem:[#allocation2 + $0x158] sm:$0xff] %v19427_v40 }
 0x4ea   : > { %v13346_v52 = vmax.f32 %v13337_v50, %v13341_v51  ;;  %13148 = vst [vmem:[#allocation2 + $0x148] sm:$0xff] %v19430_v47  ;;  %v19456_v50 = vld [vmem:[#allocation2 + $0x1b0] sm:$0xff] }
 0x4eb   : > { %v13349_v54 = vmax.f32 %v13345_v48, %v13347_v49  ;;  %v22583_v55 = vld [vmem:[#allocation4 + $0x18] sm:$0xff] }
 0x4ec   : > { %v18915_v56 = vpop.f32.mrb[44].mxu0  ;;  %v13348_v58 = vmax.f32 %v13344_v46, %v13346_v52  ;;  %v14713_v59 = vshll.u32 %v22583_v55, 16 }
 0x4ed   : > { %v19433_v60 = vadd.f32 %v19432_v57, %v18915_v56  ;;  %v12660_v61 = vpop.f32.mrb[45].mxu0  ;;  %v13351_v63 = vadd.f32 %v22531_v42, %v13349_v54  ;;  %v19459_v54 = vld [vmem:[#allocation2 + $0x1a0] sm:$0xff] }
 0x4ee   : > { %v19436_v0 = vadd.f32 %v19435_v62, %v12660_v61  ;;  %v18916_v1 = vpop.f32.mrb[46].mxu0  ;;  %v13350_v2 = vadd.f32 %v22531_v42, %v13348_v58  ;;  %v22588_v4 = vrot.slane %v14713_v59, 1  ;;  %v19462_v59 = vld [vmem:[#allocation2 + $0x1b8] sm:$0xff] }
 0x4ef   : > { %13153 = vst [vmem:[#allocation2 + $0x170] sm:$0xff] %v19433_v60  ;;  %v19439_v5 = vadd.f32 %v19438_v43, %v18916_v1  ;;  %v12663_v6 = vpop.f32.mrb[47].mxu0  ;;  %v13353_v8 = vmax.f32 %v13351_v63, 0.0  ;;  %v19465_v63 = vld [vmem:[#allocation2 + $0x1a8] sm:$0xff] }
 0x4f0   : > { %13151 = vst [vmem:[#allocation2 + $0x160] sm:$0xff] %v19436_v0  ;;  %v19442_v9 = vadd.f32 %v19441_v7, %v12663_v6  ;;  %v13352_v10 = vmax.f32 %v13350_v2, 0.0  ;;  %v22593_v13 = vsel %vm1692_vm2, %v22570_v20, %v22588_v4  ;;  %v13359_v26 = vld [vmem:[#allocation2 + $0x150] ss:$2 sm:$0xff]  ;;  %v13363_v20 = vld [vmem:[#allocation2 + $0x151] ss:$2 sm:$0xff] }
 0x4f1   : > { %13154 = vst [vmem:[#allocation2 + $0x178] sm:$0xff] %v19439_v5  ;;  %v13357_v33 = vld [vmem:[#allocation2 + $0x140] ss:$2 sm:$0xff]  ;;  %v13361_v3 = vld [vmem:[#allocation2 + $0x141] ss:$2 sm:$0xff]  ;;  %v13373_v44 = vmax.f32 %v13359_v26, %v13363_v20  ;;  %v19468_v6 = vld [vmem:[#allocation2 + $0x1d0] sm:$0xff] }
 0x4f2   : > { %13152 = vst [vmem:[#allocation2 + $0x168] sm:$0xff] %v19442_v9  ;;  %v22595_v14 = vpack.c.bf16 %v13353_v8, %v13352_v10  ;;  %v13372_v37 = vmax.f32 %v13357_v33, %v13361_v3 }
 0x4f4   : > { %v18919_v15 = vpop.f32.mrb[48].mxu0  ;;  %13355 = vst [vmem:[#allocation4 + $0x20] sm:$0xff] %v22595_v14  ;;  %18997 = vmatprep.mubr.bf16.mxu1 %v22595_v14  ;;  %v13847_v18 = vshll.u32 %v22595_v14, 16  ;;  %v13851_v7 = vshrl.u32 %v22595_v14, 16 }
 0x4f5   : > { %v19445_v19 = vadd.f32 %v19444_v16, %v18919_v15  ;;  %v12676_v22 = vpop.f32.mrb[49].mxu0  ;;  %v19471_v15 = vld [vmem:[#allocation2 + $0x1c0] sm:$0xff]  ;;  %v19474_v16 = vld [vmem:[#allocation2 + $0x1d8] sm:$0xff] }
 0x4f6   : > { %v19448_v28 = vadd.f32 %v19447_v23, %v12676_v22  ;;  %v18920_v30 = vpop.f32.mrb[50].mxu0  ;;  %v13849_v32 = vrot.slane %v13847_v18, 1 }
 0x4f7   : > { %13157 = vst [vmem:[#allocation2 + $0x190] sm:$0xff] %v19445_v19  ;;  %v19451_v34 = vadd.f32 %v19450_v24, %v18920_v30  ;;  %v12679_v35 = vpop.f32.mrb[51].mxu0 }
 0x4f8   : > { %v13367_v38 = vld [vmem:[#allocation2 + $0x170] ss:$2 sm:$0xff]  ;;  %v13371_v21 = vld [vmem:[#allocation2 + $0x171] ss:$2 sm:$0xff]  ;;  %13155 = vst [vmem:[#allocation2 + $0x180] sm:$0xff] %v19448_v28  ;;  %v19454_v39 = vadd.f32 %v19453_v36, %v12679_v35  ;;  %v22602_v40 = vsel %vm1692_vm2, %v13845_v31, %v13849_v32  ;;  %v13853_v23 = vor.u32 %v13851_v7, %v13849_v32  ;;  %v19477_v31 = vld [vmem:[#allocation2 + $0x1c8] sm:$0xff] }
 0x4f9   : > { %v13375_v45 = vmax.f32 %v13367_v38, %v13371_v21  ;;  %v13365_v27 = vld [vmem:[#allocation2 + $0x160] ss:$2 sm:$0xff]  ;;  %v13369_v25 = vld [vmem:[#allocation2 + $0x161] ss:$2 sm:$0xff]  ;;  %13158 = vst [vmem:[#allocation2 + $0x198] sm:$0xff] %v19451_v34 }
 0x4fa   : > { %v13374_v47 = vmax.f32 %v13365_v27, %v13369_v25  ;;  %13156 = vst [vmem:[#allocation2 + $0x188] sm:$0xff] %v19454_v39  ;;  %v19480_v27 = vld [vmem:[#allocation2 + $0x1f0] sm:$0xff] }
 0x4fb   : > { %v13377_v48 = vmax.f32 %v13373_v44, %v13375_v45 }
 0x4fc   : > { %v18923_v49 = vpop.f32.mrb[52].mxu0  ;;  %v13376_v51 = vmax.f32 %v13372_v37, %v13374_v47 }
 0x4fd   : > { %v19457_v46 = vadd.f32 %v19456_v50, %v18923_v49  ;;  %v12692_v52 = vpop.f32.mrb[53].mxu0  ;;  %v13379_v56 = vadd.f32 %v22531_v42, %v13377_v48  ;;  %v19483_v48 = vld [vmem:[#allocation2 + $0x1e0] sm:$0xff] }
 0x4fe   : > { %v19460_v57 = vadd.f32 %v19459_v54, %v12692_v52  ;;  %v18924_v58 = vpop.f32.mrb[54].mxu0  ;;  %v13378_v60 = vadd.f32 %v22531_v42, %v13376_v51 }
 0x4ff   : > { %13161 = vst [vmem:[#allocation2 + $0x1b0] sm:$0xff] %v19457_v46  ;;  %v19463_v61 = vadd.f32 %v19462_v59, %v18924_v58  ;;  %v12695_v62 = vpop.f32.mrb[55].mxu0  ;;  %v13381_v0 = vmax.f32 %v13379_v56, 0.0  ;;  %v19486_v46 = vld [vmem:[#allocation2 + $0x1f8] sm:$0xff] }
 0x500   : > { %13159 = vst [vmem:[#allocation2 + $0x1a0] sm:$0xff] %v19460_v57  ;;  %v19466_v1 = vadd.f32 %v19465_v63, %v12695_v62  ;;  %v13380_v43 = vmax.f32 %v13378_v60, 0.0  ;;  %v13387_v17 = vld [vmem:[#allocation2 + $0x190] ss:$2 sm:$0xff]  ;;  %v13391_v18 = vld [vmem:[#allocation2 + $0x191] ss:$2 sm:$0xff] }
 0x501   : > { %13162 = vst [vmem:[#allocation2 + $0x1b8] sm:$0xff] %v19463_v61  ;;  %v13385_v26 = vld [vmem:[#allocation2 + $0x180] ss:$2 sm:$0xff]  ;;  %v13389_v20 = vld [vmem:[#allocation2 + $0x181] ss:$2 sm:$0xff]  ;;  %v13401_v35 = vmax.f32 %v13387_v17, %v13391_v18  ;;  %v19492_v63 = vld [vmem:[#allocation2 + $0x210] sm:$0xff] }
 0x502   : > { %13160 = vst [vmem:[#allocation2 + $0x1a8] sm:$0xff] %v19466_v1  ;;  %v22606_v2 = vpack.c.bf16 %v13381_v0, %v13380_v43  ;;  %v13400_v21 = vmax.f32 %v13385_v26, %v13389_v20  ;;  %v19489_v57 = vld [vmem:[#allocation2 + $0x1e8] sm:$0xff]  ;;  %v19495_v43 = vld [vmem:[#allocation2 + $0x200] sm:$0xff] }
 0x503   : > { %v19501_v18 = vld [vmem:[#allocation2 + $0x208] sm:$0xff] }
 0x504   : > { %v18927_v5 = vpop.f32.mrb[56].mxu0  ;;  %13383 = vst [vmem:[#allocation4 + $0x28] sm:$0xff] %v22606_v2  ;;  %18998 = vmatmul.mubr.bf16.gmra.mrb[112].mxu1 %v22606_v2  ;;  %v13855_v8 = vshll.u32 %v22606_v2, 16 }
 0x505   : > { %v19469_v9 = vadd.f32 %v19468_v6, %v18927_v5  ;;  %v12708_v10 = vpop.f32.mrb[57].mxu0 }
 0x506   : > { %v19472_v19 = vadd.f32 %v19471_v15, %v12708_v10  ;;  %v18928_v22 = vpop.f32.mrb[58].mxu0  ;;  %v22612_v24 = vrot.slane %v13855_v8, 1 }
 0x507   : > { %13165 = vst [vmem:[#allocation2 + $0x1d0] sm:$0xff] %v19469_v9  ;;  %v19475_v28 = vadd.f32 %v19474_v16, %v18928_v22  ;;  %v12711_v30 = vpop.f32.mrb[59].mxu0  ;;  %v19498_v9 = vld [vmem:[#allocation2 + $0x218] sm:$0xff] }
 0x508   : > { %v13395_v14 = vld [vmem:[#allocation2 + $0x1b0] ss:$2 sm:$0xff]  ;;  %v13399_v33 = vld [vmem:[#allocation2 + $0x1b1] ss:$2 sm:$0xff]  ;;  %13163 = vst [vmem:[#allocation2 + $0x1c0] sm:$0xff] %v19472_v19  ;;  %v19478_v3 = vadd.f32 %v19477_v31, %v12711_v30  ;;  %v22616_v34 = vsel %vm1692_vm2, %v13853_v23, %v22612_v24 }
 0x509   : > { %v13403_v36 = vmax.f32 %v13395_v14, %v13399_v33  ;;  %v13393_v38 = vld [vmem:[#allocation2 + $0x1a0] ss:$2 sm:$0xff]  ;;  %v13397_v32 = vld [vmem:[#allocation2 + $0x1a1] ss:$2 sm:$0xff]  ;;  %13166 = vst [vmem:[#allocation2 + $0x1d8] sm:$0xff] %v19475_v28 }
 0x50a   : > { %v13402_v39 = vmax.f32 %v13393_v38, %v13397_v32  ;;  %13164 = vst [vmem:[#allocation2 + $0x1c8] sm:$0xff] %v19478_v3 }
 0x50b   : > { %v13405_v44 = vmax.f32 %v13401_v35, %v13403_v36  ;;  %v19504_v35 = vld [vmem:[#allocation2 + $0x230] sm:$0xff] }
 0x50c   : > { %v18931_v45 = vpop.f32.mrb[60].mxu0  ;;  %v13404_v25 = vmax.f32 %v13400_v21, %v13402_v39  ;;  %v19507_v21 = vld [vmem:[#allocation2 + $0x220] sm:$0xff] }
 0x50d   : > { %v19481_v37 = vadd.f32 %v19480_v27, %v18931_v45  ;;  %v12724_v47 = vpop.f32.mrb[61].mxu0  ;;  %v13407_v49 = vadd.f32 %v22531_v42, %v13405_v44  ;;  %v19510_v27 = vld [vmem:[#allocation2 + $0x238] sm:$0xff] }
 0x50e   : > { %v19484_v50 = vadd.f32 %v19483_v48, %v12724_v47  ;;  %v18932_v51 = vpop.f32.mrb[62].mxu0  ;;  %v13406_v52 = vadd.f32 %v22531_v42, %v13404_v25  ;;  %v19513_v48 = vld [vmem:[#allocation2 + $0x228] sm:$0xff] }
 0x50f   : > { %13169 = vst [vmem:[#allocation2 + $0x1f0] sm:$0xff] %v19481_v37  ;;  %v19487_v54 = vadd.f32 %v19486_v46, %v18932_v51  ;;  %v12727_v56 = vpop.f32.mrb[63].mxu0  ;;  %v13409_v58 = vmax.f32 %v13407_v49, 0.0 }
 0x510   : > { %13167 = vst [vmem:[#allocation2 + $0x1e0] sm:$0xff] %v19484_v50  ;;  %v19490_v59 = vadd.f32 %v19489_v57, %v12727_v56  ;;  %v13408_v60 = vmax.f32 %v13406_v52, 0.0  ;;  %v13415_v5 = vld [vmem:[#allocation2 + $0x1d0] ss:$2 sm:$0xff]  ;;  %v13419_v6 = vld [vmem:[#allocation2 + $0x1d1] ss:$2 sm:$0xff] }
 0x511   : > { %13170 = vst [vmem:[#allocation2 + $0x1f8] sm:$0xff] %v19487_v54  ;;  %v13413_v10 = vld [vmem:[#allocation2 + $0x1c0] ss:$2 sm:$0xff]  ;;  %v13417_v15 = vld [vmem:[#allocation2 + $0x1c1] ss:$2 sm:$0xff]  ;;  %v13429_v26 = vmax.f32 %v13415_v5, %v13419_v6  ;;  %v19516_v54 = vld [vmem:[#allocation2 + $0x250] sm:$0xff] }
 0x512   : > { %13168 = vst [vmem:[#allocation2 + $0x1e8] sm:$0xff] %v19490_v59  ;;  %v22620_v61 = vpack.c.bf16 %v13409_v58, %v13408_v60  ;;  %v13428_v31 = vmax.f32 %v13413_v10, %v13417_v15  ;;  %v19519_v58 = vld [vmem:[#allocation2 + $0x240] sm:$0xff] }
 0x514   : > { %v18935_v62 = vpop.f32.mrb[64].mxu0  ;;  %13411 = vst [vmem:[#allocation4 + $0x30] sm:$0xff] %v22620_v61  ;;  %19001 = vmatprep.mubr.bf16.mxu1 %v22620_v61 }
 0x515   : > { %v19493_v0 = vadd.f32 %v19492_v63, %v18935_v62  ;;  %v12740_v1 = vpop.f32.mrb[65].mxu0 }
 0x516   : > { %v19496_v7 = vadd.f32 %v19495_v43, %v12740_v1  ;;  %v18936_v8 = vpop.f32.mrb[66].mxu0 }
 0x517   : > { %13173 = vst [vmem:[#allocation2 + $0x210] sm:$0xff] %v19493_v0  ;;  %v19499_v16 = vadd.f32 %v19498_v9, %v18936_v8  ;;  %v12743_v17 = vpop.f32.mrb[67].mxu0  ;;  %v19522_v0 = vld [vmem:[#allocation2 + $0x258] sm:$0xff] }
 0x518   : > { %v13423_v19 = vld [vmem:[#allocation2 + $0x1f0] ss:$2 sm:$0xff]  ;;  %v13427_v22 = vld [vmem:[#allocation2 + $0x1f1] ss:$2 sm:$0xff]  ;;  %13171 = vst [vmem:[#allocation2 + $0x200] sm:$0xff] %v19496_v7  ;;  %v19502_v23 = vadd.f32 %v19501_v18, %v12743_v17  ;;  %v19525_v7 = vld [vmem:[#allocation2 + $0x248] sm:$0xff] }
 0x519   : > { %v13431_v20 = vmax.f32 %v13423_v19, %v13427_v22  ;;  %v13421_v28 = vld [vmem:[#allocation2 + $0x1e0] ss:$2 sm:$0xff]  ;;  %v13425_v30 = vld [vmem:[#allocation2 + $0x1e1] ss:$2 sm:$0xff]  ;;  %13174 = vst [vmem:[#allocation2 + $0x218] sm:$0xff] %v19499_v16 }
 0x51a   : > { %v13430_v14 = vmax.f32 %v13421_v28, %v13425_v30  ;;  %13172 = vst [vmem:[#allocation2 + $0x208] sm:$0xff] %v19502_v23 }
 0x51b   : > { %v13433_v33 = vmax.f32 %v13429_v26, %v13431_v20  ;;  %v19528_v20 = vld [vmem:[#allocation2 + $0x270] sm:$0xff] }
 0x51c   : > { %v18939_v3 = vpop.f32.mrb[68].mxu0  ;;  %v13432_v36 = vmax.f32 %v13428_v31, %v13430_v14  ;;  %v19531_v14 = vld [vmem:[#allocation2 + $0x260] sm:$0xff] }
 0x51d   : > { %v19505_v38 = vadd.f32 %v19504_v35, %v18939_v3  ;;  %v12756_v32 = vpop.f32.mrb[69].mxu0  ;;  %v13435_v39 = vadd.f32 %v22531_v42, %v13433_v33 }
 0x51e   : > { %v19508_v44 = vadd.f32 %v19507_v21, %v12756_v32  ;;  %v18940_v45 = vpop.f32.mrb[70].mxu0  ;;  %v13434_v25 = vadd.f32 %v22531_v42, %v13432_v36  ;;  %v19534_v36 = vld [vmem:[#allocation2 + $0x278] sm:$0xff] }
 0x51f   : > { %13177 = vst [vmem:[#allocation2 + $0x230] sm:$0xff] %v19505_v38  ;;  %v19511_v37 = vadd.f32 %v19510_v27, %v18940_v45  ;;  %v12759_v47 = vpop.f32.mrb[71].mxu0  ;;  %v13437_v49 = vmax.f32 %v13435_v39, 0.0  ;;  %v19537_v39 = vld [vmem:[#allocation2 + $0x268] sm:$0xff] }
 0x520   : > { %13175 = vst [vmem:[#allocation2 + $0x220] sm:$0xff] %v19508_v44  ;;  %v19514_v50 = vadd.f32 %v19513_v48, %v12759_v47  ;;  %v13436_v51 = vmax.f32 %v13434_v25, 0.0  ;;  %v13443_v59 = vld [vmem:[#allocation2 + $0x210] ss:$2 sm:$0xff]  ;;  %v13447_v60 = vld [vmem:[#allocation2 + $0x211] ss:$2 sm:$0xff] }
 0x521   : > { %13178 = vst [vmem:[#allocation2 + $0x238] sm:$0xff] %v19511_v37  ;;  %v13441_v1 = vld [vmem:[#allocation2 + $0x200] ss:$2 sm:$0xff]  ;;  %v13445_v43 = vld [vmem:[#allocation2 + $0x201] ss:$2 sm:$0xff]  ;;  %v13457_v15 = vmax.f32 %v13443_v59, %v13447_v60  ;;  %v19540_v47 = vld [vmem:[#allocation2 + $0x290] sm:$0xff] }
 0x522   : > { %13176 = vst [vmem:[#allocation2 + $0x228] sm:$0xff] %v19514_v50  ;;  %v22626_v46 = vpack.c.bf16 %v13437_v49, %v13436_v51  ;;  %v13456_v19 = vmax.f32 %v13441_v1, %v13445_v43  ;;  %v19543_v49 = vld [vmem:[#allocation2 + $0x280] sm:$0xff]  ;;  %v19546_v50 = vld [vmem:[#allocation2 + $0x298] sm:$0xff] }
 0x524   : > { %v18943_v52 = vpop.f32.mrb[72].mxu0  ;;  %13439 = vst [vmem:[#allocation4 + $0x38] sm:$0xff] %v22626_v46  ;;  %19002 = vmatmul.mubr.bf16.gmra.mrb[116].mxu1 %v22626_v46 }
 0x525   : > { %v19517_v56 = vadd.f32 %v19516_v54, %v18943_v52  ;;  %v12772_v57 = vpop.f32.mrb[73].mxu0 }
 0x526   : > { %v19520_v62 = vadd.f32 %v19519_v58, %v12772_v57  ;;  %v18944_v63 = vpop.f32.mrb[74].mxu0  ;;  %v19549_v57 = vld [vmem:[#allocation2 + $0x288] sm:$0xff] }
 0x527   : > { %13181 = vst [vmem:[#allocation2 + $0x250] sm:$0xff] %v19517_v56  ;;  %v19523_v5 = vadd.f32 %v19522_v0, %v18944_v63  ;;  %v12775_v6 = vpop.f32.mrb[75].mxu0  ;;  %v13787_v63 = vld [vmem:[#allocation4] sm:$0xff] }
 0x528   : > { %v13451_v8 = vld [vmem:[#allocation2 + $0x230] ss:$2 sm:$0xff]  ;;  %v13455_v9 = vld [vmem:[#allocation2 + $0x231] ss:$2 sm:$0xff]  ;;  %13179 = vst [vmem:[#allocation2 + $0x240] sm:$0xff] %v19520_v62  ;;  %v19526_v10 = vadd.f32 %v19525_v7, %v12775_v6 }
 0x529   : > { %v13459_v16 = vmax.f32 %v13451_v8, %v13455_v9  ;;  %v13449_v17 = vld [vmem:[#allocation2 + $0x220] ss:$2 sm:$0xff]  ;;  %v13453_v18 = vld [vmem:[#allocation2 + $0x221] ss:$2 sm:$0xff]  ;;  %13182 = vst [vmem:[#allocation2 + $0x258] sm:$0xff] %v19523_v5 }
 0x52a   : > { %v13458_v22 = vmax.f32 %v13449_v17, %v13453_v18  ;;  %13180 = vst [vmem:[#allocation2 + $0x248] sm:$0xff] %v19526_v10  ;;  %v19552_v18 = vld [vmem:[#allocation2 + $0x2b0] sm:$0xff] }
 0x52b   : > { %v13461_v23 = vmax.f32 %v13457_v15, %v13459_v16  ;;  %v13818_v15 = vshll.u32 %v13787_v63, 16 }
 0x52c   : > { %v18947_v26 = vpop.f32.mrb[76].mxu0  ;;  %v13460_v28 = vmax.f32 %v13456_v19, %v13458_v22 }
 0x52d   : > { %v19529_v30 = vadd.f32 %v19528_v20, %v18947_v26  ;;  %v12788_v31 = vpop.f32.mrb[77].mxu0  ;;  %v13463_v33 = vadd.f32 %v22531_v42, %v13461_v23  ;;  %v19555_v26 = vld [vmem:[#allocation2 + $0x2a0] sm:$0xff] }
 0x52e   : > { %v19532_v3 = vadd.f32 %v19531_v14, %v12788_v31  ;;  %v18948_v35 = vpop.f32.mrb[78].mxu0  ;;  %v13462_v38 = vadd.f32 %v22531_v42, %v13460_v28  ;;  %v22639_v20 = vld [vmem:[%s22911_s2] ss:$0 sm:$0xff]  ;;  %v19558_v14 = vld [vmem:[#allocation2 + $0x2b8] sm:$0xff] }
 0x52f   : > { %13185 = vst [vmem:[#allocation2 + $0x270] sm:$0xff] %v19529_v30  ;;  %v19535_v32 = vadd.f32 %v19534_v36, %v18948_v35  ;;  %v12791_v21 = vpop.f32.mrb[79].mxu0  ;;  %v13465_v44 = vmax.f32 %v13463_v33, 0.0 }
 0x530   : > { %13183 = vst [vmem:[#allocation2 + $0x260] sm:$0xff] %v19532_v3  ;;  %v19538_v45 = vadd.f32 %v19537_v39, %v12791_v21  ;;  %v13464_v27 = vmax.f32 %v13462_v38, 0.0  ;;  %v13471_v51 = vld [vmem:[#allocation2 + $0x250] ss:$2 sm:$0xff]  ;;  %v13475_v52 = vld [vmem:[#allocation2 + $0x251] ss:$2 sm:$0xff] }
 0x531   : > { %13186 = vst [vmem:[#allocation2 + $0x278] sm:$0xff] %v19535_v32  ;;  %v13469_v58 = vld [vmem:[#allocation2 + $0x240] ss:$2 sm:$0xff]  ;;  %v13473_v59 = vld [vmem:[#allocation2 + $0x241] ss:$2 sm:$0xff]  ;;  %v13485_v5 = vmax.f32 %v13471_v51, %v13475_v52  ;;  %v13820_v3 = vrot.slane %v13818_v15, 1 }
 0x532   : > { %13184 = vst [vmem:[#allocation2 + $0x268] sm:$0xff] %v19538_v45  ;;  %v22632_v25 = vpack.c.bf16 %v13465_v44, %v13464_v27  ;;  %v13484_v9 = vmax.f32 %v13469_v58, %v13473_v59  ;;  %v19561_v38 = vld [vmem:[#allocation2 + $0x2a8] sm:$0xff]  ;;  %v13816_v44 = vshrl.u32 %v13787_v63, 16 }
 0x533   : > { %v19573_v63 = vld [vmem:[#allocation2 + $0x2c8] sm:$0xff] }
 0x534   : > { %v18951_v37 = vpop.f32.mrb[80].mxu0  ;;  %13467 = vst [vmem:[#allocation4 + $0x40] sm:$0xff] %v22632_v25  ;;  %19005 = vmatprep.mubr.bf16.mxu1 %v22632_v25  ;;  %v13821_v27 = vor.u32 %v13820_v3, %v13816_v44  ;;  %v19588_v44 = vld [vmem:[#allocation2 + $0x310] sm:$0xff] }
 0x535   : > { %v19541_v48 = vadd.f32 %v19540_v47, %v18951_v37  ;;  %v12804_v42 = vpop.f32.mrb[81].mxu0  ;;  %v19564_v47 = vld [vmem:[#allocation2 + $0x2d0] sm:$0xff] }
 0x536   : > { %v19544_v54 = vadd.f32 %v19543_v49, %v12804_v42  ;;  %v18952_v56 = vpop.f32.mrb[82].mxu0 }
 0x537   : > { %13189 = vst [vmem:[#allocation2 + $0x290] sm:$0xff] %v19541_v48  ;;  %v19547_v60 = vadd.f32 %v19546_v50, %v18952_v56  ;;  %v12807_v62 = vpop.f32.mrb[83].mxu0  ;;  %v13826_v48 = vsel %vm1692_vm2, %v13821_v27, %v22550_v29  ;;  %v19567_v50 = vld [vmem:[#allocation2 + $0x2c0] sm:$0xff] }
 0x538   : > { %v13479_v0 = vld [vmem:[#allocation2 + $0x270] ss:$2 sm:$0xff]  ;;  %v13483_v1 = vld [vmem:[#allocation2 + $0x271] ss:$2 sm:$0xff]  ;;  %13187 = vst [vmem:[#allocation2 + $0x280] sm:$0xff] %v19544_v54  ;;  %v19550_v43 = vadd.f32 %v19549_v57, %v12807_v62  ;;  %v19591_v27 = vld [vmem:[#allocation2 + $0x300] sm:$0xff] }
 0x539   : > { %v13487_v6 = vmax.f32 %v13479_v0, %v13483_v1  ;;  %v13477_v7 = vld [vmem:[#allocation2 + $0x260] ss:$2 sm:$0xff]  ;;  %v13481_v8 = vld [vmem:[#allocation2 + $0x261] ss:$2 sm:$0xff]  ;;  %13190 = vst [vmem:[#allocation2 + $0x298] sm:$0xff] %v19547_v60  ;;  %v19570_v57 = vld [vmem:[#allocation2 + $0x2d8] sm:$0xff] }
 0x53a   : > { %v13486_v10 = vmax.f32 %v13477_v7, %v13481_v8  ;;  %13188 = vst [vmem:[#allocation2 + $0x288] sm:$0xff] %v19550_v43 }
 0x53b   : > { %v13489_v16 = vmax.f32 %v13485_v5, %v13487_v6 }
 0x53c   : > { %v18955_v17 = vpop.f32.mrb[84].mxu0  ;;  %v13488_v19 = vmax.f32 %v13484_v9, %v13486_v10  ;;  %v21022_v10 = vld [vmem:[#allocation5 + $0x88] sm:$0xff]  }
 0x53d   : > { %v19553_v22 = vadd.f32 %v19552_v18, %v18955_v17  ;;  %v12820_v23 = vpop.f32.mrb[85].mxu0  ;;  %v13491_v28 = vadd.f32 %v22639_v20, %v13489_v16  ;;  %v19576_v18 = vld [vmem:[#allocation2 + $0x2f0] sm:$0xff] }
 0x53e   : > { %v19556_v30 = vadd.f32 %v19555_v26, %v12820_v23  ;;  %v18956_v31 = vpop.f32.mrb[86].mxu0  ;;  %v13490_v33 = vadd.f32 %v22639_v20, %v13488_v19  ;;  %v19579_v26 = vld [vmem:[#allocation2 + $0x2e0] sm:$0xff] }
 0x53f   : > { %13193 = vst [vmem:[#allocation2 + $0x2b0] sm:$0xff] %v19553_v22  ;;  %v19559_v35 = vadd.f32 %v19558_v14, %v18956_v31  ;;  %v12823_v36 = vpop.f32.mrb[87].mxu0  ;;  %v13493_v32 = vmax.f32 %v13491_v28, 0.0  ;;  %v19582_v14 = vld [vmem:[#allocation2 + $0x2f8] sm:$0xff] }
 0x540   : > { %13191 = vst [vmem:[#allocation2 + $0x2a0] sm:$0xff] %v19556_v30  ;;  %v19562_v21 = vadd.f32 %v19561_v38, %v12823_v36  ;;  %v13492_v39 = vmax.f32 %v13490_v33, 0.0  ;;  %v13499_v51 = vld [vmem:[#allocation2 + $0x290] ss:$2 sm:$0xff]  ;;  %v13503_v52 = vld [vmem:[#allocation2 + $0x291] ss:$2 sm:$0xff] }
 0x541   : > { %13194 = vst [vmem:[#allocation2 + $0x2b8] sm:$0xff] %v19559_v35  ;;  %v13497_v58 = vld [vmem:[#allocation2 + $0x280] ss:$2 sm:$0xff]  ;;  %v13501_v59 = vld [vmem:[#allocation2 + $0x281] ss:$2 sm:$0xff]  ;;  %v13513_v29 = vmax.f32 %v13499_v51, %v13503_v52  ;;  %v21023_v33 = vld [vmem:[#allocation5 + $0x90] sm:$0xff]  }
 0x542   : > { %13192 = vst [vmem:[#allocation2 + $0x2a8] sm:$0xff] %v19562_v21  ;;  %v22643_v45 = vpack.c.bf16 %v13493_v32, %v13492_v39  ;;  %v13512_v8 = vmax.f32 %v13497_v58, %v13501_v59 }
 0x544   : > { %v18959_v37 = vpop.f32.mrb[88].mxu0  ;;  %13495 = vst [vmem:[#allocation4 + $0x48] sm:$0xff] %v22643_v45  ;;  %19006 = vmatmul.mubr.bf16.gmra.mrb[120].mxu1 %v22643_v45 }
 0x545   : > { %v19565_v42 = vadd.f32 %v19564_v47, %v18959_v37  ;;  %v12836_v49 = vpop.f32.mrb[89].mxu0  ;;  %19025 = vmatprep.mubr.bf16.mxu1 %v13826_v48  ;;  %v13871_v37 = vshll.u32 %v22626_v46, 16 }
 0x546   : > { %v19568_v54 = vadd.f32 %v19567_v50, %v12836_v49  ;;  %v18960_v56 = vpop.f32.mrb[90].mxu0  ;;  %v19597_v49 = vld [vmem:[#allocation2 + $0x308] sm:$0xff] }
 0x547   : > { %13197 = vst [vmem:[#allocation2 + $0x2d0] sm:$0xff] %v19565_v42  ;;  %v19571_v60 = vadd.f32 %v19570_v57, %v18960_v56  ;;  %v12839_v62 = vpop.f32.mrb[91].mxu0  ;;  %v19594_v42 = vld [vmem:[#allocation2 + $0x318] sm:$0xff]  ;;  %v21025_v50 = vld [vmem:[#allocation5 + $0xa0] sm:$0xff]  }
 0x548   : > { %v13507_v0 = vld [vmem:[#allocation2 + $0x2b0] ss:$2 sm:$0xff]  ;;  %v13511_v1 = vld [vmem:[#allocation2 + $0x2b1] ss:$2 sm:$0xff]  ;;  %13195 = vst [vmem:[#allocation2 + $0x2c0] sm:$0xff] %v19568_v54  ;;  %v19574_v43 = vadd.f32 %v19573_v63, %v12839_v62  ;;  %v13859_v62 = vshrl.u32 %v22606_v2, 16 }
 0x549   : > { %v13515_v5 = vmax.f32 %v13507_v0, %v13511_v1  ;;  %v13505_v6 = vld [vmem:[#allocation2 + $0x2a0] ss:$2 sm:$0xff]  ;;  %v13509_v7 = vld [vmem:[#allocation2 + $0x2a1] ss:$2 sm:$0xff]  ;;  %13198 = vst [vmem:[#allocation2 + $0x2d8] sm:$0xff] %v19571_v60 }
 0x54a   : > { %v13514_v9 = vmax.f32 %v13505_v6, %v13509_v7  ;;  %13196 = vst [vmem:[#allocation2 + $0x2c8] sm:$0xff] %v19574_v43  ;;  %v13873_v43 = vrot.slane %v13871_v37, 1 }
 0x54b   : > { %v13517_v15 = vmax.f32 %v13513_v29, %v13515_v5 }
 0x54c   : > { %v13516_v16 = vmax.f32 %v13512_v8, %v13514_v9  ;;  %v18963_v17 = vpop.f32.mrb[92].mxu0  ;;  %19026 = vmatmul.mubr.bf16.vlgmr.msra.gmra.mrb[104].mxu1 %v22561_v53  ;;  %v19585_v53 = vld [vmem:[#allocation2 + $0x2e8] sm:$0xff]  ;;  %v13861_v8 = vor.u32 %v13859_v62, %v22612_v24  ;;  %v13887_v24 = vshll.u32 %v22643_v45, 16 }
 0x54d   : > { %v13519_v19 = vadd.f32 %v22639_v20, %v13517_v15  ;;  %v19577_v22 = vadd.f32 %v19576_v18, %v18963_v17  ;;  %v12852_v23 = vpop.f32.mrb[93].mxu0  ;;  %19029 = vmatprep.mubr.bf16.mxu1 %v22581_v41  ;;  %19046 = vmatpush3.bf16.msra.mxu1 %v22565_v11  ;;  %v21024_v11 = vld [vmem:[#allocation5 + $0x98] sm:$0xff]   ;;  %v13863_v41 = vshll.u32 %v22620_v61, 16  ;;  %v21026_v17 = vld [vmem:[#allocation5 + $0xa8] sm:$0xff]  }
 0x54e   : > { %v13518_v28 = vadd.f32 %v22639_v20, %v13516_v16  ;;  %v19580_v30 = vadd.f32 %v19579_v26, %v12852_v23  ;;  %v18964_v31 = vpop.f32.mrb[94].mxu0  ;;  %19047 = vmatprep.subr.bf16.mxu1 %v21022_v10  ;;  %v13879_v16 = vshll.u32 %v22632_v25, 16  ;;  %v19600_v26 = vld [vmem:[#allocation2 + $0x330] sm:$0xff] }
 0x54f   : > { %13201 = vst [vmem:[#allocation2 + $0x2f0] sm:$0xff] %v19577_v22  ;;  %v19583_v3 = vadd.f32 %v19582_v14, %v18964_v31  ;;  %v12855_v35 = vpop.f32.mrb[95].mxu0  ;;  %v13521_v36 = vmax.f32 %v13519_v19, 0.0  ;;  %v13865_v57 = vrot.slane %v13863_v41, 1 }
 0x550   : > { %13199 = vst [vmem:[#allocation2 + $0x2e0] sm:$0xff] %v19580_v30  ;;  %v19586_v38 = vadd.f32 %v19585_v53, %v12855_v35  ;;  %v13520_v32 = vmax.f32 %v13518_v28, 0.0  ;;  %v13527_v51 = vld [vmem:[#allocation2 + $0x2d0] ss:$2 sm:$0xff]  ;;  %v13531_v52 = vld [vmem:[#allocation2 + $0x2d1] ss:$2 sm:$0xff] }
 0x551   : > { %13202 = vst [vmem:[#allocation2 + $0x2f8] sm:$0xff] %v19583_v3  ;;  %19048 = vmatpush3.bf16.msra.mxu1 %v21022_v10  ;;  %v13525_v58 = vld [vmem:[#allocation2 + $0x2c0] ss:$2 sm:$0xff]  ;;  %v13541_v29 = vmax.f32 %v13527_v51, %v13531_v52  ;;  %v13866_v19 = vsel %vm1692_vm2, %v13861_v8, %v13865_v57 }
 0x552   : > { %13200 = vst [vmem:[#allocation2 + $0x2e8] sm:$0xff] %v19586_v38  ;;  %19049 = vmatprep.subr.bf16.mxu1 %v21023_v33  ;;  %v22655_v21 = vpack.c.bf16 %v13521_v36, %v13520_v32  ;;  %v19606_v36 = vld [vmem:[#allocation2 + $0x338] sm:$0xff]  ;;  %v22670_v38 = vrot.slane %v13879_v16, 1  ;;  %v21028_v52 = vld [vmem:[#allocation5 + $0xb8] sm:$0xff]  }
 0x553   : > { %v21027_v32 = vld [vmem:[#allocation5 + $0xb0] sm:$0xff]  }
 0x554   : > { %v18967_v39 = vpop.f32.mrb[96].mxu0  ;;  %19030 = vmatmul.mubr.bf16.gmra.mrb[108].mxu1 %v22602_v40  ;;  %13523 = vst [vmem:[#allocation4 + $0x50] sm:$0xff] %v22655_v21  ;;  %v13529_v40 = vld [vmem:[#allocation2 + $0x2c1] ss:$2 sm:$0xff] }
 0x555   : > { %v19589_v47 = vadd.f32 %v19588_v44, %v18967_v39  ;;  %v12868_v48 = vpop.f32.mrb[97].mxu0  ;;  %19033 = vmatprep.mubr.bf16.mxu1 %v22616_v34  ;;  %19050 = vmatpush3.bf16.msra.mxu1 %v21023_v33  ;;  %v13867_v34 = vshrl.u32 %v22620_v61, 16  ;;  %v13540_v9 = vmax.f32 %v13525_v58, %v13529_v40  ;;  %v19603_v33 = vld [vmem:[#allocation2 + $0x320] sm:$0xff]  ;;  %v19609_v39 = vld [vmem:[#allocation2 + $0x328] sm:$0xff]  ;;  %v13875_v44 = vshrl.u32 %v22626_v46, 16 }
 0x556   : > { %v19592_v54 = vadd.f32 %v19591_v27, %v12868_v48  ;;  %v18968_v56 = vpop.f32.mrb[98].mxu0  ;;  %19051 = vmatprep.subr.bf16.mxu1 %v21024_v11  ;;  %v13889_v48 = vrot.slane %v13887_v24, 1  ;;  %v14130_v40 = vld [vmem:[#allocation4] sm:$0xfe] }
 0x557   : > { %13205 = vst [vmem:[#allocation2 + $0x310] sm:$0xff] %v19589_v47  ;;  %v19595_v59 = vadd.f32 %v19594_v42, %v18968_v56  ;;  %v12871_v60 = vpop.f32.mrb[99].mxu0  ;;  %v13869_v15 = vor.u32 %v13867_v34, %v13865_v57  ;;  %v13883_v47 = vshrl.u32 %v22632_v25, 16  ;;  %v13891_v34 = vshrl.u32 %v22643_v45, 16 }
 0x558   : > { %v13535_v63 = vld [vmem:[#allocation2 + $0x2f0] ss:$2 sm:$0xff]  ;;  %v13539_v0 = vld [vmem:[#allocation2 + $0x2f1] ss:$2 sm:$0xff]  ;;  %13203 = vst [vmem:[#allocation2 + $0x300] sm:$0xff] %v19592_v54  ;;  %v19598_v1 = vadd.f32 %v19597_v49, %v12871_v60 }
 0x559   : > { %v13543_v5 = vmax.f32 %v13535_v63, %v13539_v0  ;;  %v13533_v6 = vld [vmem:[#allocation2 + $0x2e0] ss:$2 sm:$0xff]  ;;  %v13537_v7 = vld [vmem:[#allocation2 + $0x2e1] ss:$2 sm:$0xff]  ;;  %13206 = vst [vmem:[#allocation2 + $0x318] sm:$0xff] %v19595_v59  ;;  %19052 = vmatpush3.bf16.msra.mxu1 %v21024_v11  ;;  %v13874_v28 = vsel %vm1692_vm2, %v13869_v15, %v13873_v43  ;;  %v13885_v51 = vor.u32 %v13883_v47, %v22670_v38  ;;  %v14180_v47 = vrot.slane %v22620_v61, 1 }
 0x55a   : > { %v13542_v10 = vmax.f32 %v13533_v6, %v13537_v7  ;;  %13204 = vst [vmem:[#allocation2 + $0x308] sm:$0xff] %v19598_v1  ;;  %19053 = vmatprep.subr.bf16.mxu1 %v21025_v50  ;;  %v22684_v59 = vld [vmem:[#allocation4 + $0x8] sm:$0xff]  ;;  %v22688_v15 = vor.u32 %v13891_v34, %v13889_v48  ;;  %v22740_v34 = vld [vmem:[#allocation4 + $0x18] sm:$0xff] }
 0x55b   : > { %v13545_v18 = vmax.f32 %v13541_v29, %v13543_v5  ;;  %v13797_v42 = vld [vmem:[#allocation4 + $0x50] sm:$0x1]  ;;  %v22680_v58 = vsel %vm1692_vm2, %v13885_v51, %v13889_v48  ;;  %v21029_v63 = vld [vmem:[#allocation5 + $0xc0] sm:$0xff]   ;;  %v14170_v6 = vrot.slane %v22684_v59, 1  ;;  %v14184_v51 = vrot.slane %v22632_v25, 1 }
 0x55c   : > { %v13544_v22 = vmax.f32 %v13540_v9, %v13542_v10  ;;  %v18971_v23 = vpop.f32.mrb[100].mxu0  ;;  %19034 = vmatmul.mubr.bf16.gmra.mrb[112].mxu1 %v13866_v19  ;;  %v13895_v57 = vshll.u32 %v13797_v42, 16  ;;  %v21034_v48 = vld [vmem:[#allocation5 + $0xe8] sm:$0xff]  }
 0x55d   : > { %v13547_v30 = vadd.f32 %v22639_v20, %v13545_v18  ;;  %v19601_v31 = vadd.f32 %v19600_v26, %v18971_v23  ;;  %v12884_v14 = vpop.f32.mrb[101].mxu0  ;;  %19037 = vmatprep.mubr.bf16.mxu1 %v13874_v28  ;;  %19054 = vmatpush3.bf16.msra.mxu1 %v21025_v50  ;;  %v13877_v50 = vor.u32 %v13875_v44, %v13873_v43  ;;  %v14169_v18 = vrot.slane %v14130_v40, 1 }
 0x55e   : > { %v13546_v3 = vadd.f32 %v22639_v20, %v13544_v22  ;;  %v19604_v35 = vadd.f32 %v19603_v33, %v12884_v14  ;;  %v18972_v53 = vpop.f32.mrb[102].mxu0  ;;  %19055 = vmatprep.subr.bf16.mxu1 %v21026_v17  ;;  %v13897_v43 = vrot.slane %v13895_v57, 1  ;;  %v22701_v33 = vrot.slane %v22583_v55, 1  ;;  %v21031_v55 = vld [vmem:[#allocation5 + $0xd0] sm:$0xff]  }
 0x55f   : > { %13209 = vst [vmem:[#allocation2 + $0x330] sm:$0xff] %v19601_v31  ;;  %v19607_v11 = vadd.f32 %v19606_v36, %v18972_v53  ;;  %v12887_v41 = vpop.f32.mrb[103].mxu0  ;;  %v13549_v27 = vmax.f32 %v13547_v30, 0.0  ;;  %v13882_v56 = vsel %vm1692_vm2, %v13877_v50, %v22670_v38  ;;  %v14171_v26 = vsel %vm3403_vm3, %v14169_v18, %v14170_v6  ;;  %v22695_v30 = vld [vmem:[#allocation4 + $0x10] sm:$0xff]  ;;  %v21035_v50 = vld [vmem:[#allocation5 + $0xf0] sm:$0xff]  }
 0x560   : > { %13207 = vst [vmem:[#allocation2 + $0x320] sm:$0xff] %v19604_v35  ;;  %v19610_v37 = vadd.f32 %v19609_v39, %v12887_v41  ;;  %v13548_v49 = vmax.f32 %v13546_v3, 0.0  ;;  %v13555_v60 = vld [vmem:[#allocation2 + $0x310] ss:$2 sm:$0xff]  ;;  %v13559_v62 = vld [vmem:[#allocation2 + $0x311] ss:$2 sm:$0xff]  ;;  %v13898_v22 = vsel %vm1692_vm2, %v22688_v15, %v13897_v43 }
 0x561   : > { %13210 = vst [vmem:[#allocation2 + $0x338] sm:$0xff] %v19607_v11  ;;  %19056 = vmatpush3.bf16.msra.mxu1 %v21026_v17  ;;  %v13553_v0 = vld [vmem:[#allocation2 + $0x300] ss:$2 sm:$0xff]  ;;  %v13557_v1 = vld [vmem:[#allocation2 + $0x301] ss:$2 sm:$0xff]  ;;  %v13569_v7 = vmax.f32 %v13555_v60, %v13559_v62  ;;  %v22698_v31 = vrot.slane %v22695_v30, 1 }
 0x562   : > { %13208 = vst [vmem:[#allocation2 + $0x328] sm:$0xff] %v19610_v37  ;;  %19057 = vmatprep.subr.bf16.mxu1 %v21027_v32  ;;  %v22675_v54 = vpack.c.bf16 %v13549_v27, %v13548_v49  ;;  %v13568_v16 = vmax.f32 %v13553_v0, %v13557_v1  ;;  %v21030_v35 = vld [vmem:[#allocation5 + $0xc8] sm:$0xff]   ;;  %v14178_v41 = vrot.slane %v22606_v2, 1  ;;  %v21032_v39 = vld [vmem:[#allocation5 + $0xd8] sm:$0xff]   ;;  %v21033_v37 = vld [vmem:[#allocation5 + $0xe0] sm:$0xff]   ;;  %v14182_v2 = vrot.slane %v22626_v46, 1 }
 0x563   : > { %v14173_v36 = vsel %vm3403_vm3, %v14170_v6, %v22698_v31  ;;  %v14140_v60 = vld [vmem:[#allocation4 + $0x50] sm:$0x1]  ;;  %v21037_v62 = vld [vmem:[#allocation5 + $0x100] sm:$0xff]   ;;  %v21039_v43 = vld [vmem:[#allocation5 + $0x110] sm:$0xff]  }
 0x564   : > { %19038 = vmatmul.mubr.bf16.gmra.mrb[116].mxu1 %v13882_v56  ;;  %13551 = vst [vmem:[#allocation4 + $0x58] sm:$0xff] %v22675_v54  ;;  %v14181_v42 = vsel %vm3403_vm3, %v14178_v41, %v14180_v47  ;;  %v14183_v49 = vsel %vm3403_vm3, %v14180_v47, %v14182_v2  ;;  %v21036_v56 = vld [vmem:[#allocation5 + $0xf8] sm:$0xff]   ;;  %v14185_v57 = vsel %vm3403_vm3, %v14182_v2, %v14184_v51  ;;  %v21038_v1 = vld [vmem:[#allocation5 + $0x108] sm:$0xff]   ;;  %v21041_v6 = vld [vmem:[#allocation5 + $0x120] sm:$0xff]  }
 0x565   : > { %19041 = vmatprep.mubr.bf16.mxu1 %v22680_v58  ;;  %19058 = vmatpush3.bf16.msra.mxu1 %v21027_v32  ;;  %v22710_v32 = vld [vmem:[#allocation4 + $0x20] sm:$0xff]  ;;  %v21049_v2 = vld [vmem:[#allocation5 + $0x160] sm:$0xff]  }
 0x566   : > { %19059 = vmatprep.subr.bf16.mxu1 %v21028_v52  ;;  %v22714_v11 = vrot.slane %v22710_v32, 1 }
 0x568   : > { %v13563_v29 = vld [vmem:[#allocation2 + $0x330] ss:$2 sm:$0xff]  ;;  %v13567_v5 = vld [vmem:[#allocation2 + $0x331] ss:$2 sm:$0xff]  ;;  %v22720_v44 = vsel %vm3403_vm3, %v22701_v33, %v22714_v11  ;;  %v14179_v27 = vsel %vm3403_vm3, %v22714_v11, %v14178_v41  ;;  %v21048_v41 = vld [vmem:[#allocation5 + $0x158] sm:$0xff]  }
 0x569   : > { %v13571_v8 = vmax.f32 %v13563_v29, %v13567_v5  ;;  %v13561_v9 = vld [vmem:[#allocation2 + $0x320] ss:$2 sm:$0xff]  ;;  %v13565_v10 = vld [vmem:[#allocation2 + $0x321] ss:$2 sm:$0xff]  ;;  %19060 = vmatpush3.bf16.msra.mxu1 %v21028_v52  ;;  %v22731_v52 = vrot.slane %v22643_v45, 1 }
 0x56a   : > { %v13570_v17 = vmax.f32 %v13561_v9, %v13565_v10  ;;  %19081 = vmatprep.subr.bf16.mxu1 %v21029_v63  ;;  %v21040_v29 = vld [vmem:[#allocation5 + $0x118] sm:$0xff]   ;;  %v22744_v5 = vld [vmem:[#allocation4 + $0x28] sm:$0xff]  ;;  %v14700_v9 = vshll.u32 %v22684_v59, 16 }
 0x56b   : > { %v13573_v19 = vmax.f32 %v13569_v7, %v13571_v8  ;;  %v14187_v40 = vsel %vm3403_vm3, %v14184_v51, %v22731_v52  ;;  %v21042_v7 = vld [vmem:[#allocation5 + $0x128] sm:$0xff]   ;;  %v21043_v8 = vld [vmem:[#allocation5 + $0x130] sm:$0xff]   ;;  %v21044_v10 = vld [vmem:[#allocation5 + $0x138] sm:$0xff]  }
 0x56c   : > { %v13572_v23 = vmax.f32 %v13568_v16, %v13570_v17  ;;  %19042 = vmatmul.mubr.bf16.gmra.mrb[120].mxu1 %v13898_v22  ;;  %v14702_v16 = vrot.slane %v14700_v9, 1  ;;  %v21045_v17 = vld [vmem:[#allocation5 + $0x140] sm:$0xff]   ;;  %v22758_v22 = vld [vmem:[#allocation4 + $0x30] sm:$0xff] }
 0x56d   : > { %v13575_v28 = vadd.f32 %v22639_v20, %v13573_v19  ;;  %19061 = vmatprep.mubr.bf16.mxu1 %v14171_v26  ;;  %v14721_v19 = vshll.u32 %v22710_v32, 16  ;;  %v21046_v26 = vld [vmem:[#allocation5 + $0x148] sm:$0xff]  }
 0x56e   : > { %v13574_v24 = vadd.f32 %v22639_v20, %v13572_v23  ;;  %v22708_v20 = vsel %vm3403_vm3, %v22698_v31, %v22701_v33  ;;  %v21050_v51 = vld [vmem:[#allocation5 + $0x168] sm:$0xff]  }
 0x56f   : > { %v13577_v14 = vmax.f32 %v13575_v28, 0.0 }
 0x570   : > { %v13576_v3 = vmax.f32 %v13574_v24, 0.0 }
 0x572   : > { %v13578_v53 = vpack.c.bf16 %v13577_v14, %v13576_v3  ;;  %v21047_v14 = vld [vmem:[#allocation5 + $0x150] sm:$0xff]   ;;  %v14725_v3 = vshrl.u32 %v22710_v32, 16 }
 0x574   : > { %19062 = vmatmul.mubr.bf16.vlgmr.msra.gmra.mrb[104].mxu1 %v14173_v36  ;;  %13579 = vst [vmem:[#allocation4 + $0x60] sm:$0xff] %v13578_v53 }
 0x575   : > { %19065 = vmatprep.mubr.bf16.mxu1 %v22708_v20  ;;  %19082 = vmatpush3.bf16.msra.mxu1 %v21029_v63  ;;  %v14188_v63 = vrot.slane %v14140_v60, 1  ;;  %v21051_v60 = vld [vmem:[#allocation5 + $0x170] sm:$0xff]  }
 0x576   : > { %19083 = vmatprep.subr.bf16.mxu1 %v21030_v35 }
 0x577   : > { %v14189_v0 = vsel %vm3403_vm3, %v22731_v52, %v14188_v63  ;;  %v14679_v63 = vld [vmem:[#allocation4 + $0x58] sm:$0x1] }
 0x579   : > { %19084 = vmatpush3.bf16.msra.mxu1 %v21030_v35  ;;  %v22769_v35 = vld [vmem:[#allocation4 + $0x38] sm:$0xff] }
 0x57a   : > { %19085 = vmatprep.subr.bf16.mxu1 %v21031_v55 }
 0x57c   : > { %19066 = vmatmul.mubr.bf16.gmra.mrb[108].mxu1 %v22720_v44 }
 0x57d   : > { %19069 = vmatprep.mubr.bf16.mxu1 %v14179_v27  ;;  %19086 = vmatpush3.bf16.msra.mxu1 %v21031_v55 }
 0x57e   : > { %19087 = vmatprep.subr.bf16.mxu1 %v21032_v39 }
 0x581   : > { %19088 = vmatpush3.bf16.msra.mxu1 %v21032_v39  ;;  %v14745_v39 = vshll.u32 %v22769_v35, 16 }
 0x582   : > { %19089 = vmatprep.subr.bf16.mxu1 %v21033_v37 }
 0x583   : > { %v14747_v47 = vrot.slane %v14745_v39, 1  ;;  %v21064_v39 = vld [vmem:[#allocation5 + $0x1d8] sm:$0xff]  }
 0x584   : > { %19070 = vmatmul.mubr.bf16.gmra.mrb[112].mxu1 %v14181_v42  ;;  %v14749_v42 = vshrl.u32 %v22769_v35, 16 }
 0x585   : > { %19073 = vmatprep.mubr.bf16.mxu1 %v14183_v49  ;;  %19090 = vmatpush3.bf16.msra.mxu1 %v21033_v37 }
 0x586   : > { %19091 = vmatprep.subr.bf16.mxu1 %v21034_v48 }
 0x589   : > { %19092 = vmatpush3.bf16.msra.mxu1 %v21034_v48  ;;  %v14741_v48 = vshrl.u32 %v22758_v22, 16 }
 0x58a   : > { %19093 = vmatprep.subr.bf16.mxu1 %v21035_v50 }
 0x58c   : > { %19074 = vmatmul.mubr.bf16.gmra.mrb[116].mxu1 %v14185_v57 }
 0x58d   : > { %19077 = vmatprep.mubr.bf16.mxu1 %v14187_v40  ;;  %19094 = vmatpush3.bf16.msra.mxu1 %v21035_v50  ;;  %v22783_v50 = vor.u32 %v14749_v42, %v14747_v47  ;;  %v14769_v40 = vshll.u32 %v22655_v21, 16 }
 0x58e   : > { %19095 = vmatprep.subr.bf16.mxu1 %v21036_v56 }
 0x58f   : > { %v14756_v57 = vsel %vm1692_vm2, %v22783_v50, %v22670_v38  ;;  %v21053_v38 = vld [vmem:[#allocation5 + $0x180] sm:$0xff]  }
 0x591   : > { %19096 = vmatpush3.bf16.msra.mxu1 %v21036_v56 }
 0x592   : > { %19117 = vmatprep.subr.bf16.mxu1 %v21037_v62 }
 0x594   : > { %19078 = vmatmul.mubr.bf16.gmra.mrb[120].mxu1 %v14189_v0  ;;  %v21052_v0 = vld [vmem:[#allocation5 + $0x178] sm:$0xff]  }
 0x595   : > { %19097 = vmatprep.mubr.bf16.mxu1 %v22684_v59 }
 0x59c   : > { %19098 = vmatmul.mubr.bf16.vlgmr.msra.gmra.mrb[104].mxu1 %v22695_v30 }
 0x59d   : > { %19101 = vmatprep.mubr.bf16.mxu1 %v22740_v34  ;;  %19118 = vmatpush3.bf16.msra.mxu1 %v21037_v62  ;;  %v22793_v62 = vrot.slane %v14769_v40, 1 }
 0x59e   : > { %19119 = vmatprep.subr.bf16.mxu1 %v21038_v1 }
 0x5a1   : > { %19120 = vmatpush3.bf16.msra.mxu1 %v21038_v1  ;;  %v14777_v1 = vshll.u32 %v14679_v63, 16 }
 0x5a2   : > { %19121 = vmatprep.subr.bf16.mxu1 %v21039_v43 }
 0x5a4   : > { %19102 = vmatmul.mubr.bf16.gmra.mrb[108].mxu1 %v22710_v32 }
 0x5a5   : > { %19105 = vmatprep.mubr.bf16.mxu1 %v22744_v5  ;;  %19122 = vmatpush3.bf16.msra.mxu1 %v21039_v43  ;;  %v14772_v43 = vsel %vm1692_vm2, %v22688_v15, %v22793_v62 }
 0x5a6   : > { %19123 = vmatprep.subr.bf16.mxu1 %v21040_v29 }
 0x5a9   : > { %19124 = vmatpush3.bf16.msra.mxu1 %v21040_v29  ;;  %v14773_v29 = vshrl.u32 %v22655_v21, 16 }
 0x5aa   : > { %19125 = vmatprep.subr.bf16.mxu1 %v21041_v6 }
 0x5ac   : > { %19106 = vmatmul.mubr.bf16.gmra.mrb[112].mxu1 %v22620_v61  ;;  %v14698_v61 = vshrl.u32 %v22684_v59, 16  ;;  %v14729_v59 = vshll.u32 %v22744_v5, 16 }
 0x5ad   : > { %19109 = vmatprep.mubr.bf16.mxu1 %v22626_v46  ;;  %19126 = vmatpush3.bf16.msra.mxu1 %v21041_v6  ;;  %v14779_v6 = vrot.slane %v14777_v1, 1  ;;  %v15561_v1 = vld [vmem:[#allocation4 + $0x60] sm:$0x1] }
 0x5ae   : > { %19127 = vmatprep.subr.bf16.mxu1 %v21042_v7  ;;  %v14703_v46 = vor.u32 %v14702_v16, %v14698_v61  ;;  %v14731_v24 = vrot.slane %v14729_v59, 1  ;;  %v21055_v16 = vld [vmem:[#allocation5 + $0x190] sm:$0xff]   ;;  %v15060_v61 = vrot.slane %v22758_v22, 1 }
 0x5af   : > { %v21059_v59 = vld [vmem:[#allocation5 + $0x1b0] sm:$0xff]  }
 0x5b0   : > { %v14708_v18 = vsel %vm1692_vm2, %v14703_v46, %v22567_v12  ;;  %v14737_v12 = vshll.u32 %v22758_v22, 16  ;;  %v21056_v46 = vld [vmem:[#allocation5 + $0x198] sm:$0xff]  }
 0x5b1   : > { %19128 = vmatpush3.bf16.msra.mxu1 %v21042_v7  ;;  %v15012_v7 = vld [vmem:[#allocation4 + $0x8] sm:$0xfe] }
 0x5b2   : > { %19129 = vmatprep.subr.bf16.mxu1 %v21043_v8  ;;  %v14739_v53 = vrot.slane %v14737_v12, 1  ;;  %v15051_v9 = vrot.slane %v15012_v7, 1  ;;  %v15068_v12 = vrot.slane %v22655_v21, 1  ;;  %v15655_v7 = vshrl.u32 %v22675_v54, 16 }
 0x5b4   : > { %19110 = vmatmul.mubr.bf16.gmra.mrb[116].mxu1 %v22632_v25  ;;  %v14717_v25 = vshrl.u32 %v22740_v34, 16  ;;  %v14743_v49 = vor.u32 %v14741_v48, %v14739_v53  ;;  %v15053_v15 = vsel %vm3403_vm3, %v15051_v9, %v22698_v31 }
 0x5b5   : > { %19113 = vmatprep.mubr.bf16.mxu1 %v22643_v45  ;;  %19130 = vmatpush3.bf16.msra.mxu1 %v21043_v8  ;;  %v14723_v45 = vrot.slane %v14721_v19, 1  ;;  %v22801_v8 = vor.u32 %v14773_v29, %v22793_v62  ;;  %v21057_v19 = vld [vmem:[#allocation5 + $0x1a0] sm:$0xff]   ;;  %v15659_v29 = vshll.u32 %v15561_v1, 16 }
 0x5b6   : > { %19131 = vmatprep.subr.bf16.mxu1 %v21044_v10  ;;  %v14719_v23 = vor.u32 %v14717_v25, %v22588_v4  ;;  %v14733_v4 = vshrl.u32 %v22744_v5, 16  ;;  %v22786_v56 = vsel %vm1692_vm2, %v14743_v49, %v14747_v47  ;;  %v15062_v25 = vrot.slane %v22769_v35, 1  ;;  %v21065_v47 = vld [vmem:[#allocation5 + $0x1e0] sm:$0xff]  }
 0x5b7   : > { %v14727_v36 = vor.u32 %v14725_v3, %v14723_v45  ;;  %v15069_v3 = vsel %vm3403_vm3, %v22731_v52, %v15068_v12  ;;  %v15661_v9 = vrot.slane %v15659_v29, 1 }
 0x5b8   : > { %v22764_v28 = vsel %vm1692_vm2, %v14719_v23, %v14723_v45  ;;  %v14735_v55 = vor.u32 %v14733_v4, %v14731_v24  ;;  %v22827_v23 = vsel %vm3403_vm3, %v15060_v61, %v15062_v25  ;;  %v15022_v4 = vld [vmem:[#allocation4 + $0x58] sm:$0x1] }
 0x5b9   : > { %19132 = vmatpush3.bf16.msra.mxu1 %v21044_v10  ;;  %v22774_v27 = vsel %vm1692_vm2, %v14727_v36, %v14731_v24  ;;  %v21054_v10 = vld [vmem:[#allocation5 + $0x188] sm:$0xff]   ;;  %v21060_v24 = vld [vmem:[#allocation5 + $0x1b8] sm:$0xff]   ;;  %v15070_v36 = vrot.slane %v15022_v4, 1 }
 0x5ba   : > { %19153 = vmatprep.subr.bf16.mxu1 %v21045_v17  ;;  %v22778_v37 = vsel %vm1692_vm2, %v14735_v55, %v14739_v53  ;;  %v21061_v53 = vld [vmem:[#allocation5 + $0x1c0] sm:$0xff]  }
 0x5bb   : > { %v15071_v55 = vsel %vm3403_vm3, %v15068_v12, %v15070_v36 }
 0x5bc   : > { %19114 = vmatmul.mubr.bf16.gmra.mrb[120].mxu1 %v22655_v21 }
 0x5bd   : > { %19133 = vmatprep.mubr.bf16.mxu1 %v14708_v18 }
 0x5c4   : > { %19134 = vmatmul.mubr.bf16.vlgmr.msra.gmra.mrb[104].mxu1 %v22593_v13 }
 0x5c5   : > { %19137 = vmatprep.mubr.bf16.mxu1 %v22764_v28  ;;  %19154 = vmatpush3.bf16.msra.mxu1 %v21045_v17  ;;  %v15058_v17 = vrot.slane %v22744_v5, 1 }
 0x5c6   : > { %19155 = vmatprep.subr.bf16.mxu1 %v21046_v26 }
 0x5c7   : > { %v22813_v18 = vsel %vm3403_vm3, %v22714_v11, %v15058_v17  ;;  %v22817_v31 = vsel %vm3403_vm3, %v15058_v17, %v15060_v61  ;;  %v21058_v11 = vld [vmem:[#allocation5 + $0x1a8] sm:$0xff]  }
 0x5c8   : > { %v15902_v61 = vld [vmem:[#allocation4 + $0x50] sm:$0xff] }
 0x5c9   : > { %19156 = vmatpush3.bf16.msra.mxu1 %v21046_v26 }
 0x5ca   : > { %19157 = vmatprep.subr.bf16.mxu1 %v21047_v14 }
 0x5cc   : > { %19138 = vmatmul.mubr.bf16.gmra.mrb[108].mxu1 %v22774_v27 }
 0x5cd   : > { %19141 = vmatprep.mubr.bf16.mxu1 %v22778_v37  ;;  %19158 = vmatpush3.bf16.msra.mxu1 %v21047_v14 }
 0x5ce   : > { %19159 = vmatprep.subr.bf16.mxu1 %v21048_v41 }
 0x5d1   : > { %19160 = vmatpush3.bf16.msra.mxu1 %v21048_v41  ;;  %v21062_v41 = vld [vmem:[#allocation5 + $0x1c8] sm:$0xff]  }
 0x5d2   : > { %19161 = vmatprep.subr.bf16.mxu1 %v21049_v2 }
 0x5d4   : > { %19142 = vmatmul.mubr.bf16.gmra.mrb[112].mxu1 %v22786_v56 }
 0x5d5   : > { %19145 = vmatprep.mubr.bf16.mxu1 %v14756_v57  ;;  %19162 = vmatpush3.bf16.msra.mxu1 %v21049_v2  ;;  %v22849_v2 = vld [vmem:[#allocation4 + $0x48] sm:$0xff]  ;;  %v21074_v57 = vld [vmem:[#allocation5 + $0x228] sm:$0xff]  }
 0x5d6   : > { %19163 = vmatprep.subr.bf16.mxu1 %v21050_v51  ;;  %v15635_v42 = vshll.u32 %v22849_v2, 16  ;;  %v15639_v63 = vshrl.u32 %v22849_v2, 16 }
 0x5d8   : > { %v15637_v49 = vrot.slane %v15635_v42, 1 }
 0x5d9   : > { %19164 = vmatpush3.bf16.msra.mxu1 %v21050_v51 }
 0x5da   : > { %19165 = vmatprep.subr.bf16.mxu1 %v21051_v60 }
 0x5dc   : > { %19146 = vmatmul.mubr.bf16.gmra.mrb[116].mxu1 %v22680_v58  ;;  %v14780_v58 = vsel %vm1692_vm2, %v22801_v8, %v14779_v6 }
 0x5dd   : > { %19149 = vmatprep.mubr.bf16.mxu1 %v14772_v43  ;;  %19166 = vmatpush3.bf16.msra.mxu1 %v21051_v60  ;;  %v15651_v60 = vshll.u32 %v22675_v54, 16  ;;  %v15641_v43 = vor.u32 %v15639_v63, %v15637_v49 }
 0x5de   : > { %19167 = vmatprep.subr.bf16.mxu1 %v21052_v0 }
 0x5e1   : > { %19168 = vmatpush3.bf16.msra.mxu1 %v21052_v0  ;;  %v15653_v0 = vrot.slane %v15651_v60, 1 }
 0x5e2   : > { %19189 = vmatprep.subr.bf16.mxu1 %v21053_v38 }
 0x5e3   : > { %v15654_v6 = vsel %vm1692_vm2, %v22801_v8, %v15653_v0  ;;  %v15946_v8 = vrot.slane %v22849_v2, 1 }
 0x5e4   : > { %19150 = vmatmul.mubr.bf16.gmra.mrb[120].mxu1 %v14780_v58  ;;  %v15894_v58 = vld [vmem:[#allocation4 + $0x10] sm:$0xfe] }
 0x5e5   : > { %19169 = vmatprep.mubr.bf16.mxu1 %v15053_v15  ;;  %v15657_v15 = vor.u32 %v15655_v7, %v15653_v0 }
 0x5ec   : > { %19170 = vmatmul.mubr.bf16.vlgmr.msra.gmra.mrb[104].mxu1 %v22708_v20  ;;  %v22820_v20 = vld [vmem:[#allocation4 + $0x40] sm:$0xff] }
 0x5ed   : > { %19173 = vmatprep.mubr.bf16.mxu1 %v22720_v44  ;;  %19190 = vmatpush3.bf16.msra.mxu1 %v21053_v38  ;;  %v22824_v45 = vrot.slane %v22820_v20, 1  ;;  %v15627_v48 = vshll.u32 %v22820_v20, 16  ;;  %v21076_v38 = vld [vmem:[#allocation5 + $0x238] sm:$0xff]  }
 0x5ee   : > { %19191 = vmatprep.subr.bf16.mxu1 %v21054_v10 }
 0x5ef   : > { %v22832_v26 = vsel %vm3403_vm3, %v15062_v25, %v22824_v45  ;;  %v15067_v14 = vsel %vm3403_vm3, %v22824_v45, %v22731_v52  ;;  %v21063_v52 = vld [vmem:[#allocation5 + $0x1d0] sm:$0xff]   ;;  %v15947_v17 = vsel %vm3403_vm3, %v22824_v45, %v15946_v8 }
 0x5f1   : > { %19192 = vmatpush3.bf16.msra.mxu1 %v21054_v10  ;;  %v15933_v10 = vrot.slane %v15894_v58, 1 }
 0x5f2   : > { %19193 = vmatprep.subr.bf16.mxu1 %v21055_v16 }
 0x5f4   : > { %19174 = vmatmul.mubr.bf16.gmra.mrb[108].mxu1 %v22813_v18 }
 0x5f5   : > { %19177 = vmatprep.mubr.bf16.mxu1 %v22817_v31  ;;  %19194 = vmatpush3.bf16.msra.mxu1 %v21055_v16  ;;  %v15662_v16 = vsel %vm1692_vm2, %v15657_v15, %v15661_v9 }
 0x5f6   : > { %19195 = vmatprep.subr.bf16.mxu1 %v21056_v46 }
 0x5f9   : > { %19196 = vmatpush3.bf16.msra.mxu1 %v21056_v46  ;;  %v15948_v46 = vrot.slane %v15902_v61, 1 }
 0x5fa   : > { %19197 = vmatprep.subr.bf16.mxu1 %v21057_v19 }
 0x5fc   : > { %19178 = vmatmul.mubr.bf16.gmra.mrb[112].mxu1 %v22827_v23 }
 0x5fd   : > { %19181 = vmatprep.mubr.bf16.mxu1 %v22832_v26  ;;  %19198 = vmatpush3.bf16.msra.mxu1 %v21057_v19 }
 0x5fe   : > { %19199 = vmatprep.subr.bf16.mxu1 %v21058_v11 }
 0x601   : > { %19200 = vmatpush3.bf16.msra.mxu1 %v21058_v11 }
 0x602   : > { %19201 = vmatprep.subr.bf16.mxu1 %v21059_v59 }
 0x604   : > { %19182 = vmatmul.mubr.bf16.gmra.mrb[116].mxu1 %v15067_v14 }
 0x605   : > { %19185 = vmatprep.mubr.bf16.mxu1 %v15069_v3  ;;  %19202 = vmatpush3.bf16.msra.mxu1 %v21059_v59 }
 0x606   : > { %19203 = vmatprep.subr.bf16.mxu1 %v21060_v24 }
 0x609   : > { %19204 = vmatpush3.bf16.msra.mxu1 %v21060_v24 }
 0x60a   : > { %19225 = vmatprep.subr.bf16.mxu1 %v21061_v53 }
 0x60c   : > { %19186 = vmatmul.mubr.bf16.gmra.mrb[120].mxu1 %v15071_v55 }
 0x60d   : > { %19205 = vmatprep.mubr.bf16.mxu1 %v22695_v30  ;;  %v21066_v30 = vld [vmem:[#allocation5 + $0x1e8] sm:$0xff]  }
 0x614   : > { %19206 = vmatmul.mubr.bf16.vlgmr.msra.gmra.mrb[104].mxu1 %v22740_v34  ;;  %v21068_v34 = vld [vmem:[#allocation5 + $0x1f8] sm:$0xff]  }
 0x615   : > { %19209 = vmatprep.mubr.bf16.mxu1 %v22710_v32  ;;  %19226 = vmatpush3.bf16.msra.mxu1 %v21061_v53  ;;  %v21067_v32 = vld [vmem:[#allocation5 + $0x1f0] sm:$0xff]  }
 0x616   : > { %19227 = vmatprep.subr.bf16.mxu1 %v21062_v41 }
 0x619   : > { %19228 = vmatpush3.bf16.msra.mxu1 %v21062_v41  ;;  %v22890_v41 = vld [vmem:[%s22913_s4] ss:$0 sm:$0xff] }
 0x61a   : > { %19229 = vmatprep.subr.bf16.mxu1 %v21063_v52 }
 0x61c   : > { %19210 = vmatmul.mubr.bf16.gmra.mrb[108].mxu1 %v22744_v5  ;;  %v21069_v5 = vld [vmem:[#allocation5 + $0x200] sm:$0xff]  }
 0x61d   : > { %19213 = vmatprep.mubr.bf16.mxu1 %v22758_v22  ;;  %19230 = vmatpush3.bf16.msra.mxu1 %v21063_v52  ;;  %v21070_v22 = vld [vmem:[#allocation5 + $0x208] sm:$0xff]  }
 0x61e   : > { %19231 = vmatprep.subr.bf16.mxu1 %v21064_v39 }
 0x621   : > { %19232 = vmatpush3.bf16.msra.mxu1 %v21064_v39 }
 0x622   : > { %19233 = vmatprep.subr.bf16.mxu1 %v21065_v47 }
 0x624   : > { %19214 = vmatmul.mubr.bf16.gmra.mrb[112].mxu1 %v22769_v35  ;;  %v21071_v35 = vld [vmem:[#allocation5 + $0x210] sm:$0xff]  }
 0x625   : > { %19217 = vmatprep.mubr.bf16.mxu1 %v22820_v20  ;;  %19234 = vmatpush3.bf16.msra.mxu1 %v21065_v47 }
 0x626   : > { %19235 = vmatprep.subr.bf16.mxu1 %v21066_v30 }
 0x629   : > { %19236 = vmatpush3.bf16.msra.mxu1 %v21066_v30 }
 0x62a   : > { %19237 = vmatprep.subr.bf16.mxu1 %v21067_v32 }
 0x62c   : > { %19218 = vmatmul.mubr.bf16.gmra.mrb[116].mxu1 %v22849_v2 }
 0x62d   : > { %19221 = vmatprep.mubr.bf16.mxu1 %v22655_v21  ;;  %19238 = vmatpush3.bf16.msra.mxu1 %v21067_v32  ;;  %v21072_v21 = vld [vmem:[#allocation5 + $0x218] sm:$0xff]  }
 0x62e   : > { %19239 = vmatprep.subr.bf16.mxu1 %v21068_v34 }
 0x631   : > { %19240 = vmatpush3.bf16.msra.mxu1 %v21068_v34 }
 0x632   : > { %19261 = vmatprep.subr.bf16.mxu1 %v21069_v5 }
 0x634   : > { %19222 = vmatmul.mubr.bf16.gmra.mrb[120].mxu1 %v22675_v54 }
 0x635   : > { %19241 = vmatprep.mubr.bf16.mxu1 %v22593_v13  ;;  %v15629_v13 = vrot.slane %v15627_v48, 1 }
 0x637   : > { %v15630_v40 = vsel %vm1692_vm2, %v22783_v50, %v15629_v13  ;;  %v15646_v50 = vsel %vm1692_vm2, %v15641_v43, %v22793_v62  ;;  %v15935_v62 = vsel %vm3403_vm3, %v15933_v10, %v22701_v33  ;;  %v15950_v33 = vrot.slane %v22675_v54, 1 }
 0x63c   : > { %19242 = vmatmul.mubr.bf16.vlgmr.msra.gmra.mrb[104].mxu1 %v22764_v28  ;;  %v21073_v28 = vld [vmem:[#allocation5 + $0x220] sm:$0xff]  }
 0x63d   : > { %19245 = vmatprep.mubr.bf16.mxu1 %v22774_v27  ;;  %19262 = vmatpush3.bf16.msra.mxu1 %v21069_v5  ;;  %v15631_v27 = vshrl.u32 %v22820_v20, 16 }
 0x63e   : > { %19263 = vmatprep.subr.bf16.mxu1 %v21070_v22 }
 0x63f   : > { %v15633_v51 = vor.u32 %v15631_v27, %v15629_v13 }
 0x641   : > { %19264 = vmatpush3.bf16.msra.mxu1 %v21070_v22 }
 0x642   : > { %19265 = vmatprep.subr.bf16.mxu1 %v21071_v35 }
 0x644   : > { %19246 = vmatmul.mubr.bf16.gmra.mrb[108].mxu1 %v22778_v37  ;;  %v15638_v37 = vsel %vm1692_vm2, %v15633_v51, %v15637_v49 }
 0x645   : > { %19249 = vmatprep.mubr.bf16.mxu1 %v22786_v56  ;;  %19266 = vmatpush3.bf16.msra.mxu1 %v21071_v35  ;;  %v21075_v56 = vld [vmem:[#allocation5 + $0x230] sm:$0xff]  }
 0x646   : > { %19267 = vmatprep.subr.bf16.mxu1 %v21072_v21 }
 0x649   : > { %19268 = vmatpush3.bf16.msra.mxu1 %v21072_v21 }
 0x64a   : > { %19269 = vmatprep.subr.bf16.mxu1 %v21073_v28 }
 0x64c   : > { %19250 = vmatmul.mubr.bf16.gmra.mrb[112].mxu1 %v15630_v40 }
 0x64d   : > { %19253 = vmatprep.mubr.bf16.mxu1 %v15638_v37  ;;  %19270 = vmatpush3.bf16.msra.mxu1 %v21073_v28 }
 0x64e   : > { %19271 = vmatprep.subr.bf16.mxu1 %v21074_v57 }
 0x651   : > { %19272 = vmatpush3.bf16.msra.mxu1 %v21074_v57 }
 0x652   : > { %19273 = vmatprep.subr.bf16.mxu1 %v21075_v56 }
 0x654   : > { %19254 = vmatmul.mubr.bf16.gmra.mrb[116].mxu1 %v15646_v50 }
 0x655   : > { %19257 = vmatprep.mubr.bf16.mxu1 %v15654_v6  ;;  %19274 = vmatpush3.bf16.msra.mxu1 %v21075_v56 }
 0x656   : > { %19275 = vmatprep.subr.bf16.mxu1 %v21076_v38 }
 0x659   : > { %19276 = vmatpush3.bf16.msra.mxu1 %v21076_v38 }
 0x65c   : > { %19258 = vmatmul.mubr.bf16.gmra.mrb[120].mxu1 %v15662_v16 }
 0x65d   : > { %19277 = vmatprep.mubr.bf16.mxu1 %v15935_v62 }
 0x664   : > { %19278 = vmatmul.mubr.bf16.vlgmr.msra.gmra.mrb[104].mxu1 %v22720_v44  ;;  %v15949_v44 = vsel %vm3403_vm3, %v15946_v8, %v15948_v46 }
 0x665   : > { %19281 = vmatprep.mubr.bf16.mxu1 %v22813_v18  ;;  %v15951_v18 = vsel %vm3403_vm3, %v15948_v46, %v15950_v33 }
 0x66c   : > { %19282 = vmatmul.mubr.bf16.gmra.mrb[108].mxu1 %v22817_v31  ;;  %v15904_v31 = vld [vmem:[#allocation4 + $0x60] sm:$0x1] }
 0x66d   : > { %19285 = vmatprep.mubr.bf16.mxu1 %v22827_v23  ;;  %v15952_v20 = vrot.slane %v15904_v31, 1 }
 0x66f   : > { %v15953_v19 = vsel %vm3403_vm3, %v15950_v33, %v15952_v20 }
 0x674   : > { %19286 = vmatmul.mubr.bf16.gmra.mrb[112].mxu1 %v22832_v26 }
 0x675   : > { %19289 = vmatprep.mubr.bf16.mxu1 %v15947_v17 }
 0x67c   : > { %19290 = vmatmul.mubr.bf16.gmra.mrb[116].mxu1 %v15949_v44 }
 0x67d   : > { %19293 = vmatprep.mubr.bf16.mxu1 %v15951_v18 }
 0x684   : > { %19294 = vmatmul.mubr.bf16.gmra.mrb[120].mxu1 %v15953_v19 }
 0x737   : > { %v19279_v25 = vpop.f32.mrb[104].mxu1 }
 0x738   : > { %16167 = vst [vmem:[#allocation3 + $0x10] sm:$0xff] %v19279_v25  ;;  %v16046_v11 = vpop.f32.mrb[105].mxu1 }
 0x739   : > { %16165 = vst [vmem:[#allocation3] sm:$0xff] %v16046_v11  ;;  %v19280_v45 = vpop.f32.mrb[106].mxu1 }
 0x73a   : > { %16168 = vst [vmem:[#allocation3 + $0x18] sm:$0xff] %v19280_v45  ;;  %v16049_v23 = vpop.f32.mrb[107].mxu1 }
 0x73b   : > { %16166 = vst [vmem:[#allocation3 + $0x8] sm:$0xff] %v16049_v23 }
 0x73f   : > { %v19283_v54 = vpop.f32.mrb[108].mxu1 }
 0x740   : > { %16171 = vst [vmem:[#allocation3 + $0x30] sm:$0xff] %v19283_v54  ;;  %v16062_v26 = vpop.f32.mrb[109].mxu1 }
 0x741   : > { %v16189_v59 = vld [vmem:[#allocation3 + $0x10] ss:$2 sm:$0xff]  ;;  %v16191_v12 = vld [vmem:[#allocation3 + $0x11] ss:$2 sm:$0xff]  ;;  %16169 = vst [vmem:[#allocation3 + $0x20] sm:$0xff] %v16062_v26  ;;  %v19284_v24 = vpop.f32.mrb[110].mxu1 }
 0x742   : > { %v16185_v14 = vld [vmem:[#allocation3] ss:$2 sm:$0xff]  ;;  %v16187_v3 = vld [vmem:[#allocation3 + $0x1] ss:$2 sm:$0xff]  ;;  %16172 = vst [vmem:[#allocation3 + $0x38] sm:$0xff] %v19284_v24  ;;  %v16065_v4 = vpop.f32.mrb[111].mxu1  ;;  %v16193_v53 = vmax.f32 %v16189_v59, %v16191_v12 }
 0x743   : > { %16170 = vst [vmem:[#allocation3 + $0x28] sm:$0xff] %v16065_v4  ;;  %v16192_v36 = vmax.f32 %v16185_v14, %v16187_v3 }
 0x745   : > { %v16194_v52 = vmax.f32 %v16192_v36, %v16193_v53 }
 0x747   : > { %v19287_v55 = vpop.f32.mrb[112].mxu1  ;;  %v16245_v21 = vadd.f32 %v22890_v41, %v16194_v52 }
 0x748   : > { %16175 = vst [vmem:[#allocation3 + $0x50] sm:$0xff] %v19287_v55  ;;  %v16078_v39 = vpop.f32.mrb[113].mxu1 }
 0x749   : > { %v16200_v47 = vld [vmem:[#allocation3 + $0x30] ss:$2 sm:$0xff]  ;;  %v16202_v30 = vld [vmem:[#allocation3 + $0x31] ss:$2 sm:$0xff]  ;;  %16173 = vst [vmem:[#allocation3 + $0x40] sm:$0xff] %v16078_v39  ;;  %v19288_v32 = vpop.f32.mrb[114].mxu1 }
 0x74a   : > { %v16204_v34 = vmax.f32 %v16200_v47, %v16202_v30  ;;  %v16196_v2 = vld [vmem:[#allocation3 + $0x20] ss:$2 sm:$0xff]  ;;  %v16198_v5 = vld [vmem:[#allocation3 + $0x21] ss:$2 sm:$0xff]  ;;  %16176 = vst [vmem:[#allocation3 + $0x58] sm:$0xff] %v19288_v32  ;;  %v16081_v22 = vpop.f32.mrb[115].mxu1 }
 0x74b   : > { %v16203_v35 = vmax.f32 %v16196_v2, %v16198_v5  ;;  %16174 = vst [vmem:[#allocation3 + $0x48] sm:$0xff] %v16081_v22  ;;  %v16250_v28 = vmax.f32 %v16245_v21, 0.0 }
 0x74d   : > { %v16205_v48 = vmax.f32 %v16203_v35, %v16204_v34 }
 0x74f   : > { %v16246_v42 = vadd.f32 %v22890_v41, %v16205_v48  ;;  %v19291_v13 = vpop.f32.mrb[116].mxu1 }
 0x750   : > { %16179 = vst [vmem:[#allocation3 + $0x70] sm:$0xff] %v19291_v13  ;;  %v16094_v27 = vpop.f32.mrb[117].mxu1 }
 0x751   : > { %v16251_v49 = vmax.f32 %v16246_v42, 0.0  ;;  %v16211_v51 = vld [vmem:[#allocation3 + $0x50] ss:$2 sm:$0xff]  ;;  %v16213_v57 = vld [vmem:[#allocation3 + $0x51] ss:$2 sm:$0xff]  ;;  %16177 = vst [vmem:[#allocation3 + $0x60] sm:$0xff] %v16094_v27 }
 0x752   : > { %v19292_v40 = vpop.f32.mrb[118].mxu1  ;;  %v16207_v37 = vld [vmem:[#allocation3 + $0x40] ss:$2 sm:$0xff]  ;;  %v16209_v60 = vld [vmem:[#allocation3 + $0x41] ss:$2 sm:$0xff]  ;;  %v16215_v0 = vmax.f32 %v16211_v51, %v16213_v57 }
 0x753   : > { %16180 = vst [vmem:[#allocation3 + $0x78] sm:$0xff] %v19292_v40  ;;  %v16097_v56 = vpop.f32.mrb[119].mxu1  ;;  %v17372_v63 = vpack.c.bf16 %v16251_v49, %v16250_v28  ;;  %v16214_v1 = vmax.f32 %v16207_v37, %v16209_v60 }
 0x754   : > { %16178 = vst [vmem:[#allocation3 + $0x68] sm:$0xff] %v16097_v56 }
 0x755   : > { %17373 = vst [vmem:[%s22898_s27] sm:$0xff] %v17372_v63   ;;  %v16216_v50 = vmax.f32 %v16214_v1, %v16215_v0 }
 0x757   : > { %v19295_v43 = vpop.f32.mrb[120].mxu1  ;;  %v16247_v62 = vadd.f32 %v22890_v41, %v16216_v50 }
 0x758   : > { %16183 = vst [vmem:[#allocation3 + $0x90] sm:$0xff] %v19295_v43  ;;  %v16110_v38 = vpop.f32.mrb[121].mxu1 }
 0x759   : > { %16181 = vst [vmem:[#allocation3 + $0x80] sm:$0xff] %v16110_v38  ;;  %v19296_v7 = vpop.f32.mrb[122].mxu1  ;;  %v16252_v61 = vmax.f32 %v16247_v62, 0.0 }
 0x75a   : > { %v16222_v29 = vld [vmem:[#allocation3 + $0x70] ss:$2 sm:$0xff]  ;;  %v16224_v6 = vld [vmem:[#allocation3 + $0x71] ss:$2 sm:$0xff]  ;;  %16184 = vst [vmem:[#allocation3 + $0x98] sm:$0xff] %v19296_v7  ;;  %v16113_v10 = vpop.f32.mrb[123].mxu1 }
 0x75b   : > { %v16226_v9 = vmax.f32 %v16222_v29, %v16224_v6  ;;  %v16218_v58 = vld [vmem:[#allocation3 + $0x60] ss:$2 sm:$0xff]  ;;  %v16220_v15 = vld [vmem:[#allocation3 + $0x61] ss:$2 sm:$0xff]  ;;  %16182 = vst [vmem:[#allocation3 + $0x88] sm:$0xff] %v16113_v10 }
 0x75c   : > { %v16225_v16 = vmax.f32 %v16218_v58, %v16220_v15 }
 0x75e   : > { %v16227_v8 = vmax.f32 %v16225_v16, %v16226_v9 }
 0x760   : > { %v16248_v17 = vadd.f32 %v22890_v41, %v16227_v8 }
 0x761   : > { %v16233_v33 = vld [vmem:[#allocation3 + $0x90] ss:$2 sm:$0xff]  ;;  %v16235_v44 = vld [vmem:[#allocation3 + $0x91] ss:$2 sm:$0xff] }
 0x762   : > { %v16253_v46 = vmax.f32 %v16248_v17, 0.0  ;;  %v16237_v18 = vmax.f32 %v16233_v33, %v16235_v44  ;;  %v16229_v31 = vld [vmem:[#allocation3 + $0x80] ss:$2 sm:$0xff]  ;;  %v16231_v20 = vld [vmem:[#allocation3 + $0x81] ss:$2 sm:$0xff] }
 0x763   : > { %v16236_v25 = vmax.f32 %v16229_v31, %v16231_v20 }
 0x764   : > { %v17377_v19 = vpack.c.bf16 %v16253_v46, %v16252_v61 }
 0x765   : > { %v16238_v11 = vmax.f32 %v16236_v25, %v16237_v18 }
 0x766   : > { %17379 = vst [vmem:[%s22898_s27 + $0x8] sm:$0xff] %v17377_v19  }
 0x767   : > { %v16249_v45 = vadd.f32 %v22890_v41, %v16238_v11 }
 0x769   : > { %v16254_v23 = vmax.f32 %v16249_v45, 0.0 }
 0x76b   : > { %v16259_v54 = vpack.c.bf16 %v16254_v23, %v16254_v23 }
 0x76d   : > { %16264 = vst [vmem:[%s22898_s27 + $0x10] sm:$0xf] %v16259_v54 }
 0x76e PF: > { %s16_s18 = sadd.s32 1, %s21121_s18  }
 0x76f   : > { %p13_p3 = scmp.ge.s32.totalorder %s16_s18, 4  }
 0x771   :  { %15 = sbr.rel (!%p13_p3) target bundleno = 1 (0x1), region = 213 }
 0x778   :  { %16286 = vsyncpa [#allocation6], 1 }
 0x779   :  { %16288 = vsyncpa [#allocation6 + $0x1], 1 }

</bundles_post_ra>
